<compile_context>
chip_gen: v7x
topology: tpu7x:2x2x1
jax: 0.10.0
libtpu: 0.0.40
codegen_flags: <defaults>
</compile_context>

<pallas_src>
import math
from functools import partial

import jax
import jax.numpy as jnp
from jax.experimental import pallas as pl
from jax.experimental.pallas import tpu as pltpu

NEG_INF = -1e9
LN_EPS = 1e-5


# ----------------------------- in-kernel helpers -----------------------------

def _ln(x, g, b, eps):
    """Layernorm over the last axis (f32); g/b are (1, D)."""
    mu = jnp.mean(x, axis=-1, keepdims=True)
    xc = x - mu
    var = jnp.mean(xc * xc, axis=-1, keepdims=True)
    return xc * jax.lax.rsqrt(var + eps) * g + b


def _project_heads(x, w_h, b_h):
    """Head-major projection.

    x: (S, D) f32, w_h: (G, D, Dh) bf16, b_h: (G, 1, Dh) f32  ->  (G, S, Dh) f32.
    One batched MXU matmul; no lane slicing, no concat.
    """
    G = w_h.shape[0]
    xb = jnp.broadcast_to(x.astype(jnp.bfloat16)[None, :, :], (G,) + x.shape)
    y = jnp.einsum("gsd,gde->gse", xb, w_h, preferred_element_type=jnp.float32)
    return y + b_h


def _mha(q3, k3, v3, mask_add, scale):
    """Batched multi-head attention.

    q3: (H, Sq, Dh), k3/v3: (H, Sk, Dh) f32; mask_add broadcastable to (H, Sq, Sk).
    """
    s = jnp.einsum("hqd,hkd->hqk", q3.astype(jnp.bfloat16), k3.astype(jnp.bfloat16),
                   preferred_element_type=jnp.float32)
    s = s * scale + mask_add
    m = jnp.max(s, axis=-1, keepdims=True)
    p = jnp.exp(s - m)
    denom = jnp.sum(p, axis=-1, keepdims=True)
    p = p * pl.reciprocal(denom, approx=True)        # EUP divide (inference-grade)
    return jnp.einsum("hqk,hkd->hqd", p.astype(jnp.bfloat16), v3.astype(jnp.bfloat16),
                      preferred_element_type=jnp.float32)


def _attn_out(o3, wo_h, bo):
    """Head merge + output projection: (H,S,Dh) x (H,Dh,D) -> sum_h -> (S,D)."""
    t = jnp.einsum("hqe,hed->hqd", o3.astype(jnp.bfloat16), wo_h,
                   preferred_element_type=jnp.float32)
    return jnp.sum(t, axis=0) + bo


def _ffn(x, w1, b1, w2, b2):
    h = jnp.dot(x.astype(jnp.bfloat16), w1, preferred_element_type=jnp.float32) + b1
    h = jnp.maximum(h, 0.0)                          # ReLU in f32
    return jnp.dot(h.astype(jnp.bfloat16), w2, preferred_element_type=jnp.float32) + b2


def _embed(ids_col, emb_table, pe, emb_scale):
    """In-kernel embedding gather via one-hot MXU matmul.

    ids_col: (S, 1) int32, emb_table: (V, D) bf16, pe: (S, D) f32 -> (S, D) f32.
    """
    S = ids_col.shape[0]
    V = emb_table.shape[0]
    iota_v = jax.lax.broadcasted_iota(jnp.int32, (S, V), 1)
    onehot = jnp.where(iota_v == ids_col, 1.0, 0.0).astype(jnp.bfloat16)
    x = jnp.dot(onehot, emb_table, preferred_element_type=jnp.float32)
    return x * emb_scale + pe


# ----------------------------- whole-model fused kernel -----------------------------

def _transformer_kernel(
    # per-batch inputs
    src_ids_ref, tgt_ids_ref, key_valid_ref,
    # embeddings / positional encodings
    src_emb_ref, tgt_emb_ref, pe_src_ref, pe_tgt_ref,
    # encoder stacked weights (leading axis = layer)
    e_wqkv_ref, e_bqkv_ref, e_wo_ref, e_bo_ref,
    e_ln1g_ref, e_ln1b_ref,
    e_w1_ref, e_b1_ref, e_w2_ref, e_b2_ref,
    e_ln2g_ref, e_ln2b_ref,
    # decoder stacked weights (leading axis = layer)
    d_wqkv_ref, d_bqkv_ref, d_wo_ref, d_bo_ref,
    d_ln1g_ref, d_ln1b_ref,
    d_cwq_ref, d_cbq_ref, d_cwkv_ref, d_cbkv_ref, d_cwo_ref, d_cbo_ref,
    d_ln2g_ref, d_ln2b_ref,
    d_w1_ref, d_b1_ref, d_w2_ref, d_b2_ref,
    d_ln3g_ref, d_ln3b_ref,
    # lane-padded vocab projection
    out_w_ref, out_b_ref,
    # output
    logits_ref,
    *, num_heads, eps):

    H = num_heads
    D = pe_src_ref.shape[-1]
    Dh = D // H
    scale = 1.0 / math.sqrt(Dh)
    emb_scale = math.sqrt(D)
    n_enc = e_wqkv_ref.shape[0]
    n_dec = d_wqkv_ref.shape[0]
    S_src = pe_src_ref.shape[0]
    S_tgt = pe_tgt_ref.shape[0]

    # Additive source key-padding mask (True/1.0 = valid token).
    pad_add = (1.0 - key_valid_ref[0]) * NEG_INF          # (1, S_src)

    # Causal mask, built once per grid step.
    row = jax.lax.broadcasted_iota(jnp.int32, (S_tgt, S_tgt), 0)
    col = jax.lax.broadcasted_iota(jnp.int32, (S_tgt, S_tgt), 1)
    causal_add = jnp.where(col <= row, 0.0, NEG_INF)      # (S_tgt, S_tgt) f32

    # ---------------- encoder ----------------
    x = _embed(src_ids_ref[0], src_emb_ref[...], pe_src_ref[...], emb_scale)
    for l in range(n_enc):                                 # static unroll over layers
        qkv = _project_heads(x, e_wqkv_ref[l], e_bqkv_ref[l])      # (3H, S_src, Dh)
        attn = _attn_out(
            _mha(qkv[0:H], qkv[H:2 * H], qkv[2 * H:3 * H], pad_add, scale),
            e_wo_ref[l], e_bo_ref[l])
        x = _ln(x + attn, e_ln1g_ref[l], e_ln1b_ref[l], eps)
        f = _ffn(x, e_w1_ref[l], e_b1_ref[l], e_w2_ref[l], e_b2_ref[l])
        x = _ln(x + f, e_ln2g_ref[l], e_ln2b_ref[l], eps)
    enc = x

    # ---------------- decoder ----------------
    y = _embed(tgt_ids_ref[0], tgt_emb_ref[...], pe_tgt_ref[...], emb_scale)
    for l in range(n_dec):
        # masked self attention
        qkv = _project_heads(y, d_wqkv_ref[l], d_bqkv_ref[l])      # (3H, S_tgt, Dh)
        attn = _attn_out(
            _mha(qkv[0:H], qkv[H:2 * H], qkv[2 * H:3 * H], causal_add, scale),
            d_wo_ref[l], d_bo_ref[l])
        y = _ln(y + attn, d_ln1g_ref[l], d_ln1b_ref[l], eps)
        # cross attention over the (VMEM-resident) encoder output
        q3 = _project_heads(y, d_cwq_ref[l], d_cbq_ref[l])          # (H, S_tgt, Dh)
        kv = _project_heads(enc, d_cwkv_ref[l], d_cbkv_ref[l])      # (2H, S_src, Dh)
        cattn = _attn_out(
            _mha(q3, kv[0:H], kv[H:2 * H], pad_add, scale),
            d_cwo_ref[l], d_cbo_ref[l])
        y = _ln(y + cattn, d_ln2g_ref[l], d_ln2b_ref[l], eps)
        # feed forward
        f = _ffn(y, d_w1_ref[l], d_b1_ref[l], d_w2_ref[l], d_b2_ref[l])
        y = _ln(y + f, d_ln3g_ref[l], d_ln3b_ref[l], eps)

    # ---------------- vocab projection (lane-dense, Vp multiple of 128) ---------
    logits_ref[0] = (jnp.dot(y.astype(jnp.bfloat16), out_w_ref[...],
                             preferred_element_type=jnp.float32) + out_b_ref[...])


# ----------------------------- pallas_call wrapper -----------------------------

def transformer_forward(params, src_ids, tgt_ids, src_padding_mask, num_heads):
    D = params["pe"].shape[1]
    B, S_src = src_ids.shape
    S_tgt = tgt_ids.shape[1]
    V = params["tgt_emb"].shape[0]
    Vp = params["out_w"].shape[1]

    pe_src = params["pe"][:S_src]
    pe_tgt = params["pe"][:S_tgt]

    src_ids_in = src_ids.astype(jnp.int32).reshape(B, S_src, 1)
    tgt_ids_in = tgt_ids.astype(jnp.int32).reshape(B, S_tgt, 1)
    # True = valid token (NOTE: inverted vs torch's src_key_padding_mask).
    key_valid = src_padding_mask.astype(jnp.float32).reshape(B, 1, S_src)

    def batch3(shape):
        return pl.BlockSpec(shape, lambda b: (b, 0, 0))

    def full(arr):
        n = arr.ndim
        return pl.BlockSpec(arr.shape, lambda b, n=n: (0,) * n)

    weight_args = [
        params["src_emb"], params["tgt_emb"], pe_src, pe_tgt,
        params["e_wqkv"], params["e_bqkv"], params["e_wo"], params["e_bo"],
        params["e_ln1g"], params["e_ln1b"],
        params["e_w1"], params["e_b1"], params["e_w2"], params["e_b2"],
        params["e_ln2g"], params["e_ln2b"],
        params["d_wqkv"], params["d_bqkv"], params["d_wo"], params["d_bo"],
        params["d_ln1g"], params["d_ln1b"],
        params["d_cwq"], params["d_cbq"], params["d_cwkv"], params["d_cbkv"],
        params["d_cwo"], params["d_cbo"],
        params["d_ln2g"], params["d_ln2b"],
        params["d_w1"], params["d_b1"], params["d_w2"], params["d_b2"],
        params["d_ln3g"], params["d_ln3b"],
        params["out_w"], params["out_b"],
    ]

    in_specs = ([batch3((1, S_src, 1)), batch3((1, S_tgt, 1)), batch3((1, 1, S_src))]
                + [full(a) for a in weight_args])

    logits_pad = pl.pallas_call(
        partial(_transformer_kernel, num_heads=num_heads, eps=LN_EPS),
        out_shape=jax.ShapeDtypeStruct((B, S_tgt, Vp), jnp.float32),
        grid=(B,),
        in_specs=in_specs,
        out_specs=pl.BlockSpec((1, S_tgt, Vp), lambda b: (b, 0, 0)),
        compiler_params=pltpu.CompilerParams(dimension_semantics=("parallel",)),
    )(src_ids_in, tgt_ids_in, key_valid, *weight_args)

    return logits_pad[:, :, :V]


# ----------------------------- deterministic parameter init -----------------------------

def sinusoidal_pe(max_len, d):
    pos = jnp.arange(max_len, dtype=jnp.float32)[:, None]
    i = jnp.arange(0, d, 2, dtype=jnp.float32)
    div = jnp.exp(-math.log(10000.0) * i / d)
    pe = jnp.zeros((max_len, d), jnp.float32)
    pe = pe.at[:, 0::2].set(jnp.sin(pos * div))
    pe = pe.at[:, 1::2].set(jnp.cos(pos * div))
    return pe


def init_params(key, src_vocab, tgt_vocab, D, ff_dim, n_enc, n_dec, max_seq_len,
                num_heads):
    H = num_heads
    Dh = D // H
    cnt = [0]

    def nxt():
        cnt[0] += 1
        return jax.random.fold_in(key, cnt[0])

    def w(shape):
        # MXU operand weights stored in bf16 (native MXU input dtype).
        return (0.02 * jax.random.normal(nxt(), shape)).astype(jnp.bfloat16)

    def zeros(*s):
        return jnp.zeros(s, jnp.float32)

    def ones(*s):
        return jnp.ones(s, jnp.float32)

    # Lane-pad the vocab projection to a multiple of 128 (padded logits are 0
    # and sliced off in the wrapper).
    Vp = ((tgt_vocab + 127) // 128) * 128
    out_w = jnp.zeros((D, Vp), jnp.float32)
    out_w = out_w.at[:, :tgt_vocab].set(0.02 * jax.random.normal(nxt(), (D, tgt_vocab)))

    return dict(
        src_emb=w((src_vocab, D)),
        tgt_emb=w((tgt_vocab, D)),
        pe=sinusoidal_pe(max_seq_len, D),
        # ---- encoder stack (leading axis = layer) ----
        e_wqkv=w((n_enc, 3 * H, D, Dh)), e_bqkv=zeros(n_enc, 3 * H, 1, Dh),
        e_wo=w((n_enc, H, Dh, D)), e_bo=zeros(n_enc, 1, D),
        e_ln1g=ones(n_enc, 1, D), e_ln1b=zeros(n_enc, 1, D),
        e_w1=w((n_enc, D, ff_dim)), e_b1=zeros(n_enc, 1, ff_dim),
        e_w2=w((n_enc, ff_dim, D)), e_b2=zeros(n_enc, 1, D),
        e_ln2g=ones(n_enc, 1, D), e_ln2b=zeros(n_enc, 1, D),
        # ---- decoder stack (leading axis = layer) ----
        d_wqkv=w((n_dec, 3 * H, D, Dh)), d_bqkv=zeros(n_dec, 3 * H, 1, Dh),
        d_wo=w((n_dec, H, Dh, D)), d_bo=zeros(n_dec, 1, D),
        d_ln1g=ones(n_dec, 1, D), d_ln1b=zeros(n_dec, 1, D),
        d_cwq=w((n_dec, H, D, Dh)), d_cbq=zeros(n_dec, H, 1, Dh),
        d_cwkv=w((n_dec, 2 * H, D, Dh)), d_cbkv=zeros(n_dec, 2 * H, 1, Dh),
        d_cwo=w((n_dec, H, Dh, D)), d_cbo=zeros(n_dec, 1, D),
        d_ln2g=ones(n_dec, 1, D), d_ln2b=zeros(n_dec, 1, D),
        d_w1=w((n_dec, D, ff_dim)), d_b1=zeros(n_dec, 1, ff_dim),
        d_w2=w((n_dec, ff_dim, D)), d_b2=zeros(n_dec, 1, D),
        d_ln3g=ones(n_dec, 1, D), d_ln3b=zeros(n_dec, 1, D),
        # ---- lane-padded vocab projection ----
        out_w=out_w.astype(jnp.bfloat16),
        out_b=zeros(1, Vp),
    )


# ----------------------------- main -----------------------------

if __name__ == "__main__":
    src_vocab, tgt_vocab = 48, 48
    embed_dim, num_heads, ff_dim = 32, 4, 64
    num_enc, num_dec, max_seq_len = 2, 2, 16
    B, S_src, S_tgt = 2, 8, 8

    key = jax.random.PRNGKey(0)
    kp, ks, kt = jax.random.split(key, 3)
    params = init_params(kp, src_vocab, tgt_vocab, embed_dim, ff_dim,
                         num_enc, num_dec, max_seq_len, num_heads)

    src_ids = jax.random.randint(ks, (B, S_src), 0, src_vocab, dtype=jnp.int32)
    tgt_ids = jax.random.randint(kt, (B, S_tgt), 0, tgt_vocab, dtype=jnp.int32)
    src_padding_mask = jnp.ones((B, S_src), dtype=bool)   # True = valid token

    fwd = jax.jit(transformer_forward, static_argnums=(4,))
    logits = fwd(params, src_ids, tgt_ids, src_padding_mask, num_heads)
    logits = jax.block_until_ready(logits)

    assert logits.shape == (B, S_tgt, tgt_vocab)
    assert bool(jnp.all(jnp.isfinite(logits)))
    print("KERNEL_OK")
</pallas_src>

<mosaic_0001>
module attributes {stable_mosaic.version = 11 : i64} {
  func.func @_transformer_kernel(%arg0: i32, %arg1: memref<1x8x1xi32, #tpu.memory_space<vmem>>, %arg2: memref<1x8x1xi32, #tpu.memory_space<vmem>>, %arg3: memref<1x1x8xf32, #tpu.memory_space<vmem>>, %arg4: memref<48x32xbf16, #tpu.memory_space<vmem>>, %arg5: memref<48x32xbf16, #tpu.memory_space<vmem>>, %arg6: memref<8x32xf32, #tpu.memory_space<vmem>>, %arg7: memref<8x32xf32, #tpu.memory_space<vmem>>, %arg8: memref<2x12x32x8xbf16, #tpu.memory_space<vmem>>, %arg9: memref<2x12x1x8xf32, #tpu.memory_space<vmem>>, %arg10: memref<2x4x8x32xbf16, #tpu.memory_space<vmem>>, %arg11: memref<2x1x32xf32, #tpu.memory_space<vmem>>, %arg12: memref<2x1x32xf32, #tpu.memory_space<vmem>>, %arg13: memref<2x1x32xf32, #tpu.memory_space<vmem>>, %arg14: memref<2x32x64xbf16, #tpu.memory_space<vmem>>, %arg15: memref<2x1x64xf32, #tpu.memory_space<vmem>>, %arg16: memref<2x64x32xbf16, #tpu.memory_space<vmem>>, %arg17: memref<2x1x32xf32, #tpu.memory_space<vmem>>, %arg18: memref<2x1x32xf32, #tpu.memory_space<vmem>>, %arg19: memref<2x1x32xf32, #tpu.memory_space<vmem>>, %arg20: memref<2x12x32x8xbf16, #tpu.memory_space<vmem>>, %arg21: memref<2x12x1x8xf32, #tpu.memory_space<vmem>>, %arg22: memref<2x4x8x32xbf16, #tpu.memory_space<vmem>>, %arg23: memref<2x1x32xf32, #tpu.memory_space<vmem>>, %arg24: memref<2x1x32xf32, #tpu.memory_space<vmem>>, %arg25: memref<2x1x32xf32, #tpu.memory_space<vmem>>, %arg26: memref<2x4x32x8xbf16, #tpu.memory_space<vmem>>, %arg27: memref<2x4x1x8xf32, #tpu.memory_space<vmem>>, %arg28: memref<2x8x32x8xbf16, #tpu.memory_space<vmem>>, %arg29: memref<2x8x1x8xf32, #tpu.memory_space<vmem>>, %arg30: memref<2x4x8x32xbf16, #tpu.memory_space<vmem>>, %arg31: memref<2x1x32xf32, #tpu.memory_space<vmem>>, %arg32: memref<2x1x32xf32, #tpu.memory_space<vmem>>, %arg33: memref<2x1x32xf32, #tpu.memory_space<vmem>>, %arg34: memref<2x32x64xbf16, #tpu.memory_space<vmem>>, %arg35: memref<2x1x64xf32, #tpu.memory_space<vmem>>, %arg36: memref<2x64x32xbf16, #tpu.memory_space<vmem>>, %arg37: memref<2x1x32xf32, #tpu.memory_space<vmem>>, %arg38: memref<2x1x32xf32, #tpu.memory_space<vmem>>, %arg39: memref<2x1x32xf32, #tpu.memory_space<vmem>>, %arg40: memref<32x128xbf16, #tpu.memory_space<vmem>>, %arg41: memref<1x128xf32, #tpu.memory_space<vmem>>, %arg42: memref<1x8x128xf32, #tpu.memory_space<vmem>>) attributes {dimension_semantics = [#tpu.dimension_semantics<parallel>], iteration_bounds = array<i64: 2>, scalar_prefetch = 0 : i64, scratch_operands = 0 : i64, tpu.core_type = #tpu.core_type<tc>, window_params = [{transform_indices = @transform_0, window_bounds = array<i64: 1, 8, 1>}, {transform_indices = @transform_1, window_bounds = array<i64: 1, 8, 1>}, {transform_indices = @transform_2, window_bounds = array<i64: 1, 1, 8>}, {pipeline_mode = #tpu.pipeline_mode<synchronous>, transform_indices = @transform_3, window_bounds = array<i64: 48, 32>}, {pipeline_mode = #tpu.pipeline_mode<synchronous>, transform_indices = @transform_4, window_bounds = array<i64: 48, 32>}, {pipeline_mode = #tpu.pipeline_mode<synchronous>, transform_indices = @transform_5, window_bounds = array<i64: 8, 32>}, {pipeline_mode = #tpu.pipeline_mode<synchronous>, transform_indices = @transform_6, window_bounds = array<i64: 8, 32>}, {pipeline_mode = #tpu.pipeline_mode<synchronous>, transform_indices = @transform_7, window_bounds = array<i64: 2, 12, 32, 8>}, {pipeline_mode = #tpu.pipeline_mode<synchronous>, transform_indices = @transform_8, window_bounds = array<i64: 2, 12, 1, 8>}, {pipeline_mode = #tpu.pipeline_mode<synchronous>, transform_indices = @transform_9, window_bounds = array<i64: 2, 4, 8, 32>}, {pipeline_mode = #tpu.pipeline_mode<synchronous>, transform_indices = @transform_10, window_bounds = array<i64: 2, 1, 32>}, {pipeline_mode = #tpu.pipeline_mode<synchronous>, transform_indices = @transform_11, window_bounds = array<i64: 2, 1, 32>}, {pipeline_mode = #tpu.pipeline_mode<synchronous>, transform_indices = @transform_12, window_bounds = array<i64: 2, 1, 32>}, {pipeline_mode = #tpu.pipeline_mode<synchronous>, transform_indices = @transform_13, window_bounds = array<i64: 2, 32, 64>}, {pipeline_mode = #tpu.pipeline_mode<synchronous>, transform_indices = @transform_14, window_bounds = array<i64: 2, 1, 64>}, {pipeline_mode = #tpu.pipeline_mode<synchronous>, transform_indices = @transform_15, window_bounds = array<i64: 2, 64, 32>}, {pipeline_mode = #tpu.pipeline_mode<synchronous>, transform_indices = @transform_16, window_bounds = array<i64: 2, 1, 32>}, {pipeline_mode = #tpu.pipeline_mode<synchronous>, transform_indices = @transform_17, window_bounds = array<i64: 2, 1, 32>}, {pipeline_mode = #tpu.pipeline_mode<synchronous>, transform_indices = @transform_18, window_bounds = array<i64: 2, 1, 32>}, {pipeline_mode = #tpu.pipeline_mode<synchronous>, transform_indices = @transform_19, window_bounds = array<i64: 2, 12, 32, 8>}, {pipeline_mode = #tpu.pipeline_mode<synchronous>, transform_indices = @transform_20, window_bounds = array<i64: 2, 12, 1, 8>}, {pipeline_mode = #tpu.pipeline_mode<synchronous>, transform_indices = @transform_21, window_bounds = array<i64: 2, 4, 8, 32>}, {pipeline_mode = #tpu.pipeline_mode<synchronous>, transform_indices = @transform_22, window_bounds = array<i64: 2, 1, 32>}, {pipeline_mode = #tpu.pipeline_mode<synchronous>, transform_indices = @transform_23, window_bounds = array<i64: 2, 1, 32>}, {pipeline_mode = #tpu.pipeline_mode<synchronous>, transform_indices = @transform_24, window_bounds = array<i64: 2, 1, 32>}, {pipeline_mode = #tpu.pipeline_mode<synchronous>, transform_indices = @transform_25, window_bounds = array<i64: 2, 4, 32, 8>}, {pipeline_mode = #tpu.pipeline_mode<synchronous>, transform_indices = @transform_26, window_bounds = array<i64: 2, 4, 1, 8>}, {pipeline_mode = #tpu.pipeline_mode<synchronous>, transform_indices = @transform_27, window_bounds = array<i64: 2, 8, 32, 8>}, {pipeline_mode = #tpu.pipeline_mode<synchronous>, transform_indices = @transform_28, window_bounds = array<i64: 2, 8, 1, 8>}, {pipeline_mode = #tpu.pipeline_mode<synchronous>, transform_indices = @transform_29, window_bounds = array<i64: 2, 4, 8, 32>}, {pipeline_mode = #tpu.pipeline_mode<synchronous>, transform_indices = @transform_30, window_bounds = array<i64: 2, 1, 32>}, {pipeline_mode = #tpu.pipeline_mode<synchronous>, transform_indices = @transform_31, window_bounds = array<i64: 2, 1, 32>}, {pipeline_mode = #tpu.pipeline_mode<synchronous>, transform_indices = @transform_32, window_bounds = array<i64: 2, 1, 32>}, {pipeline_mode = #tpu.pipeline_mode<synchronous>, transform_indices = @transform_33, window_bounds = array<i64: 2, 32, 64>}, {pipeline_mode = #tpu.pipeline_mode<synchronous>, transform_indices = @transform_34, window_bounds = array<i64: 2, 1, 64>}, {pipeline_mode = #tpu.pipeline_mode<synchronous>, transform_indices = @transform_35, window_bounds = array<i64: 2, 64, 32>}, {pipeline_mode = #tpu.pipeline_mode<synchronous>, transform_indices = @transform_36, window_bounds = array<i64: 2, 1, 32>}, {pipeline_mode = #tpu.pipeline_mode<synchronous>, transform_indices = @transform_37, window_bounds = array<i64: 2, 1, 32>}, {pipeline_mode = #tpu.pipeline_mode<synchronous>, transform_indices = @transform_38, window_bounds = array<i64: 2, 1, 32>}, {pipeline_mode = #tpu.pipeline_mode<synchronous>, transform_indices = @transform_39, window_bounds = array<i64: 32, 128>}, {pipeline_mode = #tpu.pipeline_mode<synchronous>, transform_indices = @transform_40, window_bounds = array<i64: 1, 128>}, {transform_indices = @transform_41, window_bounds = array<i64: 1, 8, 128>}]} {
    %c0 = arith.constant 0 : index
    %c0_0 = arith.constant 0 : index
    %c0_1 = arith.constant 0 : index
    %0 = vector.load %arg3[%c0, %c0_0, %c0_1] : memref<1x1x8xf32, #tpu.memory_space<vmem>>, vector<1x1x8xf32>
    %1 = vector.shape_cast %0 : vector<1x1x8xf32> to vector<1x8xf32>
    %cst = arith.constant 1.000000e+00 : f32
    %2 = vector.broadcast %cst : f32 to vector<1x8xf32>
    %3 = arith.subf %2, %1 : vector<1x8xf32>
    %cst_2 = arith.constant -1.000000e+09 : f32
    %4 = vector.broadcast %cst_2 : f32 to vector<1x8xf32>
    %5 = arith.mulf %3, %4 : vector<1x8xf32>
    %6 = tpu.iota {dimensions = array<i32: 0>} : vector<8x8xi32>
    %7 = tpu.iota {dimensions = array<i32: 1>} : vector<8x8xi32>
    %8 = arith.cmpi sle, %7, %6 : vector<8x8xi32>
    %cst_3 = arith.constant 0.000000e+00 : f32
    %cst_4 = arith.constant -1.000000e+09 : f32
    %9 = vector.broadcast %cst_3 : f32 to vector<8x8xf32>
    %10 = vector.broadcast %cst_4 : f32 to vector<8x8xf32>
    %11 = arith.select %8, %9, %10 : vector<8x8xi1>, vector<8x8xf32>
    %c0_5 = arith.constant 0 : index
    %c0_6 = arith.constant 0 : index
    %c0_7 = arith.constant 0 : index
    %12 = vector.load %arg1[%c0_5, %c0_6, %c0_7] : memref<1x8x1xi32, #tpu.memory_space<vmem>>, vector<1x8x1xi32>
    %13 = vector.shape_cast %12 : vector<1x8x1xi32> to vector<8x1xi32>
    %c0_8 = arith.constant 0 : index
    %c0_9 = arith.constant 0 : index
    %14 = vector.load %arg4[%c0_8, %c0_9] : memref<48x32xbf16, #tpu.memory_space<vmem>>, vector<48x32xbf16>
    %c0_10 = arith.constant 0 : index
    %c0_11 = arith.constant 0 : index
    %15 = vector.load %arg6[%c0_10, %c0_11] : memref<8x32xf32, #tpu.memory_space<vmem>>, vector<8x32xf32>
    %16 = tpu.iota {dimensions = array<i32: 1>} : vector<8x48xi32>
    %17 = vector.broadcast %13 : vector<8x1xi32> to vector<8x48xi32>
    %18 = arith.cmpi eq, %16, %17 : vector<8x48xi32>
    %cst_12 = arith.constant 1.000000e+00 : f32
    %cst_13 = arith.constant 0.000000e+00 : f32
    %19 = vector.broadcast %cst_12 : f32 to vector<8x48xf32>
    %20 = vector.broadcast %cst_13 : f32 to vector<8x48xf32>
    %21 = arith.select %18, %19, %20 : vector<8x48xi1>, vector<8x48xf32>
    %22 = arith.truncf %21 : vector<8x48xf32> to vector<8x48xbf16>
    %cst_14 = arith.constant dense<0.000000e+00> : vector<8x32xf32>
    %23 = tpu.matmul %22, %14, %cst_14 {dimension_numbers = #tpu.dot_dimension_numbers<[1], [0], [0], [1], [0, 0, 1, 1], [], []>} : vector<8x48xbf16>, vector<48x32xbf16>, vector<8x32xf32> -> vector<8x32xf32>
    %cst_15 = arith.constant 5.65685415 : f32
    %24 = vector.broadcast %cst_15 : f32 to vector<8x32xf32>
    %25 = arith.mulf %23, %24 : vector<8x32xf32>
    %26 = arith.addf %25, %15 : vector<8x32xf32>
    %c0_16 = arith.constant 0 : index
    %c0_17 = arith.constant 0 : index
    %c0_18 = arith.constant 0 : index
    %c0_19 = arith.constant 0 : index
    %27 = vector.load %arg8[%c0_16, %c0_17, %c0_18, %c0_19] : memref<2x12x32x8xbf16, #tpu.memory_space<vmem>>, vector<1x12x32x8xbf16>
    %28 = vector.shape_cast %27 : vector<1x12x32x8xbf16> to vector<12x32x8xbf16>
    %c0_20 = arith.constant 0 : index
    %c0_21 = arith.constant 0 : index
    %c0_22 = arith.constant 0 : index
    %c0_23 = arith.constant 0 : index
    %29 = vector.load %arg9[%c0_20, %c0_21, %c0_22, %c0_23] : memref<2x12x1x8xf32, #tpu.memory_space<vmem>>, vector<1x12x1x8xf32>
    %30 = vector.shape_cast %29 : vector<1x12x1x8xf32> to vector<12x1x8xf32>
    %31 = arith.truncf %26 : vector<8x32xf32> to vector<8x32xbf16>
    %32 = vector.shape_cast %31 : vector<8x32xbf16> to vector<1x8x32xbf16>
    %33 = vector.shape_cast %32 : vector<1x8x32xbf16> to vector<1x8x32xbf16>
    %34 = vector.broadcast %33 : vector<1x8x32xbf16> to vector<12x8x32xbf16>
    "tpu.trace_start"() <{level = 10 : i32, message = "gsd,gde->gse"}> : () -> ()
    %cst_24 = arith.constant dense<0.000000e+00> : vector<12x8x8xf32>
    %35 = tpu.matmul %34, %28, %cst_24 {dimension_numbers = #tpu.dot_dimension_numbers<[2], [1], [1], [2], [0, 0, 0, 1, 1, 2], [0], [0]>} : vector<12x8x32xbf16>, vector<12x32x8xbf16>, vector<12x8x8xf32> -> vector<12x8x8xf32>
    "tpu.trace_stop"() : () -> ()
    %36 = vector.broadcast %30 : vector<12x1x8xf32> to vector<12x8x8xf32>
    %37 = arith.addf %35, %36 : vector<12x8x8xf32>
    %38 = vector.extract_strided_slice %37 {offsets = [0, 0, 0], sizes = [4, 8, 8], strides = [1, 1, 1]} : vector<12x8x8xf32> to vector<4x8x8xf32>
    %39 = vector.extract_strided_slice %37 {offsets = [4, 0, 0], sizes = [4, 8, 8], strides = [1, 1, 1]} : vector<12x8x8xf32> to vector<4x8x8xf32>
    %40 = vector.extract_strided_slice %37 {offsets = [8, 0, 0], sizes = [4, 8, 8], strides = [1, 1, 1]} : vector<12x8x8xf32> to vector<4x8x8xf32>
    %41 = arith.truncf %38 : vector<4x8x8xf32> to vector<4x8x8xbf16>
    %42 = arith.truncf %39 : vector<4x8x8xf32> to vector<4x8x8xbf16>
    "tpu.trace_start"() <{level = 10 : i32, message = "hqd,hkd->hqk"}> : () -> ()
    %cst_25 = arith.constant dense<0.000000e+00> : vector<4x8x8xf32>
    %43 = tpu.matmul %41, %42, %cst_25 {dimension_numbers = #tpu.dot_dimension_numbers<[2], [2], [1], [1], [0, 0, 0, 1, 1, 1], [0], [0]>} : vector<4x8x8xbf16>, vector<4x8x8xbf16>, vector<4x8x8xf32> -> vector<4x8x8xf32>
    "tpu.trace_stop"() : () -> ()
    %cst_26 = arith.constant 0.353553385 : f32
    %44 = vector.broadcast %cst_26 : f32 to vector<4x8x8xf32>
    %45 = arith.mulf %43, %44 : vector<4x8x8xf32>
    %46 = vector.shape_cast %5 : vector<1x8xf32> to vector<1x1x8xf32>
    %47 = vector.broadcast %46 : vector<1x1x8xf32> to vector<4x8x8xf32>
    %48 = arith.addf %45, %47 : vector<4x8x8xf32>
    %cst_27 = arith.constant dense<0xFF800000> : vector<4x8xf32>
    %49 = vector.multi_reduction <maximumf>, %48, %cst_27 [2] : vector<4x8x8xf32> to vector<4x8xf32>
    %50 = vector.shape_cast %49 : vector<4x8xf32> to vector<4x8x1xf32>
    %51 = vector.broadcast %50 : vector<4x8x1xf32> to vector<4x8x8xf32>
    %52 = arith.subf %48, %51 : vector<4x8x8xf32>
    %53 = math.exp %52 : vector<4x8x8xf32>
    %cst_28 = arith.constant dense<0.000000e+00> : vector<4x8xf32>
    %54 = vector.multi_reduction <add>, %53, %cst_28 [2] : vector<4x8x8xf32> to vector<4x8xf32>
    %55 = vector.shape_cast %54 : vector<4x8xf32> to vector<4x8x1xf32>
    %56 = tpu.reciprocal %55 {approx = true} : vector<4x8x1xf32> -> vector<4x8x1xf32>
    %57 = vector.broadcast %56 : vector<4x8x1xf32> to vector<4x8x8xf32>
    %58 = arith.mulf %53, %57 : vector<4x8x8xf32>
    %59 = arith.truncf %58 : vector<4x8x8xf32> to vector<4x8x8xbf16>
    %60 = arith.truncf %40 : vector<4x8x8xf32> to vector<4x8x8xbf16>
    "tpu.trace_start"() <{level = 10 : i32, message = "hqk,hkd->hqd"}> : () -> ()
    %cst_29 = arith.constant dense<0.000000e+00> : vector<4x8x8xf32>
    %61 = tpu.matmul %59, %60, %cst_29 {dimension_numbers = #tpu.dot_dimension_numbers<[2], [1], [1], [2], [0, 0, 0, 1, 1, 2], [0], [0]>} : vector<4x8x8xbf16>, vector<4x8x8xbf16>, vector<4x8x8xf32> -> vector<4x8x8xf32>
    "tpu.trace_stop"() : () -> ()
    %c0_30 = arith.constant 0 : index
    %c0_31 = arith.constant 0 : index
    %c0_32 = arith.constant 0 : index
    %c0_33 = arith.constant 0 : index
    %62 = vector.load %arg10[%c0_30, %c0_31, %c0_32, %c0_33] : memref<2x4x8x32xbf16, #tpu.memory_space<vmem>>, vector<1x4x8x32xbf16>
    %63 = vector.shape_cast %62 : vector<1x4x8x32xbf16> to vector<4x8x32xbf16>
    %c0_34 = arith.constant 0 : index
    %c0_35 = arith.constant 0 : index
    %c0_36 = arith.constant 0 : index
    %64 = vector.load %arg11[%c0_34, %c0_35, %c0_36] : memref<2x1x32xf32, #tpu.memory_space<vmem>>, vector<1x1x32xf32>
    %65 = vector.shape_cast %64 : vector<1x1x32xf32> to vector<1x32xf32>
    %66 = arith.truncf %61 : vector<4x8x8xf32> to vector<4x8x8xbf16>
    "tpu.trace_start"() <{level = 10 : i32, message = "hqe,hed->hqd"}> : () -> ()
    %cst_37 = arith.constant dense<0.000000e+00> : vector<4x8x32xf32>
    %67 = tpu.matmul %66, %63, %cst_37 {dimension_numbers = #tpu.dot_dimension_numbers<[2], [1], [1], [2], [0, 0, 0, 1, 1, 2], [0], [0]>} : vector<4x8x8xbf16>, vector<4x8x32xbf16>, vector<4x8x32xf32> -> vector<4x8x32xf32>
    "tpu.trace_stop"() : () -> ()
    %cst_38 = arith.constant dense<0.000000e+00> : vector<8x32xf32>
    %68 = vector.multi_reduction <add>, %67, %cst_38 [0] : vector<4x8x32xf32> to vector<8x32xf32>
    %69 = vector.broadcast %65 : vector<1x32xf32> to vector<8x32xf32>
    %70 = arith.addf %68, %69 : vector<8x32xf32>
    %71 = arith.addf %26, %70 : vector<8x32xf32>
    %c0_39 = arith.constant 0 : index
    %c0_40 = arith.constant 0 : index
    %c0_41 = arith.constant 0 : index
    %72 = vector.load %arg12[%c0_39, %c0_40, %c0_41] : memref<2x1x32xf32, #tpu.memory_space<vmem>>, vector<1x1x32xf32>
    %73 = vector.shape_cast %72 : vector<1x1x32xf32> to vector<1x32xf32>
    %c0_42 = arith.constant 0 : index
    %c0_43 = arith.constant 0 : index
    %c0_44 = arith.constant 0 : index
    %74 = vector.load %arg13[%c0_42, %c0_43, %c0_44] : memref<2x1x32xf32, #tpu.memory_space<vmem>>, vector<1x1x32xf32>
    %75 = vector.shape_cast %74 : vector<1x1x32xf32> to vector<1x32xf32>
    %cst_45 = arith.constant dense<0.000000e+00> : vector<8xf32>
    %76 = vector.multi_reduction <add>, %71, %cst_45 [1] : vector<8x32xf32> to vector<8xf32>
    %77 = vector.shape_cast %76 : vector<8xf32> to vector<8x1xf32>
    %cst_46 = arith.constant 3.200000e+01 : f32
    %78 = vector.broadcast %cst_46 : f32 to vector<8x1xf32>
    %79 = arith.divf %77, %78 : vector<8x1xf32>
    %80 = vector.broadcast %79 : vector<8x1xf32> to vector<8x32xf32>
    %81 = arith.subf %71, %80 : vector<8x32xf32>
    %82 = arith.mulf %81, %81 : vector<8x32xf32>
    %cst_47 = arith.constant dense<0.000000e+00> : vector<8xf32>
    %83 = vector.multi_reduction <add>, %82, %cst_47 [1] : vector<8x32xf32> to vector<8xf32>
    %84 = vector.shape_cast %83 : vector<8xf32> to vector<8x1xf32>
    %cst_48 = arith.constant 3.200000e+01 : f32
    %85 = vector.broadcast %cst_48 : f32 to vector<8x1xf32>
    %86 = arith.divf %84, %85 : vector<8x1xf32>
    %cst_49 = arith.constant 9.99999974E-6 : f32
    %87 = vector.broadcast %cst_49 : f32 to vector<8x1xf32>
    %88 = arith.addf %86, %87 : vector<8x1xf32>
    %89 = math.rsqrt %88 : vector<8x1xf32>
    %90 = vector.broadcast %89 : vector<8x1xf32> to vector<8x32xf32>
    %91 = arith.mulf %81, %90 : vector<8x32xf32>
    %92 = vector.broadcast %73 : vector<1x32xf32> to vector<8x32xf32>
    %93 = arith.mulf %91, %92 : vector<8x32xf32>
    %94 = vector.broadcast %75 : vector<1x32xf32> to vector<8x32xf32>
    %95 = arith.addf %93, %94 : vector<8x32xf32>
    %c0_50 = arith.constant 0 : index
    %c0_51 = arith.constant 0 : index
    %c0_52 = arith.constant 0 : index
    %96 = vector.load %arg14[%c0_50, %c0_51, %c0_52] : memref<2x32x64xbf16, #tpu.memory_space<vmem>>, vector<1x32x64xbf16>
    %97 = vector.shape_cast %96 : vector<1x32x64xbf16> to vector<32x64xbf16>
    %c0_53 = arith.constant 0 : index
    %c0_54 = arith.constant 0 : index
    %c0_55 = arith.constant 0 : index
    %98 = vector.load %arg15[%c0_53, %c0_54, %c0_55] : memref<2x1x64xf32, #tpu.memory_space<vmem>>, vector<1x1x64xf32>
    %99 = vector.shape_cast %98 : vector<1x1x64xf32> to vector<1x64xf32>
    %c0_56 = arith.constant 0 : index
    %c0_57 = arith.constant 0 : index
    %c0_58 = arith.constant 0 : index
    %100 = vector.load %arg16[%c0_56, %c0_57, %c0_58] : memref<2x64x32xbf16, #tpu.memory_space<vmem>>, vector<1x64x32xbf16>
    %101 = vector.shape_cast %100 : vector<1x64x32xbf16> to vector<64x32xbf16>
    %c0_59 = arith.constant 0 : index
    %c0_60 = arith.constant 0 : index
    %c0_61 = arith.constant 0 : index
    %102 = vector.load %arg17[%c0_59, %c0_60, %c0_61] : memref<2x1x32xf32, #tpu.memory_space<vmem>>, vector<1x1x32xf32>
    %103 = vector.shape_cast %102 : vector<1x1x32xf32> to vector<1x32xf32>
    %104 = arith.truncf %95 : vector<8x32xf32> to vector<8x32xbf16>
    %cst_62 = arith.constant dense<0.000000e+00> : vector<8x64xf32>
    %105 = tpu.matmul %104, %97, %cst_62 {dimension_numbers = #tpu.dot_dimension_numbers<[1], [0], [0], [1], [0, 0, 1, 1], [], []>} : vector<8x32xbf16>, vector<32x64xbf16>, vector<8x64xf32> -> vector<8x64xf32>
    %106 = vector.broadcast %99 : vector<1x64xf32> to vector<8x64xf32>
    %107 = arith.addf %105, %106 : vector<8x64xf32>
    %cst_63 = arith.constant 0.000000e+00 : f32
    %108 = vector.broadcast %cst_63 : f32 to vector<8x64xf32>
    %109 = arith.maximumf %107, %108 : vector<8x64xf32>
    %110 = arith.truncf %109 : vector<8x64xf32> to vector<8x64xbf16>
    %cst_64 = arith.constant dense<0.000000e+00> : vector<8x32xf32>
    %111 = tpu.matmul %110, %101, %cst_64 {dimension_numbers = #tpu.dot_dimension_numbers<[1], [0], [0], [1], [0, 0, 1, 1], [], []>} : vector<8x64xbf16>, vector<64x32xbf16>, vector<8x32xf32> -> vector<8x32xf32>
    %112 = vector.broadcast %103 : vector<1x32xf32> to vector<8x32xf32>
    %113 = arith.addf %111, %112 : vector<8x32xf32>
    %114 = arith.addf %95, %113 : vector<8x32xf32>
    %c0_65 = arith.constant 0 : index
    %c0_66 = arith.constant 0 : index
    %c0_67 = arith.constant 0 : index
    %115 = vector.load %arg18[%c0_65, %c0_66, %c0_67] : memref<2x1x32xf32, #tpu.memory_space<vmem>>, vector<1x1x32xf32>
    %116 = vector.shape_cast %115 : vector<1x1x32xf32> to vector<1x32xf32>
    %c0_68 = arith.constant 0 : index
    %c0_69 = arith.constant 0 : index
    %c0_70 = arith.constant 0 : index
    %117 = vector.load %arg19[%c0_68, %c0_69, %c0_70] : memref<2x1x32xf32, #tpu.memory_space<vmem>>, vector<1x1x32xf32>
    %118 = vector.shape_cast %117 : vector<1x1x32xf32> to vector<1x32xf32>
    %cst_71 = arith.constant dense<0.000000e+00> : vector<8xf32>
    %119 = vector.multi_reduction <add>, %114, %cst_71 [1] : vector<8x32xf32> to vector<8xf32>
    %120 = vector.shape_cast %119 : vector<8xf32> to vector<8x1xf32>
    %cst_72 = arith.constant 3.200000e+01 : f32
    %121 = vector.broadcast %cst_72 : f32 to vector<8x1xf32>
    %122 = arith.divf %120, %121 : vector<8x1xf32>
    %123 = vector.broadcast %122 : vector<8x1xf32> to vector<8x32xf32>
    %124 = arith.subf %114, %123 : vector<8x32xf32>
    %125 = arith.mulf %124, %124 : vector<8x32xf32>
    %cst_73 = arith.constant dense<0.000000e+00> : vector<8xf32>
    %126 = vector.multi_reduction <add>, %125, %cst_73 [1] : vector<8x32xf32> to vector<8xf32>
    %127 = vector.shape_cast %126 : vector<8xf32> to vector<8x1xf32>
    %cst_74 = arith.constant 3.200000e+01 : f32
    %128 = vector.broadcast %cst_74 : f32 to vector<8x1xf32>
    %129 = arith.divf %127, %128 : vector<8x1xf32>
    %cst_75 = arith.constant 9.99999974E-6 : f32
    %130 = vector.broadcast %cst_75 : f32 to vector<8x1xf32>
    %131 = arith.addf %129, %130 : vector<8x1xf32>
    %132 = math.rsqrt %131 : vector<8x1xf32>
    %133 = vector.broadcast %132 : vector<8x1xf32> to vector<8x32xf32>
    %134 = arith.mulf %124, %133 : vector<8x32xf32>
    %135 = vector.broadcast %116 : vector<1x32xf32> to vector<8x32xf32>
    %136 = arith.mulf %134, %135 : vector<8x32xf32>
    %137 = vector.broadcast %118 : vector<1x32xf32> to vector<8x32xf32>
    %138 = arith.addf %136, %137 : vector<8x32xf32>
    %c1 = arith.constant 1 : index
    %c0_76 = arith.constant 0 : index
    %c0_77 = arith.constant 0 : index
    %c0_78 = arith.constant 0 : index
    %139 = vector.load %arg8[%c1, %c0_76, %c0_77, %c0_78] : memref<2x12x32x8xbf16, #tpu.memory_space<vmem>>, vector<1x12x32x8xbf16>
    %140 = vector.shape_cast %139 : vector<1x12x32x8xbf16> to vector<12x32x8xbf16>
    %c1_79 = arith.constant 1 : index
    %c0_80 = arith.constant 0 : index
    %c0_81 = arith.constant 0 : index
    %c0_82 = arith.constant 0 : index
    %141 = vector.load %arg9[%c1_79, %c0_80, %c0_81, %c0_82] : memref<2x12x1x8xf32, #tpu.memory_space<vmem>>, vector<1x12x1x8xf32>
    %142 = vector.shape_cast %141 : vector<1x12x1x8xf32> to vector<12x1x8xf32>
    %143 = arith.truncf %138 : vector<8x32xf32> to vector<8x32xbf16>
    %144 = vector.shape_cast %143 : vector<8x32xbf16> to vector<1x8x32xbf16>
    %145 = vector.shape_cast %144 : vector<1x8x32xbf16> to vector<1x8x32xbf16>
    %146 = vector.broadcast %145 : vector<1x8x32xbf16> to vector<12x8x32xbf16>
    "tpu.trace_start"() <{level = 10 : i32, message = "gsd,gde->gse"}> : () -> ()
    %cst_83 = arith.constant dense<0.000000e+00> : vector<12x8x8xf32>
    %147 = tpu.matmul %146, %140, %cst_83 {dimension_numbers = #tpu.dot_dimension_numbers<[2], [1], [1], [2], [0, 0, 0, 1, 1, 2], [0], [0]>} : vector<12x8x32xbf16>, vector<12x32x8xbf16>, vector<12x8x8xf32> -> vector<12x8x8xf32>
    "tpu.trace_stop"() : () -> ()
    %148 = vector.broadcast %142 : vector<12x1x8xf32> to vector<12x8x8xf32>
    %149 = arith.addf %147, %148 : vector<12x8x8xf32>
    %150 = vector.extract_strided_slice %149 {offsets = [0, 0, 0], sizes = [4, 8, 8], strides = [1, 1, 1]} : vector<12x8x8xf32> to vector<4x8x8xf32>
    %151 = vector.extract_strided_slice %149 {offsets = [4, 0, 0], sizes = [4, 8, 8], strides = [1, 1, 1]} : vector<12x8x8xf32> to vector<4x8x8xf32>
    %152 = vector.extract_strided_slice %149 {offsets = [8, 0, 0], sizes = [4, 8, 8], strides = [1, 1, 1]} : vector<12x8x8xf32> to vector<4x8x8xf32>
    %153 = arith.truncf %150 : vector<4x8x8xf32> to vector<4x8x8xbf16>
    %154 = arith.truncf %151 : vector<4x8x8xf32> to vector<4x8x8xbf16>
    "tpu.trace_start"() <{level = 10 : i32, message = "hqd,hkd->hqk"}> : () -> ()
    %cst_84 = arith.constant dense<0.000000e+00> : vector<4x8x8xf32>
    %155 = tpu.matmul %153, %154, %cst_84 {dimension_numbers = #tpu.dot_dimension_numbers<[2], [2], [1], [1], [0, 0, 0, 1, 1, 1], [0], [0]>} : vector<4x8x8xbf16>, vector<4x8x8xbf16>, vector<4x8x8xf32> -> vector<4x8x8xf32>
    "tpu.trace_stop"() : () -> ()
    %cst_85 = arith.constant 0.353553385 : f32
    %156 = vector.broadcast %cst_85 : f32 to vector<4x8x8xf32>
    %157 = arith.mulf %155, %156 : vector<4x8x8xf32>
    %158 = vector.shape_cast %5 : vector<1x8xf32> to vector<1x1x8xf32>
    %159 = vector.broadcast %158 : vector<1x1x8xf32> to vector<4x8x8xf32>
    %160 = arith.addf %157, %159 : vector<4x8x8xf32>
    %cst_86 = arith.constant dense<0xFF800000> : vector<4x8xf32>
    %161 = vector.multi_reduction <maximumf>, %160, %cst_86 [2] : vector<4x8x8xf32> to vector<4x8xf32>
    %162 = vector.shape_cast %161 : vector<4x8xf32> to vector<4x8x1xf32>
    %163 = vector.broadcast %162 : vector<4x8x1xf32> to vector<4x8x8xf32>
    %164 = arith.subf %160, %163 : vector<4x8x8xf32>
    %165 = math.exp %164 : vector<4x8x8xf32>
    %cst_87 = arith.constant dense<0.000000e+00> : vector<4x8xf32>
    %166 = vector.multi_reduction <add>, %165, %cst_87 [2] : vector<4x8x8xf32> to vector<4x8xf32>
    %167 = vector.shape_cast %166 : vector<4x8xf32> to vector<4x8x1xf32>
    %168 = tpu.reciprocal %167 {approx = true} : vector<4x8x1xf32> -> vector<4x8x1xf32>
    %169 = vector.broadcast %168 : vector<4x8x1xf32> to vector<4x8x8xf32>
    %170 = arith.mulf %165, %169 : vector<4x8x8xf32>
    %171 = arith.truncf %170 : vector<4x8x8xf32> to vector<4x8x8xbf16>
    %172 = arith.truncf %152 : vector<4x8x8xf32> to vector<4x8x8xbf16>
    "tpu.trace_start"() <{level = 10 : i32, message = "hqk,hkd->hqd"}> : () -> ()
    %cst_88 = arith.constant dense<0.000000e+00> : vector<4x8x8xf32>
    %173 = tpu.matmul %171, %172, %cst_88 {dimension_numbers = #tpu.dot_dimension_numbers<[2], [1], [1], [2], [0, 0, 0, 1, 1, 2], [0], [0]>} : vector<4x8x8xbf16>, vector<4x8x8xbf16>, vector<4x8x8xf32> -> vector<4x8x8xf32>
    "tpu.trace_stop"() : () -> ()
    %c1_89 = arith.constant 1 : index
    %c0_90 = arith.constant 0 : index
    %c0_91 = arith.constant 0 : index
    %c0_92 = arith.constant 0 : index
    %174 = vector.load %arg10[%c1_89, %c0_90, %c0_91, %c0_92] : memref<2x4x8x32xbf16, #tpu.memory_space<vmem>>, vector<1x4x8x32xbf16>
    %175 = vector.shape_cast %174 : vector<1x4x8x32xbf16> to vector<4x8x32xbf16>
    %c1_93 = arith.constant 1 : index
    %c0_94 = arith.constant 0 : index
    %c0_95 = arith.constant 0 : index
    %176 = vector.load %arg11[%c1_93, %c0_94, %c0_95] : memref<2x1x32xf32, #tpu.memory_space<vmem>>, vector<1x1x32xf32>
    %177 = vector.shape_cast %176 : vector<1x1x32xf32> to vector<1x32xf32>
    %178 = arith.truncf %173 : vector<4x8x8xf32> to vector<4x8x8xbf16>
    "tpu.trace_start"() <{level = 10 : i32, message = "hqe,hed->hqd"}> : () -> ()
    %cst_96 = arith.constant dense<0.000000e+00> : vector<4x8x32xf32>
    %179 = tpu.matmul %178, %175, %cst_96 {dimension_numbers = #tpu.dot_dimension_numbers<[2], [1], [1], [2], [0, 0, 0, 1, 1, 2], [0], [0]>} : vector<4x8x8xbf16>, vector<4x8x32xbf16>, vector<4x8x32xf32> -> vector<4x8x32xf32>
    "tpu.trace_stop"() : () -> ()
    %cst_97 = arith.constant dense<0.000000e+00> : vector<8x32xf32>
    %180 = vector.multi_reduction <add>, %179, %cst_97 [0] : vector<4x8x32xf32> to vector<8x32xf32>
    %181 = vector.broadcast %177 : vector<1x32xf32> to vector<8x32xf32>
    %182 = arith.addf %180, %181 : vector<8x32xf32>
    %183 = arith.addf %138, %182 : vector<8x32xf32>
    %c1_98 = arith.constant 1 : index
    %c0_99 = arith.constant 0 : index
    %c0_100 = arith.constant 0 : index
    %184 = vector.load %arg12[%c1_98, %c0_99, %c0_100] : memref<2x1x32xf32, #tpu.memory_space<vmem>>, vector<1x1x32xf32>
    %185 = vector.shape_cast %184 : vector<1x1x32xf32> to vector<1x32xf32>
    %c1_101 = arith.constant 1 : index
    %c0_102 = arith.constant 0 : index
    %c0_103 = arith.constant 0 : index
    %186 = vector.load %arg13[%c1_101, %c0_102, %c0_103] : memref<2x1x32xf32, #tpu.memory_space<vmem>>, vector<1x1x32xf32>
    %187 = vector.shape_cast %186 : vector<1x1x32xf32> to vector<1x32xf32>
    %cst_104 = arith.constant dense<0.000000e+00> : vector<8xf32>
    %188 = vector.multi_reduction <add>, %183, %cst_104 [1] : vector<8x32xf32> to vector<8xf32>
    %189 = vector.shape_cast %188 : vector<8xf32> to vector<8x1xf32>
    %cst_105 = arith.constant 3.200000e+01 : f32
    %190 = vector.broadcast %cst_105 : f32 to vector<8x1xf32>
    %191 = arith.divf %189, %190 : vector<8x1xf32>
    %192 = vector.broadcast %191 : vector<8x1xf32> to vector<8x32xf32>
    %193 = arith.subf %183, %192 : vector<8x32xf32>
    %194 = arith.mulf %193, %193 : vector<8x32xf32>
    %cst_106 = arith.constant dense<0.000000e+00> : vector<8xf32>
    %195 = vector.multi_reduction <add>, %194, %cst_106 [1] : vector<8x32xf32> to vector<8xf32>
    %196 = vector.shape_cast %195 : vector<8xf32> to vector<8x1xf32>
    %cst_107 = arith.constant 3.200000e+01 : f32
    %197 = vector.broadcast %cst_107 : f32 to vector<8x1xf32>
    %198 = arith.divf %196, %197 : vector<8x1xf32>
    %cst_108 = arith.constant 9.99999974E-6 : f32
    %199 = vector.broadcast %cst_108 : f32 to vector<8x1xf32>
    %200 = arith.addf %198, %199 : vector<8x1xf32>
    %201 = math.rsqrt %200 : vector<8x1xf32>
    %202 = vector.broadcast %201 : vector<8x1xf32> to vector<8x32xf32>
    %203 = arith.mulf %193, %202 : vector<8x32xf32>
    %204 = vector.broadcast %185 : vector<1x32xf32> to vector<8x32xf32>
    %205 = arith.mulf %203, %204 : vector<8x32xf32>
    %206 = vector.broadcast %187 : vector<1x32xf32> to vector<8x32xf32>
    %207 = arith.addf %205, %206 : vector<8x32xf32>
    %c1_109 = arith.constant 1 : index
    %c0_110 = arith.constant 0 : index
    %c0_111 = arith.constant 0 : index
    %208 = vector.load %arg14[%c1_109, %c0_110, %c0_111] : memref<2x32x64xbf16, #tpu.memory_space<vmem>>, vector<1x32x64xbf16>
    %209 = vector.shape_cast %208 : vector<1x32x64xbf16> to vector<32x64xbf16>
    %c1_112 = arith.constant 1 : index
    %c0_113 = arith.constant 0 : index
    %c0_114 = arith.constant 0 : index
    %210 = vector.load %arg15[%c1_112, %c0_113, %c0_114] : memref<2x1x64xf32, #tpu.memory_space<vmem>>, vector<1x1x64xf32>
    %211 = vector.shape_cast %210 : vector<1x1x64xf32> to vector<1x64xf32>
    %c1_115 = arith.constant 1 : index
    %c0_116 = arith.constant 0 : index
    %c0_117 = arith.constant 0 : index
    %212 = vector.load %arg16[%c1_115, %c0_116, %c0_117] : memref<2x64x32xbf16, #tpu.memory_space<vmem>>, vector<1x64x32xbf16>
    %213 = vector.shape_cast %212 : vector<1x64x32xbf16> to vector<64x32xbf16>
    %c1_118 = arith.constant 1 : index
    %c0_119 = arith.constant 0 : index
    %c0_120 = arith.constant 0 : index
    %214 = vector.load %arg17[%c1_118, %c0_119, %c0_120] : memref<2x1x32xf32, #tpu.memory_space<vmem>>, vector<1x1x32xf32>
    %215 = vector.shape_cast %214 : vector<1x1x32xf32> to vector<1x32xf32>
    %216 = arith.truncf %207 : vector<8x32xf32> to vector<8x32xbf16>
    %cst_121 = arith.constant dense<0.000000e+00> : vector<8x64xf32>
    %217 = tpu.matmul %216, %209, %cst_121 {dimension_numbers = #tpu.dot_dimension_numbers<[1], [0], [0], [1], [0, 0, 1, 1], [], []>} : vector<8x32xbf16>, vector<32x64xbf16>, vector<8x64xf32> -> vector<8x64xf32>
    %218 = vector.broadcast %211 : vector<1x64xf32> to vector<8x64xf32>
    %219 = arith.addf %217, %218 : vector<8x64xf32>
    %cst_122 = arith.constant 0.000000e+00 : f32
    %220 = vector.broadcast %cst_122 : f32 to vector<8x64xf32>
    %221 = arith.maximumf %219, %220 : vector<8x64xf32>
    %222 = arith.truncf %221 : vector<8x64xf32> to vector<8x64xbf16>
    %cst_123 = arith.constant dense<0.000000e+00> : vector<8x32xf32>
    %223 = tpu.matmul %222, %213, %cst_123 {dimension_numbers = #tpu.dot_dimension_numbers<[1], [0], [0], [1], [0, 0, 1, 1], [], []>} : vector<8x64xbf16>, vector<64x32xbf16>, vector<8x32xf32> -> vector<8x32xf32>
    %224 = vector.broadcast %215 : vector<1x32xf32> to vector<8x32xf32>
    %225 = arith.addf %223, %224 : vector<8x32xf32>
    %226 = arith.addf %207, %225 : vector<8x32xf32>
    %c1_124 = arith.constant 1 : index
    %c0_125 = arith.constant 0 : index
    %c0_126 = arith.constant 0 : index
    %227 = vector.load %arg18[%c1_124, %c0_125, %c0_126] : memref<2x1x32xf32, #tpu.memory_space<vmem>>, vector<1x1x32xf32>
    %228 = vector.shape_cast %227 : vector<1x1x32xf32> to vector<1x32xf32>
    %c1_127 = arith.constant 1 : index
    %c0_128 = arith.constant 0 : index
    %c0_129 = arith.constant 0 : index
    %229 = vector.load %arg19[%c1_127, %c0_128, %c0_129] : memref<2x1x32xf32, #tpu.memory_space<vmem>>, vector<1x1x32xf32>
    %230 = vector.shape_cast %229 : vector<1x1x32xf32> to vector<1x32xf32>
    %cst_130 = arith.constant dense<0.000000e+00> : vector<8xf32>
    %231 = vector.multi_reduction <add>, %226, %cst_130 [1] : vector<8x32xf32> to vector<8xf32>
    %232 = vector.shape_cast %231 : vector<8xf32> to vector<8x1xf32>
    %cst_131 = arith.constant 3.200000e+01 : f32
    %233 = vector.broadcast %cst_131 : f32 to vector<8x1xf32>
    %234 = arith.divf %232, %233 : vector<8x1xf32>
    %235 = vector.broadcast %234 : vector<8x1xf32> to vector<8x32xf32>
    %236 = arith.subf %226, %235 : vector<8x32xf32>
    %237 = arith.mulf %236, %236 : vector<8x32xf32>
    %cst_132 = arith.constant dense<0.000000e+00> : vector<8xf32>
    %238 = vector.multi_reduction <add>, %237, %cst_132 [1] : vector<8x32xf32> to vector<8xf32>
    %239 = vector.shape_cast %238 : vector<8xf32> to vector<8x1xf32>
    %cst_133 = arith.constant 3.200000e+01 : f32
    %240 = vector.broadcast %cst_133 : f32 to vector<8x1xf32>
    %241 = arith.divf %239, %240 : vector<8x1xf32>
    %cst_134 = arith.constant 9.99999974E-6 : f32
    %242 = vector.broadcast %cst_134 : f32 to vector<8x1xf32>
    %243 = arith.addf %241, %242 : vector<8x1xf32>
    %244 = math.rsqrt %243 : vector<8x1xf32>
    %245 = vector.broadcast %244 : vector<8x1xf32> to vector<8x32xf32>
    %246 = arith.mulf %236, %245 : vector<8x32xf32>
    %247 = vector.broadcast %228 : vector<1x32xf32> to vector<8x32xf32>
    %248 = arith.mulf %246, %247 : vector<8x32xf32>
    %249 = vector.broadcast %230 : vector<1x32xf32> to vector<8x32xf32>
    %250 = arith.addf %248, %249 : vector<8x32xf32>
    %c0_135 = arith.constant 0 : index
    %c0_136 = arith.constant 0 : index
    %c0_137 = arith.constant 0 : index
    %251 = vector.load %arg2[%c0_135, %c0_136, %c0_137] : memref<1x8x1xi32, #tpu.memory_space<vmem>>, vector<1x8x1xi32>
    %252 = vector.shape_cast %251 : vector<1x8x1xi32> to vector<8x1xi32>
    %c0_138 = arith.constant 0 : index
    %c0_139 = arith.constant 0 : index
    %253 = vector.load %arg5[%c0_138, %c0_139] : memref<48x32xbf16, #tpu.memory_space<vmem>>, vector<48x32xbf16>
    %c0_140 = arith.constant 0 : index
    %c0_141 = arith.constant 0 : index
    %254 = vector.load %arg7[%c0_140, %c0_141] : memref<8x32xf32, #tpu.memory_space<vmem>>, vector<8x32xf32>
    %255 = tpu.iota {dimensions = array<i32: 1>} : vector<8x48xi32>
    %256 = vector.broadcast %252 : vector<8x1xi32> to vector<8x48xi32>
    %257 = arith.cmpi eq, %255, %256 : vector<8x48xi32>
    %cst_142 = arith.constant 1.000000e+00 : f32
    %cst_143 = arith.constant 0.000000e+00 : f32
    %258 = vector.broadcast %cst_142 : f32 to vector<8x48xf32>
    %259 = vector.broadcast %cst_143 : f32 to vector<8x48xf32>
    %260 = arith.select %257, %258, %259 : vector<8x48xi1>, vector<8x48xf32>
    %261 = arith.truncf %260 : vector<8x48xf32> to vector<8x48xbf16>
    %cst_144 = arith.constant dense<0.000000e+00> : vector<8x32xf32>
    %262 = tpu.matmul %261, %253, %cst_144 {dimension_numbers = #tpu.dot_dimension_numbers<[1], [0], [0], [1], [0, 0, 1, 1], [], []>} : vector<8x48xbf16>, vector<48x32xbf16>, vector<8x32xf32> -> vector<8x32xf32>
    %cst_145 = arith.constant 5.65685415 : f32
    %263 = vector.broadcast %cst_145 : f32 to vector<8x32xf32>
    %264 = arith.mulf %262, %263 : vector<8x32xf32>
    %265 = arith.addf %264, %254 : vector<8x32xf32>
    %c0_146 = arith.constant 0 : index
    %c0_147 = arith.constant 0 : index
    %c0_148 = arith.constant 0 : index
    %c0_149 = arith.constant 0 : index
    %266 = vector.load %arg20[%c0_146, %c0_147, %c0_148, %c0_149] : memref<2x12x32x8xbf16, #tpu.memory_space<vmem>>, vector<1x12x32x8xbf16>
    %267 = vector.shape_cast %266 : vector<1x12x32x8xbf16> to vector<12x32x8xbf16>
    %c0_150 = arith.constant 0 : index
    %c0_151 = arith.constant 0 : index
    %c0_152 = arith.constant 0 : index
    %c0_153 = arith.constant 0 : index
    %268 = vector.load %arg21[%c0_150, %c0_151, %c0_152, %c0_153] : memref<2x12x1x8xf32, #tpu.memory_space<vmem>>, vector<1x12x1x8xf32>
    %269 = vector.shape_cast %268 : vector<1x12x1x8xf32> to vector<12x1x8xf32>
    %270 = arith.truncf %265 : vector<8x32xf32> to vector<8x32xbf16>
    %271 = vector.shape_cast %270 : vector<8x32xbf16> to vector<1x8x32xbf16>
    %272 = vector.shape_cast %271 : vector<1x8x32xbf16> to vector<1x8x32xbf16>
    %273 = vector.broadcast %272 : vector<1x8x32xbf16> to vector<12x8x32xbf16>
    "tpu.trace_start"() <{level = 10 : i32, message = "gsd,gde->gse"}> : () -> ()
    %cst_154 = arith.constant dense<0.000000e+00> : vector<12x8x8xf32>
    %274 = tpu.matmul %273, %267, %cst_154 {dimension_numbers = #tpu.dot_dimension_numbers<[2], [1], [1], [2], [0, 0, 0, 1, 1, 2], [0], [0]>} : vector<12x8x32xbf16>, vector<12x32x8xbf16>, vector<12x8x8xf32> -> vector<12x8x8xf32>
    "tpu.trace_stop"() : () -> ()
    %275 = vector.broadcast %269 : vector<12x1x8xf32> to vector<12x8x8xf32>
    %276 = arith.addf %274, %275 : vector<12x8x8xf32>
    %277 = vector.extract_strided_slice %276 {offsets = [0, 0, 0], sizes = [4, 8, 8], strides = [1, 1, 1]} : vector<12x8x8xf32> to vector<4x8x8xf32>
    %278 = vector.extract_strided_slice %276 {offsets = [4, 0, 0], sizes = [4, 8, 8], strides = [1, 1, 1]} : vector<12x8x8xf32> to vector<4x8x8xf32>
    %279 = vector.extract_strided_slice %276 {offsets = [8, 0, 0], sizes = [4, 8, 8], strides = [1, 1, 1]} : vector<12x8x8xf32> to vector<4x8x8xf32>
    %280 = arith.truncf %277 : vector<4x8x8xf32> to vector<4x8x8xbf16>
    %281 = arith.truncf %278 : vector<4x8x8xf32> to vector<4x8x8xbf16>
    "tpu.trace_start"() <{level = 10 : i32, message = "hqd,hkd->hqk"}> : () -> ()
    %cst_155 = arith.constant dense<0.000000e+00> : vector<4x8x8xf32>
    %282 = tpu.matmul %280, %281, %cst_155 {dimension_numbers = #tpu.dot_dimension_numbers<[2], [2], [1], [1], [0, 0, 0, 1, 1, 1], [0], [0]>} : vector<4x8x8xbf16>, vector<4x8x8xbf16>, vector<4x8x8xf32> -> vector<4x8x8xf32>
    "tpu.trace_stop"() : () -> ()
    %cst_156 = arith.constant 0.353553385 : f32
    %283 = vector.broadcast %cst_156 : f32 to vector<4x8x8xf32>
    %284 = arith.mulf %282, %283 : vector<4x8x8xf32>
    %285 = vector.shape_cast %11 : vector<8x8xf32> to vector<1x8x8xf32>
    %286 = vector.broadcast %285 : vector<1x8x8xf32> to vector<4x8x8xf32>
    %287 = arith.addf %284, %286 : vector<4x8x8xf32>
    %cst_157 = arith.constant dense<0xFF800000> : vector<4x8xf32>
    %288 = vector.multi_reduction <maximumf>, %287, %cst_157 [2] : vector<4x8x8xf32> to vector<4x8xf32>
    %289 = vector.shape_cast %288 : vector<4x8xf32> to vector<4x8x1xf32>
    %290 = vector.broadcast %289 : vector<4x8x1xf32> to vector<4x8x8xf32>
    %291 = arith.subf %287, %290 : vector<4x8x8xf32>
    %292 = math.exp %291 : vector<4x8x8xf32>
    %cst_158 = arith.constant dense<0.000000e+00> : vector<4x8xf32>
    %293 = vector.multi_reduction <add>, %292, %cst_158 [2] : vector<4x8x8xf32> to vector<4x8xf32>
    %294 = vector.shape_cast %293 : vector<4x8xf32> to vector<4x8x1xf32>
    %295 = tpu.reciprocal %294 {approx = true} : vector<4x8x1xf32> -> vector<4x8x1xf32>
    %296 = vector.broadcast %295 : vector<4x8x1xf32> to vector<4x8x8xf32>
    %297 = arith.mulf %292, %296 : vector<4x8x8xf32>
    %298 = arith.truncf %297 : vector<4x8x8xf32> to vector<4x8x8xbf16>
    %299 = arith.truncf %279 : vector<4x8x8xf32> to vector<4x8x8xbf16>
    "tpu.trace_start"() <{level = 10 : i32, message = "hqk,hkd->hqd"}> : () -> ()
    %cst_159 = arith.constant dense<0.000000e+00> : vector<4x8x8xf32>
    %300 = tpu.matmul %298, %299, %cst_159 {dimension_numbers = #tpu.dot_dimension_numbers<[2], [1], [1], [2], [0, 0, 0, 1, 1, 2], [0], [0]>} : vector<4x8x8xbf16>, vector<4x8x8xbf16>, vector<4x8x8xf32> -> vector<4x8x8xf32>
    "tpu.trace_stop"() : () -> ()
    %c0_160 = arith.constant 0 : index
    %c0_161 = arith.constant 0 : index
    %c0_162 = arith.constant 0 : index
    %c0_163 = arith.constant 0 : index
    %301 = vector.load %arg22[%c0_160, %c0_161, %c0_162, %c0_163] : memref<2x4x8x32xbf16, #tpu.memory_space<vmem>>, vector<1x4x8x32xbf16>
    %302 = vector.shape_cast %301 : vector<1x4x8x32xbf16> to vector<4x8x32xbf16>
    %c0_164 = arith.constant 0 : index
    %c0_165 = arith.constant 0 : index
    %c0_166 = arith.constant 0 : index
    %303 = vector.load %arg23[%c0_164, %c0_165, %c0_166] : memref<2x1x32xf32, #tpu.memory_space<vmem>>, vector<1x1x32xf32>
    %304 = vector.shape_cast %303 : vector<1x1x32xf32> to vector<1x32xf32>
    %305 = arith.truncf %300 : vector<4x8x8xf32> to vector<4x8x8xbf16>
    "tpu.trace_start"() <{level = 10 : i32, message = "hqe,hed->hqd"}> : () -> ()
    %cst_167 = arith.constant dense<0.000000e+00> : vector<4x8x32xf32>
    %306 = tpu.matmul %305, %302, %cst_167 {dimension_numbers = #tpu.dot_dimension_numbers<[2], [1], [1], [2], [0, 0, 0, 1, 1, 2], [0], [0]>} : vector<4x8x8xbf16>, vector<4x8x32xbf16>, vector<4x8x32xf32> -> vector<4x8x32xf32>
    "tpu.trace_stop"() : () -> ()
    %cst_168 = arith.constant dense<0.000000e+00> : vector<8x32xf32>
    %307 = vector.multi_reduction <add>, %306, %cst_168 [0] : vector<4x8x32xf32> to vector<8x32xf32>
    %308 = vector.broadcast %304 : vector<1x32xf32> to vector<8x32xf32>
    %309 = arith.addf %307, %308 : vector<8x32xf32>
    %310 = arith.addf %265, %309 : vector<8x32xf32>
    %c0_169 = arith.constant 0 : index
    %c0_170 = arith.constant 0 : index
    %c0_171 = arith.constant 0 : index
    %311 = vector.load %arg24[%c0_169, %c0_170, %c0_171] : memref<2x1x32xf32, #tpu.memory_space<vmem>>, vector<1x1x32xf32>
    %312 = vector.shape_cast %311 : vector<1x1x32xf32> to vector<1x32xf32>
    %c0_172 = arith.constant 0 : index
    %c0_173 = arith.constant 0 : index
    %c0_174 = arith.constant 0 : index
    %313 = vector.load %arg25[%c0_172, %c0_173, %c0_174] : memref<2x1x32xf32, #tpu.memory_space<vmem>>, vector<1x1x32xf32>
    %314 = vector.shape_cast %313 : vector<1x1x32xf32> to vector<1x32xf32>
    %cst_175 = arith.constant dense<0.000000e+00> : vector<8xf32>
    %315 = vector.multi_reduction <add>, %310, %cst_175 [1] : vector<8x32xf32> to vector<8xf32>
    %316 = vector.shape_cast %315 : vector<8xf32> to vector<8x1xf32>
    %cst_176 = arith.constant 3.200000e+01 : f32
    %317 = vector.broadcast %cst_176 : f32 to vector<8x1xf32>
    %318 = arith.divf %316, %317 : vector<8x1xf32>
    %319 = vector.broadcast %318 : vector<8x1xf32> to vector<8x32xf32>
    %320 = arith.subf %310, %319 : vector<8x32xf32>
    %321 = arith.mulf %320, %320 : vector<8x32xf32>
    %cst_177 = arith.constant dense<0.000000e+00> : vector<8xf32>
    %322 = vector.multi_reduction <add>, %321, %cst_177 [1] : vector<8x32xf32> to vector<8xf32>
    %323 = vector.shape_cast %322 : vector<8xf32> to vector<8x1xf32>
    %cst_178 = arith.constant 3.200000e+01 : f32
    %324 = vector.broadcast %cst_178 : f32 to vector<8x1xf32>
    %325 = arith.divf %323, %324 : vector<8x1xf32>
    %cst_179 = arith.constant 9.99999974E-6 : f32
    %326 = vector.broadcast %cst_179 : f32 to vector<8x1xf32>
    %327 = arith.addf %325, %326 : vector<8x1xf32>
    %328 = math.rsqrt %327 : vector<8x1xf32>
    %329 = vector.broadcast %328 : vector<8x1xf32> to vector<8x32xf32>
    %330 = arith.mulf %320, %329 : vector<8x32xf32>
    %331 = vector.broadcast %312 : vector<1x32xf32> to vector<8x32xf32>
    %332 = arith.mulf %330, %331 : vector<8x32xf32>
    %333 = vector.broadcast %314 : vector<1x32xf32> to vector<8x32xf32>
    %334 = arith.addf %332, %333 : vector<8x32xf32>
    %c0_180 = arith.constant 0 : index
    %c0_181 = arith.constant 0 : index
    %c0_182 = arith.constant 0 : index
    %c0_183 = arith.constant 0 : index
    %335 = vector.load %arg26[%c0_180, %c0_181, %c0_182, %c0_183] : memref<2x4x32x8xbf16, #tpu.memory_space<vmem>>, vector<1x4x32x8xbf16>
    %336 = vector.shape_cast %335 : vector<1x4x32x8xbf16> to vector<4x32x8xbf16>
    %c0_184 = arith.constant 0 : index
    %c0_185 = arith.constant 0 : index
    %c0_186 = arith.constant 0 : index
    %c0_187 = arith.constant 0 : index
    %337 = vector.load %arg27[%c0_184, %c0_185, %c0_186, %c0_187] : memref<2x4x1x8xf32, #tpu.memory_space<vmem>>, vector<1x4x1x8xf32>
    %338 = vector.shape_cast %337 : vector<1x4x1x8xf32> to vector<4x1x8xf32>
    %339 = arith.truncf %334 : vector<8x32xf32> to vector<8x32xbf16>
    %340 = vector.shape_cast %339 : vector<8x32xbf16> to vector<1x8x32xbf16>
    %341 = vector.shape_cast %340 : vector<1x8x32xbf16> to vector<1x8x32xbf16>
    %342 = vector.broadcast %341 : vector<1x8x32xbf16> to vector<4x8x32xbf16>
    "tpu.trace_start"() <{level = 10 : i32, message = "gsd,gde->gse"}> : () -> ()
    %cst_188 = arith.constant dense<0.000000e+00> : vector<4x8x8xf32>
    %343 = tpu.matmul %342, %336, %cst_188 {dimension_numbers = #tpu.dot_dimension_numbers<[2], [1], [1], [2], [0, 0, 0, 1, 1, 2], [0], [0]>} : vector<4x8x32xbf16>, vector<4x32x8xbf16>, vector<4x8x8xf32> -> vector<4x8x8xf32>
    "tpu.trace_stop"() : () -> ()
    %344 = vector.broadcast %338 : vector<4x1x8xf32> to vector<4x8x8xf32>
    %345 = arith.addf %343, %344 : vector<4x8x8xf32>
    %c0_189 = arith.constant 0 : index
    %c0_190 = arith.constant 0 : index
    %c0_191 = arith.constant 0 : index
    %c0_192 = arith.constant 0 : index
    %346 = vector.load %arg28[%c0_189, %c0_190, %c0_191, %c0_192] : memref<2x8x32x8xbf16, #tpu.memory_space<vmem>>, vector<1x8x32x8xbf16>
    %347 = vector.shape_cast %346 : vector<1x8x32x8xbf16> to vector<8x32x8xbf16>
    %c0_193 = arith.constant 0 : index
    %c0_194 = arith.constant 0 : index
    %c0_195 = arith.constant 0 : index
    %c0_196 = arith.constant 0 : index
    %348 = vector.load %arg29[%c0_193, %c0_194, %c0_195, %c0_196] : memref<2x8x1x8xf32, #tpu.memory_space<vmem>>, vector<1x8x1x8xf32>
    %349 = vector.shape_cast %348 : vector<1x8x1x8xf32> to vector<8x1x8xf32>
    %350 = arith.truncf %250 : vector<8x32xf32> to vector<8x32xbf16>
    %351 = vector.shape_cast %350 : vector<8x32xbf16> to vector<1x8x32xbf16>
    %352 = vector.shape_cast %351 : vector<1x8x32xbf16> to vector<1x8x32xbf16>
    %353 = vector.broadcast %352 : vector<1x8x32xbf16> to vector<8x8x32xbf16>
    "tpu.trace_start"() <{level = 10 : i32, message = "gsd,gde->gse"}> : () -> ()
    %cst_197 = arith.constant dense<0.000000e+00> : vector<8x8x8xf32>
    %354 = tpu.matmul %353, %347, %cst_197 {dimension_numbers = #tpu.dot_dimension_numbers<[2], [1], [1], [2], [0, 0, 0, 1, 1, 2], [0], [0]>} : vector<8x8x32xbf16>, vector<8x32x8xbf16>, vector<8x8x8xf32> -> vector<8x8x8xf32>
    "tpu.trace_stop"() : () -> ()
    %355 = vector.broadcast %349 : vector<8x1x8xf32> to vector<8x8x8xf32>
    %356 = arith.addf %354, %355 : vector<8x8x8xf32>
    %357 = vector.extract_strided_slice %356 {offsets = [0, 0, 0], sizes = [4, 8, 8], strides = [1, 1, 1]} : vector<8x8x8xf32> to vector<4x8x8xf32>
    %358 = vector.extract_strided_slice %356 {offsets = [4, 0, 0], sizes = [4, 8, 8], strides = [1, 1, 1]} : vector<8x8x8xf32> to vector<4x8x8xf32>
    %359 = arith.truncf %345 : vector<4x8x8xf32> to vector<4x8x8xbf16>
    %360 = arith.truncf %357 : vector<4x8x8xf32> to vector<4x8x8xbf16>
    "tpu.trace_start"() <{level = 10 : i32, message = "hqd,hkd->hqk"}> : () -> ()
    %cst_198 = arith.constant dense<0.000000e+00> : vector<4x8x8xf32>
    %361 = tpu.matmul %359, %360, %cst_198 {dimension_numbers = #tpu.dot_dimension_numbers<[2], [2], [1], [1], [0, 0, 0, 1, 1, 1], [0], [0]>} : vector<4x8x8xbf16>, vector<4x8x8xbf16>, vector<4x8x8xf32> -> vector<4x8x8xf32>
    "tpu.trace_stop"() : () -> ()
    %cst_199 = arith.constant 0.353553385 : f32
    %362 = vector.broadcast %cst_199 : f32 to vector<4x8x8xf32>
    %363 = arith.mulf %361, %362 : vector<4x8x8xf32>
    %364 = vector.shape_cast %5 : vector<1x8xf32> to vector<1x1x8xf32>
    %365 = vector.broadcast %364 : vector<1x1x8xf32> to vector<4x8x8xf32>
    %366 = arith.addf %363, %365 : vector<4x8x8xf32>
    %cst_200 = arith.constant dense<0xFF800000> : vector<4x8xf32>
    %367 = vector.multi_reduction <maximumf>, %366, %cst_200 [2] : vector<4x8x8xf32> to vector<4x8xf32>
    %368 = vector.shape_cast %367 : vector<4x8xf32> to vector<4x8x1xf32>
    %369 = vector.broadcast %368 : vector<4x8x1xf32> to vector<4x8x8xf32>
    %370 = arith.subf %366, %369 : vector<4x8x8xf32>
    %371 = math.exp %370 : vector<4x8x8xf32>
    %cst_201 = arith.constant dense<0.000000e+00> : vector<4x8xf32>
    %372 = vector.multi_reduction <add>, %371, %cst_201 [2] : vector<4x8x8xf32> to vector<4x8xf32>
    %373 = vector.shape_cast %372 : vector<4x8xf32> to vector<4x8x1xf32>
    %374 = tpu.reciprocal %373 {approx = true} : vector<4x8x1xf32> -> vector<4x8x1xf32>
    %375 = vector.broadcast %374 : vector<4x8x1xf32> to vector<4x8x8xf32>
    %376 = arith.mulf %371, %375 : vector<4x8x8xf32>
    %377 = arith.truncf %376 : vector<4x8x8xf32> to vector<4x8x8xbf16>
    %378 = arith.truncf %358 : vector<4x8x8xf32> to vector<4x8x8xbf16>
    "tpu.trace_start"() <{level = 10 : i32, message = "hqk,hkd->hqd"}> : () -> ()
    %cst_202 = arith.constant dense<0.000000e+00> : vector<4x8x8xf32>
    %379 = tpu.matmul %377, %378, %cst_202 {dimension_numbers = #tpu.dot_dimension_numbers<[2], [1], [1], [2], [0, 0, 0, 1, 1, 2], [0], [0]>} : vector<4x8x8xbf16>, vector<4x8x8xbf16>, vector<4x8x8xf32> -> vector<4x8x8xf32>
    "tpu.trace_stop"() : () -> ()
    %c0_203 = arith.constant 0 : index
    %c0_204 = arith.constant 0 : index
    %c0_205 = arith.constant 0 : index
    %c0_206 = arith.constant 0 : index
    %380 = vector.load %arg30[%c0_203, %c0_204, %c0_205, %c0_206] : memref<2x4x8x32xbf16, #tpu.memory_space<vmem>>, vector<1x4x8x32xbf16>
    %381 = vector.shape_cast %380 : vector<1x4x8x32xbf16> to vector<4x8x32xbf16>
    %c0_207 = arith.constant 0 : index
    %c0_208 = arith.constant 0 : index
    %c0_209 = arith.constant 0 : index
    %382 = vector.load %arg31[%c0_207, %c0_208, %c0_209] : memref<2x1x32xf32, #tpu.memory_space<vmem>>, vector<1x1x32xf32>
    %383 = vector.shape_cast %382 : vector<1x1x32xf32> to vector<1x32xf32>
    %384 = arith.truncf %379 : vector<4x8x8xf32> to vector<4x8x8xbf16>
    "tpu.trace_start"() <{level = 10 : i32, message = "hqe,hed->hqd"}> : () -> ()
    %cst_210 = arith.constant dense<0.000000e+00> : vector<4x8x32xf32>
    %385 = tpu.matmul %384, %381, %cst_210 {dimension_numbers = #tpu.dot_dimension_numbers<[2], [1], [1], [2], [0, 0, 0, 1, 1, 2], [0], [0]>} : vector<4x8x8xbf16>, vector<4x8x32xbf16>, vector<4x8x32xf32> -> vector<4x8x32xf32>
    "tpu.trace_stop"() : () -> ()
    %cst_211 = arith.constant dense<0.000000e+00> : vector<8x32xf32>
    %386 = vector.multi_reduction <add>, %385, %cst_211 [0] : vector<4x8x32xf32> to vector<8x32xf32>
    %387 = vector.broadcast %383 : vector<1x32xf32> to vector<8x32xf32>
    %388 = arith.addf %386, %387 : vector<8x32xf32>
    %389 = arith.addf %334, %388 : vector<8x32xf32>
    %c0_212 = arith.constant 0 : index
    %c0_213 = arith.constant 0 : index
    %c0_214 = arith.constant 0 : index
    %390 = vector.load %arg32[%c0_212, %c0_213, %c0_214] : memref<2x1x32xf32, #tpu.memory_space<vmem>>, vector<1x1x32xf32>
    %391 = vector.shape_cast %390 : vector<1x1x32xf32> to vector<1x32xf32>
    %c0_215 = arith.constant 0 : index
    %c0_216 = arith.constant 0 : index
    %c0_217 = arith.constant 0 : index
    %392 = vector.load %arg33[%c0_215, %c0_216, %c0_217] : memref<2x1x32xf32, #tpu.memory_space<vmem>>, vector<1x1x32xf32>
    %393 = vector.shape_cast %392 : vector<1x1x32xf32> to vector<1x32xf32>
    %cst_218 = arith.constant dense<0.000000e+00> : vector<8xf32>
    %394 = vector.multi_reduction <add>, %389, %cst_218 [1] : vector<8x32xf32> to vector<8xf32>
    %395 = vector.shape_cast %394 : vector<8xf32> to vector<8x1xf32>
    %cst_219 = arith.constant 3.200000e+01 : f32
    %396 = vector.broadcast %cst_219 : f32 to vector<8x1xf32>
    %397 = arith.divf %395, %396 : vector<8x1xf32>
    %398 = vector.broadcast %397 : vector<8x1xf32> to vector<8x32xf32>
    %399 = arith.subf %389, %398 : vector<8x32xf32>
    %400 = arith.mulf %399, %399 : vector<8x32xf32>
    %cst_220 = arith.constant dense<0.000000e+00> : vector<8xf32>
    %401 = vector.multi_reduction <add>, %400, %cst_220 [1] : vector<8x32xf32> to vector<8xf32>
    %402 = vector.shape_cast %401 : vector<8xf32> to vector<8x1xf32>
    %cst_221 = arith.constant 3.200000e+01 : f32
    %403 = vector.broadcast %cst_221 : f32 to vector<8x1xf32>
    %404 = arith.divf %402, %403 : vector<8x1xf32>
    %cst_222 = arith.constant 9.99999974E-6 : f32
    %405 = vector.broadcast %cst_222 : f32 to vector<8x1xf32>
    %406 = arith.addf %404, %405 : vector<8x1xf32>
    %407 = math.rsqrt %406 : vector<8x1xf32>
    %408 = vector.broadcast %407 : vector<8x1xf32> to vector<8x32xf32>
    %409 = arith.mulf %399, %408 : vector<8x32xf32>
    %410 = vector.broadcast %391 : vector<1x32xf32> to vector<8x32xf32>
    %411 = arith.mulf %409, %410 : vector<8x32xf32>
    %412 = vector.broadcast %393 : vector<1x32xf32> to vector<8x32xf32>
    %413 = arith.addf %411, %412 : vector<8x32xf32>
    %c0_223 = arith.constant 0 : index
    %c0_224 = arith.constant 0 : index
    %c0_225 = arith.constant 0 : index
    %414 = vector.load %arg34[%c0_223, %c0_224, %c0_225] : memref<2x32x64xbf16, #tpu.memory_space<vmem>>, vector<1x32x64xbf16>
    %415 = vector.shape_cast %414 : vector<1x32x64xbf16> to vector<32x64xbf16>
    %c0_226 = arith.constant 0 : index
    %c0_227 = arith.constant 0 : index
    %c0_228 = arith.constant 0 : index
    %416 = vector.load %arg35[%c0_226, %c0_227, %c0_228] : memref<2x1x64xf32, #tpu.memory_space<vmem>>, vector<1x1x64xf32>
    %417 = vector.shape_cast %416 : vector<1x1x64xf32> to vector<1x64xf32>
    %c0_229 = arith.constant 0 : index
    %c0_230 = arith.constant 0 : index
    %c0_231 = arith.constant 0 : index
    %418 = vector.load %arg36[%c0_229, %c0_230, %c0_231] : memref<2x64x32xbf16, #tpu.memory_space<vmem>>, vector<1x64x32xbf16>
    %419 = vector.shape_cast %418 : vector<1x64x32xbf16> to vector<64x32xbf16>
    %c0_232 = arith.constant 0 : index
    %c0_233 = arith.constant 0 : index
    %c0_234 = arith.constant 0 : index
    %420 = vector.load %arg37[%c0_232, %c0_233, %c0_234] : memref<2x1x32xf32, #tpu.memory_space<vmem>>, vector<1x1x32xf32>
    %421 = vector.shape_cast %420 : vector<1x1x32xf32> to vector<1x32xf32>
    %422 = arith.truncf %413 : vector<8x32xf32> to vector<8x32xbf16>
    %cst_235 = arith.constant dense<0.000000e+00> : vector<8x64xf32>
    %423 = tpu.matmul %422, %415, %cst_235 {dimension_numbers = #tpu.dot_dimension_numbers<[1], [0], [0], [1], [0, 0, 1, 1], [], []>} : vector<8x32xbf16>, vector<32x64xbf16>, vector<8x64xf32> -> vector<8x64xf32>
    %424 = vector.broadcast %417 : vector<1x64xf32> to vector<8x64xf32>
    %425 = arith.addf %423, %424 : vector<8x64xf32>
    %cst_236 = arith.constant 0.000000e+00 : f32
    %426 = vector.broadcast %cst_236 : f32 to vector<8x64xf32>
    %427 = arith.maximumf %425, %426 : vector<8x64xf32>
    %428 = arith.truncf %427 : vector<8x64xf32> to vector<8x64xbf16>
    %cst_237 = arith.constant dense<0.000000e+00> : vector<8x32xf32>
    %429 = tpu.matmul %428, %419, %cst_237 {dimension_numbers = #tpu.dot_dimension_numbers<[1], [0], [0], [1], [0, 0, 1, 1], [], []>} : vector<8x64xbf16>, vector<64x32xbf16>, vector<8x32xf32> -> vector<8x32xf32>
    %430 = vector.broadcast %421 : vector<1x32xf32> to vector<8x32xf32>
    %431 = arith.addf %429, %430 : vector<8x32xf32>
    %432 = arith.addf %413, %431 : vector<8x32xf32>
    %c0_238 = arith.constant 0 : index
    %c0_239 = arith.constant 0 : index
    %c0_240 = arith.constant 0 : index
    %433 = vector.load %arg38[%c0_238, %c0_239, %c0_240] : memref<2x1x32xf32, #tpu.memory_space<vmem>>, vector<1x1x32xf32>
    %434 = vector.shape_cast %433 : vector<1x1x32xf32> to vector<1x32xf32>
    %c0_241 = arith.constant 0 : index
    %c0_242 = arith.constant 0 : index
    %c0_243 = arith.constant 0 : index
    %435 = vector.load %arg39[%c0_241, %c0_242, %c0_243] : memref<2x1x32xf32, #tpu.memory_space<vmem>>, vector<1x1x32xf32>
    %436 = vector.shape_cast %435 : vector<1x1x32xf32> to vector<1x32xf32>
    %cst_244 = arith.constant dense<0.000000e+00> : vector<8xf32>
    %437 = vector.multi_reduction <add>, %432, %cst_244 [1] : vector<8x32xf32> to vector<8xf32>
    %438 = vector.shape_cast %437 : vector<8xf32> to vector<8x1xf32>
    %cst_245 = arith.constant 3.200000e+01 : f32
    %439 = vector.broadcast %cst_245 : f32 to vector<8x1xf32>
    %440 = arith.divf %438, %439 : vector<8x1xf32>
    %441 = vector.broadcast %440 : vector<8x1xf32> to vector<8x32xf32>
    %442 = arith.subf %432, %441 : vector<8x32xf32>
    %443 = arith.mulf %442, %442 : vector<8x32xf32>
    %cst_246 = arith.constant dense<0.000000e+00> : vector<8xf32>
    %444 = vector.multi_reduction <add>, %443, %cst_246 [1] : vector<8x32xf32> to vector<8xf32>
    %445 = vector.shape_cast %444 : vector<8xf32> to vector<8x1xf32>
    %cst_247 = arith.constant 3.200000e+01 : f32
    %446 = vector.broadcast %cst_247 : f32 to vector<8x1xf32>
    %447 = arith.divf %445, %446 : vector<8x1xf32>
    %cst_248 = arith.constant 9.99999974E-6 : f32
    %448 = vector.broadcast %cst_248 : f32 to vector<8x1xf32>
    %449 = arith.addf %447, %448 : vector<8x1xf32>
    %450 = math.rsqrt %449 : vector<8x1xf32>
    %451 = vector.broadcast %450 : vector<8x1xf32> to vector<8x32xf32>
    %452 = arith.mulf %442, %451 : vector<8x32xf32>
    %453 = vector.broadcast %434 : vector<1x32xf32> to vector<8x32xf32>
    %454 = arith.mulf %452, %453 : vector<8x32xf32>
    %455 = vector.broadcast %436 : vector<1x32xf32> to vector<8x32xf32>
    %456 = arith.addf %454, %455 : vector<8x32xf32>
    %c1_249 = arith.constant 1 : index
    %c0_250 = arith.constant 0 : index
    %c0_251 = arith.constant 0 : index
    %c0_252 = arith.constant 0 : index
    %457 = vector.load %arg20[%c1_249, %c0_250, %c0_251, %c0_252] : memref<2x12x32x8xbf16, #tpu.memory_space<vmem>>, vector<1x12x32x8xbf16>
    %458 = vector.shape_cast %457 : vector<1x12x32x8xbf16> to vector<12x32x8xbf16>
    %c1_253 = arith.constant 1 : index
    %c0_254 = arith.constant 0 : index
    %c0_255 = arith.constant 0 : index
    %c0_256 = arith.constant 0 : index
    %459 = vector.load %arg21[%c1_253, %c0_254, %c0_255, %c0_256] : memref<2x12x1x8xf32, #tpu.memory_space<vmem>>, vector<1x12x1x8xf32>
    %460 = vector.shape_cast %459 : vector<1x12x1x8xf32> to vector<12x1x8xf32>
    %461 = arith.truncf %456 : vector<8x32xf32> to vector<8x32xbf16>
    %462 = vector.shape_cast %461 : vector<8x32xbf16> to vector<1x8x32xbf16>
    %463 = vector.shape_cast %462 : vector<1x8x32xbf16> to vector<1x8x32xbf16>
    %464 = vector.broadcast %463 : vector<1x8x32xbf16> to vector<12x8x32xbf16>
    "tpu.trace_start"() <{level = 10 : i32, message = "gsd,gde->gse"}> : () -> ()
    %cst_257 = arith.constant dense<0.000000e+00> : vector<12x8x8xf32>
    %465 = tpu.matmul %464, %458, %cst_257 {dimension_numbers = #tpu.dot_dimension_numbers<[2], [1], [1], [2], [0, 0, 0, 1, 1, 2], [0], [0]>} : vector<12x8x32xbf16>, vector<12x32x8xbf16>, vector<12x8x8xf32> -> vector<12x8x8xf32>
    "tpu.trace_stop"() : () -> ()
    %466 = vector.broadcast %460 : vector<12x1x8xf32> to vector<12x8x8xf32>
    %467 = arith.addf %465, %466 : vector<12x8x8xf32>
    %468 = vector.extract_strided_slice %467 {offsets = [0, 0, 0], sizes = [4, 8, 8], strides = [1, 1, 1]} : vector<12x8x8xf32> to vector<4x8x8xf32>
    %469 = vector.extract_strided_slice %467 {offsets = [4, 0, 0], sizes = [4, 8, 8], strides = [1, 1, 1]} : vector<12x8x8xf32> to vector<4x8x8xf32>
    %470 = vector.extract_strided_slice %467 {offsets = [8, 0, 0], sizes = [4, 8, 8], strides = [1, 1, 1]} : vector<12x8x8xf32> to vector<4x8x8xf32>
    %471 = arith.truncf %468 : vector<4x8x8xf32> to vector<4x8x8xbf16>
    %472 = arith.truncf %469 : vector<4x8x8xf32> to vector<4x8x8xbf16>
    "tpu.trace_start"() <{level = 10 : i32, message = "hqd,hkd->hqk"}> : () -> ()
    %cst_258 = arith.constant dense<0.000000e+00> : vector<4x8x8xf32>
    %473 = tpu.matmul %471, %472, %cst_258 {dimension_numbers = #tpu.dot_dimension_numbers<[2], [2], [1], [1], [0, 0, 0, 1, 1, 1], [0], [0]>} : vector<4x8x8xbf16>, vector<4x8x8xbf16>, vector<4x8x8xf32> -> vector<4x8x8xf32>
    "tpu.trace_stop"() : () -> ()
    %cst_259 = arith.constant 0.353553385 : f32
    %474 = vector.broadcast %cst_259 : f32 to vector<4x8x8xf32>
    %475 = arith.mulf %473, %474 : vector<4x8x8xf32>
    %476 = vector.shape_cast %11 : vector<8x8xf32> to vector<1x8x8xf32>
    %477 = vector.broadcast %476 : vector<1x8x8xf32> to vector<4x8x8xf32>
    %478 = arith.addf %475, %477 : vector<4x8x8xf32>
    %cst_260 = arith.constant dense<0xFF800000> : vector<4x8xf32>
    %479 = vector.multi_reduction <maximumf>, %478, %cst_260 [2] : vector<4x8x8xf32> to vector<4x8xf32>
    %480 = vector.shape_cast %479 : vector<4x8xf32> to vector<4x8x1xf32>
    %481 = vector.broadcast %480 : vector<4x8x1xf32> to vector<4x8x8xf32>
    %482 = arith.subf %478, %481 : vector<4x8x8xf32>
    %483 = math.exp %482 : vector<4x8x8xf32>
    %cst_261 = arith.constant dense<0.000000e+00> : vector<4x8xf32>
    %484 = vector.multi_reduction <add>, %483, %cst_261 [2] : vector<4x8x8xf32> to vector<4x8xf32>
    %485 = vector.shape_cast %484 : vector<4x8xf32> to vector<4x8x1xf32>
    %486 = tpu.reciprocal %485 {approx = true} : vector<4x8x1xf32> -> vector<4x8x1xf32>
    %487 = vector.broadcast %486 : vector<4x8x1xf32> to vector<4x8x8xf32>
    %488 = arith.mulf %483, %487 : vector<4x8x8xf32>
    %489 = arith.truncf %488 : vector<4x8x8xf32> to vector<4x8x8xbf16>
    %490 = arith.truncf %470 : vector<4x8x8xf32> to vector<4x8x8xbf16>
    "tpu.trace_start"() <{level = 10 : i32, message = "hqk,hkd->hqd"}> : () -> ()
    %cst_262 = arith.constant dense<0.000000e+00> : vector<4x8x8xf32>
    %491 = tpu.matmul %489, %490, %cst_262 {dimension_numbers = #tpu.dot_dimension_numbers<[2], [1], [1], [2], [0, 0, 0, 1, 1, 2], [0], [0]>} : vector<4x8x8xbf16>, vector<4x8x8xbf16>, vector<4x8x8xf32> -> vector<4x8x8xf32>
    "tpu.trace_stop"() : () -> ()
    %c1_263 = arith.constant 1 : index
    %c0_264 = arith.constant 0 : index
    %c0_265 = arith.constant 0 : index
    %c0_266 = arith.constant 0 : index
    %492 = vector.load %arg22[%c1_263, %c0_264, %c0_265, %c0_266] : memref<2x4x8x32xbf16, #tpu.memory_space<vmem>>, vector<1x4x8x32xbf16>
    %493 = vector.shape_cast %492 : vector<1x4x8x32xbf16> to vector<4x8x32xbf16>
    %c1_267 = arith.constant 1 : index
    %c0_268 = arith.constant 0 : index
    %c0_269 = arith.constant 0 : index
    %494 = vector.load %arg23[%c1_267, %c0_268, %c0_269] : memref<2x1x32xf32, #tpu.memory_space<vmem>>, vector<1x1x32xf32>
    %495 = vector.shape_cast %494 : vector<1x1x32xf32> to vector<1x32xf32>
    %496 = arith.truncf %491 : vector<4x8x8xf32> to vector<4x8x8xbf16>
    "tpu.trace_start"() <{level = 10 : i32, message = "hqe,hed->hqd"}> : () -> ()
    %cst_270 = arith.constant dense<0.000000e+00> : vector<4x8x32xf32>
    %497 = tpu.matmul %496, %493, %cst_270 {dimension_numbers = #tpu.dot_dimension_numbers<[2], [1], [1], [2], [0, 0, 0, 1, 1, 2], [0], [0]>} : vector<4x8x8xbf16>, vector<4x8x32xbf16>, vector<4x8x32xf32> -> vector<4x8x32xf32>
    "tpu.trace_stop"() : () -> ()
    %cst_271 = arith.constant dense<0.000000e+00> : vector<8x32xf32>
    %498 = vector.multi_reduction <add>, %497, %cst_271 [0] : vector<4x8x32xf32> to vector<8x32xf32>
    %499 = vector.broadcast %495 : vector<1x32xf32> to vector<8x32xf32>
    %500 = arith.addf %498, %499 : vector<8x32xf32>
    %501 = arith.addf %456, %500 : vector<8x32xf32>
    %c1_272 = arith.constant 1 : index
    %c0_273 = arith.constant 0 : index
    %c0_274 = arith.constant 0 : index
    %502 = vector.load %arg24[%c1_272, %c0_273, %c0_274] : memref<2x1x32xf32, #tpu.memory_space<vmem>>, vector<1x1x32xf32>
    %503 = vector.shape_cast %502 : vector<1x1x32xf32> to vector<1x32xf32>
    %c1_275 = arith.constant 1 : index
    %c0_276 = arith.constant 0 : index
    %c0_277 = arith.constant 0 : index
    %504 = vector.load %arg25[%c1_275, %c0_276, %c0_277] : memref<2x1x32xf32, #tpu.memory_space<vmem>>, vector<1x1x32xf32>
    %505 = vector.shape_cast %504 : vector<1x1x32xf32> to vector<1x32xf32>
    %cst_278 = arith.constant dense<0.000000e+00> : vector<8xf32>
    %506 = vector.multi_reduction <add>, %501, %cst_278 [1] : vector<8x32xf32> to vector<8xf32>
    %507 = vector.shape_cast %506 : vector<8xf32> to vector<8x1xf32>
    %cst_279 = arith.constant 3.200000e+01 : f32
    %508 = vector.broadcast %cst_279 : f32 to vector<8x1xf32>
    %509 = arith.divf %507, %508 : vector<8x1xf32>
    %510 = vector.broadcast %509 : vector<8x1xf32> to vector<8x32xf32>
    %511 = arith.subf %501, %510 : vector<8x32xf32>
    %512 = arith.mulf %511, %511 : vector<8x32xf32>
    %cst_280 = arith.constant dense<0.000000e+00> : vector<8xf32>
    %513 = vector.multi_reduction <add>, %512, %cst_280 [1] : vector<8x32xf32> to vector<8xf32>
    %514 = vector.shape_cast %513 : vector<8xf32> to vector<8x1xf32>
    %cst_281 = arith.constant 3.200000e+01 : f32
    %515 = vector.broadcast %cst_281 : f32 to vector<8x1xf32>
    %516 = arith.divf %514, %515 : vector<8x1xf32>
    %cst_282 = arith.constant 9.99999974E-6 : f32
    %517 = vector.broadcast %cst_282 : f32 to vector<8x1xf32>
    %518 = arith.addf %516, %517 : vector<8x1xf32>
    %519 = math.rsqrt %518 : vector<8x1xf32>
    %520 = vector.broadcast %519 : vector<8x1xf32> to vector<8x32xf32>
    %521 = arith.mulf %511, %520 : vector<8x32xf32>
    %522 = vector.broadcast %503 : vector<1x32xf32> to vector<8x32xf32>
    %523 = arith.mulf %521, %522 : vector<8x32xf32>
    %524 = vector.broadcast %505 : vector<1x32xf32> to vector<8x32xf32>
    %525 = arith.addf %523, %524 : vector<8x32xf32>
    %c1_283 = arith.constant 1 : index
    %c0_284 = arith.constant 0 : index
    %c0_285 = arith.constant 0 : index
    %c0_286 = arith.constant 0 : index
    %526 = vector.load %arg26[%c1_283, %c0_284, %c0_285, %c0_286] : memref<2x4x32x8xbf16, #tpu.memory_space<vmem>>, vector<1x4x32x8xbf16>
    %527 = vector.shape_cast %526 : vector<1x4x32x8xbf16> to vector<4x32x8xbf16>
    %c1_287 = arith.constant 1 : index
    %c0_288 = arith.constant 0 : index
    %c0_289 = arith.constant 0 : index
    %c0_290 = arith.constant 0 : index
    %528 = vector.load %arg27[%c1_287, %c0_288, %c0_289, %c0_290] : memref<2x4x1x8xf32, #tpu.memory_space<vmem>>, vector<1x4x1x8xf32>
    %529 = vector.shape_cast %528 : vector<1x4x1x8xf32> to vector<4x1x8xf32>
    %530 = arith.truncf %525 : vector<8x32xf32> to vector<8x32xbf16>
    %531 = vector.shape_cast %530 : vector<8x32xbf16> to vector<1x8x32xbf16>
    %532 = vector.shape_cast %531 : vector<1x8x32xbf16> to vector<1x8x32xbf16>
    %533 = vector.broadcast %532 : vector<1x8x32xbf16> to vector<4x8x32xbf16>
    "tpu.trace_start"() <{level = 10 : i32, message = "gsd,gde->gse"}> : () -> ()
    %cst_291 = arith.constant dense<0.000000e+00> : vector<4x8x8xf32>
    %534 = tpu.matmul %533, %527, %cst_291 {dimension_numbers = #tpu.dot_dimension_numbers<[2], [1], [1], [2], [0, 0, 0, 1, 1, 2], [0], [0]>} : vector<4x8x32xbf16>, vector<4x32x8xbf16>, vector<4x8x8xf32> -> vector<4x8x8xf32>
    "tpu.trace_stop"() : () -> ()
    %535 = vector.broadcast %529 : vector<4x1x8xf32> to vector<4x8x8xf32>
    %536 = arith.addf %534, %535 : vector<4x8x8xf32>
    %c1_292 = arith.constant 1 : index
    %c0_293 = arith.constant 0 : index
    %c0_294 = arith.constant 0 : index
    %c0_295 = arith.constant 0 : index
    %537 = vector.load %arg28[%c1_292, %c0_293, %c0_294, %c0_295] : memref<2x8x32x8xbf16, #tpu.memory_space<vmem>>, vector<1x8x32x8xbf16>
    %538 = vector.shape_cast %537 : vector<1x8x32x8xbf16> to vector<8x32x8xbf16>
    %c1_296 = arith.constant 1 : index
    %c0_297 = arith.constant 0 : index
    %c0_298 = arith.constant 0 : index
    %c0_299 = arith.constant 0 : index
    %539 = vector.load %arg29[%c1_296, %c0_297, %c0_298, %c0_299] : memref<2x8x1x8xf32, #tpu.memory_space<vmem>>, vector<1x8x1x8xf32>
    %540 = vector.shape_cast %539 : vector<1x8x1x8xf32> to vector<8x1x8xf32>
    %541 = arith.truncf %250 : vector<8x32xf32> to vector<8x32xbf16>
    %542 = vector.shape_cast %541 : vector<8x32xbf16> to vector<1x8x32xbf16>
    %543 = vector.shape_cast %542 : vector<1x8x32xbf16> to vector<1x8x32xbf16>
    %544 = vector.broadcast %543 : vector<1x8x32xbf16> to vector<8x8x32xbf16>
    "tpu.trace_start"() <{level = 10 : i32, message = "gsd,gde->gse"}> : () -> ()
    %cst_300 = arith.constant dense<0.000000e+00> : vector<8x8x8xf32>
    %545 = tpu.matmul %544, %538, %cst_300 {dimension_numbers = #tpu.dot_dimension_numbers<[2], [1], [1], [2], [0, 0, 0, 1, 1, 2], [0], [0]>} : vector<8x8x32xbf16>, vector<8x32x8xbf16>, vector<8x8x8xf32> -> vector<8x8x8xf32>
    "tpu.trace_stop"() : () -> ()
    %546 = vector.broadcast %540 : vector<8x1x8xf32> to vector<8x8x8xf32>
    %547 = arith.addf %545, %546 : vector<8x8x8xf32>
    %548 = vector.extract_strided_slice %547 {offsets = [0, 0, 0], sizes = [4, 8, 8], strides = [1, 1, 1]} : vector<8x8x8xf32> to vector<4x8x8xf32>
    %549 = vector.extract_strided_slice %547 {offsets = [4, 0, 0], sizes = [4, 8, 8], strides = [1, 1, 1]} : vector<8x8x8xf32> to vector<4x8x8xf32>
    %550 = arith.truncf %536 : vector<4x8x8xf32> to vector<4x8x8xbf16>
    %551 = arith.truncf %548 : vector<4x8x8xf32> to vector<4x8x8xbf16>
    "tpu.trace_start"() <{level = 10 : i32, message = "hqd,hkd->hqk"}> : () -> ()
    %cst_301 = arith.constant dense<0.000000e+00> : vector<4x8x8xf32>
    %552 = tpu.matmul %550, %551, %cst_301 {dimension_numbers = #tpu.dot_dimension_numbers<[2], [2], [1], [1], [0, 0, 0, 1, 1, 1], [0], [0]>} : vector<4x8x8xbf16>, vector<4x8x8xbf16>, vector<4x8x8xf32> -> vector<4x8x8xf32>
    "tpu.trace_stop"() : () -> ()
    %cst_302 = arith.constant 0.353553385 : f32
    %553 = vector.broadcast %cst_302 : f32 to vector<4x8x8xf32>
    %554 = arith.mulf %552, %553 : vector<4x8x8xf32>
    %555 = vector.shape_cast %5 : vector<1x8xf32> to vector<1x1x8xf32>
    %556 = vector.broadcast %555 : vector<1x1x8xf32> to vector<4x8x8xf32>
    %557 = arith.addf %554, %556 : vector<4x8x8xf32>
    %cst_303 = arith.constant dense<0xFF800000> : vector<4x8xf32>
    %558 = vector.multi_reduction <maximumf>, %557, %cst_303 [2] : vector<4x8x8xf32> to vector<4x8xf32>
    %559 = vector.shape_cast %558 : vector<4x8xf32> to vector<4x8x1xf32>
    %560 = vector.broadcast %559 : vector<4x8x1xf32> to vector<4x8x8xf32>
    %561 = arith.subf %557, %560 : vector<4x8x8xf32>
    %562 = math.exp %561 : vector<4x8x8xf32>
    %cst_304 = arith.constant dense<0.000000e+00> : vector<4x8xf32>
    %563 = vector.multi_reduction <add>, %562, %cst_304 [2] : vector<4x8x8xf32> to vector<4x8xf32>
    %564 = vector.shape_cast %563 : vector<4x8xf32> to vector<4x8x1xf32>
    %565 = tpu.reciprocal %564 {approx = true} : vector<4x8x1xf32> -> vector<4x8x1xf32>
    %566 = vector.broadcast %565 : vector<4x8x1xf32> to vector<4x8x8xf32>
    %567 = arith.mulf %562, %566 : vector<4x8x8xf32>
    %568 = arith.truncf %567 : vector<4x8x8xf32> to vector<4x8x8xbf16>
    %569 = arith.truncf %549 : vector<4x8x8xf32> to vector<4x8x8xbf16>
    "tpu.trace_start"() <{level = 10 : i32, message = "hqk,hkd->hqd"}> : () -> ()
    %cst_305 = arith.constant dense<0.000000e+00> : vector<4x8x8xf32>
    %570 = tpu.matmul %568, %569, %cst_305 {dimension_numbers = #tpu.dot_dimension_numbers<[2], [1], [1], [2], [0, 0, 0, 1, 1, 2], [0], [0]>} : vector<4x8x8xbf16>, vector<4x8x8xbf16>, vector<4x8x8xf32> -> vector<4x8x8xf32>
    "tpu.trace_stop"() : () -> ()
    %c1_306 = arith.constant 1 : index
    %c0_307 = arith.constant 0 : index
    %c0_308 = arith.constant 0 : index
    %c0_309 = arith.constant 0 : index
    %571 = vector.load %arg30[%c1_306, %c0_307, %c0_308, %c0_309] : memref<2x4x8x32xbf16, #tpu.memory_space<vmem>>, vector<1x4x8x32xbf16>
    %572 = vector.shape_cast %571 : vector<1x4x8x32xbf16> to vector<4x8x32xbf16>
    %c1_310 = arith.constant 1 : index
    %c0_311 = arith.constant 0 : index
    %c0_312 = arith.constant 0 : index
    %573 = vector.load %arg31[%c1_310, %c0_311, %c0_312] : memref<2x1x32xf32, #tpu.memory_space<vmem>>, vector<1x1x32xf32>
    %574 = vector.shape_cast %573 : vector<1x1x32xf32> to vector<1x32xf32>
    %575 = arith.truncf %570 : vector<4x8x8xf32> to vector<4x8x8xbf16>
    "tpu.trace_start"() <{level = 10 : i32, message = "hqe,hed->hqd"}> : () -> ()
    %cst_313 = arith.constant dense<0.000000e+00> : vector<4x8x32xf32>
    %576 = tpu.matmul %575, %572, %cst_313 {dimension_numbers = #tpu.dot_dimension_numbers<[2], [1], [1], [2], [0, 0, 0, 1, 1, 2], [0], [0]>} : vector<4x8x8xbf16>, vector<4x8x32xbf16>, vector<4x8x32xf32> -> vector<4x8x32xf32>
    "tpu.trace_stop"() : () -> ()
    %cst_314 = arith.constant dense<0.000000e+00> : vector<8x32xf32>
    %577 = vector.multi_reduction <add>, %576, %cst_314 [0] : vector<4x8x32xf32> to vector<8x32xf32>
    %578 = vector.broadcast %574 : vector<1x32xf32> to vector<8x32xf32>
    %579 = arith.addf %577, %578 : vector<8x32xf32>
    %580 = arith.addf %525, %579 : vector<8x32xf32>
    %c1_315 = arith.constant 1 : index
    %c0_316 = arith.constant 0 : index
    %c0_317 = arith.constant 0 : index
    %581 = vector.load %arg32[%c1_315, %c0_316, %c0_317] : memref<2x1x32xf32, #tpu.memory_space<vmem>>, vector<1x1x32xf32>
    %582 = vector.shape_cast %581 : vector<1x1x32xf32> to vector<1x32xf32>
    %c1_318 = arith.constant 1 : index
    %c0_319 = arith.constant 0 : index
    %c0_320 = arith.constant 0 : index
    %583 = vector.load %arg33[%c1_318, %c0_319, %c0_320] : memref<2x1x32xf32, #tpu.memory_space<vmem>>, vector<1x1x32xf32>
    %584 = vector.shape_cast %583 : vector<1x1x32xf32> to vector<1x32xf32>
    %cst_321 = arith.constant dense<0.000000e+00> : vector<8xf32>
    %585 = vector.multi_reduction <add>, %580, %cst_321 [1] : vector<8x32xf32> to vector<8xf32>
    %586 = vector.shape_cast %585 : vector<8xf32> to vector<8x1xf32>
    %cst_322 = arith.constant 3.200000e+01 : f32
    %587 = vector.broadcast %cst_322 : f32 to vector<8x1xf32>
    %588 = arith.divf %586, %587 : vector<8x1xf32>
    %589 = vector.broadcast %588 : vector<8x1xf32> to vector<8x32xf32>
    %590 = arith.subf %580, %589 : vector<8x32xf32>
    %591 = arith.mulf %590, %590 : vector<8x32xf32>
    %cst_323 = arith.constant dense<0.000000e+00> : vector<8xf32>
    %592 = vector.multi_reduction <add>, %591, %cst_323 [1] : vector<8x32xf32> to vector<8xf32>
    %593 = vector.shape_cast %592 : vector<8xf32> to vector<8x1xf32>
    %cst_324 = arith.constant 3.200000e+01 : f32
    %594 = vector.broadcast %cst_324 : f32 to vector<8x1xf32>
    %595 = arith.divf %593, %594 : vector<8x1xf32>
    %cst_325 = arith.constant 9.99999974E-6 : f32
    %596 = vector.broadcast %cst_325 : f32 to vector<8x1xf32>
    %597 = arith.addf %595, %596 : vector<8x1xf32>
    %598 = math.rsqrt %597 : vector<8x1xf32>
    %599 = vector.broadcast %598 : vector<8x1xf32> to vector<8x32xf32>
    %600 = arith.mulf %590, %599 : vector<8x32xf32>
    %601 = vector.broadcast %582 : vector<1x32xf32> to vector<8x32xf32>
    %602 = arith.mulf %600, %601 : vector<8x32xf32>
    %603 = vector.broadcast %584 : vector<1x32xf32> to vector<8x32xf32>
    %604 = arith.addf %602, %603 : vector<8x32xf32>
    %c1_326 = arith.constant 1 : index
    %c0_327 = arith.constant 0 : index
    %c0_328 = arith.constant 0 : index
    %605 = vector.load %arg34[%c1_326, %c0_327, %c0_328] : memref<2x32x64xbf16, #tpu.memory_space<vmem>>, vector<1x32x64xbf16>
    %606 = vector.shape_cast %605 : vector<1x32x64xbf16> to vector<32x64xbf16>
    %c1_329 = arith.constant 1 : index
    %c0_330 = arith.constant 0 : index
    %c0_331 = arith.constant 0 : index
    %607 = vector.load %arg35[%c1_329, %c0_330, %c0_331] : memref<2x1x64xf32, #tpu.memory_space<vmem>>, vector<1x1x64xf32>
    %608 = vector.shape_cast %607 : vector<1x1x64xf32> to vector<1x64xf32>
    %c1_332 = arith.constant 1 : index
    %c0_333 = arith.constant 0 : index
    %c0_334 = arith.constant 0 : index
    %609 = vector.load %arg36[%c1_332, %c0_333, %c0_334] : memref<2x64x32xbf16, #tpu.memory_space<vmem>>, vector<1x64x32xbf16>
    %610 = vector.shape_cast %609 : vector<1x64x32xbf16> to vector<64x32xbf16>
    %c1_335 = arith.constant 1 : index
    %c0_336 = arith.constant 0 : index
    %c0_337 = arith.constant 0 : index
    %611 = vector.load %arg37[%c1_335, %c0_336, %c0_337] : memref<2x1x32xf32, #tpu.memory_space<vmem>>, vector<1x1x32xf32>
    %612 = vector.shape_cast %611 : vector<1x1x32xf32> to vector<1x32xf32>
    %613 = arith.truncf %604 : vector<8x32xf32> to vector<8x32xbf16>
    %cst_338 = arith.constant dense<0.000000e+00> : vector<8x64xf32>
    %614 = tpu.matmul %613, %606, %cst_338 {dimension_numbers = #tpu.dot_dimension_numbers<[1], [0], [0], [1], [0, 0, 1, 1], [], []>} : vector<8x32xbf16>, vector<32x64xbf16>, vector<8x64xf32> -> vector<8x64xf32>
    %615 = vector.broadcast %608 : vector<1x64xf32> to vector<8x64xf32>
    %616 = arith.addf %614, %615 : vector<8x64xf32>
    %cst_339 = arith.constant 0.000000e+00 : f32
    %617 = vector.broadcast %cst_339 : f32 to vector<8x64xf32>
    %618 = arith.maximumf %616, %617 : vector<8x64xf32>
    %619 = arith.truncf %618 : vector<8x64xf32> to vector<8x64xbf16>
    %cst_340 = arith.constant dense<0.000000e+00> : vector<8x32xf32>
    %620 = tpu.matmul %619, %610, %cst_340 {dimension_numbers = #tpu.dot_dimension_numbers<[1], [0], [0], [1], [0, 0, 1, 1], [], []>} : vector<8x64xbf16>, vector<64x32xbf16>, vector<8x32xf32> -> vector<8x32xf32>
    %621 = vector.broadcast %612 : vector<1x32xf32> to vector<8x32xf32>
    %622 = arith.addf %620, %621 : vector<8x32xf32>
    %623 = arith.addf %604, %622 : vector<8x32xf32>
    %c1_341 = arith.constant 1 : index
    %c0_342 = arith.constant 0 : index
    %c0_343 = arith.constant 0 : index
    %624 = vector.load %arg38[%c1_341, %c0_342, %c0_343] : memref<2x1x32xf32, #tpu.memory_space<vmem>>, vector<1x1x32xf32>
    %625 = vector.shape_cast %624 : vector<1x1x32xf32> to vector<1x32xf32>
    %c1_344 = arith.constant 1 : index
    %c0_345 = arith.constant 0 : index
    %c0_346 = arith.constant 0 : index
    %626 = vector.load %arg39[%c1_344, %c0_345, %c0_346] : memref<2x1x32xf32, #tpu.memory_space<vmem>>, vector<1x1x32xf32>
    %627 = vector.shape_cast %626 : vector<1x1x32xf32> to vector<1x32xf32>
    %cst_347 = arith.constant dense<0.000000e+00> : vector<8xf32>
    %628 = vector.multi_reduction <add>, %623, %cst_347 [1] : vector<8x32xf32> to vector<8xf32>
    %629 = vector.shape_cast %628 : vector<8xf32> to vector<8x1xf32>
    %cst_348 = arith.constant 3.200000e+01 : f32
    %630 = vector.broadcast %cst_348 : f32 to vector<8x1xf32>
    %631 = arith.divf %629, %630 : vector<8x1xf32>
    %632 = vector.broadcast %631 : vector<8x1xf32> to vector<8x32xf32>
    %633 = arith.subf %623, %632 : vector<8x32xf32>
    %634 = arith.mulf %633, %633 : vector<8x32xf32>
    %cst_349 = arith.constant dense<0.000000e+00> : vector<8xf32>
    %635 = vector.multi_reduction <add>, %634, %cst_349 [1] : vector<8x32xf32> to vector<8xf32>
    %636 = vector.shape_cast %635 : vector<8xf32> to vector<8x1xf32>
    %cst_350 = arith.constant 3.200000e+01 : f32
    %637 = vector.broadcast %cst_350 : f32 to vector<8x1xf32>
    %638 = arith.divf %636, %637 : vector<8x1xf32>
    %cst_351 = arith.constant 9.99999974E-6 : f32
    %639 = vector.broadcast %cst_351 : f32 to vector<8x1xf32>
    %640 = arith.addf %638, %639 : vector<8x1xf32>
    %641 = math.rsqrt %640 : vector<8x1xf32>
    %642 = vector.broadcast %641 : vector<8x1xf32> to vector<8x32xf32>
    %643 = arith.mulf %633, %642 : vector<8x32xf32>
    %644 = vector.broadcast %625 : vector<1x32xf32> to vector<8x32xf32>
    %645 = arith.mulf %643, %644 : vector<8x32xf32>
    %646 = vector.broadcast %627 : vector<1x32xf32> to vector<8x32xf32>
    %647 = arith.addf %645, %646 : vector<8x32xf32>
    %648 = arith.truncf %647 : vector<8x32xf32> to vector<8x32xbf16>
    %c0_352 = arith.constant 0 : index
    %c0_353 = arith.constant 0 : index
    %649 = vector.load %arg40[%c0_352, %c0_353] : memref<32x128xbf16, #tpu.memory_space<vmem>>, vector<32x128xbf16>
    %cst_354 = arith.constant dense<0.000000e+00> : vector<8x128xf32>
    %650 = tpu.matmul %648, %649, %cst_354 {dimension_numbers = #tpu.dot_dimension_numbers<[1], [0], [0], [1], [0, 0, 1, 1], [], []>} : vector<8x32xbf16>, vector<32x128xbf16>, vector<8x128xf32> -> vector<8x128xf32>
    %c0_355 = arith.constant 0 : index
    %c0_356 = arith.constant 0 : index
    %651 = vector.load %arg41[%c0_355, %c0_356] : memref<1x128xf32, #tpu.memory_space<vmem>>, vector<1x128xf32>
    %652 = vector.broadcast %651 : vector<1x128xf32> to vector<8x128xf32>
    %653 = arith.addf %650, %652 : vector<8x128xf32>
    %c0_357 = arith.constant 0 : index
    %c0_358 = arith.constant 0 : index
    %c0_359 = arith.constant 0 : index
    %654 = vector.load %arg42[%c0_357, %c0_358, %c0_359] : memref<1x8x128xf32, #tpu.memory_space<vmem>>, vector<1x8x128xf32>
    %655 = vector.shape_cast %654 : vector<1x8x128xf32> to vector<8x128xf32>
    %656 = vector.shape_cast %653 : vector<8x128xf32> to vector<1x8x128xf32>
    tpu.vector_store %arg42[%c0_357, %c0_358, %c0_359], %656 {strides = array<i32>} : memref<1x8x128xf32, #tpu.memory_space<vmem>>, vector<1x8x128xf32>,
    return
  }
  func.func @transform_0(%arg0: i32) -> (i32, i32, i32) {
    %c0_i32 = arith.constant 0 : i32
    %c0_i32_0 = arith.constant 0 : i32
    %c0_i32_1 = arith.constant 0 : i32
    return %arg0, %c0_i32, %c0_i32_0 : i32, i32, i32
  }
  func.func @transform_1(%arg0: i32) -> (i32, i32, i32) {
    %c0_i32 = arith.constant 0 : i32
    %c0_i32_0 = arith.constant 0 : i32
    %c0_i32_1 = arith.constant 0 : i32
    return %arg0, %c0_i32, %c0_i32_0 : i32, i32, i32
  }
  func.func @transform_2(%arg0: i32) -> (i32, i32, i32) {
    %c0_i32 = arith.constant 0 : i32
    %c0_i32_0 = arith.constant 0 : i32
    %c0_i32_1 = arith.constant 0 : i32
    return %arg0, %c0_i32, %c0_i32_0 : i32, i32, i32
  }
  func.func @transform_3(%arg0: i32) -> (i32, i32) {
    %c0_i32 = arith.constant 0 : i32
    %c0_i32_0 = arith.constant 0 : i32
    %c0_i32_1 = arith.constant 0 : i32
    return %c0_i32, %c0_i32_0 : i32, i32
  }
  func.func @transform_4(%arg0: i32) -> (i32, i32) {
    %c0_i32 = arith.constant 0 : i32
    %c0_i32_0 = arith.constant 0 : i32
    %c0_i32_1 = arith.constant 0 : i32
    return %c0_i32, %c0_i32_0 : i32, i32
  }
  func.func @transform_5(%arg0: i32) -> (i32, i32) {
    %c0_i32 = arith.constant 0 : i32
    %c0_i32_0 = arith.constant 0 : i32
    %c0_i32_1 = arith.constant 0 : i32
    return %c0_i32, %c0_i32_0 : i32, i32
  }
  func.func @transform_6(%arg0: i32) -> (i32, i32) {
    %c0_i32 = arith.constant 0 : i32
    %c0_i32_0 = arith.constant 0 : i32
    %c0_i32_1 = arith.constant 0 : i32
    return %c0_i32, %c0_i32_0 : i32, i32
  }
  func.func @transform_7(%arg0: i32) -> (i32, i32, i32, i32) {
    %c0_i32 = arith.constant 0 : i32
    %c0_i32_0 = arith.constant 0 : i32
    %c0_i32_1 = arith.constant 0 : i32
    %c0_i32_2 = arith.constant 0 : i32
    %c0_i32_3 = arith.constant 0 : i32
    return %c0_i32, %c0_i32_0, %c0_i32_1, %c0_i32_2 : i32, i32, i32, i32
  }
  func.func @transform_8(%arg0: i32) -> (i32, i32, i32, i32) {
    %c0_i32 = arith.constant 0 : i32
    %c0_i32_0 = arith.constant 0 : i32
    %c0_i32_1 = arith.constant 0 : i32
    %c0_i32_2 = arith.constant 0 : i32
    %c0_i32_3 = arith.constant 0 : i32
    return %c0_i32, %c0_i32_0, %c0_i32_1, %c0_i32_2 : i32, i32, i32, i32
  }
  func.func @transform_9(%arg0: i32) -> (i32, i32, i32, i32) {
    %c0_i32 = arith.constant 0 : i32
    %c0_i32_0 = arith.constant 0 : i32
    %c0_i32_1 = arith.constant 0 : i32
    %c0_i32_2 = arith.constant 0 : i32
    %c0_i32_3 = arith.constant 0 : i32
    return %c0_i32, %c0_i32_0, %c0_i32_1, %c0_i32_2 : i32, i32, i32, i32
  }
  func.func @transform_10(%arg0: i32) -> (i32, i32, i32) {
    %c0_i32 = arith.constant 0 : i32
    %c0_i32_0 = arith.constant 0 : i32
    %c0_i32_1 = arith.constant 0 : i32
    %c0_i32_2 = arith.constant 0 : i32
    return %c0_i32, %c0_i32_0, %c0_i32_1 : i32, i32, i32
  }
  func.func @transform_11(%arg0: i32) -> (i32, i32, i32) {
    %c0_i32 = arith.constant 0 : i32
    %c0_i32_0 = arith.constant 0 : i32
    %c0_i32_1 = arith.constant 0 : i32
    %c0_i32_2 = arith.constant 0 : i32
    return %c0_i32, %c0_i32_0, %c0_i32_1 : i32, i32, i32
  }
  func.func @transform_12(%arg0: i32) -> (i32, i32, i32) {
    %c0_i32 = arith.constant 0 : i32
    %c0_i32_0 = arith.constant 0 : i32
    %c0_i32_1 = arith.constant 0 : i32
    %c0_i32_2 = arith.constant 0 : i32
    return %c0_i32, %c0_i32_0, %c0_i32_1 : i32, i32, i32
  }
  func.func @transform_13(%arg0: i32) -> (i32, i32, i32) {
    %c0_i32 = arith.constant 0 : i32
    %c0_i32_0 = arith.constant 0 : i32
    %c0_i32_1 = arith.constant 0 : i32
    %c0_i32_2 = arith.constant 0 : i32
    return %c0_i32, %c0_i32_0, %c0_i32_1 : i32, i32, i32
  }
  func.func @transform_14(%arg0: i32) -> (i32, i32, i32) {
    %c0_i32 = arith.constant 0 : i32
    %c0_i32_0 = arith.constant 0 : i32
    %c0_i32_1 = arith.constant 0 : i32
    %c0_i32_2 = arith.constant 0 : i32
    return %c0_i32, %c0_i32_0, %c0_i32_1 : i32, i32, i32
  }
  func.func @transform_15(%arg0: i32) -> (i32, i32, i32) {
    %c0_i32 = arith.constant 0 : i32
    %c0_i32_0 = arith.constant 0 : i32
    %c0_i32_1 = arith.constant 0 : i32
    %c0_i32_2 = arith.constant 0 : i32
    return %c0_i32, %c0_i32_0, %c0_i32_1 : i32, i32, i32
  }
  func.func @transform_16(%arg0: i32) -> (i32, i32, i32) {
    %c0_i32 = arith.constant 0 : i32
    %c0_i32_0 = arith.constant 0 : i32
    %c0_i32_1 = arith.constant 0 : i32
    %c0_i32_2 = arith.constant 0 : i32
    return %c0_i32, %c0_i32_0, %c0_i32_1 : i32, i32, i32
  }
  func.func @transform_17(%arg0: i32) -> (i32, i32, i32) {
    %c0_i32 = arith.constant 0 : i32
    %c0_i32_0 = arith.constant 0 : i32
    %c0_i32_1 = arith.constant 0 : i32
    %c0_i32_2 = arith.constant 0 : i32
    return %c0_i32, %c0_i32_0, %c0_i32_1 : i32, i32, i32
  }
  func.func @transform_18(%arg0: i32) -> (i32, i32, i32) {
    %c0_i32 = arith.constant 0 : i32
    %c0_i32_0 = arith.constant 0 : i32
    %c0_i32_1 = arith.constant 0 : i32
    %c0_i32_2 = arith.constant 0 : i32
    return %c0_i32, %c0_i32_0, %c0_i32_1 : i32, i32, i32
  }
  func.func @transform_19(%arg0: i32) -> (i32, i32, i32, i32) {
    %c0_i32 = arith.constant 0 : i32
    %c0_i32_0 = arith.constant 0 : i32
    %c0_i32_1 = arith.constant 0 : i32
    %c0_i32_2 = arith.constant 0 : i32
    %c0_i32_3 = arith.constant 0 : i32
    return %c0_i32, %c0_i32_0, %c0_i32_1, %c0_i32_2 : i32, i32, i32, i32
  }
  func.func @transform_20(%arg0: i32) -> (i32, i32, i32, i32) {
    %c0_i32 = arith.constant 0 : i32
    %c0_i32_0 = arith.constant 0 : i32
    %c0_i32_1 = arith.constant 0 : i32
    %c0_i32_2 = arith.constant 0 : i32
    %c0_i32_3 = arith.constant 0 : i32
    return %c0_i32, %c0_i32_0, %c0_i32_1, %c0_i32_2 : i32, i32, i32, i32
  }
  func.func @transform_21(%arg0: i32) -> (i32, i32, i32, i32) {
    %c0_i32 = arith.constant 0 : i32
    %c0_i32_0 = arith.constant 0 : i32
    %c0_i32_1 = arith.constant 0 : i32
    %c0_i32_2 = arith.constant 0 : i32
    %c0_i32_3 = arith.constant 0 : i32
    return %c0_i32, %c0_i32_0, %c0_i32_1, %c0_i32_2 : i32, i32, i32, i32
  }
  func.func @transform_22(%arg0: i32) -> (i32, i32, i32) {
    %c0_i32 = arith.constant 0 : i32
    %c0_i32_0 = arith.constant 0 : i32
    %c0_i32_1 = arith.constant 0 : i32
    %c0_i32_2 = arith.constant 0 : i32
    return %c0_i32, %c0_i32_0, %c0_i32_1 : i32, i32, i32
  }
  func.func @transform_23(%arg0: i32) -> (i32, i32, i32) {
    %c0_i32 = arith.constant 0 : i32
    %c0_i32_0 = arith.constant 0 : i32
    %c0_i32_1 = arith.constant 0 : i32
    %c0_i32_2 = arith.constant 0 : i32
    return %c0_i32, %c0_i32_0, %c0_i32_1 : i32, i32, i32
  }
  func.func @transform_24(%arg0: i32) -> (i32, i32, i32) {
    %c0_i32 = arith.constant 0 : i32
    %c0_i32_0 = arith.constant 0 : i32
    %c0_i32_1 = arith.constant 0 : i32
    %c0_i32_2 = arith.constant 0 : i32
    return %c0_i32, %c0_i32_0, %c0_i32_1 : i32, i32, i32
  }
  func.func @transform_25(%arg0: i32) -> (i32, i32, i32, i32) {
    %c0_i32 = arith.constant 0 : i32
    %c0_i32_0 = arith.constant 0 : i32
    %c0_i32_1 = arith.constant 0 : i32
    %c0_i32_2 = arith.constant 0 : i32
    %c0_i32_3 = arith.constant 0 : i32
    return %c0_i32, %c0_i32_0, %c0_i32_1, %c0_i32_2 : i32, i32, i32, i32
  }
  func.func @transform_26(%arg0: i32) -> (i32, i32, i32, i32) {
    %c0_i32 = arith.constant 0 : i32
    %c0_i32_0 = arith.constant 0 : i32
    %c0_i32_1 = arith.constant 0 : i32
    %c0_i32_2 = arith.constant 0 : i32
    %c0_i32_3 = arith.constant 0 : i32
    return %c0_i32, %c0_i32_0, %c0_i32_1, %c0_i32_2 : i32, i32, i32, i32
  }
  func.func @transform_27(%arg0: i32) -> (i32, i32, i32, i32) {
    %c0_i32 = arith.constant 0 : i32
    %c0_i32_0 = arith.constant 0 : i32
    %c0_i32_1 = arith.constant 0 : i32
    %c0_i32_2 = arith.constant 0 : i32
    %c0_i32_3 = arith.constant 0 : i32
    return %c0_i32, %c0_i32_0, %c0_i32_1, %c0_i32_2 : i32, i32, i32, i32
  }
  func.func @transform_28(%arg0: i32) -> (i32, i32, i32, i32) {
    %c0_i32 = arith.constant 0 : i32
    %c0_i32_0 = arith.constant 0 : i32
    %c0_i32_1 = arith.constant 0 : i32
    %c0_i32_2 = arith.constant 0 : i32
    %c0_i32_3 = arith.constant 0 : i32
    return %c0_i32, %c0_i32_0, %c0_i32_1, %c0_i32_2 : i32, i32, i32, i32
  }
  func.func @transform_29(%arg0: i32) -> (i32, i32, i32, i32) {
    %c0_i32 = arith.constant 0 : i32
    %c0_i32_0 = arith.constant 0 : i32
    %c0_i32_1 = arith.constant 0 : i32
    %c0_i32_2 = arith.constant 0 : i32
    %c0_i32_3 = arith.constant 0 : i32
    return %c0_i32, %c0_i32_0, %c0_i32_1, %c0_i32_2 : i32, i32, i32, i32
  }
  func.func @transform_30(%arg0: i32) -> (i32, i32, i32) {
    %c0_i32 = arith.constant 0 : i32
    %c0_i32_0 = arith.constant 0 : i32
    %c0_i32_1 = arith.constant 0 : i32
    %c0_i32_2 = arith.constant 0 : i32
    return %c0_i32, %c0_i32_0, %c0_i32_1 : i32, i32, i32
  }
  func.func @transform_31(%arg0: i32) -> (i32, i32, i32) {
    %c0_i32 = arith.constant 0 : i32
    %c0_i32_0 = arith.constant 0 : i32
    %c0_i32_1 = arith.constant 0 : i32
    %c0_i32_2 = arith.constant 0 : i32
    return %c0_i32, %c0_i32_0, %c0_i32_1 : i32, i32, i32
  }
  func.func @transform_32(%arg0: i32) -> (i32, i32, i32) {
    %c0_i32 = arith.constant 0 : i32
    %c0_i32_0 = arith.constant 0 : i32
    %c0_i32_1 = arith.constant 0 : i32
    %c0_i32_2 = arith.constant 0 : i32
    return %c0_i32, %c0_i32_0, %c0_i32_1 : i32, i32, i32
  }
  func.func @transform_33(%arg0: i32) -> (i32, i32, i32) {
    %c0_i32 = arith.constant 0 : i32
    %c0_i32_0 = arith.constant 0 : i32
    %c0_i32_1 = arith.constant 0 : i32
    %c0_i32_2 = arith.constant 0 : i32
    return %c0_i32, %c0_i32_0, %c0_i32_1 : i32, i32, i32
  }
  func.func @transform_34(%arg0: i32) -> (i32, i32, i32) {
    %c0_i32 = arith.constant 0 : i32
    %c0_i32_0 = arith.constant 0 : i32
    %c0_i32_1 = arith.constant 0 : i32
    %c0_i32_2 = arith.constant 0 : i32
    return %c0_i32, %c0_i32_0, %c0_i32_1 : i32, i32, i32
  }
  func.func @transform_35(%arg0: i32) -> (i32, i32, i32) {
    %c0_i32 = arith.constant 0 : i32
    %c0_i32_0 = arith.constant 0 : i32
    %c0_i32_1 = arith.constant 0 : i32
    %c0_i32_2 = arith.constant 0 : i32
    return %c0_i32, %c0_i32_0, %c0_i32_1 : i32, i32, i32
  }
  func.func @transform_36(%arg0: i32) -> (i32, i32, i32) {
    %c0_i32 = arith.constant 0 : i32
    %c0_i32_0 = arith.constant 0 : i32
    %c0_i32_1 = arith.constant 0 : i32
    %c0_i32_2 = arith.constant 0 : i32
    return %c0_i32, %c0_i32_0, %c0_i32_1 : i32, i32, i32
  }
  func.func @transform_37(%arg0: i32) -> (i32, i32, i32) {
    %c0_i32 = arith.constant 0 : i32
    %c0_i32_0 = arith.constant 0 : i32
    %c0_i32_1 = arith.constant 0 : i32
    %c0_i32_2 = arith.constant 0 : i32
    return %c0_i32, %c0_i32_0, %c0_i32_1 : i32, i32, i32
  }
  func.func @transform_38(%arg0: i32) -> (i32, i32, i32) {
    %c0_i32 = arith.constant 0 : i32
    %c0_i32_0 = arith.constant 0 : i32
    %c0_i32_1 = arith.constant 0 : i32
    %c0_i32_2 = arith.constant 0 : i32
    return %c0_i32, %c0_i32_0, %c0_i32_1 : i32, i32, i32
  }
  func.func @transform_39(%arg0: i32) -> (i32, i32) {
    %c0_i32 = arith.constant 0 : i32
    %c0_i32_0 = arith.constant 0 : i32
    %c0_i32_1 = arith.constant 0 : i32
    return %c0_i32, %c0_i32_0 : i32, i32
  }
  func.func @transform_40(%arg0: i32) -> (i32, i32) {
    %c0_i32 = arith.constant 0 : i32
    %c0_i32_0 = arith.constant 0 : i32
    %c0_i32_1 = arith.constant 0 : i32
    return %c0_i32, %c0_i32_0 : i32, i32
  }
  func.func @transform_41(%arg0: i32) -> (i32, i32, i32) {
    %c0_i32 = arith.constant 0 : i32
    %c0_i32_0 = arith.constant 0 : i32
    %c0_i32_1 = arith.constant 0 : i32
    return %arg0, %c0_i32, %c0_i32_0 : i32, i32, i32
  }
}

</mosaic_0001>

<bundles_post_ra>
// kernel: transformer_forward.1
= control target key start
LH: loop header
LB: loop body
LE: loop exit
PB: predicated region body
PF: predicated region fallthrough
CT: control target
= control target key end

     0   :  { %s13644_s6 = smov 1   ;;  %s13645_s10 = smov 2   ;;  %s15380_s0 = inlined_call_operand.smem [shape: u32[42], index: -1, kind: input, shape index: {}] }
   0x1   :  { %s13698_s5 = sld [smem:[%s15380_s0]]   ;;  %s13646_s14 = smov 3  }
   0x2   :  { %s13703_s9 = sld [smem:[%s15380_s0 + %s13644_s6]]   ;;  %s13647_s18 = smov 4  }
   0x3   :  { %s13708_s13 = sld [smem:[%s15380_s0 + %s13645_s10]]   ;;  %s13648_s22 = smov 5  }
   0x4   :  { %s13713_s17 = sld [smem:[%s15380_s0 + %s13646_s14]]   ;;  %s13649_s26 = smov 6  }
   0x5   :  { %s13718_s21 = sld [smem:[%s15380_s0 + %s13647_s18]]   ;;  %s13650_s30 = smov 7  }
   0x6   :  { %s13723_s25 = sld [smem:[%s15380_s0 + %s13648_s22]]   ;;  %s13651_s4 = smov 8  }
   0x7   :  { %15426 = sst [smem:[#allocation5_spill]] %s13698_s5  ;;  %s13652_s10 = smov 9  }
   0x8   :  { %15427 = sst [smem:[#allocation6_spill]] %s13703_s9  ;;  %s13653_s15 = smov 10  }
   0x9   :  { %15428 = sst [smem:[#allocation7_spill]] %s13708_s13  ;;  %s13654_s20 = smov 11  }
   0xa   :  { %15429 = sst [smem:[#allocation8_spill]] %s13713_s17  ;;  %s13656_s1 = smov 13  }
   0xb   :  { %15430 = sst [smem:[#allocation9_spill]] %s13718_s21  ;;  %s13657_s7 = smov 14  }
   0xc   :  { %15431 = sst [smem:[#allocation10_spill]] %s13723_s25  ;;  %s13659_s22 = smov 16  }
   0xd   :  { %s13728_s29 = sld [smem:[%s15380_s0 + %s13649_s26]]   ;;  %s13655_s26 = smov 12  }
   0xe   :  { %s13733_s3 = sld [smem:[%s15380_s0 + %s13650_s30]]   ;;  %s13660_s28 = smov 17  }
   0xf   :  { %s13738_s8 = sld [smem:[%s15380_s0 + %s13651_s4]]  }
  0x10   :  { %s13743_s14 = sld [smem:[%s15380_s0 + %s13652_s10]]  }
  0x11   :  { %s13748_s19 = sld [smem:[%s15380_s0 + %s13653_s15]]   ;;  %s13658_s15 = smov 15  }
  0x12   :  { %s13753_s24 = sld [smem:[%s15380_s0 + %s13654_s20]]  }
  0x13   :  { %15432 = sst [smem:[#allocation11_spill]] %s13728_s29 }
  0x14   :  { %15433 = sst [smem:[#allocation12_spill]] %s13733_s3 }
  0x15   :  { %15434 = sst [smem:[#allocation13_spill]] %s13738_s8 }
  0x16   :  { %15435 = sst [smem:[#allocation14_spill]] %s13743_s14 }
  0x17   :  { %15436 = sst [smem:[#allocation15_spill]] %s13748_s19 }
  0x18   :  { %15437 = sst [smem:[#allocation16_spill]] %s13753_s24 }
  0x19   :  { %s13758_s30 = sld [smem:[%s15380_s0 + %s13655_s26]]  }
  0x1a   :  { %s13763_s6 = sld [smem:[%s15380_s0 + %s13656_s1]]  }
  0x1b   :  { %s13768_s12 = sld [smem:[%s15380_s0 + %s13657_s7]]   ;;  %s13661_s7 = smov 18  }
  0x1c   :  { %s13773_s20 = sld [smem:[%s15380_s0 + %s13658_s15]]   ;;  %s13662_s15 = smov 19  }
  0x1d   :  { %s13778_s27 = sld [smem:[%s15380_s0 + %s13659_s22]]   ;;  %s13663_s22 = smov 20  }
  0x1e   :  { %s13783_s4 = sld [smem:[%s15380_s0 + %s13660_s28]]   ;;  %s13664_s28 = smov 21  }
  0x1f   :  { %15438 = sst [smem:[#allocation17_spill]] %s13758_s30 }
  0x20   :  { %15439 = sst [smem:[#allocation18_spill]] %s13763_s6 }
  0x21   :  { %15440 = sst [smem:[#allocation19_spill]] %s13768_s12 }
  0x22   :  { %15441 = sst [smem:[#allocation20_spill]] %s13773_s20 }
  0x23   :  { %15442 = sst [smem:[#allocation21_spill]] %s13778_s27 }
  0x24   :  { %15443 = sst [smem:[#allocation22_spill]] %s13783_s4 }
  0x25   :  { %s13788_s29 = sld [smem:[%s15380_s0 + %s13661_s7]]   ;;  %s13665_s7 = smov 22  }
  0x26   :  { %s13793_s21 = sld [smem:[%s15380_s0 + %s13662_s15]]   ;;  %s13666_s15 = smov 23  }
  0x27   :  { %s13798_s9 = sld [smem:[%s15380_s0 + %s13663_s22]]   ;;  %s13667_s22 = smov 24  }
  0x28   :  { %s13803_s4 = sld [smem:[%s15380_s0 + %s13664_s28]]   ;;  %s13668_s28 = smov 25  }
  0x2b   :  { %15444 = sst [smem:[#allocation23_spill]] %s13788_s29 }
  0x2c   :  { %15445 = sst [smem:[#allocation24_spill]] %s13793_s21 }
  0x2d   :  { %15446 = sst [smem:[#allocation25_spill]] %s13798_s9 }
  0x2e   :  { %15447 = sst [smem:[#allocation26_spill]] %s13803_s4 }
  0x2f   :  { %s13808_s29 = sld [smem:[%s15380_s0 + %s13665_s7]]   ;;  %s13669_s7 = smov 26  }
  0x30   :  { %s13813_s21 = sld [smem:[%s15380_s0 + %s13666_s15]]   ;;  %s13670_s15 = smov 27  }
  0x31   :  { %s13818_s9 = sld [smem:[%s15380_s0 + %s13667_s22]]   ;;  %s13671_s22 = smov 28  }
  0x32   :  { %s13823_s4 = sld [smem:[%s15380_s0 + %s13668_s28]]   ;;  %s13672_s28 = smov 29  }
  0x35   :  { %15448 = sst [smem:[#allocation27_spill]] %s13808_s29 }
  0x36   :  { %15449 = sst [smem:[#allocation28_spill]] %s13813_s21 }
  0x37   :  { %15450 = sst [smem:[#allocation29_spill]] %s13818_s9 }
  0x38   :  { %15451 = sst [smem:[#allocation30_spill]] %s13823_s4 }
  0x39   :  { %s13828_s29 = sld [smem:[%s15380_s0 + %s13669_s7]]   ;;  %s13673_s7 = smov 30  }
  0x3a   :  { %s13833_s21 = sld [smem:[%s15380_s0 + %s13670_s15]]   ;;  %s13674_s15 = smov 31  }
  0x3b   :  { %s13838_s9 = sld [smem:[%s15380_s0 + %s13671_s22]]   ;;  %s13675_s22 = smov 32  }
  0x3c   :  { %s13843_s4 = sld [smem:[%s15380_s0 + %s13672_s28]]   ;;  %s13676_s28 = smov 33  }
  0x3f   :  { %15452 = sst [smem:[#allocation31_spill]] %s13828_s29 }
  0x40   :  { %15453 = sst [smem:[#allocation32_spill]] %s13833_s21 }
  0x41   :  { %15454 = sst [smem:[#allocation33_spill]] %s13838_s9 }
  0x42   :  { %15455 = sst [smem:[#allocation34_spill]] %s13843_s4 }
  0x43   :  { %s13848_s29 = sld [smem:[%s15380_s0 + %s13673_s7]]   ;;  %s13677_s7 = smov 34  }
  0x44   :  { %s13853_s21 = sld [smem:[%s15380_s0 + %s13674_s15]]   ;;  %s13678_s15 = smov 35  }
  0x45   :  { %s13858_s9 = sld [smem:[%s15380_s0 + %s13675_s22]]   ;;  %s13679_s22 = smov 36  }
  0x46   :  { %s13863_s4 = sld [smem:[%s15380_s0 + %s13676_s28]]   ;;  %s13680_s28 = smov 37  }
  0x49   :  { %15456 = sst [smem:[#allocation35_spill]] %s13848_s29 }
  0x4a   :  { %15457 = sst [smem:[#allocation36_spill]] %s13853_s21 }
  0x4b   :  { %15458 = sst [smem:[#allocation37_spill]] %s13858_s9 }
  0x4c   :  { %15459 = sst [smem:[#allocation38_spill]] %s13863_s4 }
  0x4d   :  { %s13868_s29 = sld [smem:[%s15380_s0 + %s13677_s7]]   ;;  %s13681_s7 = smov 38  }
  0x4e   :  { %s13873_s21 = sld [smem:[%s15380_s0 + %s13678_s15]]   ;;  %s13682_s15 = smov 39  }
  0x4f   :  { %s13878_s9 = sld [smem:[%s15380_s0 + %s13679_s22]]   ;;  %s13683_s22 = smov 40  }
  0x50   :  { %s13883_s4 = sld [smem:[%s15380_s0 + %s13680_s28]]   ;;  %s13684_s28 = smov 41  }
  0x53   :  { %15460 = sst [smem:[#allocation39_spill]] %s13868_s29 }
  0x54   :  { %15461 = sst [smem:[#allocation40_spill]] %s13873_s21 }
  0x55   :  { %15462 = sst [smem:[#allocation41_spill]] %s13878_s9 }
  0x56   :  { %15463 = sst [smem:[#allocation42_spill]] %s13883_s4 }
  0x57   :  { %s13888_s29 = sld [smem:[%s15380_s0 + %s13681_s7]]  }
  0x58   :  { %s13893_s21 = sld [smem:[%s15380_s0 + %s13682_s15]]  }
  0x59   :  { %s13898_s9 = sld [smem:[%s15380_s0 + %s13683_s22]]  }
  0x5a   :  { %s13903_s4 = sld [smem:[%s15380_s0 + %s13684_s28]]  }
  0x5f   :  { %15464 = sst [smem:[#allocation43_spill]] %s13898_s9 }
  0x60   :  { %88 = vsyncpa [#allocation3], 0 }
  0x61   :  { %90 = vsyncpa [#allocation3 + $0x1], 0  ;;  %s13905_s7 = smov 0   ;;  %s13907_s10 = smov 0  }
  0x62   :  { %s13909_s11 = smov 0   ;;  %s13911_s15 = smov 0  }
  0x63 LB: > { %s15465_s30 = sld [smem:[#allocation17_spill]]  ;;  %s15466_s27 = sld [smem:[#allocation21_spill]]  ;;  %s13638_s11 = sphi %s13909_s11, %s15511_s11   ;;  %s13634_s10 = sphi %s13907_s10, %s15510_s10   ;;  %s13630_s7 = sphi %s13905_s7, %s15509_s7   ;;  %s13642_s15 = sphi %s13911_s15, %s15512_s15  }
  0x64   : > { %s15467_s24 = sld [smem:[#allocation16_spill]]  ;;  %s15468_s20 = sld [smem:[#allocation20_spill]] }
  0x65   : > { %s15469_s19 = sld [smem:[#allocation15_spill]]  ;;  %s15470_s17 = sld [smem:[#allocation8_spill]] }
  0x66   : > { %s15471_s14 = sld [smem:[#allocation14_spill]]  ;;  %s15472_s12 = sld [smem:[#allocation19_spill]] }
  0x67   : > { %s15473_s8 = sld [smem:[#allocation13_spill]]  ;;  %s15474_s6 = sld [smem:[#allocation18_spill]] }
  0x68   : > { %s15475_s3 = sld [smem:[#allocation12_spill]]  ;;  %s13926_s0 = sadd.s32 4294967295, %s13642_s15  }
  0x69   : > { %s11002_s16 = sadd.s32 4294967294, %s13642_s15   ;;  %s13930_s18 = sadd.s32 1, %s13642_s15  }
  0x6a   : > { %s979_s22 = sadd.s32 1, %s13638_s11  ;;  %s976_s23 = ssub.s32 %s13642_s15, %s13930_s18 }
  0x6b   : > { %p989_p0 = scmp.ne.s32.totalorder %s13638_s11, %s13634_s10  ;;  %p977_p1 = scmp.eq.s32.totalorder %s976_s23, 0 }
  0x6c   : > { %p990_p2 = scmp.eq.s32.totalorder %s13926_s0, 1  ;;  %p995_p3 = scmp.ne.s32.totalorder %s13634_s10, %s13630_s7 }
  0x6d   : > { %p996_p4 = scmp.eq.s32.totalorder %s11002_s16, 1  ;;  %p11005_p7 = scmp.ge.s32.totalorder %s13642_s15, 1 }
  0x6e   : > { %s13941_s26 = scalar_select %p977_p1, %s13638_s11, %s979_s22  }
  0x6f   : > { %p13943_p5 = por %p990_p2, %p989_p0  ;;  %p13947_p6 = por %p996_p4, %p995_p3 }
  0x70   : > { %15476 = sst [smem:[#allocation44_spill]] %s13941_s26  ;;  %p1148_p8 = scmp.lt.s32.totalorder %s13642_s15, 3 }
  0x72   : > { %p1149_p9 = pnand %p11005_p7, %p1148_p8 }
  0x73   : > { %s15479_s13 = sld [smem:[#allocation7_spill]] (!%p1149_p9)  ;;  %s15480_s5 = sld [smem:[#allocation5_spill]] (!%p1149_p9)  ;;  %v13288_v0 = vld [vmem:[%s15470_s17] sm:$0xff] (!%p1149_p9)   ;;  %v1269_v1 = vlaneseq (!%p1149_p9)  ;;  %v13685_v2 = vmov (!%p1149_p9), 0   ;;  %v13686_v3 = vmov (!%p1149_p9), 0.0   ;;  %v13289_v4 = vld [vmem:[%s15470_s17 + $0x8] sm:$0xff] (!%p1149_p9)  }
  0x74   : > { %1152 = sbr.rel (%p1149_p9) target bundleno = 12385 (0x3061), region = 184  ;;  %p1254_p10 = scmp.lt.s32.totalorder (!%p1149_p9), %s13926_s0, 1  ;;  %13287 = vset.pattern.permute.xlu0 (!%p1149_p9), %v13685_v2  ;;  %12087 = vmatprep.subr.bf16.mxu0 (!%p1149_p9), %v13686_v3  ;;  %v13290_v10 = vld [vmem:[%s15470_s17 + $0x10] sm:$0xff] (!%p1149_p9)   ;;  %vm13687_vm0 = vmmov (!%p1149_p9), 0   ;;  %vm1307_vm2 = vcmask (!%p1149_p9), 392192   ;;  %v13291_v17 = vld [vmem:[%s15475_s3] sm:$0xff] (!%p1149_p9)  }
  0x75   : > { %12088 = vmatpush3.bf16.msra.mxu0 (!%p1149_p9), %v13288_v0  ;;  %v13960_v5 = vshrl.u32 (!%p1149_p9), %v1269_v1, 7  ;;  %12097 = vmatprep.subr.bf16.mxu1 (!%p1149_p9), %v13686_v3  ;;  %v13980_v13 = vand.u32 (!%p1149_p9), 127, %v1269_v1  ;;  %s15481_s25 = sld [smem:[#allocation10_spill]] (!%p1149_p9)  ;;  %v13292_v18 = vld [vmem:[%s15475_s3 + $0x20] sm:$0xff] (!%p1149_p9)   ;;  %v13293_v19 = vld [vmem:[%s15475_s3 + $0x8] sm:$0xff] (!%p1149_p9)   ;;  %vm1498_vm3 = vcmask (!%p1149_p9), 261120  }
  0x76   : > { %12089 = vmatprep.subr.bf16.mxu0 (!%p1149_p9), %v13686_v3  ;;  %12093 = vmatprep.mubr.msk.bf16.mxu0 (!%p1149_p9), %vm13687_vm0, %v13686_v3  ;;  %v13294_v20 = vld [vmem:[%s15475_s3 + $0x28] sm:$0xff] (!%p1149_p9)   ;;  %v13295_v28 = vld [vmem:[%s15475_s3 + $0x10] sm:$0xff] (!%p1149_p9)   ;;  %v13296_v29 = vld [vmem:[%s15475_s3 + $0x40] sm:$0xff] (!%p1149_p9)   ;;  %vm2122_vm4 = vcmask (!%p1149_p9), 64512   ;;  %vm2376_vm5 = vcmask (!%p1149_p9), 1043456   ;;  %vm2904_vm6 = vcmask (!%p1149_p9), 523264  }
  0x77   : > { %v2314_v9 = vsub.s32 (!%p1149_p9), 0, %v13960_v5  ;;  %12101 = vmatprep.mubr.msk.bf16.mxu1 (!%p1149_p9), %vm13687_vm0, %v13686_v3  ;;  %12098 = vmatpush3.bf16.msra.mxu1 (!%p1149_p9), %v13291_v17  ;;  %v13297_v31 = vld [vmem:[%s15475_s3 + $0x18] sm:$0xff] (!%p1149_p9)   ;;  %v13298_v32 = vld [vmem:[%s15475_s3 + $0x48] sm:$0xff] (!%p1149_p9)   ;;  %v13299_v33 = vld [vmem:[%s15475_s3 + $0x30] sm:$0xff] (!%p1149_p9)   ;;  %vm1273_vm8 = vcmp.le.s32.totalorder (!%p1149_p9), %v13980_v13, %v13960_v5  ;;  %s15497_s17 = sld [smem:[#allocation31_spill]] (!%p1149_p9)  ;;  %s15506_s26 = sld [smem:[#allocation42_spill]] (!%p1149_p9) }
  0x78   : > { %12099 = vmatprep.subr.bf16.mxu1 (!%p1149_p9), %v13686_v3  ;;  %v13300_v34 = vld [vmem:[%s15475_s3 + $0x60] sm:$0xff] (!%p1149_p9)   ;;  %v13301_v35 = vld [vmem:[%s15475_s3 + $0x38] sm:$0xff] (!%p1149_p9)   ;;  %v13302_v36 = vld [vmem:[%s15475_s3 + $0x68] sm:$0xff] (!%p1149_p9)   ;;  %s15507_s9 = sld [smem:[#allocation43_spill]] (!%p1149_p9) }
  0x79   : > { %12090 = vmatpush3.bf16.msra.mxu0 (!%p1149_p9), %v13289_v4  ;;  %v13303_v37 = vld [vmem:[%s15475_s3 + $0x50] sm:$0xff] (!%p1149_p9)   ;;  %v13304_v38 = vld [vmem:[%s15475_s3 + $0x80] sm:$0xff] (!%p1149_p9)   ;;  %v13305_v39 = vld [vmem:[%s15475_s3 + $0x58] sm:$0xff] (!%p1149_p9)  }
  0x7a   : > { %12091 = vmatprep.subr.bf16.mxu0 (!%p1149_p9), %v13686_v3  ;;  %v13306_v40 = vld [vmem:[%s15475_s3 + $0x88] sm:$0xff] (!%p1149_p9)   ;;  %v13307_v41 = vld [vmem:[%s15475_s3 + $0x70] sm:$0xff] (!%p1149_p9)   ;;  %v13308_v42 = vld [vmem:[%s15475_s3 + $0xa0] sm:$0xff] (!%p1149_p9)  }
  0x7b   : > { %s13957_s2 = scalar_select %p1254_p10, %s13926_s0, 1  ;;  %12100 = vmatpush3.bf16.msra.mxu1 %v13293_v19  ;;  %v1282_v21 = vld [vmem:[%s15481_s25] sm:$0xff]  ;;  %v13309_v43 = vld [vmem:[%s15475_s3 + $0x78] sm:$0xff]   ;;  %v13310_v44 = vld [vmem:[%s15475_s3 + $0xa8] sm:$0xff]  }
  0x7c   : > { %12105 = vmatprep.subr.bf16.mxu1 %v13686_v3  ;;  %v13311_v45 = vld [vmem:[%s15475_s3 + $0x90] sm:$0xff]   ;;  %v13312_v46 = vld [vmem:[%s15475_s3 + $0x98] sm:$0xff]   ;;  %v11017_v57 = vld [vmem:[%s15473_s8 + $0x4] ss:$0 sm:$0xff]  ;;  %s15503_s25 = sld [smem:[#allocation37_spill]] }
  0x7d   : > { %s15403_s16 = sshll.u32 %s13957_s2, 3  ;;  %s1264_s22 = scalar_lea.vmem %s15479_s13, %s13957_s2  ;;  %12092 = vmatpush3.bf16.msra.mxu0 %v13290_v10  ;;  %v13313_v47 = vld [vmem:[%s15475_s3 + $0xb0] sm:$0xff]   ;;  %v13314_v48 = vld [vmem:[%s15475_s3 + $0xb8] sm:$0xff]  }
  0x7e   : > { %s1257_s23 = scalar_lea.vmem %s15480_s5, %s15403_s16  ;;  %v1266_v6 = vld [vmem:[%s1264_s22] sm:$0x1]  ;;  %12113 = vmatprep.subr.bf16.mxu0 %v13686_v3  ;;  %s15482_s22 = sld [smem:[#allocation22_spill]] }
  0x7f   : > { %v1267_v7 = vsub.f32 1.0, %v1266_v6  ;;  %v1275_v8 = vld [vmem:[%s1257_s23] sm:$0xff]  ;;  %s15483_s23 = sld [smem:[#allocation23_spill]]  ;;  %s15484_s16 = sld [smem:[#allocation6_spill]] }
  0x80   : > { %1284 = vperm.xlu0 %13287, %v1275_v8   ;;  %v11013_v6 = vld [vmem:[%s15473_s8] ss:$0 sm:$0xff]  ;;  %v11019_v8 = vld [vmem:[%s15473_s8 + $0x6] ss:$0 sm:$0xff]  ;;  %s15495_s13 = sld [smem:[#allocation32_spill]] }
  0x81   : > { %v1268_v11 = vmul.f32 -1e+09, %v1267_v7 }
  0x83   : > { %v13973_v12 = vrot.slane %v1268_v11, %v2314_v9 }
  0xff   : > { %v1285_v14 = vpop.permute.xlu0 %1284 }
 0x100   : > { %vm1286_vm1 = vcmp.eq.s32.totalorder %v13980_v13, %v1285_v14 }
 0x101   : > { %v1287_v15 = vsel %vm1286_vm1, 1.0, %v13686_v3 }
 0x102   : > { %v1288_v16 = vpack.c.bf16 %v1287_v15, %v1287_v15 }
 0x104   : > { %12094 = vmatmul.mubr.msk.bf16.vlgmr.msra.gmra.mrb[0].mxu0 %vm1307_vm2, %v1288_v16 }
 0x105   : > { %12117 = vmatprep.mubr.msk.bf16.mxu0 %vm13687_vm0, %v13686_v3  ;;  %12114 = vmatpush3.bf16.msra.mxu0 %v13292_v18 }
 0x106   : > { %12115 = vmatprep.subr.bf16.mxu0 %v13686_v3 }
 0x109   : > { %12116 = vmatpush3.bf16.msra.mxu0 %v13294_v20 }
 0x10a   : > { %12129 = vmatprep.subr.bf16.mxu0 %v13686_v3 }
 0x1d7   : > { %v1345_v22 = vpop.f32.mrb[0].mxu0 }
 0x1d8   : > { %v1351_v23 = vmul.f32 5.656854, %v1345_v22  ;;  %v12095_v24 = vpop.f32.mrb[1].mxu0 }
 0x1d9   : > { %v1348_v25 = vpop.f32.mrb[2].mxu0 }
 0x1da   : > { %v13996_v26 = vadd.f32 %v1351_v23, %v1282_v21  ;;  %v12096_v27 = vpop.f32.mrb[3].mxu0  ;;  %v11015_v23 = vld [vmem:[%s15473_s8 + $0x2] ss:$0 sm:$0xff]  ;;  %v11018_v25 = vld [vmem:[%s15473_s8 + $0x5] ss:$0 sm:$0xff] }
 0x1db   : > { %v11021_v27 = vld [vmem:[%s15473_s8 + $0x8] ss:$0 sm:$0xff] }
 0x1dc   : > { %v14002_v30 = vpack.c.bf16 %v13996_v26, %v13996_v26 }
 0x1de   : > { %12102 = vmatmul.mubr.msk.bf16.vlgmr.msra.gmra.mrb[0].mxu1 %vm1498_vm3, %v14002_v30  ;;  %12118 = vmatmul.mubr.msk.bf16.vlgmr.msra.gmra.mrb[4].mxu0 %vm1498_vm3, %v14002_v30 }
 0x1df   : > { %12106 = vmatpush3.bf16.msra.mxu1 %v13295_v28  ;;  %12130 = vmatpush3.bf16.msra.mxu0 %v13296_v29 }
 0x1e0   : > { %12107 = vmatprep.subr.bf16.mxu1 %v13686_v3  ;;  %12131 = vmatprep.subr.bf16.mxu0 %v13686_v3 }
 0x1e1   : > { %12109 = vmatprep.mubr.msk.bf16.mxu1 %vm13687_vm0, %v13686_v3  ;;  %12133 = vmatprep.mubr.msk.bf16.mxu0 %vm13687_vm0, %v13686_v3 }
 0x1e3   : > { %12108 = vmatpush3.bf16.msra.mxu1 %v13297_v31  ;;  %12132 = vmatpush3.bf16.msra.mxu0 %v13298_v32 }
 0x1e4   : > { %12121 = vmatprep.subr.bf16.mxu1 %v13686_v3  ;;  %12145 = vmatprep.subr.bf16.mxu0 %v13686_v3 }
 0x1e6   : > { %12110 = vmatmul.mubr.msk.bf16.vlgmr.msra.gmra.mrb[4].mxu1 %vm1498_vm3, %v14002_v30  ;;  %12134 = vmatmul.mubr.msk.bf16.vlgmr.msra.gmra.mrb[8].mxu0 %vm1498_vm3, %v14002_v30 }
 0x1e7   : > { %12122 = vmatpush3.bf16.msra.mxu1 %v13299_v33  ;;  %12146 = vmatpush3.bf16.msra.mxu0 %v13300_v34 }
 0x1e8   : > { %12123 = vmatprep.subr.bf16.mxu1 %v13686_v3  ;;  %12147 = vmatprep.subr.bf16.mxu0 %v13686_v3 }
 0x1e9   : > { %12125 = vmatprep.mubr.msk.bf16.mxu1 %vm13687_vm0, %v13686_v3  ;;  %12149 = vmatprep.mubr.msk.bf16.mxu0 %vm13687_vm0, %v13686_v3 }
 0x1eb   : > { %12124 = vmatpush3.bf16.msra.mxu1 %v13301_v35  ;;  %12148 = vmatpush3.bf16.msra.mxu0 %v13302_v36 }
 0x1ec   : > { %12137 = vmatprep.subr.bf16.mxu1 %v13686_v3  ;;  %12161 = vmatprep.subr.bf16.mxu0 %v13686_v3 }
 0x1ee   : > { %12126 = vmatmul.mubr.msk.bf16.vlgmr.msra.gmra.mrb[8].mxu1 %vm1498_vm3, %v14002_v30  ;;  %12150 = vmatmul.mubr.msk.bf16.vlgmr.msra.gmra.mrb[12].mxu0 %vm1498_vm3, %v14002_v30 }
 0x1ef   : > { %12138 = vmatpush3.bf16.msra.mxu1 %v13303_v37  ;;  %12162 = vmatpush3.bf16.msra.mxu0 %v13304_v38 }
 0x1f0   : > { %12139 = vmatprep.subr.bf16.mxu1 %v13686_v3  ;;  %12163 = vmatprep.subr.bf16.mxu0 %v13686_v3 }
 0x1f1   : > { %12141 = vmatprep.mubr.msk.bf16.mxu1 %vm13687_vm0, %v13686_v3  ;;  %12165 = vmatprep.mubr.msk.bf16.mxu0 %vm13687_vm0, %v13686_v3 }
 0x1f3   : > { %12140 = vmatpush3.bf16.msra.mxu1 %v13305_v39  ;;  %12164 = vmatpush3.bf16.msra.mxu0 %v13306_v40 }
 0x1f4   : > { %12153 = vmatprep.subr.bf16.mxu1 %v13686_v3  ;;  %12177 = vmatprep.subr.bf16.mxu0 %v13686_v3 }
 0x1f6   : > { %12142 = vmatmul.mubr.msk.bf16.vlgmr.msra.gmra.mrb[12].mxu1 %vm1498_vm3, %v14002_v30  ;;  %12166 = vmatmul.mubr.msk.bf16.vlgmr.msra.gmra.mrb[16].mxu0 %vm1498_vm3, %v14002_v30 }
 0x1f7   : > { %12154 = vmatpush3.bf16.msra.mxu1 %v13307_v41  ;;  %12178 = vmatpush3.bf16.msra.mxu0 %v13308_v42  ;;  %v11014_v42 = vld [vmem:[%s15473_s8 + $0x1] ss:$0 sm:$0xff] }
 0x1f8   : > { %12155 = vmatprep.subr.bf16.mxu1 %v13686_v3  ;;  %12179 = vmatprep.subr.bf16.mxu0 %v13686_v3 }
 0x1f9   : > { %12157 = vmatprep.mubr.msk.bf16.mxu1 %vm13687_vm0, %v13686_v3  ;;  %12181 = vmatprep.mubr.msk.bf16.mxu0 %vm13687_vm0, %v13686_v3 }
 0x1fb   : > { %12156 = vmatpush3.bf16.msra.mxu1 %v13309_v43  ;;  %12180 = vmatpush3.bf16.msra.mxu0 %v13310_v44 }
 0x1fc   : > { %12169 = vmatprep.subr.bf16.mxu1 %v13686_v3  ;;  %12193 = vmatprep.subr.bf16.mxu0 %v13686_v3 }
 0x1fe   : > { %12158 = vmatmul.mubr.msk.bf16.vlgmr.msra.gmra.mrb[16].mxu1 %vm1498_vm3, %v14002_v30  ;;  %12182 = vmatmul.mubr.msk.bf16.vlgmr.msra.gmra.mrb[20].mxu0 %vm1498_vm3, %v14002_v30 }
 0x1ff   : > { %12170 = vmatpush3.bf16.msra.mxu1 %v13311_v45  ;;  %12173 = vmatprep.mubr.msk.bf16.mxu1 %vm13687_vm0, %v13686_v3  ;;  %v11020_v45 = vld [vmem:[%s15473_s8 + $0x7] ss:$0 sm:$0xff] }
 0x200   : > { %12171 = vmatprep.subr.bf16.mxu1 %v13686_v3  ;;  %12195 = vmatprep.mubr.msk.bf16.mxu0 %vm13687_vm0, %v13686_v3 }
 0x203   : > { %12172 = vmatpush3.bf16.msra.mxu1 %v13312_v46 }
 0x204   : > { %12185 = vmatprep.subr.bf16.mxu1 %v13686_v3 }
 0x206   : > { %12174 = vmatmul.mubr.msk.bf16.vlgmr.msra.gmra.mrb[20].mxu1 %vm1498_vm3, %v14002_v30 }
 0x207   : > { %12186 = vmatpush3.bf16.msra.mxu1 %v13313_v47  ;;  %12189 = vmatprep.mubr.msk.bf16.mxu1 %vm13687_vm0, %v13686_v3 }
 0x208   : > { %12187 = vmatprep.subr.bf16.mxu1 %v13686_v3 }
 0x20b   : > { %12188 = vmatpush3.bf16.msra.mxu1 %v13314_v48 }
 0x20c   : > { %12199 = vmatprep.subr.bf16.mxu1 %v13686_v3 }
 0x20e   : > { %12190 = vmatmul.mubr.msk.bf16.vlgmr.msra.gmra.mrb[24].mxu1 %vm1498_vm3, %v14002_v30 }
 0x20f   : > { %12201 = vmatprep.mubr.msk.bf16.mxu1 %vm13687_vm0, %v13686_v3 }
 0x2b1   : > { %v1536_v49 = vpop.f32.mrb[0].mxu1  ;;  %v1640_v50 = vpop.f32.mrb[4].mxu0 }
 0x2b2   : > { %v12103_v51 = vpop.f32.mrb[1].mxu1  ;;  %v12119_v52 = vpop.f32.mrb[5].mxu0  ;;  %v1537_v9 = vadd.f32 %v11013_v6, %v1536_v49  ;;  %v1641_v28 = vadd.f32 %v11015_v23, %v1640_v50 }
 0x2b3   : > { %v1539_v53 = vpop.f32.mrb[2].mxu1  ;;  %v1643_v54 = vpop.f32.mrb[6].mxu0 }
 0x2b4   : > { %v12104_v55 = vpop.f32.mrb[3].mxu1  ;;  %v12120_v56 = vpop.f32.mrb[7].mxu0  ;;  %v2114_v19 = vpack.c.bf16 %v1537_v9, %v1537_v9  ;;  %v2116_v37 = vpack.c.bf16 %v1641_v28, %v1641_v28 }
 0x2b9   : > { %v1588_v58 = vpop.f32.mrb[4].mxu1  ;;  %v1744_v59 = vpop.f32.mrb[8].mxu0 }
 0x2ba   : > { %v1745_v60 = vadd.f32 %v11017_v57, %v1744_v59  ;;  %v12111_v61 = vpop.f32.mrb[5].mxu1  ;;  %v12135_v62 = vpop.f32.mrb[9].mxu0  ;;  %v1589_v46 = vadd.f32 %v11014_v42, %v1588_v58  ;;  %v11016_v58 = vld [vmem:[%s15473_s8 + $0x3] ss:$0 sm:$0xff] }
 0x2bb   : > { %v1591_v63 = vpop.f32.mrb[6].mxu1  ;;  %v1747_v0 = vpop.f32.mrb[10].mxu0 }
 0x2bc   : > { %v2118_v1 = vpack.c.bf16 %v1745_v60, %v1745_v60  ;;  %v12112_v2 = vpop.f32.mrb[7].mxu1  ;;  %v12136_v4 = vpop.f32.mrb[11].mxu0  ;;  %v2115_v54 = vpack.c.bf16 %v1589_v46, %v1589_v46  ;;  %v11022_v60 = vld [vmem:[%s15473_s8 + $0x9] ss:$0 sm:$0xff] }
 0x2be   : > { %v2127_v7 = vsel %vm2122_vm4, %v2118_v1, 0 }
 0x2bf   : > { %12194 = vmatpush3.bf16.xpose.msra.mxu0 %v2127_v7 }
 0x2c0   : > { %12205 = vmatprep.subr.bf16.mxu0 %v13686_v3 }
 0x2c1   : > { %v1692_v10 = vpop.f32.mrb[8].mxu1  ;;  %v1848_v11 = vpop.f32.mrb[12].mxu0 }
 0x2c2   : > { %v1849_v14 = vadd.f32 %v11019_v8, %v1848_v11  ;;  %v12127_v15 = vpop.f32.mrb[9].mxu1  ;;  %v12151_v16 = vpop.f32.mrb[13].mxu0  ;;  %v1693_v61 = vadd.f32 %v11016_v58, %v1692_v10 }
 0x2c3   : > { %v1695_v17 = vpop.f32.mrb[10].mxu1  ;;  %v1851_v18 = vpop.f32.mrb[14].mxu0 }
 0x2c4   : > { %v2120_v20 = vpack.c.bf16 %v1849_v14, %v1849_v14  ;;  %v12128_v21 = vpop.f32.mrb[11].mxu1  ;;  %v12152_v22 = vpop.f32.mrb[15].mxu0  ;;  %v2117_v2 = vpack.c.bf16 %v1693_v61, %v1693_v61 }
 0x2c6   : > { %12196 = vmatmul.mubr.msk.bf16.vlgmr.msra.gmra.mrb[24].mxu0 %vm2122_vm4, %v2114_v19  ;;  %v2219_v24 = vsel %vm2122_vm4, %v2120_v20, 0 }
 0x2c7   : > { %12206 = vmatpush3.bf16.xpose.msra.mxu0 %v2219_v24  ;;  %12207 = vmatprep.mubr.msk.bf16.mxu0 %vm13687_vm0, %v13686_v3 }
 0x2c8   : > { %12217 = vmatprep.subr.bf16.mxu0 %v13686_v3 }
 0x2c9   : > { %v1796_v29 = vpop.f32.mrb[12].mxu1  ;;  %v1952_v30 = vpop.f32.mrb[16].mxu0 }
 0x2ca   : > { %v1797_v31 = vadd.f32 %v11018_v25, %v1796_v29  ;;  %v1953_v32 = vadd.f32 %v11021_v27, %v1952_v30  ;;  %v12143_v33 = vpop.f32.mrb[13].mxu1  ;;  %v12167_v34 = vpop.f32.mrb[17].mxu0 }
 0x2cb   : > { %v1799_v35 = vpop.f32.mrb[14].mxu1  ;;  %v1955_v36 = vpop.f32.mrb[18].mxu0 }
 0x2cc   : > { %v2119_v38 = vpack.c.bf16 %v1797_v31, %v1797_v31  ;;  %v2369_v39 = vpack.c.bf16 %v1953_v32, %v1953_v32  ;;  %v12144_v40 = vpop.f32.mrb[15].mxu1  ;;  %v12168_v41 = vpop.f32.mrb[19].mxu0 }
 0x2ce   : > { %12208 = vmatmul.mubr.msk.bf16.vlgmr.msra.gmra.mrb[28].mxu0 %vm2122_vm4, %v2116_v37  ;;  %v2173_v43 = vsel %vm2122_vm4, %v2119_v38, 0  ;;  %v2378_v44 = vsel %vm2376_vm5, %v2369_v39, 0 }
 0x2cf   : > { %12200 = vmatpush3.bf16.xpose.msra.mxu1 %v2173_v43  ;;  %12218 = vmatpush3.bf16.msra.mxu0 %v2378_v44 }
 0x2d0   : > { %12211 = vmatprep.subr.bf16.mxu1 %v13686_v3  ;;  %12219 = vmatprep.mubr.msk.bf16.mxu0 %vm13687_vm0, %v13686_v3 }
 0x2d1   : > { %v1900_v47 = vpop.f32.mrb[16].mxu1  ;;  %v14111_v48 = vpop.f32.mrb[20].mxu0  ;;  %12229 = vmatprep.subr.bf16.mxu0 %v13686_v3 }
 0x2d2   : > { %v1901_v49 = vadd.f32 %v11020_v45, %v1900_v47  ;;  %v12159_v50 = vpop.f32.mrb[17].mxu1  ;;  %v12183_v51 = vpop.f32.mrb[21].mxu0 }
 0x2d3   : > { %v1903_v52 = vpop.f32.mrb[18].mxu1  ;;  %v2059_v53 = vpop.f32.mrb[22].mxu0 }
 0x2d4   : > { %v2121_v55 = vpack.c.bf16 %v1901_v49, %v1901_v49  ;;  %v12160_v56 = vpop.f32.mrb[19].mxu1  ;;  %v12184_v57 = vpop.f32.mrb[23].mxu0 }
 0x2d6   : > { %12202 = vmatmul.mubr.msk.bf16.vlgmr.msra.gmra.mrb[28].mxu1 %vm2122_vm4, %v2115_v54  ;;  %v2265_v59 = vsel %vm2122_vm4, %v2121_v55, 0 }
 0x2d7   : > { %12212 = vmatpush3.bf16.xpose.msra.mxu1 %v2265_v59  ;;  %12213 = vmatprep.mubr.msk.bf16.mxu1 %vm13687_vm0, %v13686_v3 }
 0x2d8   : > { %12223 = vmatprep.subr.bf16.mxu1 %v13686_v3 }
 0x2d9   : > { %v2004_v62 = vpop.f32.mrb[20].mxu1 }
 0x2da   : > { %v2005_v63 = vadd.f32 %v11022_v60, %v2004_v62  ;;  %v12175_v0 = vpop.f32.mrb[21].mxu1 }
 0x2db   : > { %v2007_v1 = vpop.f32.mrb[22].mxu1 }
 0x2dc   : > { %v2370_v4 = vpack.c.bf16 %v2005_v63, %v2005_v63  ;;  %v12176_v6 = vpop.f32.mrb[23].mxu1  ;;  %v11023_v1 = vld [vmem:[%s15473_s8 + $0xa] ss:$0 sm:$0xff] }
 0x2de   : > { %12214 = vmatmul.mubr.msk.bf16.vlgmr.msra.gmra.mrb[32].mxu1 %vm2122_vm4, %v2117_v2  ;;  %v2424_v7 = vsel %vm2376_vm5, %v2370_v4, 0  ;;  %v2057_v2 = vadd.f32 %v11023_v1, %v14111_v48 }
 0x2df   : > { %12224 = vmatpush3.bf16.msra.mxu1 %v2424_v7  ;;  %12225 = vmatprep.mubr.msk.bf16.mxu1 %vm13687_vm0, %v13686_v3 }
 0x2e0   : > { %12235 = vmatprep.subr.bf16.mxu1 %v13686_v3  ;;  %v2371_v6 = vpack.c.bf16 %v2057_v2, %v2057_v2 }
 0x2e1   : > { %v14126_v8 = vpop.f32.mrb[24].mxu1 }
 0x2e2   : > { %v12191_v9 = vpop.f32.mrb[25].mxu1 }
 0x2e3   : > { %v2111_v10 = vpop.f32.mrb[26].mxu1 }
 0x2e4   : > { %v12192_v11 = vpop.f32.mrb[27].mxu1  ;;  %v2470_v10 = vsel %vm2376_vm5, %v2371_v6, 0 }
 0x399   : > { %v2163_v14 = vpop.f32.mrb[24].mxu0 }
 0x39a   : > { %v2307_v15 = vmul.f32 0.35355338, %v2163_v14  ;;  %v12197_v16 = vpop.f32.mrb[25].mxu0 }
 0x39b   : > { %v2166_v17 = vpop.f32.mrb[26].mxu0 }
 0x39c   : > { %v12198_v18 = vpop.f32.mrb[27].mxu0  ;;  %v2317_v19 = vadd.f32 %v13973_v12, %v2307_v15  ;;  %v11024_v15 = vld [vmem:[%s15473_s8 + $0xb] ss:$0 sm:$0xff] }
 0x39d   : > { %v2109_v48 = vadd.f32 %v11024_v15, %v14126_v8 }
 0x39e   : > { %v2321_v20 = vsel %vm2122_vm4, %v2317_v19, -inf }
 0x39f   : > { %2322 = vmax.xlane.f32.xlu0 %v2321_v20  ;;  %v2372_v18 = vpack.c.bf16 %v2109_v48, %v2109_v48 }
 0x3a1   : > { %v2255_v21 = vpop.f32.mrb[28].mxu0 }
 0x3a2   : > { %v12209_v22 = vpop.f32.mrb[29].mxu0  ;;  %v2309_v27 = vmul.f32 0.35355338, %v2255_v21 }
 0x3a3   : > { %v2258_v23 = vpop.f32.mrb[30].mxu0 }
 0x3a4   : > { %v12210_v24 = vpop.f32.mrb[31].mxu0  ;;  %v2319_v34 = vadd.f32 %v13973_v12, %v2309_v27  ;;  %v2516_v23 = vsel %vm2376_vm5, %v2372_v18, 0 }
 0x3a6   : > { %v2327_v38 = vsel %vm2122_vm4, %v2319_v34, -inf }
 0x3a9   : > { %v2209_v25 = vpop.f32.mrb[28].mxu1 }
 0x3aa   : > { %v2308_v28 = vmul.f32 0.35355338, %v2209_v25  ;;  %v12203_v29 = vpop.f32.mrb[29].mxu1 }
 0x3ab   : > { %v2212_v30 = vpop.f32.mrb[30].mxu1 }
 0x3ac   : > { %v12204_v31 = vpop.f32.mrb[31].mxu1  ;;  %v2318_v32 = vadd.f32 %v13973_v12, %v2308_v28  ;;  %v2558_v28 = vld [vmem:[%s15471_s14] sm:$0xf]  ;;  %v2559_v30 = vld [vmem:[%s15471_s14 + $0x4] sm:$0xf] }
 0x3ad   : > { %v2571_v29 = vsel %vm2376_vm5, %v2558_v28, 0  ;;  %v2617_v31 = vsel %vm2376_vm5, %v2559_v30, 0  ;;  %v13316_v30 = vld [vmem:[%s15474_s6 + $0x8] sm:$0xff]  }
 0x3ae   : > { %v2324_v33 = vsel %vm2122_vm4, %v2318_v32, -inf }
 0x3af   : > { %2325 = vmax.xlane.f32.xlu1 %v2324_v33 }
 0x3b1   : > { %v2301_v35 = vpop.f32.mrb[32].mxu1 }
 0x3b2   : > { %v2310_v36 = vmul.f32 0.35355338, %v2301_v35  ;;  %v12215_v37 = vpop.f32.mrb[33].mxu1 }
 0x3b3   : > { %v2304_v39 = vpop.f32.mrb[34].mxu1  ;;  %2328 = vmax.xlane.f32.xlu1 %v2327_v38 }
 0x3b4   : > { %v12216_v40 = vpop.f32.mrb[35].mxu1  ;;  %v2320_v41 = vadd.f32 %v13973_v12, %v2310_v36  ;;  %v2561_v39 = vld [vmem:[%s15471_s14 + $0xc] sm:$0xf] }
 0x3b6   : > { %v2330_v42 = vsel %vm2122_vm4, %v2320_v41, -inf }
 0x3b7   : > { %2331 = vmax.xlane.f32.xlu1 %v2330_v42 }
 0x42c   : > { %v2323_v43 = vpop.xlane.xlu0 %2322 }
 0x42d   : > { %v2333_v44 = vsub.f32 %v2317_v19, %v2323_v43  ;;  %v2709_v43 = vsel %vm2376_vm5, %v2561_v39, 0 }
 0x42f   : > { %v2337_v45 = vmul.f32 1.442695, %v2333_v44 }
 0x431   : > { %13464 = vpow2.f32 %v2337_v45 }
 0x43b   : > { %v13465_v46 = vpop.eup %13464 }
 0x43c   : > { %v2326_v47 = vpop.xlane.xlu1 %2325  ;;  %v2345_v49 = vsel %vm2122_vm4, %v13465_v46, 0.0 }
 0x43d   : > { %v2334_v50 = vsub.f32 %v2318_v32, %v2326_v47  ;;  %2346 = vadd.xlane.f32.xlu1 %v2345_v49  ;;  %v2560_v32 = vld [vmem:[%s15471_s14 + $0x8] sm:$0xf] }
 0x43e   : > { %v2663_v36 = vsel %vm2376_vm5, %v2560_v32, 0 }
 0x43f   : > { %v2339_v51 = vmul.f32 1.442695, %v2334_v50 }
 0x440   : > { %v2329_v52 = vpop.xlane.xlu1 %2328 }
 0x441   : > { %13466 = vpow2.f32 %v2339_v51  ;;  %v2335_v53 = vsub.f32 %v2319_v34, %v2329_v52 }
 0x443   : > { %v2341_v54 = vmul.f32 1.442695, %v2335_v53 }
 0x444   : > { %v2332_v55 = vpop.xlane.xlu1 %2331 }
 0x445   : > { %13468 = vpow2.f32 %v2341_v54  ;;  %v2336_v56 = vsub.f32 %v2320_v41, %v2332_v55 }
 0x447   : > { %v2343_v57 = vmul.f32 1.442695, %v2336_v56 }
 0x449   : > { %13470 = vpow2.f32 %v2343_v57 }
 0x44b   : > { %v13467_v58 = vpop.eup %13466 }
 0x44c   : > { %v2348_v59 = vsel %vm2122_vm4, %v13467_v58, 0.0 }
 0x44d   : > { %2349 = vadd.xlane.f32.xlu1 %v2348_v59 }
 0x44f   : > { %v13469_v60 = vpop.eup %13468 }
 0x450   : > { %v2351_v61 = vsel %vm2122_vm4, %v13469_v60, 0.0 }
 0x451   : > { %2352 = vadd.xlane.f32.xlu1 %v2351_v61 }
 0x453   : > { %v13471_v62 = vpop.eup %13470 }
 0x454   : > { %v2354_v63 = vsel %vm2122_vm4, %v13471_v62, 0.0 }
 0x455   : > { %2355 = vadd.xlane.f32.xlu1 %v2354_v63 }
 0x4ca   : > { %v2347_v0 = vpop.xlane.xlu1 %2346 }
 0x4cb   : > { %13472 = vrcp.f32 %v2347_v0 }
 0x4d5   : > { %v13473_v4 = vpop.eup %13472 }
 0x4d6   : > { %v2361_v7 = vmul.f32 %v13473_v4, %v13465_v46 }
 0x4d8   : > { %v2365_v9 = vpack.c.bf16 %v2361_v7, %v2361_v7 }
 0x4da   : > { %12220 = vmatmul.mubr.msk.bf16.vlgmr.msra.gmra.mrb[32].mxu0 %vm2122_vm4, %v2365_v9  ;;  %v2350_v11 = vpop.xlane.xlu1 %2349 }
 0x4db   : > { %12230 = vmatpush3.bf16.msra.mxu0 %v2470_v10  ;;  %13474 = vrcp.f32 %v2350_v11  ;;  %12231 = vmatprep.mubr.msk.bf16.mxu0 %vm13687_vm0, %v13686_v3 }
 0x4dc   : > { %12241 = vmatprep.subr.bf16.mxu0 %v13686_v3 }
 0x4de   : > { %v2353_v14 = vpop.xlane.xlu1 %2352 }
 0x4df   : > { %13476 = vrcp.f32 %v2353_v14 }
 0x4e2   : > { %v2356_v16 = vpop.xlane.xlu1 %2355 }
 0x4e3   : > { %13478 = vrcp.f32 %v2356_v16 }
 0x4e5   : > { %v13475_v17 = vpop.eup %13474 }
 0x4e6   : > { %v2362_v19 = vmul.f32 %v13475_v17, %v13467_v58  ;;  %v11073_v17 = vld [vmem:[%s15469_s19] ss:$0 sm:$0xff] }
 0x4e8   : > { %v2366_v20 = vpack.c.bf16 %v2362_v19, %v2362_v19 }
 0x4e9   : > { %v13477_v21 = vpop.eup %13476 }
 0x4ea   : > { %v2363_v22 = vmul.f32 %v13477_v21, %v13469_v60  ;;  %12226 = vmatmul.mubr.msk.bf16.vlgmr.msra.gmra.mrb[36].mxu1 %vm2122_vm4, %v2366_v20 }
 0x4eb   : > { %12236 = vmatpush3.bf16.msra.mxu1 %v2516_v23  ;;  %12237 = vmatprep.mubr.msk.bf16.mxu1 %vm13687_vm0, %v13686_v3 }
 0x4ec   : > { %v2367_v24 = vpack.c.bf16 %v2363_v22, %v2363_v22  ;;  %12247 = vmatprep.subr.bf16.mxu1 %v13686_v3 }
 0x4ed   : > { %v13479_v8 = vpop.eup %13478 }
 0x4ee   : > { %v2364_v25 = vmul.f32 %v13479_v8, %v13471_v62  ;;  %12232 = vmatmul.mubr.msk.bf16.vlgmr.msra.gmra.mrb[36].mxu0 %vm2122_vm4, %v2367_v24 }
 0x4ef   : > { %12243 = vmatprep.mubr.msk.bf16.mxu0 %vm13687_vm0, %v13686_v3  ;;  %12242 = vmatpush3.bf16.msra.mxu0 %v2571_v29  ;;  %v13315_v29 = vld [vmem:[%s15474_s6] sm:$0xff]  }
 0x4f0   : > { %v2368_v27 = vpack.c.bf16 %v2364_v25, %v2364_v25  ;;  %12253 = vmatprep.subr.bf16.mxu0 %v13686_v3 }
 0x4f2   : > { %12238 = vmatmul.mubr.msk.bf16.vlgmr.msra.gmra.mrb[40].mxu1 %vm2122_vm4, %v2368_v27 }
 0x4f3   : > { %12249 = vmatprep.mubr.msk.bf16.mxu1 %vm13687_vm0, %v13686_v3  ;;  %12248 = vmatpush3.bf16.msra.mxu1 %v2617_v31  ;;  %v13318_v31 = vld [vmem:[%s15468_s20 + $0x8] sm:$0xff]  }
 0x4f4   : > { %12259 = vmatprep.subr.bf16.mxu1 %v13686_v3 }
 0x5ad   : > { %v2414_v33 = vpop.f32.mrb[32].mxu0 }
 0x5ae   : > { %v2563_v34 = vpack.c.bf16 %v2414_v33, %v2414_v33  ;;  %v12221_v35 = vpop.f32.mrb[33].mxu0 }
 0x5af   : > { %v2417_v37 = vpop.f32.mrb[34].mxu0 }
 0x5b0   : > { %v12222_v38 = vpop.f32.mrb[35].mxu0  ;;  %12244 = vmatmul.mubr.msk.bf16.vlgmr.msra.gmra.mrb[40].mxu0 %vm2122_vm4, %v2563_v34 }
 0x5b1   : > { %12254 = vmatpush3.bf16.msra.mxu0 %v2663_v36  ;;  %12255 = vmatprep.mubr.msk.bf16.mxu0 %vm13687_vm0, %v13686_v3  ;;  %v11074_v36 = vld [vmem:[%s15467_s24] ss:$0 sm:$0xff] }
 0x5b2   : > { %12265 = vmatprep.subr.bf16.mxu0 %v13686_v3  ;;  %v11075_v38 = vld [vmem:[%s15465_s30] ss:$0 sm:$0xff] }
 0x5bd   : > { %v2460_v40 = vpop.f32.mrb[36].mxu1 }
 0x5be   : > { %v2564_v41 = vpack.c.bf16 %v2460_v40, %v2460_v40  ;;  %v12227_v42 = vpop.f32.mrb[37].mxu1 }
 0x5bf   : > { %v2463_v44 = vpop.f32.mrb[38].mxu1  ;;  %v13319_v42 = vld [vmem:[%s15468_s20 + $0x10] sm:$0xff]  }
 0x5c0   : > { %v12228_v45 = vpop.f32.mrb[39].mxu1  ;;  %12250 = vmatmul.mubr.msk.bf16.vlgmr.msra.gmra.mrb[44].mxu1 %vm2122_vm4, %v2564_v41  ;;  %v11076_v44 = vld [vmem:[%s15472_s12] ss:$0 sm:$0xff] }
 0x5c1   : > { %v2506_v46 = vpop.f32.mrb[36].mxu0  ;;  %12260 = vmatpush3.bf16.msra.mxu1 %v2709_v43  ;;  %12261 = vmatprep.mubr.msk.bf16.mxu1 %vm13687_vm0, %v13686_v3  ;;  %v13320_v43 = vld [vmem:[%s15468_s20 + $0x18] sm:$0xff]  }
 0x5c2   : > { %v2565_v47 = vpack.c.bf16 %v2506_v46, %v2506_v46  ;;  %v12233_v49 = vpop.f32.mrb[37].mxu0  ;;  %12273 = vmatprep.subr.bf16.mxu1 %v13686_v3 }
 0x5c3   : > { %v2509_v50 = vpop.f32.mrb[38].mxu0 }
 0x5c4   : > { %v12234_v51 = vpop.f32.mrb[39].mxu0  ;;  %12256 = vmatmul.mubr.msk.bf16.vlgmr.msra.gmra.mrb[44].mxu0 %vm2122_vm4, %v2565_v47 }
 0x5c5   : > { %v2552_v52 = vpop.f32.mrb[40].mxu1  ;;  %12269 = vmatprep.mubr.msk.bf16.mxu0 %vm13687_vm0, %v13686_v3  ;;  %12266 = vmatpush3.bf16.msra.mxu0 %v13315_v29  ;;  %v13334_v29 = vld [vmem:[%s15475_s3 + $0x140] sm:$0xff]  }
 0x5c6   : > { %v2566_v53 = vpack.c.bf16 %v2552_v52, %v2552_v52  ;;  %v12239_v54 = vpop.f32.mrb[41].mxu1  ;;  %12267 = vmatprep.subr.bf16.mxu0 %v13686_v3 }
 0x5c7   : > { %v2555_v55 = vpop.f32.mrb[42].mxu1 }
 0x5c8   : > { %v12240_v56 = vpop.f32.mrb[43].mxu1  ;;  %12262 = vmatmul.mubr.msk.bf16.vlgmr.msra.gmra.mrb[48].mxu1 %vm2122_vm4, %v2566_v53  ;;  %v11080_v53 = vld [vmem:[%s15466_s27] ss:$0 sm:$0xff] }
 0x5c9   : > { %12281 = vmatprep.mubr.msk.bf16.mxu1 %vm13687_vm0, %v13686_v3  ;;  %12268 = vmatpush3.bf16.msra.mxu0 %v13316_v30  ;;  %v13335_v30 = vld [vmem:[%s15475_s3 + $0x118] sm:$0xff]  }
 0x5ca   : > { %12285 = vmatprep.subr.bf16.mxu0 %v13686_v3 }
 0x683   : > { %v2607_v57 = vpop.f32.mrb[40].mxu0 }
 0x684   : > { %v12245_v58 = vpop.f32.mrb[41].mxu0  ;;  %v2751_v62 = vsel %vm1498_vm3, %v2607_v57, 0.0 }
 0x685   : > { %v2610_v59 = vpop.f32.mrb[42].mxu0 }
 0x686   : > { %v12246_v60 = vpop.f32.mrb[43].mxu0 }
 0x693   : > { %v2653_v61 = vpop.f32.mrb[44].mxu1 }
 0x694   : > { %v2752_v63 = vsel %vm1498_vm3, %v2653_v61, 0.0  ;;  %v12251_v0 = vpop.f32.mrb[45].mxu1 }
 0x695   : > { %v2753_v1 = vadd.f32 %v2752_v63, %v2751_v62  ;;  %v2656_v2 = vpop.f32.mrb[46].mxu1 }
 0x696   : > { %v12252_v4 = vpop.f32.mrb[47].mxu1  ;;  %v13321_v2 = vld [vmem:[%s15475_s3 + $0xc0] sm:$0xff]  }
 0x697   : > { %v2699_v6 = vpop.f32.mrb[44].mxu0  ;;  %v13322_v4 = vld [vmem:[%s15475_s3 + $0xe0] sm:$0xff]  }
 0x698   : > { %v2754_v7 = vsel %vm1498_vm3, %v2699_v6, 0.0  ;;  %v12257_v9 = vpop.f32.mrb[45].mxu0  ;;  %v13323_v6 = vld [vmem:[%s15475_s3 + $0xc8] sm:$0xff]  }
 0x699   : > { %v2755_v10 = vadd.f32 %v2754_v7, %v2753_v1  ;;  %v2702_v11 = vpop.f32.mrb[46].mxu0  ;;  %v13324_v7 = vld [vmem:[%s15475_s3 + $0xe8] sm:$0xff]  }
 0x69a   : > { %v12258_v14 = vpop.f32.mrb[47].mxu0 }
 0x69b   : > { %v2745_v15 = vpop.f32.mrb[48].mxu1 }
 0x69c   : > { %v2756_v48 = vsel %vm1498_vm3, %v2745_v15, 0.0  ;;  %v12263_v16 = vpop.f32.mrb[49].mxu1  ;;  %v11086_v15 = vld [vmem:[%s15482_s22] ss:$0 sm:$0xff] }
 0x69d   : > { %v2757_v18 = vadd.f32 %v2756_v48, %v2755_v10  ;;  %v2748_v19 = vpop.f32.mrb[50].mxu1  ;;  %v11087_v16 = vld [vmem:[%s15483_s23] ss:$0 sm:$0xff] }
 0x69e   : > { %v12264_v20 = vpop.f32.mrb[51].mxu1  ;;  %v13325_v19 = vld [vmem:[%s15475_s3 + $0xd0] sm:$0xff]  }
 0x69f   : > { %v2764_v21 = vadd.f32 %v11073_v17, %v2757_v18  ;;  %v13326_v20 = vld [vmem:[%s15475_s3 + $0x100] sm:$0xff]  }
 0x6a1   : > { %v2765_v22 = vadd.f32 %v2764_v21, %v13996_v26  ;;  %v13317_v26 = vld [vmem:[%s15468_s20] sm:$0xff]  }
 0x6a2   : > { %12274 = vmatpush3.bf16.msra.mxu1 %v13317_v26  ;;  %v13336_v26 = vld [vmem:[%s15475_s3 + $0x148] sm:$0xff]  }
 0x6a3   : > { %v2768_v23 = vsel %vm1498_vm3, %v2765_v22, 0.0  ;;  %12275 = vmatprep.subr.bf16.mxu1 %v13686_v3 }
 0x6a4   : > { %2769 = vadd.xlane.f32.xlu1 %v2768_v23  ;;  %v13328_v23 = vld [vmem:[%s15475_s3 + $0x108] sm:$0xff]  }
 0x6a6   : > { %12276 = vmatpush3.bf16.msra.mxu1 %v13318_v31  ;;  %v13337_v31 = vld [vmem:[%s15475_s3 + $0x130] sm:$0xff]  }
 0x6a7   : > { %12277 = vmatprep.subr.bf16.mxu1 %v13686_v3 }
 0x6aa   : > { %12278 = vmatpush3.bf16.msra.mxu1 %v13319_v42 }
 0x6ab   : > { %12279 = vmatprep.subr.bf16.mxu1 %v13686_v3 }
 0x6ae   : > { %12280 = vmatpush3.bf16.msra.mxu1 %v13320_v43 }
 0x6af   : > { %12301 = vmatprep.subr.bf16.mxu1 %v13686_v3 }
 0x731   : > { %v2770_v24 = vpop.xlane.xlu1 %2769 }
 0x732   : > { %v2772_v8 = vmul.f32 0.03125, %v2770_v24  ;;  %v13329_v24 = vld [vmem:[%s15475_s3 + $0xf0] sm:$0xff]  }
 0x734   : > { %v2773_v25 = vsub.f32 %v2765_v22, %v2772_v8  ;;  %v13327_v22 = vld [vmem:[%s15475_s3 + $0xd8] sm:$0xff]   ;;  %v13330_v8 = vld [vmem:[%s15475_s3 + $0x120] sm:$0xff]  }
 0x736   : > { %v2774_v27 = vmul.f32 %v2773_v25, %v2773_v25 }
 0x738   : > { %v2775_v28 = vsel %vm1498_vm3, %v2774_v27, 0.0  ;;  %v13332_v27 = vld [vmem:[%s15475_s3 + $0x128] sm:$0xff]  }
 0x739   : > { %2776 = vadd.xlane.f32.xlu1 %v2775_v28  ;;  %v13333_v28 = vld [vmem:[%s15475_s3 + $0x110] sm:$0xff]  }
 0x7c6   : > { %v2777_v32 = vpop.xlane.xlu1 %2776 }
 0x7c7   : > { %v2778_v33 = vmul.f32 0.03125, %v2777_v32  ;;  %v13338_v32 = vld [vmem:[%s15475_s3 + $0x160] sm:$0xff]  }
 0x7c9   : > { %v2779_v34 = vadd.f32 1e-05, %v2778_v33  ;;  %v13339_v33 = vld [vmem:[%s15475_s3 + $0x138] sm:$0xff]  }
 0x7cb   : > { %13480 = vrsqrt.f32 %v2779_v34  ;;  %v13340_v34 = vld [vmem:[%s15475_s3 + $0x168] sm:$0xff]  }
 0x7d5   : > { %v13481_v35 = vpop.eup %13480 }
 0x7d6   : > { %v2781_v37 = vmul.f32 %v13481_v35, %v2773_v25  ;;  %v13331_v25 = vld [vmem:[%s15475_s3 + $0xf8] sm:$0xff]   ;;  %v13341_v35 = vld [vmem:[%s15475_s3 + $0x150] sm:$0xff]  }
 0x7d8   : > { %v2788_v39 = vmul.f32 %v11074_v36, %v2781_v37  ;;  %v13342_v36 = vld [vmem:[%s15475_s3 + $0x158] sm:$0xff]   ;;  %v13343_v37 = vld [vmem:[%s15475_s3 + $0x170] sm:$0xff]  }
 0x7da   : > { %v2795_v40 = vadd.f32 %v11075_v38, %v2788_v39  ;;  %v13344_v38 = vld [vmem:[%s15475_s3 + $0x178] sm:$0xff]   ;;  %s15485_s3 = sshll.u32 %s13957_s2, 3  ;;  %s15488_s2 = sld [smem:[#allocation11_spill]] }
 0x7db   : > { %s1261_s5 = scalar_lea.vmem %s15484_s16, %s15485_s3  ;;  %s15487_s3 = sld [smem:[#allocation24_spill]] }
 0x7dc   : > { %v2810_v41 = vpack.c.bf16 %v2795_v40, %v2795_v40  ;;  %s15489_s16 = sld [smem:[#allocation25_spill]] }
 0x7de   : > { %12270 = vmatmul.mubr.msk.bf16.vlgmr.msra.gmra.mrb[48].mxu0 %vm1498_vm3, %v2810_v41 }
 0x7df   : > { %12289 = vmatprep.mubr.msk.bf16.mxu0 %vm13687_vm0, %v13686_v3  ;;  %12286 = vmatpush3.bf16.msra.mxu0 %v13321_v2 }
 0x7e0   : > { %12287 = vmatprep.subr.bf16.mxu0 %v13686_v3 }
 0x7e3   : > { %12288 = vmatpush3.bf16.msra.mxu0 %v13323_v6 }
 0x7e4   : > { %12293 = vmatprep.subr.bf16.mxu0 %v13686_v3 }
 0x8b1   : > { %v2866_v45 = vpop.f32.mrb[48].mxu0 }
 0x8b2   : > { %v2867_v46 = vadd.f32 %v11076_v44, %v2866_v45  ;;  %v12271_v47 = vpop.f32.mrb[49].mxu0 }
 0x8b3   : > { %v2869_v49 = vpop.f32.mrb[50].mxu0  ;;  %v11152_v47 = vld [vmem:[%s15473_s8 + $0x10] ss:$0 sm:$0xff] }
 0x8b4   : > { %v2872_v50 = vmax.f32 %v2867_v46, 0.0  ;;  %v12272_v51 = vpop.f32.mrb[51].mxu0 }
 0x8b6   : > { %v2873_v52 = vpack.c.bf16 %v2872_v50, %v2872_v50 }
 0x8b8   : > { %12282 = vmatmul.mubr.msk.bf16.vlgmr.msra.gmra.mrb[52].mxu1 %vm2904_vm6, %v2873_v52 }
 0x8b9   : > { %12305 = vmatprep.mubr.msk.bf16.mxu1 %vm13687_vm0, %v13686_v3  ;;  %12302 = vmatpush3.bf16.msra.mxu1 %v13322_v4 }
 0x8ba   : > { %12303 = vmatprep.subr.bf16.mxu1 %v13686_v3 }
 0x8bd   : > { %12304 = vmatpush3.bf16.msra.mxu1 %v13324_v7 }
 0x8be   : > { %12317 = vmatprep.subr.bf16.mxu1 %v13686_v3 }
 0x98b   : > { %v2942_v54 = vpop.f32.mrb[52].mxu1 }
 0x98c   : > { %v2943_v55 = vadd.f32 %v11080_v53, %v2942_v54  ;;  %v12283_v56 = vpop.f32.mrb[53].mxu1 }
 0x98d   : > { %v2945_v57 = vpop.f32.mrb[54].mxu1 }
 0x98e   : > { %v12284_v58 = vpop.f32.mrb[55].mxu1  ;;  %v2948_v59 = vadd.f32 %v2943_v55, %v2795_v40 }
 0x990   : > { %v2951_v60 = vsel %vm1498_vm3, %v2948_v59, 0.0 }
 0x991   : > { %2952 = vadd.xlane.f32.xlu0 %v2951_v60 }
 0xa1e   : > { %v2953_v61 = vpop.xlane.xlu0 %2952 }
 0xa1f   : > { %v2954_v62 = vmul.f32 0.03125, %v2953_v61  ;;  %v11154_v61 = vld [vmem:[%s15473_s8 + $0x12] ss:$0 sm:$0xff] }
 0xa21   : > { %v2955_v63 = vsub.f32 %v2948_v59, %v2954_v62  ;;  %v11148_v59 = vld [vmem:[%s15473_s8 + $0xc] ss:$0 sm:$0xff] }
 0xa23   : > { %v2956_v0 = vmul.f32 %v2955_v63, %v2955_v63 }
 0xa25   : > { %v2957_v1 = vsel %vm1498_vm3, %v2956_v0, 0.0 }
 0xa26   : > { %2958 = vadd.xlane.f32.xlu1 %v2957_v1 }
 0xab3   : > { %v2959_v9 = vpop.xlane.xlu1 %2958 }
 0xab4   : > { %v2960_v10 = vmul.f32 0.03125, %v2959_v9 }
 0xab6   : > { %v2961_v11 = vadd.f32 1e-05, %v2960_v10 }
 0xab8   : > { %13482 = vrsqrt.f32 %v2961_v11 }
 0xac2   : > { %v13483_v14 = vpop.eup %13482 }
 0xac3   : > { %v2963_v48 = vmul.f32 %v13483_v14, %v2955_v63 }
 0xac5   : > { %v2970_v17 = vmul.f32 %v11086_v15, %v2963_v48  ;;  %v11150_v15 = vld [vmem:[%s15473_s8 + $0xe] ss:$0 sm:$0xff] }
 0xac7   : > { %v14226_v18 = vadd.f32 %v11087_v16, %v2970_v17  ;;  %v11153_v16 = vld [vmem:[%s15473_s8 + $0x11] ss:$0 sm:$0xff]  ;;  %v11156_v17 = vld [vmem:[%s15473_s8 + $0x14] ss:$0 sm:$0xff] }
 0xac9   : > { %v14232_v21 = vpack.c.bf16 %v14226_v18, %v14226_v18 }
 0xacb   : > { %12290 = vmatmul.mubr.msk.bf16.vlgmr.msra.gmra.mrb[52].mxu0 %vm1498_vm3, %v14232_v21  ;;  %12306 = vmatmul.mubr.msk.bf16.vlgmr.msra.gmra.mrb[56].mxu1 %vm1498_vm3, %v14232_v21 }
 0xacc   : > { %12294 = vmatpush3.bf16.msra.mxu0 %v13325_v19  ;;  %12318 = vmatpush3.bf16.msra.mxu1 %v13326_v20 }
 0xacd   : > { %12295 = vmatprep.subr.bf16.mxu0 %v13686_v3  ;;  %12319 = vmatprep.subr.bf16.mxu1 %v13686_v3 }
 0xace   : > { %12297 = vmatprep.mubr.msk.bf16.mxu0 %vm13687_vm0, %v13686_v3  ;;  %12321 = vmatprep.mubr.msk.bf16.mxu1 %vm13687_vm0, %v13686_v3 }
 0xad0   : > { %12296 = vmatpush3.bf16.msra.mxu0 %v13327_v22  ;;  %12320 = vmatpush3.bf16.msra.mxu1 %v13328_v23 }
 0xad1   : > { %12309 = vmatprep.subr.bf16.mxu0 %v13686_v3  ;;  %12333 = vmatprep.subr.bf16.mxu1 %v13686_v3 }
 0xad3   : > { %12298 = vmatmul.mubr.msk.bf16.vlgmr.msra.gmra.mrb[56].mxu0 %vm1498_vm3, %v14232_v21  ;;  %12322 = vmatmul.mubr.msk.bf16.vlgmr.msra.gmra.mrb[60].mxu1 %vm1498_vm3, %v14232_v21 }
 0xad4   : > { %12310 = vmatpush3.bf16.msra.mxu0 %v13329_v24  ;;  %12334 = vmatpush3.bf16.msra.mxu1 %v13330_v8 }
 0xad5   : > { %12311 = vmatprep.subr.bf16.mxu0 %v13686_v3  ;;  %12335 = vmatprep.subr.bf16.mxu1 %v13686_v3 }
 0xad6   : > { %12313 = vmatprep.mubr.msk.bf16.mxu0 %vm13687_vm0, %v13686_v3  ;;  %12337 = vmatprep.mubr.msk.bf16.mxu1 %vm13687_vm0, %v13686_v3 }
 0xad8   : > { %12312 = vmatpush3.bf16.msra.mxu0 %v13331_v25  ;;  %12336 = vmatpush3.bf16.msra.mxu1 %v13332_v27 }
 0xad9   : > { %12325 = vmatprep.subr.bf16.mxu0 %v13686_v3  ;;  %12349 = vmatprep.subr.bf16.mxu1 %v13686_v3 }
 0xadb   : > { %12314 = vmatmul.mubr.msk.bf16.vlgmr.msra.gmra.mrb[60].mxu0 %vm1498_vm3, %v14232_v21  ;;  %12338 = vmatmul.mubr.msk.bf16.vlgmr.msra.gmra.mrb[64].mxu1 %vm1498_vm3, %v14232_v21 }
 0xadc   : > { %12326 = vmatpush3.bf16.msra.mxu0 %v13333_v28  ;;  %12350 = vmatpush3.bf16.msra.mxu1 %v13334_v29 }
 0xadd   : > { %12327 = vmatprep.subr.bf16.mxu0 %v13686_v3  ;;  %12351 = vmatprep.subr.bf16.mxu1 %v13686_v3 }
 0xade   : > { %12329 = vmatprep.mubr.msk.bf16.mxu0 %vm13687_vm0, %v13686_v3  ;;  %12353 = vmatprep.mubr.msk.bf16.mxu1 %vm13687_vm0, %v13686_v3 }
 0xae0   : > { %12328 = vmatpush3.bf16.msra.mxu0 %v13335_v30  ;;  %12352 = vmatpush3.bf16.msra.mxu1 %v13336_v26 }
 0xae1   : > { %12341 = vmatprep.subr.bf16.mxu0 %v13686_v3  ;;  %12365 = vmatprep.subr.bf16.mxu1 %v13686_v3 }
 0xae3   : > { %12330 = vmatmul.mubr.msk.bf16.vlgmr.msra.gmra.mrb[64].mxu0 %vm1498_vm3, %v14232_v21  ;;  %12354 = vmatmul.mubr.msk.bf16.vlgmr.msra.gmra.mrb[68].mxu1 %vm1498_vm3, %v14232_v21 }
 0xae4   : > { %12342 = vmatpush3.bf16.msra.mxu0 %v13337_v31  ;;  %12366 = vmatpush3.bf16.msra.mxu1 %v13338_v32  ;;  %v11149_v32 = vld [vmem:[%s15473_s8 + $0xd] ss:$0 sm:$0xff] }
 0xae5   : > { %12343 = vmatprep.subr.bf16.mxu0 %v13686_v3  ;;  %12367 = vmatprep.subr.bf16.mxu1 %v13686_v3 }
 0xae6   : > { %12345 = vmatprep.mubr.msk.bf16.mxu0 %vm13687_vm0, %v13686_v3  ;;  %12369 = vmatprep.mubr.msk.bf16.mxu1 %vm13687_vm0, %v13686_v3 }
 0xae8   : > { %12344 = vmatpush3.bf16.msra.mxu0 %v13339_v33  ;;  %12368 = vmatpush3.bf16.msra.mxu1 %v13340_v34 }
 0xae9   : > { %12357 = vmatprep.subr.bf16.mxu0 %v13686_v3  ;;  %12381 = vmatprep.subr.bf16.mxu1 %v13686_v3 }
 0xaeb   : > { %12346 = vmatmul.mubr.msk.bf16.vlgmr.msra.gmra.mrb[68].mxu0 %vm1498_vm3, %v14232_v21  ;;  %12370 = vmatmul.mubr.msk.bf16.vlgmr.msra.gmra.mrb[72].mxu1 %vm1498_vm3, %v14232_v21 }
 0xaec   : > { %12358 = vmatpush3.bf16.msra.mxu0 %v13341_v35  ;;  %12361 = vmatprep.mubr.msk.bf16.mxu0 %vm13687_vm0, %v13686_v3  ;;  %v11155_v35 = vld [vmem:[%s15473_s8 + $0x13] ss:$0 sm:$0xff] }
 0xaed   : > { %12359 = vmatprep.subr.bf16.mxu0 %v13686_v3  ;;  %12383 = vmatprep.mubr.msk.bf16.mxu1 %vm13687_vm0, %v13686_v3 }
 0xaf0   : > { %12360 = vmatpush3.bf16.msra.mxu0 %v13342_v36 }
 0xaf1   : > { %12373 = vmatprep.subr.bf16.mxu0 %v13686_v3 }
 0xaf3   : > { %12362 = vmatmul.mubr.msk.bf16.vlgmr.msra.gmra.mrb[72].mxu0 %vm1498_vm3, %v14232_v21 }
 0xaf4   : > { %12374 = vmatpush3.bf16.msra.mxu0 %v13343_v37  ;;  %12377 = vmatprep.mubr.msk.bf16.mxu0 %vm13687_vm0, %v13686_v3 }
 0xaf5   : > { %12375 = vmatprep.subr.bf16.mxu0 %v13686_v3 }
 0xaf8   : > { %12376 = vmatpush3.bf16.msra.mxu0 %v13344_v38 }
 0xaf9   : > { %12387 = vmatprep.subr.bf16.mxu0 %v13686_v3 }
 0xafb   : > { %12378 = vmatmul.mubr.msk.bf16.vlgmr.msra.gmra.mrb[76].mxu0 %vm1498_vm3, %v14232_v21 }
 0xafc   : > { %12389 = vmatprep.mubr.msk.bf16.mxu0 %vm13687_vm0, %v13686_v3 }
 0xb9e   : > { %v3162_v39 = vpop.f32.mrb[52].mxu0  ;;  %v3266_v40 = vpop.f32.mrb[56].mxu1 }
 0xb9f   : > { %v12291_v41 = vpop.f32.mrb[53].mxu0  ;;  %v12307_v42 = vpop.f32.mrb[57].mxu1  ;;  %v3163_v62 = vadd.f32 %v11148_v59, %v3162_v39  ;;  %v3267_v19 = vadd.f32 %v11150_v15, %v3266_v40 }
 0xba0   : > { %v3165_v43 = vpop.f32.mrb[54].mxu0  ;;  %v3269_v44 = vpop.f32.mrb[58].mxu1 }
 0xba1   : > { %v12292_v45 = vpop.f32.mrb[55].mxu0  ;;  %v12308_v46 = vpop.f32.mrb[59].mxu1  ;;  %v3740_v9 = vpack.c.bf16 %v3163_v62, %v3163_v62  ;;  %v3742_v28 = vpack.c.bf16 %v3267_v19, %v3267_v19 }
 0xba6   : > { %v3214_v49 = vpop.f32.mrb[56].mxu0  ;;  %v3370_v50 = vpop.f32.mrb[60].mxu1 }
 0xba7   : > { %v3371_v51 = vadd.f32 %v11152_v47, %v3370_v50  ;;  %v12299_v52 = vpop.f32.mrb[57].mxu0  ;;  %v12323_v53 = vpop.f32.mrb[61].mxu1  ;;  %v3215_v36 = vadd.f32 %v11149_v32, %v3214_v49  ;;  %v11151_v49 = vld [vmem:[%s15473_s8 + $0xf] ss:$0 sm:$0xff] }
 0xba8   : > { %v3217_v54 = vpop.f32.mrb[58].mxu0  ;;  %v3373_v55 = vpop.f32.mrb[62].mxu1 }
 0xba9   : > { %v3744_v56 = vpack.c.bf16 %v3371_v51, %v3371_v51  ;;  %v12300_v57 = vpop.f32.mrb[59].mxu0  ;;  %v12324_v58 = vpop.f32.mrb[63].mxu1  ;;  %v3741_v44 = vpack.c.bf16 %v3215_v36, %v3215_v36  ;;  %v11157_v51 = vld [vmem:[%s15473_s8 + $0x15] ss:$0 sm:$0xff] }
 0xbab   : > { %v3752_v60 = vsel %vm2122_vm4, %v3744_v56, 0 }
 0xbac   : > { %12382 = vmatpush3.bf16.xpose.msra.mxu1 %v3752_v60 }
 0xbad   : > { %12393 = vmatprep.subr.bf16.mxu1 %v13686_v3 }
 0xbae   : > { %v3318_v63 = vpop.f32.mrb[60].mxu0  ;;  %v3474_v0 = vpop.f32.mrb[64].mxu1 }
 0xbaf   : > { %v3475_v1 = vadd.f32 %v11154_v61, %v3474_v0  ;;  %v12315_v2 = vpop.f32.mrb[61].mxu0  ;;  %v12339_v4 = vpop.f32.mrb[65].mxu1  ;;  %v3319_v52 = vadd.f32 %v11151_v49, %v3318_v63 }
 0xbb0   : > { %v3321_v6 = vpop.f32.mrb[62].mxu0  ;;  %v3477_v7 = vpop.f32.mrb[66].mxu1 }
 0xbb1   : > { %v3746_v10 = vpack.c.bf16 %v3475_v1, %v3475_v1  ;;  %v12316_v11 = vpop.f32.mrb[63].mxu0  ;;  %v12340_v14 = vpop.f32.mrb[67].mxu1  ;;  %v3743_v57 = vpack.c.bf16 %v3319_v52, %v3319_v52 }
 0xbb3   : > { %v3844_v48 = vsel %vm2122_vm4, %v3746_v10, 0  ;;  %12384 = vmatmul.mubr.msk.bf16.vlgmr.msra.gmra.mrb[76].mxu1 %vm2122_vm4, %v3740_v9 }
 0xbb4   : > { %12394 = vmatpush3.bf16.xpose.msra.mxu1 %v3844_v48  ;;  %12395 = vmatprep.mubr.msk.bf16.mxu1 %vm13687_vm0, %v13686_v3 }
 0xbb5   : > { %12405 = vmatprep.subr.bf16.mxu1 %v13686_v3 }
 0xbb6   : > { %v3422_v20 = vpop.f32.mrb[64].mxu0  ;;  %v3578_v21 = vpop.f32.mrb[68].mxu1 }
 0xbb7   : > { %v3423_v22 = vadd.f32 %v11153_v16, %v3422_v20  ;;  %v3579_v23 = vadd.f32 %v11156_v17, %v3578_v21  ;;  %v12331_v24 = vpop.f32.mrb[65].mxu0  ;;  %v12355_v8 = vpop.f32.mrb[69].mxu1 }
 0xbb8   : > { %v3425_v25 = vpop.f32.mrb[66].mxu0  ;;  %v3581_v27 = vpop.f32.mrb[70].mxu1 }
 0xbb9   : > { %v3745_v29 = vpack.c.bf16 %v3423_v22, %v3423_v22  ;;  %v3988_v30 = vpack.c.bf16 %v3579_v23, %v3579_v23  ;;  %v12332_v26 = vpop.f32.mrb[67].mxu0  ;;  %v12356_v31 = vpop.f32.mrb[71].mxu1 }
 0xbbb   : > { %v3798_v33 = vsel %vm2122_vm4, %v3745_v29, 0  ;;  %v3996_v34 = vsel %vm2376_vm5, %v3988_v30, 0  ;;  %12396 = vmatmul.mubr.msk.bf16.vlgmr.msra.gmra.mrb[80].mxu1 %vm2122_vm4, %v3742_v28 }
 0xbbc   : > { %12388 = vmatpush3.bf16.xpose.msra.mxu0 %v3798_v33  ;;  %12406 = vmatpush3.bf16.msra.mxu1 %v3996_v34 }
 0xbbd   : > { %12399 = vmatprep.subr.bf16.mxu0 %v13686_v3  ;;  %12407 = vmatprep.mubr.msk.bf16.mxu1 %vm13687_vm0, %v13686_v3 }
 0xbbe   : > { %v3526_v37 = vpop.f32.mrb[68].mxu0  ;;  %v14341_v38 = vpop.f32.mrb[72].mxu1  ;;  %12417 = vmatprep.subr.bf16.mxu1 %v13686_v3 }
 0xbbf   : > { %v3527_v39 = vadd.f32 %v11155_v35, %v3526_v37  ;;  %v12347_v40 = vpop.f32.mrb[69].mxu0  ;;  %v12371_v41 = vpop.f32.mrb[73].mxu1 }
 0xbc0   : > { %v3529_v42 = vpop.f32.mrb[70].mxu0  ;;  %v3685_v43 = vpop.f32.mrb[74].mxu1 }
 0xbc1   : > { %v3747_v45 = vpack.c.bf16 %v3527_v39, %v3527_v39  ;;  %v12348_v46 = vpop.f32.mrb[71].mxu0  ;;  %v12372_v47 = vpop.f32.mrb[75].mxu1 }
 0xbc3   : > { %v3890_v50 = vsel %vm2122_vm4, %v3747_v45, 0  ;;  %12390 = vmatmul.mubr.msk.bf16.vlgmr.msra.gmra.mrb[80].mxu0 %vm2122_vm4, %v3741_v44 }
 0xbc4   : > { %12400 = vmatpush3.bf16.xpose.msra.mxu0 %v3890_v50  ;;  %12401 = vmatprep.mubr.msk.bf16.mxu0 %vm13687_vm0, %v13686_v3 }
 0xbc5   : > { %12411 = vmatprep.subr.bf16.mxu0 %v13686_v3 }
 0xbc6   : > { %v3630_v53 = vpop.f32.mrb[72].mxu0 }
 0xbc7   : > { %v3631_v54 = vadd.f32 %v11157_v51, %v3630_v53  ;;  %v12363_v55 = vpop.f32.mrb[73].mxu0 }
 0xbc8   : > { %v3633_v56 = vpop.f32.mrb[74].mxu0 }
 0xbc9   : > { %v3989_v58 = vpack.c.bf16 %v3631_v54, %v3631_v54  ;;  %v12364_v59 = vpop.f32.mrb[75].mxu0  ;;  %v11158_v56 = vld [vmem:[%s15473_s8 + $0x16] ss:$0 sm:$0xff] }
 0xbcb   : > { %v4042_v60 = vsel %vm2376_vm5, %v3989_v58, 0  ;;  %12402 = vmatmul.mubr.msk.bf16.vlgmr.msra.gmra.mrb[84].mxu0 %vm2122_vm4, %v3743_v57  ;;  %v3683_v57 = vadd.f32 %v11158_v56, %v14341_v38 }
 0xbcc   : > { %12412 = vmatpush3.bf16.msra.mxu0 %v4042_v60  ;;  %12413 = vmatprep.mubr.msk.bf16.mxu0 %vm13687_vm0, %v13686_v3 }
 0xbcd   : > { %12423 = vmatprep.subr.bf16.mxu0 %v13686_v3  ;;  %v3990_v60 = vpack.c.bf16 %v3683_v57, %v3683_v57 }
 0xbce   : > { %v14356_v61 = vpop.f32.mrb[76].mxu0 }
 0xbcf   : > { %v12379_v62 = vpop.f32.mrb[77].mxu0 }
 0xbd0   : > { %v3737_v63 = vpop.f32.mrb[78].mxu0 }
 0xbd1   : > { %v12380_v0 = vpop.f32.mrb[79].mxu0 }
 0xbd2   : > { %v4088_v0 = vsel %vm2376_vm5, %v3990_v60, 0 }
 0xc86   : > { %v3788_v1 = vpop.f32.mrb[76].mxu1 }
 0xc87   : > { %v3932_v2 = vmul.f32 0.35355338, %v3788_v1  ;;  %v12385_v4 = vpop.f32.mrb[77].mxu1 }
 0xc88   : > { %v3791_v6 = vpop.f32.mrb[78].mxu1  ;;  %v11159_v4 = vld [vmem:[%s15473_s8 + $0x17] ss:$0 sm:$0xff]  ;;  %s15493_s8 = sld [smem:[#allocation28_spill]] }
 0xc89   : > { %v12386_v7 = vpop.f32.mrb[79].mxu1  ;;  %v3936_v9 = vadd.f32 %v3932_v2, %v13973_v12 }
 0xc8a   : > { %v3735_v7 = vadd.f32 %v11159_v4, %v14356_v61 }
 0xc8b   : > { %v3940_v10 = vsel %vm2122_vm4, %v3936_v9, -inf }
 0xc8c   : > { %3941 = vmax.xlane.f32.xlu0 %v3940_v10 }
 0xc8e   : > { %v3880_v11 = vpop.f32.mrb[80].mxu1 }
 0xc8f   : > { %v3934_v14 = vmul.f32 0.35355338, %v3880_v11  ;;  %v12397_v15 = vpop.f32.mrb[81].mxu1  ;;  %v3991_v11 = vpack.c.bf16 %v3735_v7, %v3735_v7 }
 0xc90   : > { %v3883_v48 = vpop.f32.mrb[82].mxu1 }
 0xc91   : > { %v12398_v16 = vpop.f32.mrb[83].mxu1  ;;  %v3938_v17 = vadd.f32 %v3934_v14, %v13973_v12  ;;  %v4134_v48 = vsel %vm2376_vm5, %v3991_v11, 0 }
 0xc93   : > { %v3946_v19 = vsel %vm2122_vm4, %v3938_v17, -inf }
 0xc94   : > { %3947 = vmax.xlane.f32.xlu0 %v3946_v19  ;;  %v11204_v19 = vld [vmem:[%s15471_s14 + $0x10] sm:$0xf] }
 0xc96   : > { %v3834_v20 = vpop.f32.mrb[80].mxu0 }
 0xc97   : > { %v3933_v21 = vmul.f32 0.35355338, %v3834_v20  ;;  %v12391_v22 = vpop.f32.mrb[81].mxu0  ;;  %v4191_v20 = vsel %vm2376_vm5, %v11204_v19, 0 }
 0xc98   : > { %v3837_v23 = vpop.f32.mrb[82].mxu0 }
 0xc99   : > { %v12392_v24 = vpop.f32.mrb[83].mxu0  ;;  %v3937_v8 = vadd.f32 %v3933_v21, %v13973_v12  ;;  %v11205_v21 = vld [vmem:[%s15471_s14 + $0x14] sm:$0xf]  ;;  %v11206_v23 = vld [vmem:[%s15471_s14 + $0x18] sm:$0xf] }
 0xc9a   : > { %v4237_v22 = vsel %vm2376_vm5, %v11205_v21, 0  ;;  %v13345_v21 = vld [vmem:[%s15474_s6 + $0x10] sm:$0xff]  }
 0xc9b   : > { %v3943_v25 = vsel %vm2122_vm4, %v3937_v8, -inf }
 0xc9c   : > { %3944 = vmax.xlane.f32.xlu1 %v3943_v25 }
 0xc9e   : > { %v3926_v27 = vpop.f32.mrb[84].mxu0 }
 0xc9f   : > { %v3935_v28 = vmul.f32 0.35355338, %v3926_v27  ;;  %v12403_v29 = vpop.f32.mrb[85].mxu0  ;;  %v4283_v27 = vsel %vm2376_vm5, %v11206_v23, 0  ;;  %v13351_v23 = vld [vmem:[%s15468_s20 + $0x28] sm:$0xff]  }
 0xca0   : > { %v3929_v30 = vpop.f32.mrb[86].mxu0 }
 0xca1   : > { %v12404_v26 = vpop.f32.mrb[87].mxu0  ;;  %v3939_v31 = vadd.f32 %v3935_v28, %v13973_v12 }
 0xca3   : > { %v3949_v32 = vsel %vm2122_vm4, %v3939_v31, -inf }
 0xca4   : > { %3950 = vmax.xlane.f32.xlu1 %v3949_v32 }
 0xd19   : > { %v3942_v33 = vpop.xlane.xlu0 %3941 }
 0xd1a   : > { %v3952_v34 = vsub.f32 %v3936_v9, %v3942_v33 }
 0xd1c   : > { %v3956_v35 = vmul.f32 1.442695, %v3952_v34  ;;  %v11207_v34 = vld [vmem:[%s15471_s14 + $0x1c] sm:$0xf]  ;;  %s15496_s14 = sld [smem:[#allocation33_spill]] }
 0xd1e   : > { %13484 = vpow2.f32 %v3956_v35 }
 0xd21   : > { %v3948_v36 = vpop.xlane.xlu0 %3947 }
 0xd22   : > { %v3954_v37 = vsub.f32 %v3938_v17, %v3948_v36 }
 0xd24   : > { %v3960_v39 = vmul.f32 1.442695, %v3954_v37 }
 0xd26   : > { %13486 = vpow2.f32 %v3960_v39  ;;  %v4329_v39 = vsel %vm2376_vm5, %v11207_v34, 0 }
 0xd28   : > { %v13485_v40 = vpop.eup %13484 }
 0xd29   : > { %v3945_v41 = vpop.xlane.xlu1 %3944  ;;  %v3964_v42 = vsel %vm2122_vm4, %v13485_v40, 0.0 }
 0xd2a   : > { %v3953_v43 = vsub.f32 %v3937_v8, %v3945_v41  ;;  %3965 = vadd.xlane.f32.xlu0 %v3964_v42 }
 0xd2c   : > { %v3958_v44 = vmul.f32 1.442695, %v3953_v43 }
 0xd2e   : > { %13488 = vpow2.f32 %v3958_v44 }
 0xd30   : > { %v13487_v45 = vpop.eup %13486 }
 0xd31   : > { %v3951_v46 = vpop.xlane.xlu1 %3950  ;;  %v3970_v47 = vsel %vm2122_vm4, %v13487_v45, 0.0 }
 0xd32   : > { %v3955_v49 = vsub.f32 %v3939_v31, %v3951_v46  ;;  %3971 = vadd.xlane.f32.xlu0 %v3970_v47 }
 0xd34   : > { %v3962_v50 = vmul.f32 1.442695, %v3955_v49 }
 0xd36   : > { %13490 = vpow2.f32 %v3962_v50 }
 0xd38   : > { %v13489_v51 = vpop.eup %13488 }
 0xd39   : > { %v3967_v52 = vsel %vm2122_vm4, %v13489_v51, 0.0 }
 0xd3a   : > { %3968 = vadd.xlane.f32.xlu1 %v3967_v52 }
 0xd40   : > { %v13491_v53 = vpop.eup %13490 }
 0xd41   : > { %v3973_v54 = vsel %vm2122_vm4, %v13491_v53, 0.0 }
 0xd42   : > { %3974 = vadd.xlane.f32.xlu1 %v3973_v54 }
 0xdb7   : > { %v3966_v55 = vpop.xlane.xlu0 %3965 }
 0xdb8   : > { %13492 = vrcp.f32 %v3966_v55 }
 0xdbf   : > { %v3972_v58 = vpop.xlane.xlu0 %3971 }
 0xdc0   : > { %13494 = vrcp.f32 %v3972_v58 }
 0xdc2   : > { %v13493_v59 = vpop.eup %13492 }
 0xdc3   : > { %v3980_v62 = vmul.f32 %v13493_v59, %v13485_v40 }
 0xdc5   : > { %v3984_v63 = vpack.c.bf16 %v3980_v62, %v3980_v62 }
 0xdc7   : > { %12408 = vmatmul.mubr.msk.bf16.vlgmr.msra.gmra.mrb[84].mxu1 %vm2122_vm4, %v3984_v63  ;;  %v3969_v1 = vpop.xlane.xlu1 %3968 }
 0xdc8   : > { %12418 = vmatpush3.bf16.msra.mxu1 %v4088_v0  ;;  %13496 = vrcp.f32 %v3969_v1  ;;  %12419 = vmatprep.mubr.msk.bf16.mxu1 %vm13687_vm0, %v13686_v3 }
 0xdc9   : > { %12429 = vmatprep.subr.bf16.mxu1 %v13686_v3 }
 0xdca   : > { %v13495_v38 = vpop.eup %13494 }
 0xdcb   : > { %v3982_v2 = vmul.f32 %v13495_v38, %v13487_v45 }
 0xdcd   : > { %v3986_v6 = vpack.c.bf16 %v3982_v2, %v3982_v2  ;;  %v11213_v2 = vld [vmem:[%s15469_s19 + $0x1] ss:$0 sm:$0xff]  ;;  %s15498_s19 = sld [smem:[#allocation34_spill]] }
 0xdcf   : > { %12420 = vmatmul.mubr.msk.bf16.vlgmr.msra.gmra.mrb[88].mxu1 %vm2122_vm4, %v3986_v6  ;;  %v3975_v9 = vpop.xlane.xlu1 %3974 }
 0xdd0   : > { %13498 = vrcp.f32 %v3975_v9  ;;  %12431 = vmatprep.mubr.msk.bf16.mxu1 %vm13687_vm0, %v13686_v3  ;;  %12430 = vmatpush3.bf16.msra.mxu1 %v4191_v20 }
 0xdd1   : > { %12441 = vmatprep.subr.bf16.mxu1 %v13686_v3 }
 0xdd2   : > { %v13497_v10 = vpop.eup %13496 }
 0xdd3   : > { %v3981_v14 = vmul.f32 %v13497_v10, %v13489_v51 }
 0xdd5   : > { %v3985_v15 = vpack.c.bf16 %v3981_v14, %v3981_v14 }
 0xdd7   : > { %12414 = vmatmul.mubr.msk.bf16.vlgmr.msra.gmra.mrb[88].mxu0 %vm2122_vm4, %v3985_v15 }
 0xdd8   : > { %12424 = vmatpush3.bf16.msra.mxu0 %v4134_v48  ;;  %12425 = vmatprep.mubr.msk.bf16.mxu0 %vm13687_vm0, %v13686_v3  ;;  %v4604_v48 = vld [vmem:[%s1261_s5] sm:$0xff]  ;;  %s15486_s5 = sld [smem:[#allocation9_spill]] }
 0xdd9   : > { %12435 = vmatprep.subr.bf16.mxu0 %v13686_v3 }
 0xdda   : > { %v13499_v61 = vpop.eup %13498 }
 0xddb   : > { %v3983_v16 = vmul.f32 %v13499_v61, %v13491_v53 }
 0xddd   : > { %v3987_v17 = vpack.c.bf16 %v3983_v16, %v3983_v16 }
 0xddf   : > { %12426 = vmatmul.mubr.msk.bf16.vlgmr.msra.gmra.mrb[92].mxu0 %vm2122_vm4, %v3987_v17 }
 0xde0   : > { %12437 = vmatprep.mubr.msk.bf16.mxu0 %vm13687_vm0, %v13686_v3  ;;  %12436 = vmatpush3.bf16.msra.mxu0 %v4237_v22  ;;  %v13350_v22 = vld [vmem:[%s15468_s20 + $0x20] sm:$0xff]  }
 0xde1   : > { %12447 = vmatprep.subr.bf16.mxu0 %v13686_v3 }
 0xe9a   : > { %v4032_v24 = vpop.f32.mrb[84].mxu1 }
 0xe9b   : > { %v4183_v8 = vpack.c.bf16 %v4032_v24, %v4032_v24  ;;  %v12409_v25 = vpop.f32.mrb[85].mxu1 }
 0xe9c   : > { %v4035_v28 = vpop.f32.mrb[86].mxu1 }
 0xe9d   : > { %v12410_v29 = vpop.f32.mrb[87].mxu1  ;;  %12432 = vmatmul.mubr.msk.bf16.vlgmr.msra.gmra.mrb[92].mxu1 %vm2122_vm4, %v4183_v8  ;;  %v11216_v28 = vld [vmem:[%s15467_s24 + $0x1] ss:$0 sm:$0xff]  ;;  %s15502_s24 = sld [smem:[#allocation36_spill]] }
 0xe9e   : > { %12442 = vmatpush3.bf16.msra.mxu1 %v4283_v27  ;;  %12443 = vmatprep.mubr.msk.bf16.mxu1 %vm13687_vm0, %v13686_v3 }
 0xe9f   : > { %12453 = vmatprep.subr.bf16.mxu1 %v13686_v3 }
 0xea2   : > { %v4124_v30 = vpop.f32.mrb[88].mxu1 }
 0xea3   : > { %v4185_v26 = vpack.c.bf16 %v4124_v30, %v4124_v30  ;;  %v12421_v31 = vpop.f32.mrb[89].mxu1  ;;  %v11217_v30 = vld [vmem:[%s15465_s30 + $0x1] ss:$0 sm:$0xff]  ;;  %s15505_s30 = sld [smem:[#allocation41_spill]] }
 0xea4   : > { %v4127_v32 = vpop.f32.mrb[90].mxu1 }
 0xea5   : > { %v12422_v33 = vpop.f32.mrb[91].mxu1  ;;  %12444 = vmatmul.mubr.msk.bf16.vlgmr.msra.gmra.mrb[96].mxu1 %vm2122_vm4, %v4185_v26  ;;  %v13347_v32 = vld [vmem:[%s15486_s5] sm:$0xff]  }
 0xea6   : > { %12457 = vmatprep.mubr.msk.bf16.mxu1 %vm13687_vm0, %v13686_v3  ;;  %12454 = vmatpush3.bf16.msra.mxu1 %v13345_v21  ;;  %v13376_v21 = vld [vmem:[%s15487_s3 + $0xa8] sm:$0xff]  }
 0xea7   : > { %12455 = vmatprep.subr.bf16.mxu1 %v13686_v3 }
 0xeaa   : > { %v4078_v35 = vpop.f32.mrb[88].mxu0 }
 0xeab   : > { %v4184_v36 = vpack.c.bf16 %v4078_v35, %v4078_v35  ;;  %v12415_v37 = vpop.f32.mrb[89].mxu0  ;;  %v13348_v35 = vld [vmem:[%s15486_s5 + $0x8] sm:$0xff]  }
 0xeac   : > { %v4081_v40 = vpop.f32.mrb[90].mxu0 }
 0xead   : > { %v12416_v41 = vpop.f32.mrb[91].mxu0  ;;  %12438 = vmatmul.mubr.msk.bf16.vlgmr.msra.gmra.mrb[96].mxu0 %vm2122_vm4, %v4184_v36  ;;  %v13349_v36 = vld [vmem:[%s15486_s5 + $0x10] sm:$0xff]   ;;  %s15491_s5 = sld [smem:[#allocation27_spill]] }
 0xeae   : > { %12448 = vmatpush3.bf16.msra.mxu0 %v4329_v39  ;;  %12449 = vmatprep.mubr.msk.bf16.mxu0 %vm13687_vm0, %v13686_v3  ;;  %v13352_v40 = vld [vmem:[%s15468_s20 + $0x30] sm:$0xff]   ;;  %v13353_v41 = vld [vmem:[%s15468_s20 + $0x38] sm:$0xff]   ;;  %s15499_s20 = sld [smem:[#allocation35_spill]] }
 0xeaf   : > { %12461 = vmatprep.subr.bf16.mxu0 %v13686_v3 }
 0xeb2   : > { %v4170_v42 = vpop.f32.mrb[92].mxu0 }
 0xeb3   : > { %v4186_v43 = vpack.c.bf16 %v4170_v42, %v4170_v42  ;;  %v12427_v44 = vpop.f32.mrb[93].mxu0  ;;  %v13355_v42 = vld [vmem:[%s15487_s3 + $0x10] sm:$0xff]  }
 0xeb4   : > { %v4173_v45 = vpop.f32.mrb[94].mxu0  ;;  %v11232_v44 = vld [vmem:[%s15472_s12 + $0x1] ss:$0 sm:$0xff]  ;;  %s15494_s12 = sld [smem:[#allocation29_spill]] }
 0xeb5   : > { %v12428_v46 = vpop.f32.mrb[95].mxu0  ;;  %12450 = vmatmul.mubr.msk.bf16.vlgmr.msra.gmra.mrb[100].mxu0 %vm2122_vm4, %v4186_v43  ;;  %v13357_v43 = vld [vmem:[%s15487_s3 + $0x18] sm:$0xff]  }
 0xeb6   : > { %12469 = vmatprep.mubr.msk.bf16.mxu0 %vm13687_vm0, %v13686_v3  ;;  %12462 = vmatpush3.bf16.msra.mxu0 %v13350_v22 }
 0xeb7   : > { %12463 = vmatprep.subr.bf16.mxu0 %v13686_v3 }
 0xeba   : > { %12464 = vmatpush3.bf16.msra.mxu0 %v13351_v23 }
 0xebb   : > { %12465 = vmatprep.subr.bf16.mxu0 %v13686_v3 }
 0xebe   : > { %12466 = vmatpush3.bf16.msra.mxu0 %v13352_v40 }
 0xebf   : > { %12467 = vmatprep.subr.bf16.mxu0 %v13686_v3 }
 0xec2   : > { %12468 = vmatpush3.bf16.msra.mxu0 %v13353_v41 }
 0xec3   : > { %12483 = vmatprep.subr.bf16.mxu0 %v13686_v3 }
 0xf70   : > { %v4227_v47 = vpop.f32.mrb[92].mxu1 }
 0xf71   : > { %v12433_v49 = vpop.f32.mrb[93].mxu1  ;;  %v4371_v57 = vsel %vm1498_vm3, %v4227_v47, 0.0 }
 0xf72   : > { %v4230_v50 = vpop.f32.mrb[94].mxu1 }
 0xf73   : > { %v12434_v51 = vpop.f32.mrb[95].mxu1 }
 0xf78   : > { %v4319_v52 = vpop.f32.mrb[96].mxu1 }
 0xf79   : > { %v12445_v53 = vpop.f32.mrb[97].mxu1  ;;  %v4374_v63 = vsel %vm1498_vm3, %v4319_v52, 0.0  ;;  %v13354_v52 = vld [vmem:[%s15487_s3] sm:$0xff]  }
 0xf7a   : > { %v4322_v54 = vpop.f32.mrb[98].mxu1 }
 0xf7b   : > { %v12446_v55 = vpop.f32.mrb[99].mxu1  ;;  %v13356_v54 = vld [vmem:[%s15487_s3 + $0x8] sm:$0xff]  }
 0xf7c   : > { %v4611_v55 = vld [vmem:[%s15488_s2] sm:$0xff]  ;;  %s15490_s2 = sld [smem:[#allocation26_spill]] }
 0xf80   : > { %v4273_v56 = vpop.f32.mrb[96].mxu0 }
 0xf81   : > { %v4372_v58 = vsel %vm1498_vm3, %v4273_v56, 0.0  ;;  %v12439_v59 = vpop.f32.mrb[97].mxu0 }
 0xf82   : > { %v4373_v60 = vadd.f32 %v4372_v58, %v4371_v57  ;;  %v4276_v62 = vpop.f32.mrb[98].mxu0 }
 0xf83   : > { %v12440_v0 = vpop.f32.mrb[99].mxu0 }
 0xf84   : > { %v4375_v1 = vadd.f32 %v4374_v63, %v4373_v60  ;;  %v13358_v63 = vld [vmem:[%s15487_s3 + $0x20] sm:$0xff]   ;;  %v13359_v0 = vld [vmem:[%s15487_s3 + $0x30] sm:$0xff]  }
 0xf88   : > { %v4365_v38 = vpop.f32.mrb[100].mxu0 }
 0xf89   : > { %v4376_v4 = vsel %vm1498_vm3, %v4365_v38, 0.0  ;;  %v12451_v6 = vpop.f32.mrb[101].mxu0  ;;  %v13360_v38 = vld [vmem:[%s15487_s3 + $0x28] sm:$0xff]  }
 0xf8a   : > { %v4377_v7 = vadd.f32 %v4376_v4, %v4375_v1  ;;  %v4368_v9 = vpop.f32.mrb[102].mxu0  ;;  %v13362_v4 = vld [vmem:[%s15487_s3 + $0x40] sm:$0xff]   ;;  %v13363_v6 = vld [vmem:[%s15487_s3 + $0x50] sm:$0xff]  }
 0xf8b   : > { %v12452_v10 = vpop.f32.mrb[103].mxu0  ;;  %v13365_v9 = vld [vmem:[%s15487_s3 + $0x58] sm:$0xff]  }
 0xf8c   : > { %v4384_v11 = vadd.f32 %v11213_v2, %v4377_v7  ;;  %v13361_v2 = vld [vmem:[%s15487_s3 + $0x38] sm:$0xff]   ;;  %v13364_v7 = vld [vmem:[%s15487_s3 + $0x48] sm:$0xff]   ;;  %v13366_v10 = vld [vmem:[%s15487_s3 + $0x60] sm:$0xff]  }
 0xf8e   : > { %v4385_v14 = vadd.f32 %v4384_v11, %v14226_v18  ;;  %v13346_v18 = vld [vmem:[%s15474_s6 + $0x18] sm:$0xff]   ;;  %v13367_v11 = vld [vmem:[%s15487_s3 + $0x70] sm:$0xff]   ;;  %s15492_s6 = sld [smem:[#allocation30_spill]] }
 0xf8f   : > { %12456 = vmatpush3.bf16.msra.mxu1 %v13346_v18  ;;  %v13377_v18 = vld [vmem:[%s15487_s3 + $0xb8] sm:$0xff]  }
 0xf90   : > { %v4390_v15 = vsel %vm1498_vm3, %v4385_v14, 0.0  ;;  %12473 = vmatprep.subr.bf16.mxu1 %v13686_v3 }
 0xf91   : > { %4391 = vadd.xlane.f32.xlu0 %v4390_v15  ;;  %v13369_v15 = vld [vmem:[%s15487_s3 + $0x78] sm:$0xff]  }
 0xfa7   : > { %4613 = vperm.xlu0 %13287, %v4604_v48   ;;  %v13370_v48 = vld [vmem:[%s15487_s3 + $0x80] sm:$0xff]  }
0x101e   : > { %v4392_v61 = vpop.xlane.xlu0 %4391 }
0x101f   : > { %v4393_v16 = vmul.f32 0.03125, %v4392_v61  ;;  %v13371_v61 = vld [vmem:[%s15487_s3 + $0x90] sm:$0xff]  }
0x1021   : > { %v4394_v17 = vsub.f32 %v4385_v14, %v4393_v16  ;;  %v13368_v14 = vld [vmem:[%s15487_s3 + $0x68] sm:$0xff]  }
0x1022   : > { %v13372_v16 = vld [vmem:[%s15487_s3 + $0x88] sm:$0xff]  }
0x1023   : > { %v4395_v19 = vmul.f32 %v4394_v17, %v4394_v17 }
0x1025   : > { %v4396_v20 = vsel %vm1498_vm3, %v4395_v19, 0.0  ;;  %v13374_v19 = vld [vmem:[%s15487_s3 + $0xa0] sm:$0xff]  }
0x1026   : > { %4397 = vadd.xlane.f32.xlu1 %v4396_v20  ;;  %v4614_v34 = vpop.permute.xlu0 %4613  ;;  %v13375_v20 = vld [vmem:[%s15487_s3 + $0xb0] sm:$0xff]  }
0x1027   : > { %vm4615_vm7 = vcmp.eq.s32.totalorder %v13980_v13, %v4614_v34 }
0x1028   : > { %v4616_v37 = vsel %vm4615_vm7, 1.0, %v13686_v3 }
0x1029   : > { %v4617_v39 = vpack.c.bf16 %v4616_v37, %v4616_v37 }
0x10b3   : > { %v4398_v24 = vpop.xlane.xlu1 %4397 }
0x10b4   : > { %v4399_v8 = vmul.f32 0.03125, %v4398_v24 }
0x10b6   : > { %v4400_v25 = vadd.f32 1e-05, %v4399_v8 }
0x10b8   : > { %13500 = vrsqrt.f32 %v4400_v25 }
0x10c2   : > { %v13501_v27 = vpop.eup %13500 }
0x10c3   : > { %v4402_v29 = vmul.f32 %v13501_v27, %v4394_v17  ;;  %v13373_v17 = vld [vmem:[%s15487_s3 + $0x98] sm:$0xff]  }
0x10c5   : > { %v4409_v26 = vmul.f32 %v11216_v28, %v4402_v29 }
0x10c7   : > { %v14435_v31 = vadd.f32 %v11217_v30, %v4409_v26 }
0x10c9   : > { %v4435_v33 = vpack.c.bf16 %v14435_v31, %v14435_v31 }
0x10cb   : > { %12458 = vmatmul.mubr.msk.bf16.vlgmr.msra.gmra.mrb[100].mxu1 %vm1498_vm3, %v4435_v33 }
0x10cc   : > { %12474 = vmatpush3.bf16.msra.mxu1 %v13347_v32  ;;  %12479 = vmatprep.mubr.msk.bf16.mxu1 %vm13687_vm0, %v13686_v3 }
0x10cd   : > { %12475 = vmatprep.subr.bf16.mxu1 %v13686_v3 }
0x10d0   : > { %12476 = vmatpush3.bf16.msra.mxu1 %v13348_v35 }
0x10d1   : > { %12477 = vmatprep.subr.bf16.mxu1 %v13686_v3 }
0x10d4   : > { %12478 = vmatpush3.bf16.msra.mxu1 %v13349_v36 }
0x10d5   : > { %12491 = vmatprep.subr.bf16.mxu1 %v13686_v3 }
0x10d7   : > { %12480 = vmatmul.mubr.msk.bf16.vlgmr.msra.gmra.mrb[104].mxu1 %vm1307_vm2, %v4617_v39 }
0x10d8   : > { %12495 = vmatprep.mubr.msk.bf16.mxu1 %vm13687_vm0, %v13686_v3  ;;  %12492 = vmatpush3.bf16.msra.mxu1 %v13355_v42 }
0x10d9   : > { %12493 = vmatprep.subr.bf16.mxu1 %v13686_v3 }
0x10dc   : > { %12494 = vmatpush3.bf16.msra.mxu1 %v13357_v43  ;;  %v11254_v43 = vld [vmem:[%s15489_s16 + $0x4] ss:$0 sm:$0xff] }
0x10dd   : > { %12507 = vmatprep.subr.bf16.mxu1 %v13686_v3 }
0x119e   : > { %v4491_v45 = vpop.f32.mrb[100].mxu1 }
0x119f   : > { %v4492_v46 = vadd.f32 %v11232_v44, %v4491_v45  ;;  %v12459_v47 = vpop.f32.mrb[101].mxu1  ;;  %v11255_v44 = vld [vmem:[%s15489_s16 + $0x5] ss:$0 sm:$0xff] }
0x11a0   : > { %v4494_v49 = vpop.f32.mrb[102].mxu1 }
0x11a1   : > { %v4497_v50 = vmax.f32 %v4492_v46, 0.0  ;;  %v12460_v51 = vpop.f32.mrb[103].mxu1 }
0x11a3   : > { %v4498_v53 = vpack.c.bf16 %v4497_v50, %v4497_v50 }
0x11a5   : > { %12470 = vmatmul.mubr.msk.bf16.vlgmr.msra.gmra.mrb[104].mxu0 %vm2904_vm6, %v4498_v53 }
0x11a6   : > { %12484 = vmatpush3.bf16.msra.mxu0 %v13354_v52  ;;  %12487 = vmatprep.mubr.msk.bf16.mxu0 %vm13687_vm0, %v13686_v3 }
0x11a7   : > { %12485 = vmatprep.subr.bf16.mxu0 %v13686_v3 }
0x11aa   : > { %v4673_v56 = vpop.f32.mrb[104].mxu1  ;;  %12486 = vmatpush3.bf16.msra.mxu0 %v13356_v54 }
0x11ab   : > { %v4679_v57 = vmul.f32 5.656854, %v4673_v56  ;;  %v12481_v58 = vpop.f32.mrb[105].mxu1  ;;  %12499 = vmatprep.subr.bf16.mxu0 %v13686_v3 }
0x11ac   : > { %v4676_v59 = vpop.f32.mrb[106].mxu1  ;;  %v11250_v58 = vld [vmem:[%s15489_s16] ss:$0 sm:$0xff] }
0x11ad   : > { %v14470_v60 = vadd.f32 %v4679_v57, %v4611_v55  ;;  %v12482_v62 = vpop.f32.mrb[107].mxu1  ;;  %v11251_v59 = vld [vmem:[%s15489_s16 + $0x1] ss:$0 sm:$0xff] }
0x11af   : > { %v14476_v1 = vpack.c.bf16 %v14470_v60, %v14470_v60 }
0x11b1   : > { %12488 = vmatmul.mubr.msk.bf16.vlgmr.msra.gmra.mrb[108].mxu0 %vm1498_vm3, %v14476_v1  ;;  %12496 = vmatmul.mubr.msk.bf16.vlgmr.msra.gmra.mrb[108].mxu1 %vm1498_vm3, %v14476_v1 }
0x11b2   : > { %12500 = vmatpush3.bf16.msra.mxu0 %v13358_v63  ;;  %12508 = vmatpush3.bf16.msra.mxu1 %v13359_v0  ;;  %v11256_v0 = vld [vmem:[%s15489_s16 + $0x6] ss:$0 sm:$0xff] }
0x11b3   : > { %12501 = vmatprep.subr.bf16.mxu0 %v13686_v3  ;;  %12509 = vmatprep.subr.bf16.mxu1 %v13686_v3 }
0x11b4   : > { %12503 = vmatprep.mubr.msk.bf16.mxu0 %vm13687_vm0, %v13686_v3  ;;  %12511 = vmatprep.mubr.msk.bf16.mxu1 %vm13687_vm0, %v13686_v3 }
0x11b6   : > { %12502 = vmatpush3.bf16.msra.mxu0 %v13360_v38  ;;  %12510 = vmatpush3.bf16.msra.mxu1 %v13361_v2 }
0x11b7   : > { %12515 = vmatprep.subr.bf16.mxu0 %v13686_v3  ;;  %12523 = vmatprep.subr.bf16.mxu1 %v13686_v3 }
0x11b9   : > { %12504 = vmatmul.mubr.msk.bf16.vlgmr.msra.gmra.mrb[112].mxu0 %vm1498_vm3, %v14476_v1  ;;  %12512 = vmatmul.mubr.msk.bf16.vlgmr.msra.gmra.mrb[112].mxu1 %vm1498_vm3, %v14476_v1 }
0x11ba   : > { %12516 = vmatpush3.bf16.msra.mxu0 %v13362_v4  ;;  %12524 = vmatpush3.bf16.msra.mxu1 %v13363_v6 }
0x11bb   : > { %12517 = vmatprep.subr.bf16.mxu0 %v13686_v3  ;;  %12525 = vmatprep.subr.bf16.mxu1 %v13686_v3 }
0x11bc   : > { %12519 = vmatprep.mubr.msk.bf16.mxu0 %vm13687_vm0, %v13686_v3  ;;  %12527 = vmatprep.mubr.msk.bf16.mxu1 %vm13687_vm0, %v13686_v3 }
0x11be   : > { %12518 = vmatpush3.bf16.msra.mxu0 %v13364_v7  ;;  %12526 = vmatpush3.bf16.msra.mxu1 %v13365_v9 }
0x11bf   : > { %12531 = vmatprep.subr.bf16.mxu0 %v13686_v3  ;;  %12539 = vmatprep.subr.bf16.mxu1 %v13686_v3 }
0x11c1   : > { %12520 = vmatmul.mubr.msk.bf16.vlgmr.msra.gmra.mrb[116].mxu0 %vm1498_vm3, %v14476_v1  ;;  %12528 = vmatmul.mubr.msk.bf16.vlgmr.msra.gmra.mrb[116].mxu1 %vm1498_vm3, %v14476_v1 }
0x11c2   : > { %12532 = vmatpush3.bf16.msra.mxu0 %v13366_v10  ;;  %12540 = vmatpush3.bf16.msra.mxu1 %v13367_v11 }
0x11c3   : > { %12533 = vmatprep.subr.bf16.mxu0 %v13686_v3  ;;  %12541 = vmatprep.subr.bf16.mxu1 %v13686_v3 }
0x11c4   : > { %12535 = vmatprep.mubr.msk.bf16.mxu0 %vm13687_vm0, %v13686_v3  ;;  %12543 = vmatprep.mubr.msk.bf16.mxu1 %vm13687_vm0, %v13686_v3 }
0x11c6   : > { %12534 = vmatpush3.bf16.msra.mxu0 %v13368_v14  ;;  %12542 = vmatpush3.bf16.msra.mxu1 %v13369_v15 }
0x11c7   : > { %12547 = vmatprep.subr.bf16.mxu0 %v13686_v3  ;;  %12555 = vmatprep.subr.bf16.mxu1 %v13686_v3 }
0x11c9   : > { %12536 = vmatmul.mubr.msk.bf16.vlgmr.msra.gmra.mrb[120].mxu0 %vm1498_vm3, %v14476_v1  ;;  %12544 = vmatmul.mubr.msk.bf16.vlgmr.msra.gmra.mrb[120].mxu1 %vm1498_vm3, %v14476_v1 }
0x11ca   : > { %12548 = vmatpush3.bf16.msra.mxu0 %v13370_v48  ;;  %12556 = vmatpush3.bf16.msra.mxu1 %v13371_v61 }
0x11cb   : > { %12549 = vmatprep.subr.bf16.mxu0 %v13686_v3  ;;  %12557 = vmatprep.subr.bf16.mxu1 %v13686_v3 }
0x11cc   : > { %12551 = vmatprep.mubr.msk.bf16.mxu0 %vm13687_vm0, %v13686_v3  ;;  %12559 = vmatprep.mubr.msk.bf16.mxu1 %vm13687_vm0, %v13686_v3 }
0x11ce   : > { %12550 = vmatpush3.bf16.msra.mxu0 %v13372_v16  ;;  %12558 = vmatpush3.bf16.msra.mxu1 %v13373_v17 }
0x11cf   : > { %12563 = vmatprep.subr.bf16.mxu0 %v13686_v3  ;;  %12571 = vmatprep.subr.bf16.mxu1 %v13686_v3 }
0x11d1   : > { %12552 = vmatmul.mubr.msk.bf16.vlgmr.msra.gmra.mrb[124].mxu0 %vm1498_vm3, %v14476_v1  ;;  %12560 = vmatmul.mubr.msk.bf16.vlgmr.msra.gmra.mrb[124].mxu1 %vm1498_vm3, %v14476_v1 }
0x11d2   : > { %12564 = vmatpush3.bf16.msra.mxu0 %v13374_v19  ;;  %12572 = vmatpush3.bf16.msra.mxu1 %v13375_v20 }
0x11d3   : > { %12565 = vmatprep.subr.bf16.mxu0 %v13686_v3  ;;  %12573 = vmatprep.subr.bf16.mxu1 %v13686_v3 }
0x11d4   : > { %12567 = vmatprep.mubr.msk.bf16.mxu0 %vm13687_vm0, %v13686_v3  ;;  %12575 = vmatprep.mubr.msk.bf16.mxu1 %vm13687_vm0, %v13686_v3 }
0x11d6   : > { %12566 = vmatpush3.bf16.msra.mxu0 %v13376_v21  ;;  %12574 = vmatpush3.bf16.msra.mxu1 %v13377_v18  ;;  %v11252_v21 = vld [vmem:[%s15489_s16 + $0x2] ss:$0 sm:$0xff]  ;;  %v11253_v18 = vld [vmem:[%s15489_s16 + $0x3] ss:$0 sm:$0xff] }
0x11d7   : > { %12579 = vmatprep.subr.bf16.mxu0 %v13686_v3  ;;  %12585 = vmatprep.subr.bf16.mxu1 %v13686_v3 }
0x11d9   : > { %12568 = vmatmul.mubr.msk.bf16.vlgmr.msra.gmra.mrb[128].mxu0 %vm1498_vm3, %v14476_v1  ;;  %12576 = vmatmul.mubr.msk.bf16.vlgmr.msra.gmra.mrb[128].mxu1 %vm1498_vm3, %v14476_v1  ;;  %v11257_v1 = vld [vmem:[%s15489_s16 + $0x7] ss:$0 sm:$0xff] }
0x11da   : > { %12581 = vmatprep.mubr.msk.bf16.mxu0 %vm13687_vm0, %v13686_v3  ;;  %12587 = vmatprep.mubr.msk.bf16.mxu1 %vm13687_vm0, %v13686_v3 }
0x1278   : > { %v14564_v22 = vpop.f32.mrb[104].mxu0 }
0x1279   : > { %v12471_v23 = vpop.f32.mrb[105].mxu0 }
0x127a   : > { %v4569_v24 = vpop.f32.mrb[106].mxu0 }
0x127b   : > { %v12472_v8 = vpop.f32.mrb[107].mxu0 }
0x127c   : > { %v11258_v8 = vld [vmem:[%s15489_s16 + $0x8] ss:$0 sm:$0xff] }
0x1284   : > { %v4863_v25 = vpop.f32.mrb[108].mxu0  ;;  %v4915_v27 = vpop.f32.mrb[108].mxu1 }
0x1285   : > { %v12489_v28 = vpop.f32.mrb[109].mxu0  ;;  %v12497_v29 = vpop.f32.mrb[109].mxu1  ;;  %v4864_v38 = vadd.f32 %v11250_v58, %v4863_v25  ;;  %v4916_v2 = vadd.f32 %v11251_v59, %v4915_v27  ;;  %v11259_v25 = vld [vmem:[%s15489_s16 + $0x9] ss:$0 sm:$0xff] }
0x1286   : > { %v4866_v30 = vpop.f32.mrb[110].mxu0  ;;  %v4918_v26 = vpop.f32.mrb[110].mxu1 }
0x1287   : > { %v12490_v32 = vpop.f32.mrb[111].mxu0  ;;  %v12498_v33 = vpop.f32.mrb[111].mxu1  ;;  %v5441_v48 = vpack.c.bf16 %v4864_v38, %v4864_v38  ;;  %v5442_v61 = vpack.c.bf16 %v4916_v2, %v4916_v2 }
0x128c   : > { %v4967_v34 = vpop.f32.mrb[112].mxu0  ;;  %v5019_v35 = vpop.f32.mrb[112].mxu1 }
0x128d   : > { %v12505_v36 = vpop.f32.mrb[113].mxu0  ;;  %v12513_v37 = vpop.f32.mrb[113].mxu1  ;;  %v4968_v27 = vadd.f32 %v11252_v21, %v4967_v34  ;;  %v5020_v28 = vadd.f32 %v11253_v18, %v5019_v35 }
0x128e   : > { %v4970_v39 = vpop.f32.mrb[114].mxu0  ;;  %v5022_v40 = vpop.f32.mrb[114].mxu1 }
0x128f   : > { %v12506_v41 = vpop.f32.mrb[115].mxu0  ;;  %v12514_v42 = vpop.f32.mrb[115].mxu1  ;;  %v5443_v34 = vpack.c.bf16 %v4968_v27, %v4968_v27  ;;  %v5444_v35 = vpack.c.bf16 %v5020_v28, %v5020_v28 }
0x1294   : > { %v5071_v45 = vpop.f32.mrb[116].mxu0  ;;  %v5123_v46 = vpop.f32.mrb[116].mxu1 }
0x1295   : > { %v5072_v47 = vadd.f32 %v11254_v43, %v5071_v45  ;;  %v5124_v49 = vadd.f32 %v11255_v44, %v5123_v46  ;;  %v12521_v50 = vpop.f32.mrb[117].mxu0  ;;  %v12529_v51 = vpop.f32.mrb[117].mxu1 }
0x1296   : > { %v5074_v52 = vpop.f32.mrb[118].mxu0  ;;  %v5126_v53 = vpop.f32.mrb[118].mxu1 }
0x1297   : > { %v5445_v54 = vpack.c.bf16 %v5072_v47, %v5072_v47  ;;  %v5446_v55 = vpack.c.bf16 %v5124_v49, %v5124_v49  ;;  %v12522_v56 = vpop.f32.mrb[119].mxu0  ;;  %v12530_v57 = vpop.f32.mrb[119].mxu1 }
0x1299   : > { %v5453_v62 = vsel %vm2122_vm4, %v5445_v54, 0  ;;  %v5499_v63 = vsel %vm2122_vm4, %v5446_v55, 0  ;;  %v13688_v55 = vmov -1e+09  }
0x129a   : > { %12580 = vmatpush3.bf16.xpose.msra.mxu0 %v5453_v62  ;;  %12586 = vmatpush3.bf16.xpose.msra.mxu1 %v5499_v63  ;;  %v14606_v56 = vsel %vm1273_vm8, 0.0, %v13688_v55 }
0x129b   : > { %12591 = vmatprep.subr.bf16.mxu0 %v13686_v3  ;;  %12597 = vmatprep.subr.bf16.mxu1 %v13686_v3 }
0x129c   : > { %v5175_v4 = vpop.f32.mrb[120].mxu0  ;;  %v5227_v6 = vpop.f32.mrb[120].mxu1 }
0x129d   : > { %v5176_v7 = vadd.f32 %v11256_v0, %v5175_v4  ;;  %v5228_v9 = vadd.f32 %v11257_v1, %v5227_v6  ;;  %v12537_v10 = vpop.f32.mrb[121].mxu0  ;;  %v12545_v11 = vpop.f32.mrb[121].mxu1 }
0x129e   : > { %v5178_v14 = vpop.f32.mrb[122].mxu0  ;;  %v5230_v15 = vpop.f32.mrb[122].mxu1 }
0x129f   : > { %v5447_v16 = vpack.c.bf16 %v5176_v7, %v5176_v7  ;;  %v5448_v17 = vpack.c.bf16 %v5228_v9, %v5228_v9  ;;  %v12538_v19 = vpop.f32.mrb[123].mxu0  ;;  %v12546_v20 = vpop.f32.mrb[123].mxu1 }
0x12a1   : > { %v5545_v23 = vsel %vm2122_vm4, %v5447_v16, 0  ;;  %v5591_v24 = vsel %vm2122_vm4, %v5448_v17, 0  ;;  %12582 = vmatmul.mubr.msk.bf16.vlgmr.msra.gmra.mrb[132].mxu0 %vm2122_vm4, %v5441_v48  ;;  %12588 = vmatmul.mubr.msk.bf16.vlgmr.msra.gmra.mrb[132].mxu1 %vm2122_vm4, %v5442_v61 }
0x12a2   : > { %12592 = vmatpush3.bf16.xpose.msra.mxu0 %v5545_v23  ;;  %12598 = vmatpush3.bf16.xpose.msra.mxu1 %v5591_v24 }
0x12a3   : > { %12593 = vmatprep.mubr.msk.bf16.mxu0 %vm13687_vm0, %v13686_v3  ;;  %12599 = vmatprep.mubr.msk.bf16.mxu1 %vm13687_vm0, %v13686_v3 }
0x12a4   : > { %v5279_v29 = vpop.f32.mrb[124].mxu0  ;;  %v5331_v30 = vpop.f32.mrb[124].mxu1  ;;  %12603 = vmatprep.subr.bf16.mxu0 %v13686_v3  ;;  %12609 = vmatprep.subr.bf16.mxu1 %v13686_v3 }
0x12a5   : > { %v5280_v26 = vadd.f32 %v11258_v8, %v5279_v29  ;;  %v5332_v32 = vadd.f32 %v11259_v25, %v5331_v30  ;;  %v12553_v33 = vpop.f32.mrb[125].mxu0  ;;  %v12561_v36 = vpop.f32.mrb[125].mxu1 }
0x12a6   : > { %v5282_v37 = vpop.f32.mrb[126].mxu0  ;;  %v5334_v39 = vpop.f32.mrb[126].mxu1 }
0x12a7   : > { %v5689_v40 = vpack.c.bf16 %v5280_v26, %v5280_v26  ;;  %v5690_v41 = vpack.c.bf16 %v5332_v32, %v5332_v32  ;;  %v12554_v42 = vpop.f32.mrb[127].mxu0  ;;  %v12562_v43 = vpop.f32.mrb[127].mxu1 }
0x12a9   : > { %v5697_v44 = vsel %vm2376_vm5, %v5689_v40, 0  ;;  %v5743_v45 = vsel %vm2376_vm5, %v5690_v41, 0  ;;  %12594 = vmatmul.mubr.msk.bf16.vlgmr.msra.gmra.mrb[136].mxu0 %vm2122_vm4, %v5443_v34  ;;  %12600 = vmatmul.mubr.msk.bf16.vlgmr.msra.gmra.mrb[136].mxu1 %vm2122_vm4, %v5444_v35 }
0x12aa   : > { %12604 = vmatpush3.bf16.msra.mxu0 %v5697_v44  ;;  %12610 = vmatpush3.bf16.msra.mxu1 %v5743_v45 }
0x12ab   : > { %12605 = vmatprep.mubr.msk.bf16.mxu0 %vm13687_vm0, %v13686_v3  ;;  %12615 = vmatprep.subr.bf16.mxu0 %v13686_v3 }
0x12ac   : > { %v14597_v46 = vpop.f32.mrb[128].mxu0  ;;  %v14599_v47 = vpop.f32.mrb[128].mxu1  ;;  %12611 = vmatprep.mubr.msk.bf16.mxu1 %vm13687_vm0, %v13686_v3  ;;  %12621 = vmatprep.subr.bf16.mxu1 %v13686_v3 }
0x12ad   : > { %v12569_v49 = vpop.f32.mrb[129].mxu0  ;;  %v12577_v50 = vpop.f32.mrb[129].mxu1 }
0x12ae   : > { %v5386_v51 = vpop.f32.mrb[130].mxu0  ;;  %v5438_v52 = vpop.f32.mrb[130].mxu1  ;;  %v11260_v50 = vld [vmem:[%s15489_s16 + $0xa] ss:$0 sm:$0xff] }
0x12af   : > { %v12570_v53 = vpop.f32.mrb[131].mxu0  ;;  %v12578_v54 = vpop.f32.mrb[131].mxu1  ;;  %v5384_v51 = vadd.f32 %v11260_v50, %v14597_v46 }
0x12b0   : > { %v11261_v53 = vld [vmem:[%s15489_s16 + $0xb] ss:$0 sm:$0xff] }
0x12b1   : > { %v5691_v55 = vpack.c.bf16 %v5384_v51, %v5384_v51 }
0x1374   : > { %v5489_v57 = vpop.f32.mrb[132].mxu0  ;;  %v5535_v58 = vpop.f32.mrb[132].mxu1 }
0x1375   : > { %v5633_v59 = vmul.f32 0.35355338, %v5489_v57  ;;  %v5634_v62 = vmul.f32 0.35355338, %v5535_v58  ;;  %v12583_v63 = vpop.f32.mrb[133].mxu0  ;;  %v12589_v0 = vpop.f32.mrb[133].mxu1  ;;  %v5436_v57 = vadd.f32 %v11261_v53, %v14599_v47 }
0x1376   : > { %v5492_v1 = vpop.f32.mrb[134].mxu0  ;;  %v5538_v38 = vpop.f32.mrb[134].mxu1  ;;  %v5789_v0 = vsel %vm2376_vm5, %v5691_v55, 0  ;;  %v5877_v47 = vld [vmem:[%s15490_s2] sm:$0xf] }
0x1377   : > { %v12584_v2 = vpop.f32.mrb[135].mxu0  ;;  %v12590_v4 = vpop.f32.mrb[135].mxu1  ;;  %v5637_v6 = vadd.f32 %v5633_v59, %v14606_v56  ;;  %v5638_v7 = vadd.f32 %v5634_v62, %v14606_v56  ;;  %v5692_v1 = vpack.c.bf16 %v5436_v57, %v5436_v57 }
0x1379   : > { %v5641_v9 = vsel %vm2122_vm4, %v5637_v6, -inf  ;;  %v5644_v10 = vsel %vm2122_vm4, %v5638_v7, -inf  ;;  %v5835_v4 = vsel %vm2376_vm5, %v5692_v1, 0 }
0x137a   : > { %5642 = vmax.xlane.f32.xlu1 %v5641_v9  ;;  %v5890_v9 = vsel %vm2376_vm5, %v5877_v47, 0 }
0x137c   : > { %v5581_v5 = vpop.f32.mrb[136].mxu0  ;;  %v5627_v13 = vpop.f32.mrb[136].mxu1 }
0x137d   : > { %v5635_v11 = vmul.f32 0.35355338, %v5581_v5  ;;  %v5636_v14 = vmul.f32 0.35355338, %v5627_v13  ;;  %v12595_v15 = vpop.f32.mrb[137].mxu0  ;;  %v12601_v48 = vpop.f32.mrb[137].mxu1 }
0x137e   : > { %v5630_v61 = vpop.f32.mrb[138].mxu1  ;;  %5645 = vmax.xlane.f32.xlu1 %v5644_v10  ;;  %v5584_v16 = vpop.f32.mrb[138].mxu0  ;;  %v5879_v15 = vld [vmem:[%s15490_s2 + $0x8] sm:$0xf] }
0x137f   : > { %v12596_v17 = vpop.f32.mrb[139].mxu0  ;;  %v12602_v19 = vpop.f32.mrb[139].mxu1  ;;  %v5639_v20 = vadd.f32 %v5635_v11, %v14606_v56  ;;  %v5640_v18 = vadd.f32 %v5636_v14, %v14606_v56  ;;  %v5878_v11 = vld [vmem:[%s15490_s2 + $0x4] sm:$0xf] }
0x1380   : > { %v5936_v14 = vsel %vm2376_vm5, %v5878_v11, 0  ;;  %v5982_v17 = vsel %vm2376_vm5, %v5879_v15, 0 }
0x1381   : > { %v5647_v21 = vsel %vm2122_vm4, %v5639_v20, -inf  ;;  %v5650_v23 = vsel %vm2122_vm4, %v5640_v18, -inf }
0x1382   : > { %5648 = vmax.xlane.f32.xlu1 %v5647_v21 }
0x1386   : > { %5651 = vmax.xlane.f32.xlu1 %v5650_v23 }
0x1407   : > { %v5643_v24 = vpop.xlane.xlu1 %5642 }
0x1408   : > { %v5653_v8 = vsub.f32 %v5637_v6, %v5643_v24 }
0x140a   : > { %v5657_v25 = vmul.f32 1.442695, %v5653_v8 }
0x140b   : > { %v5646_v27 = vpop.xlane.xlu1 %5645 }
0x140c   : > { %13502 = vpow2.f32 %v5657_v25  ;;  %v5654_v28 = vsub.f32 %v5638_v7, %v5646_v27 }
0x140e   : > { %v5659_v29 = vmul.f32 1.442695, %v5654_v28 }
0x140f   : > { %v5649_v30 = vpop.xlane.xlu1 %5648 }
0x1410   : > { %13504 = vpow2.f32 %v5659_v29  ;;  %v5655_v26 = vsub.f32 %v5639_v20, %v5649_v30  ;;  %v5880_v20 = vld [vmem:[%s15490_s2 + $0xc] sm:$0xf] }
0x1411   : > { %v6028_v8 = vsel %vm2376_vm5, %v5880_v20, 0  ;;  %v13380_v20 = vld [vmem:[%s15492_s6 + $0x8] sm:$0xff]  }
0x1412   : > { %v5661_v32 = vmul.f32 1.442695, %v5655_v26 }
0x1413   : > { %v5652_v33 = vpop.xlane.xlu1 %5651 }
0x1414   : > { %13506 = vpow2.f32 %v5661_v32  ;;  %v5656_v36 = vsub.f32 %v5640_v18, %v5652_v33 }
0x1416   : > { %v13503_v37 = vpop.eup %13502  ;;  %v5663_v39 = vmul.f32 1.442695, %v5656_v36 }
0x1417   : > { %v5665_v34 = vsel %vm2122_vm4, %v13503_v37, 0.0 }
0x1418   : > { %13508 = vpow2.f32 %v5663_v39  ;;  %5666 = vadd.xlane.f32.xlu1 %v5665_v34 }
0x141a   : > { %v13505_v35 = vpop.eup %13504 }
0x141b   : > { %v5668_v40 = vsel %vm2122_vm4, %v13505_v35, 0.0 }
0x141c   : > { %5669 = vadd.xlane.f32.xlu1 %v5668_v40 }
0x141e   : > { %v13507_v41 = vpop.eup %13506 }
0x141f   : > { %v5671_v42 = vsel %vm2122_vm4, %v13507_v41, 0.0 }
0x1420   : > { %5672 = vadd.xlane.f32.xlu0 %v5671_v42 }
0x1422   : > { %v13509_v43 = vpop.eup %13508 }
0x1423   : > { %v5674_v44 = vsel %vm2122_vm4, %v13509_v43, 0.0 }
0x1424   : > { %5675 = vadd.xlane.f32.xlu1 %v5674_v44 }
0x14a5   : > { %v5667_v45 = vpop.xlane.xlu1 %5666 }
0x14a6   : > { %13510 = vrcp.f32 %v5667_v45 }
0x14a9   : > { %v5670_v49 = vpop.xlane.xlu1 %5669 }
0x14aa   : > { %13512 = vrcp.f32 %v5670_v49 }
0x14ad   : > { %v5673_v52 = vpop.xlane.xlu0 %5672 }
0x14ae   : > { %13514 = vrcp.f32 %v5673_v52 }
0x14b0   : > { %v13511_v54 = vpop.eup %13510 }
0x14b1   : > { %v5681_v58 = vmul.f32 %v13511_v54, %v13503_v37  ;;  %v5676_v59 = vpop.xlane.xlu1 %5675 }
0x14b2   : > { %13516 = vrcp.f32 %v5676_v59 }
0x14b3   : > { %v5685_v62 = vpack.c.bf16 %v5681_v58, %v5681_v58 }
0x14b4   : > { %v13513_v63 = vpop.eup %13512 }
0x14b5   : > { %v5682_v38 = vmul.f32 %v13513_v63, %v13505_v35  ;;  %12606 = vmatmul.mubr.msk.bf16.vlgmr.msra.gmra.mrb[140].mxu0 %vm2122_vm4, %v5685_v62  ;;  %v11236_v63 = vld [vmem:[%s15466_s27 + $0x1] ss:$0 sm:$0xff]  ;;  %s15504_s27 = sld [smem:[#allocation39_spill]] }
0x14b6   : > { %12616 = vmatpush3.bf16.msra.mxu0 %v5789_v0  ;;  %12617 = vmatprep.mubr.msk.bf16.mxu0 %vm13687_vm0, %v13686_v3  ;;  %v11310_v0 = vld [vmem:[%s15491_s5] ss:$0 sm:$0xff] }
0x14b7   : > { %v5686_v46 = vpack.c.bf16 %v5682_v38, %v5682_v38  ;;  %12627 = vmatprep.subr.bf16.mxu0 %v13686_v3 }
0x14b8   : > { %v13515_v2 = vpop.eup %13514 }
0x14b9   : > { %v5683_v6 = vmul.f32 %v13515_v2, %v13507_v41  ;;  %12612 = vmatmul.mubr.msk.bf16.vlgmr.msra.gmra.mrb[140].mxu1 %vm2122_vm4, %v5686_v46 }
0x14ba   : > { %12622 = vmatpush3.bf16.msra.mxu1 %v5835_v4  ;;  %12623 = vmatprep.mubr.msk.bf16.mxu1 %vm13687_vm0, %v13686_v3  ;;  %v4567_v4 = vadd.f32 %v11236_v63, %v14564_v22  ;;  %v13396_v63 = vld [vmem:[%s15495_s13 + $0x48] sm:$0xff]  }
0x14bb   : > { %v5687_v7 = vpack.c.bf16 %v5683_v6, %v5683_v6  ;;  %12633 = vmatprep.subr.bf16.mxu1 %v13686_v3 }
0x14bc   : > { %v13517_v5 = vpop.eup %13516 }
0x14bd   : > { %v5684_v13 = vmul.f32 %v13517_v5, %v13509_v43  ;;  %12618 = vmatmul.mubr.msk.bf16.vlgmr.msra.gmra.mrb[144].mxu0 %vm2122_vm4, %v5687_v7  ;;  %v4572_v5 = vadd.f32 %v4567_v4, %v14435_v31 }
0x14be   : > { %12628 = vmatpush3.bf16.msra.mxu0 %v5890_v9  ;;  %12629 = vmatprep.mubr.msk.bf16.mxu0 %vm13687_vm0, %v13686_v3 }
0x14bf   : > { %v5688_v10 = vpack.c.bf16 %v5684_v13, %v5684_v13  ;;  %12639 = vmatprep.subr.bf16.mxu0 %v13686_v3  ;;  %v4577_v13 = vsel %vm1498_vm3, %v4572_v5, 0.0 }
0x14c1   : > { %12624 = vmatmul.mubr.msk.bf16.vlgmr.msra.gmra.mrb[144].mxu1 %vm2122_vm4, %v5688_v10 }
0x14c2   : > { %12635 = vmatprep.mubr.msk.bf16.mxu1 %vm13687_vm0, %v13686_v3  ;;  %12634 = vmatpush3.bf16.msra.mxu1 %v5936_v14 }
0x14c3   : > { %12645 = vmatprep.subr.bf16.mxu1 %v13686_v3 }
0x1588   : > { %v5733_v48 = vpop.f32.mrb[140].mxu0 }
0x1589   : > { %v5882_v61 = vpack.c.bf16 %v5733_v48, %v5733_v48  ;;  %v12607_v16 = vpop.f32.mrb[141].mxu0 }
0x158a   : > { %v5736_v19 = vpop.f32.mrb[142].mxu0 }
0x158b   : > { %v12608_v21 = vpop.f32.mrb[143].mxu0  ;;  %12630 = vmatmul.mubr.msk.bf16.vlgmr.msra.gmra.mrb[148].mxu0 %vm2122_vm4, %v5882_v61  ;;  %v13379_v19 = vld [vmem:[%s15492_s6 + $0x10] sm:$0xff]  }
0x158c   : > { %v5779_v18 = vpop.f32.mrb[140].mxu1  ;;  %12640 = vmatpush3.bf16.msra.mxu0 %v5982_v17  ;;  %12641 = vmatprep.mubr.msk.bf16.mxu0 %vm13687_vm0, %v13686_v3  ;;  %v13378_v17 = vld [vmem:[%s15492_s6] sm:$0xff]   ;;  %v13381_v21 = vld [vmem:[%s15492_s6 + $0x18] sm:$0xff]  }
0x158d   : > { %v5883_v23 = vpack.c.bf16 %v5779_v18, %v5779_v18  ;;  %v12613_v24 = vpop.f32.mrb[141].mxu1  ;;  %12651 = vmatprep.subr.bf16.mxu0 %v13686_v3 }
0x158e   : > { %v5782_v25 = vpop.f32.mrb[142].mxu1 }
0x158f   : > { %v12614_v27 = vpop.f32.mrb[143].mxu1  ;;  %12636 = vmatmul.mubr.msk.bf16.vlgmr.msra.gmra.mrb[148].mxu1 %vm2122_vm4, %v5883_v23 }
0x1590   : > { %v5825_v28 = vpop.f32.mrb[144].mxu0  ;;  %12646 = vmatpush3.bf16.msra.mxu1 %v6028_v8  ;;  %12647 = vmatprep.mubr.msk.bf16.mxu1 %vm13687_vm0, %v13686_v3 }
0x1591   : > { %v5884_v29 = vpack.c.bf16 %v5825_v28, %v5825_v28  ;;  %v12619_v30 = vpop.f32.mrb[145].mxu0  ;;  %12659 = vmatprep.subr.bf16.mxu1 %v13686_v3 }
0x1592   : > { %v5828_v26 = vpop.f32.mrb[146].mxu0 }
0x1593   : > { %v12620_v32 = vpop.f32.mrb[147].mxu0  ;;  %12642 = vmatmul.mubr.msk.bf16.vlgmr.msra.gmra.mrb[152].mxu0 %vm2122_vm4, %v5884_v29  ;;  %v11311_v29 = vld [vmem:[%s15493_s8] ss:$0 sm:$0xff] }
0x1594   : > { %v5871_v33 = vpop.f32.mrb[144].mxu1  ;;  %12655 = vmatprep.mubr.msk.bf16.mxu0 %vm13687_vm0, %v13686_v3  ;;  %12652 = vmatpush3.bf16.msra.mxu0 %v13378_v17  ;;  %v11312_v26 = vld [vmem:[%s15494_s12] ss:$0 sm:$0xff]  ;;  %v11330_v17 = vld [vmem:[%s15496_s14 + $0x1] ss:$0 sm:$0xff] }
0x1595   : > { %v5885_v36 = vpack.c.bf16 %v5871_v33, %v5871_v33  ;;  %v12625_v37 = vpop.f32.mrb[145].mxu1  ;;  %12653 = vmatprep.subr.bf16.mxu0 %v13686_v3 }
0x1596   : > { %v5874_v39 = vpop.f32.mrb[146].mxu1  ;;  %v13383_v37 = vld [vmem:[%s15492_s6 + $0x30] sm:$0xff]  }
0x1597   : > { %v12626_v34 = vpop.f32.mrb[147].mxu1  ;;  %12648 = vmatmul.mubr.msk.bf16.vlgmr.msra.gmra.mrb[152].mxu1 %vm2122_vm4, %v5885_v36  ;;  %v13382_v36 = vld [vmem:[%s15492_s6 + $0x20] sm:$0xff]  }
0x1598   : > { %12663 = vmatprep.mubr.msk.bf16.mxu1 %vm13687_vm0, %v13686_v3  ;;  %12660 = vmatpush3.bf16.msra.mxu1 %v13379_v19 }
0x1599   : > { %12661 = vmatprep.subr.bf16.mxu1 %v13686_v3  ;;  %12654 = vmatpush3.bf16.msra.mxu0 %v13380_v20 }
0x159a   : > { %12667 = vmatprep.subr.bf16.mxu0 %v13686_v3 }
0x159c   : > { %12662 = vmatpush3.bf16.msra.mxu1 %v13381_v21 }
0x159d   : > { %12675 = vmatprep.subr.bf16.mxu1 %v13686_v3 }
0x165e   : > { %v5926_v35 = vpop.f32.mrb[148].mxu0 }
0x165f   : > { %v12631_v40 = vpop.f32.mrb[149].mxu0  ;;  %v6070_v44 = vsel %vm1498_vm3, %v5926_v35, 0.0  ;;  %v13384_v35 = vld [vmem:[%s15492_s6 + $0x28] sm:$0xff]  }
0x1660   : > { %v5929_v41 = vpop.f32.mrb[150].mxu0  ;;  %v13385_v40 = vld [vmem:[%s15492_s6 + $0x38] sm:$0xff]  }
0x1661   : > { %v12632_v42 = vpop.f32.mrb[151].mxu0 }
0x1662   : > { %v5972_v43 = vpop.f32.mrb[148].mxu1  ;;  %v11244_v42 = vld [vmem:[%s15482_s22 + $0x1] ss:$0 sm:$0xff]  ;;  %s15500_s22 = sld [smem:[#allocation38_spill]] }
0x1663   : > { %v6071_v45 = vsel %vm1498_vm3, %v5972_v43, 0.0  ;;  %v12637_v49 = vpop.f32.mrb[149].mxu1  ;;  %v13386_v43 = vld [vmem:[%s15495_s13] sm:$0xff]  }
0x1664   : > { %v6072_v50 = vadd.f32 %v6071_v45, %v6070_v44  ;;  %v5975_v51 = vpop.f32.mrb[150].mxu1  ;;  %v13387_v44 = vld [vmem:[%s15495_s13 + $0x10] sm:$0xff]   ;;  %v11245_v49 = vld [vmem:[%s15483_s23 + $0x1] ss:$0 sm:$0xff]  ;;  %s15501_s23 = sld [smem:[#allocation40_spill]] }
0x1665   : > { %v12638_v52 = vpop.f32.mrb[151].mxu1  ;;  %v13389_v51 = vld [vmem:[%s15495_s13 + $0x18] sm:$0xff]  }
0x1666   : > { %v6018_v53 = vpop.f32.mrb[152].mxu0 }
0x1667   : > { %v6073_v54 = vsel %vm1498_vm3, %v6018_v53, 0.0  ;;  %v12643_v55 = vpop.f32.mrb[153].mxu0  ;;  %v13390_v53 = vld [vmem:[%s15495_s13 + $0x20] sm:$0xff]  }
0x1668   : > { %v6074_v57 = vadd.f32 %v6073_v54, %v6072_v50  ;;  %v6021_v58 = vpop.f32.mrb[154].mxu0  ;;  %v13388_v50 = vld [vmem:[%s15495_s13 + $0x8] sm:$0xff]   ;;  %v13391_v54 = vld [vmem:[%s15495_s13 + $0x30] sm:$0xff]  }
0x1669   : > { %v12644_v59 = vpop.f32.mrb[155].mxu0  ;;  %v13393_v58 = vld [vmem:[%s15495_s13 + $0x38] sm:$0xff]  }
0x166a   : > { %v6064_v62 = vpop.f32.mrb[152].mxu1  ;;  %v13394_v59 = vld [vmem:[%s15495_s13 + $0x40] sm:$0xff]  }
0x166b   : > { %v6075_v1 = vsel %vm1498_vm3, %v6064_v62, 0.0  ;;  %v12649_v38 = vpop.f32.mrb[153].mxu1  ;;  %v13395_v62 = vld [vmem:[%s15495_s13 + $0x50] sm:$0xff]  }
0x166c   : > { %v6076_v46 = vadd.f32 %v6075_v1, %v6074_v57  ;;  %v6067_v2 = vpop.f32.mrb[154].mxu1  ;;  %v13392_v57 = vld [vmem:[%s15495_s13 + $0x28] sm:$0xff]   ;;  %v13398_v1 = vld [vmem:[%s15495_s13 + $0x60] sm:$0xff]   ;;  %v13399_v38 = vld [vmem:[%s15495_s13 + $0x70] sm:$0xff]  }
0x166d   : > { %v12650_v47 = vpop.f32.mrb[155].mxu1  ;;  %v13401_v2 = vld [vmem:[%s15495_s13 + $0x78] sm:$0xff]  }
0x166e   : > { %v6083_v6 = vadd.f32 %v11310_v0, %v6076_v46  ;;  %v13397_v0 = vld [vmem:[%s15495_s13 + $0x58] sm:$0xff]   ;;  %v13400_v46 = vld [vmem:[%s15495_s13 + $0x68] sm:$0xff]  }
0x1670   : > { %v6084_v7 = vadd.f32 %v6083_v6, %v14470_v60 }
0x1672   : > { %v6087_v9 = vsel %vm1498_vm3, %v6084_v7, 0.0 }
0x1673   : > { %6088 = vadd.xlane.f32.xlu1 %v6087_v9 }
0x1677   : > { %4578 = vadd.xlane.f32.xlu1 %v4577_v13 }
0x1700   : > { %v6089_v10 = vpop.xlane.xlu1 %6088 }
0x1701   : > { %v6090_v11 = vmul.f32 0.03125, %v6089_v10 }
0x1703   : > { %v6091_v14 = vsub.f32 %v6084_v7, %v6090_v11 }
0x1704   : > { %v4579_v15 = vpop.xlane.xlu1 %4578 }
0x1705   : > { %v4580_v22 = vmul.f32 0.03125, %v4579_v15  ;;  %v6092_v48 = vmul.f32 %v6091_v14, %v6091_v14 }
0x1707   : > { %v4581_v61 = vsub.f32 %v4572_v5, %v4580_v22  ;;  %v6093_v60 = vsel %vm1498_vm3, %v6092_v48, 0.0 }
0x1708   : > { %6094 = vadd.xlane.f32.xlu1 %v6093_v60 }
0x1709   : > { %v4582_v16 = vmul.f32 %v4581_v61, %v4581_v61 }
0x170b   : > { %v4583_v31 = vsel %vm1498_vm3, %v4582_v16, 0.0 }
0x170c   : > { %4584 = vadd.xlane.f32.xlu1 %v4583_v31  ;;  %v11329_v31 = vld [vmem:[%s15496_s14] ss:$0 sm:$0xff] }
0x1795   : > { %v6095_v18 = vpop.xlane.xlu1 %6094 }
0x1796   : > { %v6096_v23 = vmul.f32 0.03125, %v6095_v18 }
0x1798   : > { %v6097_v24 = vadd.f32 1e-05, %v6096_v23 }
0x1799   : > { %v4585_v8 = vpop.xlane.xlu1 %4584 }
0x179a   : > { %13518 = vrsqrt.f32 %v6097_v24  ;;  %v4586_v25 = vmul.f32 0.03125, %v4585_v8 }
0x179c   : > { %v4587_v27 = vadd.f32 1e-05, %v4586_v25 }
0x179e   : > { %13520 = vrsqrt.f32 %v4587_v27 }
0x17a4   : > { %v13519_v28 = vpop.eup %13518 }
0x17a5   : > { %v6099_v30 = vmul.f32 %v13519_v28, %v6091_v14 }
0x17a7   : > { %v6106_v32 = vmul.f32 %v11311_v29, %v6099_v30 }
0x17a8   : > { %v13521_v34 = vpop.eup %13520 }
0x17a9   : > { %v14687_v33 = vadd.f32 %v11312_v26, %v6106_v32  ;;  %v4589_v41 = vmul.f32 %v13521_v34, %v4581_v61  ;;  %v11313_v26 = vld [vmem:[%s15497_s17] ss:$0 sm:$0xff]  ;;  %v11314_v32 = vld [vmem:[%s15497_s17 + $0x1] ss:$0 sm:$0xff]  ;;  %v11332_v34 = vld [vmem:[%s15496_s14 + $0x3] ss:$0 sm:$0xff] }
0x17ab   : > { %v6134_v39 = vpack.c.bf16 %v14687_v33, %v14687_v33  ;;  %v4596_v45 = vmul.f32 %v11244_v42, %v4589_v41 }
0x17ad   : > { %12656 = vmatmul.mubr.msk.bf16.vlgmr.msra.gmra.mrb[156].mxu0 %vm1498_vm3, %v6134_v39  ;;  %12664 = vmatmul.mubr.msk.bf16.vlgmr.msra.gmra.mrb[156].mxu1 %vm1498_vm3, %v6134_v39  ;;  %v4603_v52 = vadd.f32 %v11245_v49, %v4596_v45 }
0x17ae   : > { %12668 = vmatpush3.bf16.msra.mxu0 %v13382_v36  ;;  %12676 = vmatpush3.bf16.msra.mxu1 %v13383_v37 }
0x17af   : > { %12669 = vmatprep.subr.bf16.mxu0 %v13686_v3  ;;  %12677 = vmatprep.subr.bf16.mxu1 %v13686_v3  ;;  %v14721_v55 = vpack.c.bf16 %v4603_v52, %v4603_v52 }
0x17b0   : > { %12671 = vmatprep.mubr.msk.bf16.mxu0 %vm13687_vm0, %v13686_v3  ;;  %12679 = vmatprep.mubr.msk.bf16.mxu1 %vm13687_vm0, %v13686_v3 }
0x17b2   : > { %12670 = vmatpush3.bf16.msra.mxu0 %v13384_v35  ;;  %12678 = vmatpush3.bf16.msra.mxu1 %v13385_v40 }
0x17b3   : > { %12683 = vmatprep.subr.bf16.mxu0 %v13686_v3  ;;  %12691 = vmatprep.subr.bf16.mxu1 %v13686_v3 }
0x17b5   : > { %12672 = vmatmul.mubr.msk.bf16.vlgmr.msra.gmra.mrb[160].mxu0 %vm1498_vm3, %v6134_v39  ;;  %12680 = vmatmul.mubr.msk.bf16.vlgmr.msra.gmra.mrb[160].mxu1 %vm1498_vm3, %v6134_v39  ;;  %v11331_v39 = vld [vmem:[%s15496_s14 + $0x2] ss:$0 sm:$0xff] }
0x17b6   : > { %12684 = vmatpush3.bf16.msra.mxu0 %v13386_v43  ;;  %12692 = vmatpush3.bf16.msra.mxu1 %v13387_v44 }
0x17b7   : > { %12685 = vmatprep.subr.bf16.mxu0 %v13686_v3  ;;  %12693 = vmatprep.subr.bf16.mxu1 %v13686_v3 }
0x17b8   : > { %12687 = vmatprep.mubr.msk.bf16.mxu0 %vm13687_vm0, %v13686_v3  ;;  %12695 = vmatprep.mubr.msk.bf16.mxu1 %vm13687_vm0, %v13686_v3 }
0x17ba   : > { %12686 = vmatpush3.bf16.msra.mxu0 %v13388_v50  ;;  %12694 = vmatpush3.bf16.msra.mxu1 %v13389_v51 }
0x17bb   : > { %12699 = vmatprep.subr.bf16.mxu0 %v13686_v3  ;;  %12707 = vmatprep.subr.bf16.mxu1 %v13686_v3 }
0x17bd   : > { %12688 = vmatmul.mubr.msk.bf16.vlgmr.msra.gmra.mrb[164].mxu0 %vm1498_vm3, %v14721_v55  ;;  %12696 = vmatmul.mubr.msk.bf16.vlgmr.msra.gmra.mrb[164].mxu1 %vm1498_vm3, %v14721_v55 }
0x17be   : > { %12700 = vmatpush3.bf16.msra.mxu0 %v13390_v53  ;;  %12708 = vmatpush3.bf16.msra.mxu1 %v13391_v54 }
0x17bf   : > { %12701 = vmatprep.subr.bf16.mxu0 %v13686_v3  ;;  %12709 = vmatprep.subr.bf16.mxu1 %v13686_v3 }
0x17c0   : > { %12703 = vmatprep.mubr.msk.bf16.mxu0 %vm13687_vm0, %v13686_v3  ;;  %12711 = vmatprep.mubr.msk.bf16.mxu1 %vm13687_vm0, %v13686_v3 }
0x17c2   : > { %12702 = vmatpush3.bf16.msra.mxu0 %v13392_v57  ;;  %12710 = vmatpush3.bf16.msra.mxu1 %v13393_v58 }
0x17c3   : > { %12715 = vmatprep.subr.bf16.mxu0 %v13686_v3  ;;  %12723 = vmatprep.subr.bf16.mxu1 %v13686_v3 }
0x17c5   : > { %12704 = vmatmul.mubr.msk.bf16.vlgmr.msra.gmra.mrb[168].mxu0 %vm1498_vm3, %v14721_v55  ;;  %12712 = vmatmul.mubr.msk.bf16.vlgmr.msra.gmra.mrb[168].mxu1 %vm1498_vm3, %v14721_v55 }
0x17c6   : > { %12716 = vmatpush3.bf16.msra.mxu0 %v13394_v59  ;;  %12724 = vmatpush3.bf16.msra.mxu1 %v13395_v62  ;;  %v11315_v62 = vld [vmem:[%s15497_s17 + $0x2] ss:$0 sm:$0xff] }
0x17c7   : > { %12717 = vmatprep.subr.bf16.mxu0 %v13686_v3  ;;  %12725 = vmatprep.subr.bf16.mxu1 %v13686_v3 }
0x17c8   : > { %12719 = vmatprep.mubr.msk.bf16.mxu0 %vm13687_vm0, %v13686_v3  ;;  %12727 = vmatprep.mubr.msk.bf16.mxu1 %vm13687_vm0, %v13686_v3 }
0x17ca   : > { %12718 = vmatpush3.bf16.msra.mxu0 %v13396_v63  ;;  %12726 = vmatpush3.bf16.msra.mxu1 %v13397_v0  ;;  %v11316_v63 = vld [vmem:[%s15497_s17 + $0x3] ss:$0 sm:$0xff] }
0x17cb   : > { %12731 = vmatprep.subr.bf16.mxu0 %v13686_v3  ;;  %12739 = vmatprep.subr.bf16.mxu1 %v13686_v3 }
0x17cd   : > { %12720 = vmatmul.mubr.msk.bf16.vlgmr.msra.gmra.mrb[172].mxu0 %vm1498_vm3, %v14721_v55  ;;  %12728 = vmatmul.mubr.msk.bf16.vlgmr.msra.gmra.mrb[172].mxu1 %vm1498_vm3, %v14721_v55 }
0x17ce   : > { %12732 = vmatpush3.bf16.msra.mxu0 %v13398_v1  ;;  %12740 = vmatpush3.bf16.msra.mxu1 %v13399_v38  ;;  %v11333_v38 = vld [vmem:[%s15496_s14 + $0x4] ss:$0 sm:$0xff] }
0x17cf   : > { %12733 = vmatprep.subr.bf16.mxu0 %v13686_v3  ;;  %12741 = vmatprep.subr.bf16.mxu1 %v13686_v3 }
0x17d0   : > { %12735 = vmatprep.mubr.msk.bf16.mxu0 %vm13687_vm0, %v13686_v3  ;;  %12743 = vmatprep.mubr.msk.bf16.mxu1 %vm13687_vm0, %v13686_v3 }
0x17d2   : > { %12734 = vmatpush3.bf16.msra.mxu0 %v13400_v46  ;;  %12742 = vmatpush3.bf16.msra.mxu1 %v13401_v2  ;;  %v11334_v46 = vld [vmem:[%s15496_s14 + $0x5] ss:$0 sm:$0xff] }
0x17d3   : > { %12747 = vmatprep.subr.bf16.mxu0 %v13686_v3  ;;  %12753 = vmatprep.subr.bf16.mxu1 %v13686_v3 }
0x17d5   : > { %12736 = vmatmul.mubr.msk.bf16.vlgmr.msra.gmra.mrb[176].mxu0 %vm1498_vm3, %v14721_v55  ;;  %12744 = vmatmul.mubr.msk.bf16.vlgmr.msra.gmra.mrb[176].mxu1 %vm1498_vm3, %v14721_v55 }
0x17d6   : > { %12749 = vmatprep.mubr.msk.bf16.mxu0 %vm13687_vm0, %v13686_v3  ;;  %12755 = vmatprep.mubr.msk.bf16.mxu1 %vm13687_vm0, %v13686_v3 }
0x1880   : > { %v6208_v47 = vpop.f32.mrb[156].mxu0  ;;  %v6260_v4 = vpop.f32.mrb[156].mxu1 }
0x1881   : > { %v12657_v6 = vpop.f32.mrb[157].mxu0  ;;  %v12665_v7 = vpop.f32.mrb[157].mxu1  ;;  %v6209_v35 = vadd.f32 %v11313_v26, %v6208_v47  ;;  %v6261_v40 = vadd.f32 %v11314_v32, %v6260_v4 }
0x1882   : > { %v6211_v9 = vpop.f32.mrb[158].mxu0  ;;  %v6263_v5 = vpop.f32.mrb[158].mxu1 }
0x1883   : > { %v12658_v13 = vpop.f32.mrb[159].mxu0  ;;  %v12666_v10 = vpop.f32.mrb[159].mxu1  ;;  %v6878_v52 = vpack.c.bf16 %v6209_v35, %v6209_v35  ;;  %v6879_v53 = vpack.c.bf16 %v6261_v40, %v6261_v40 }
0x1888   : > { %v6312_v11 = vpop.f32.mrb[160].mxu0  ;;  %v6364_v14 = vpop.f32.mrb[160].mxu1 }
0x1889   : > { %v12673_v15 = vpop.f32.mrb[161].mxu0  ;;  %v12681_v22 = vpop.f32.mrb[161].mxu1  ;;  %v6313_v2 = vadd.f32 %v11315_v62, %v6312_v11  ;;  %v6365_v47 = vadd.f32 %v11316_v63, %v6364_v14 }
0x188a   : > { %v6315_v48 = vpop.f32.mrb[162].mxu0  ;;  %v6367_v61 = vpop.f32.mrb[162].mxu1 }
0x188b   : > { %v12674_v60 = vpop.f32.mrb[163].mxu0  ;;  %v12682_v16 = vpop.f32.mrb[163].mxu1  ;;  %v6880_v11 = vpack.c.bf16 %v6313_v2, %v6313_v2  ;;  %v6881_v14 = vpack.c.bf16 %v6365_v47, %v6365_v47 }
0x1890   : > { %v6508_v19 = vpop.f32.mrb[164].mxu0  ;;  %v6560_v20 = vpop.f32.mrb[164].mxu1 }
0x1891   : > { %v6509_v21 = vadd.f32 %v11329_v31, %v6508_v19  ;;  %v6561_v18 = vadd.f32 %v11330_v17, %v6560_v20  ;;  %v12689_v23 = vpop.f32.mrb[165].mxu0  ;;  %v12697_v24 = vpop.f32.mrb[165].mxu1 }
0x1892   : > { %v6511_v8 = vpop.f32.mrb[166].mxu0  ;;  %v6563_v25 = vpop.f32.mrb[166].mxu1 }
0x1893   : > { %v6882_v27 = vpack.c.bf16 %v6509_v21, %v6509_v21  ;;  %v6883_v28 = vpack.c.bf16 %v6561_v18, %v6561_v18  ;;  %v12690_v29 = vpop.f32.mrb[167].mxu0  ;;  %v12698_v30 = vpop.f32.mrb[167].mxu1 }
0x1895   : > { %v6890_v36 = vsel %vm2122_vm4, %v6882_v27, 0  ;;  %v6936_v37 = vsel %vm2122_vm4, %v6883_v28, 0 }
0x1896   : > { %12748 = vmatpush3.bf16.xpose.msra.mxu0 %v6890_v36  ;;  %12754 = vmatpush3.bf16.xpose.msra.mxu1 %v6936_v37 }
0x1897   : > { %12759 = vmatprep.subr.bf16.mxu0 %v13686_v3  ;;  %12765 = vmatprep.subr.bf16.mxu1 %v13686_v3 }
0x1898   : > { %v6612_v41 = vpop.f32.mrb[168].mxu0  ;;  %v6664_v42 = vpop.f32.mrb[168].mxu1 }
0x1899   : > { %v6613_v43 = vadd.f32 %v11331_v39, %v6612_v41  ;;  %v6665_v44 = vadd.f32 %v11332_v34, %v6664_v42  ;;  %v12705_v45 = vpop.f32.mrb[169].mxu0  ;;  %v12713_v49 = vpop.f32.mrb[169].mxu1 }
0x189a   : > { %v6615_v50 = vpop.f32.mrb[170].mxu0  ;;  %v6667_v51 = vpop.f32.mrb[170].mxu1 }
0x189b   : > { %v6884_v54 = vpack.c.bf16 %v6613_v43, %v6613_v43  ;;  %v6885_v57 = vpack.c.bf16 %v6665_v44, %v6665_v44  ;;  %v12706_v58 = vpop.f32.mrb[171].mxu0  ;;  %v12714_v59 = vpop.f32.mrb[171].mxu1 }
0x189d   : > { %v6982_v0 = vsel %vm2122_vm4, %v6884_v54, 0  ;;  %v7028_v1 = vsel %vm2122_vm4, %v6885_v57, 0  ;;  %12750 = vmatmul.mubr.msk.bf16.vlgmr.msra.gmra.mrb[180].mxu0 %vm2122_vm4, %v6878_v52  ;;  %12756 = vmatmul.mubr.msk.bf16.vlgmr.msra.gmra.mrb[180].mxu1 %vm2122_vm4, %v6879_v53 }
0x189e   : > { %12760 = vmatpush3.bf16.xpose.msra.mxu0 %v6982_v0  ;;  %12766 = vmatpush3.bf16.xpose.msra.mxu1 %v7028_v1 }
0x189f   : > { %12761 = vmatprep.mubr.msk.bf16.mxu0 %vm13687_vm0, %v13686_v3  ;;  %12767 = vmatprep.mubr.msk.bf16.mxu1 %vm13687_vm0, %v13686_v3 }
0x18a0   : > { %v6716_v4 = vpop.f32.mrb[172].mxu0  ;;  %v6768_v6 = vpop.f32.mrb[172].mxu1  ;;  %12771 = vmatprep.subr.bf16.mxu0 %v13686_v3  ;;  %12777 = vmatprep.subr.bf16.mxu1 %v13686_v3 }
0x18a1   : > { %v6717_v7 = vadd.f32 %v11333_v38, %v6716_v4  ;;  %v6769_v9 = vadd.f32 %v11334_v46, %v6768_v6  ;;  %v12721_v5 = vpop.f32.mrb[173].mxu0  ;;  %v12729_v13 = vpop.f32.mrb[173].mxu1 }
0x18a2   : > { %v6719_v10 = vpop.f32.mrb[174].mxu0  ;;  %v6771_v15 = vpop.f32.mrb[174].mxu1 }
0x18a3   : > { %v7126_v22 = vpack.c.bf16 %v6717_v7, %v6717_v7  ;;  %v7127_v48 = vpack.c.bf16 %v6769_v9, %v6769_v9  ;;  %v12722_v61 = vpop.f32.mrb[175].mxu0  ;;  %v12730_v60 = vpop.f32.mrb[175].mxu1 }
0x18a5   : > { %v7134_v16 = vsel %vm2376_vm5, %v7126_v22, 0  ;;  %v7180_v31 = vsel %vm2376_vm5, %v7127_v48, 0  ;;  %12762 = vmatmul.mubr.msk.bf16.vlgmr.msra.gmra.mrb[184].mxu0 %vm2122_vm4, %v6880_v11  ;;  %12768 = vmatmul.mubr.msk.bf16.vlgmr.msra.gmra.mrb[184].mxu1 %vm2122_vm4, %v6881_v14 }
0x18a6   : > { %12772 = vmatpush3.bf16.msra.mxu0 %v7134_v16  ;;  %12778 = vmatpush3.bf16.msra.mxu1 %v7180_v31  ;;  %v11335_v31 = vld [vmem:[%s15496_s14 + $0x6] ss:$0 sm:$0xff] }
0x18a7   : > { %12773 = vmatprep.mubr.msk.bf16.mxu0 %vm13687_vm0, %v13686_v3  ;;  %12783 = vmatprep.subr.bf16.mxu0 %v13686_v3 }
0x18a8   : > { %v14810_v17 = vpop.f32.mrb[176].mxu0  ;;  %v14812_v19 = vpop.f32.mrb[176].mxu1  ;;  %12779 = vmatprep.mubr.msk.bf16.mxu1 %vm13687_vm0, %v13686_v3  ;;  %12789 = vmatprep.subr.bf16.mxu1 %v13686_v3 }
0x18a9   : > { %v12737_v20 = vpop.f32.mrb[177].mxu0  ;;  %v12745_v21 = vpop.f32.mrb[177].mxu1 }
0x18aa   : > { %v6823_v18 = vpop.f32.mrb[178].mxu0  ;;  %v6875_v23 = vpop.f32.mrb[178].mxu1  ;;  %v6821_v20 = vadd.f32 %v11335_v31, %v14810_v17 }
0x18ab   : > { %v12738_v24 = vpop.f32.mrb[179].mxu0  ;;  %v12746_v8 = vpop.f32.mrb[179].mxu1  ;;  %v11336_v18 = vld [vmem:[%s15496_s14 + $0x7] ss:$0 sm:$0xff] }
0x18ac   : > { %v7128_v8 = vpack.c.bf16 %v6821_v20, %v6821_v20 }
0x1970   : > { %v6926_v25 = vpop.f32.mrb[180].mxu0  ;;  %v6972_v27 = vpop.f32.mrb[180].mxu1 }
0x1971   : > { %v7070_v28 = vmul.f32 0.35355338, %v6926_v25  ;;  %v7071_v29 = vmul.f32 0.35355338, %v6972_v27  ;;  %v12751_v30 = vpop.f32.mrb[181].mxu0  ;;  %v12757_v26 = vpop.f32.mrb[181].mxu1  ;;  %v6873_v25 = vadd.f32 %v11336_v18, %v14812_v19 }
0x1972   : > { %v6929_v32 = vpop.f32.mrb[182].mxu0  ;;  %v6975_v36 = vpop.f32.mrb[182].mxu1  ;;  %v7226_v30 = vsel %vm2376_vm5, %v7128_v8, 0 }
0x1973   : > { %v12752_v37 = vpop.f32.mrb[183].mxu0  ;;  %v12758_v39 = vpop.f32.mrb[183].mxu1  ;;  %v7074_v34 = vadd.f32 %v7070_v28, %v13973_v12  ;;  %v7075_v35 = vadd.f32 %v7071_v29, %v13973_v12  ;;  %v7129_v26 = vpack.c.bf16 %v6873_v25, %v6873_v25 }
0x1974   : > { %v7314_v39 = vld [vmem:[%s15498_s19] sm:$0xf] }
0x1975   : > { %v7078_v40 = vsel %vm2122_vm4, %v7074_v34, -inf  ;;  %v7081_v43 = vsel %vm2122_vm4, %v7075_v35, -inf  ;;  %v7272_v19 = vsel %vm2376_vm5, %v7129_v26, 0 }
0x1976   : > { %7079 = vmax.xlane.f32.xlu1 %v7078_v40 }
0x1978   : > { %v7018_v41 = vpop.f32.mrb[184].mxu0  ;;  %v7064_v42 = vpop.f32.mrb[184].mxu1 }
0x1979   : > { %v7072_v44 = vmul.f32 0.35355338, %v7018_v41  ;;  %v7073_v45 = vmul.f32 0.35355338, %v7064_v42  ;;  %v12763_v49 = vpop.f32.mrb[185].mxu0  ;;  %v12769_v50 = vpop.f32.mrb[185].mxu1 }
0x197a   : > { %v7067_v51 = vpop.f32.mrb[186].mxu1  ;;  %7082 = vmax.xlane.f32.xlu1 %v7081_v43  ;;  %v7021_v52 = vpop.f32.mrb[186].mxu0  ;;  %v7327_v41 = vsel %vm2376_vm5, %v7314_v39, 0  ;;  %v7315_v43 = vld [vmem:[%s15498_s19 + $0x4] sm:$0xf] }
0x197b   : > { %v12764_v53 = vpop.f32.mrb[187].mxu0  ;;  %v12770_v54 = vpop.f32.mrb[187].mxu1  ;;  %v7077_v57 = vadd.f32 %v7073_v45, %v13973_v12  ;;  %v7076_v58 = vadd.f32 %v7072_v44, %v13973_v12  ;;  %v7373_v44 = vsel %vm2376_vm5, %v7315_v43, 0  ;;  %v7316_v45 = vld [vmem:[%s15498_s19 + $0x8] sm:$0xf] }
0x197c   : > { %v7419_v52 = vsel %vm2376_vm5, %v7316_v45, 0  ;;  %v7317_v54 = vld [vmem:[%s15498_s19 + $0xc] sm:$0xf] }
0x197d   : > { %v7087_v59 = vsel %vm2122_vm4, %v7077_v57, -inf  ;;  %v7084_v62 = vsel %vm2122_vm4, %v7076_v58, -inf  ;;  %v13403_v43 = vld [vmem:[%s15500_s22 + $0x8] sm:$0xff]  }
0x197e   : > { %7088 = vmax.xlane.f32.xlu1 %v7087_v59  ;;  %7085 = vmax.xlane.f32.xlu0 %v7084_v62 }
0x1a03   : > { %v7080_v63 = vpop.xlane.xlu1 %7079 }
0x1a04   : > { %v7090_v0 = vsub.f32 %v7074_v34, %v7080_v63  ;;  %v7465_v63 = vsel %vm2376_vm5, %v7317_v54, 0  ;;  %v11375_v54 = vld [vmem:[%s15503_s25] ss:$0 sm:$0xff] }
0x1a06   : > { %v7094_v1 = vmul.f32 1.442695, %v7090_v0 }
0x1a07   : > { %v7083_v38 = vpop.xlane.xlu1 %7082 }
0x1a08   : > { %13522 = vpow2.f32 %v7094_v1  ;;  %v7091_v46 = vsub.f32 %v7075_v35, %v7083_v38 }
0x1a0a   : > { %v7096_v2 = vmul.f32 1.442695, %v7091_v46 }
0x1a0b   : > { %v7089_v47 = vpop.xlane.xlu1 %7088  ;;  %v7086_v4 = vpop.xlane.xlu0 %7085 }
0x1a0c   : > { %13524 = vpow2.f32 %v7096_v2  ;;  %v7093_v6 = vsub.f32 %v7077_v57, %v7089_v47  ;;  %v7092_v7 = vsub.f32 %v7076_v58, %v7086_v4 }
0x1a0e   : > { %v7100_v9 = vmul.f32 1.442695, %v7093_v6  ;;  %v7098_v5 = vmul.f32 1.442695, %v7092_v7 }
0x1a10   : > { %13526 = vpow2.f32 %v7100_v9 }
0x1a11   : > { %13528 = vpow2.f32 %v7098_v5 }
0x1a12   : > { %v13523_v13 = vpop.eup %13522 }
0x1a13   : > { %v7102_v10 = vsel %vm2122_vm4, %v13523_v13, 0.0 }
0x1a14   : > { %7103 = vadd.xlane.f32.xlu0 %v7102_v10 }
0x1a16   : > { %v13525_v15 = vpop.eup %13524 }
0x1a17   : > { %v7105_v11 = vsel %vm2122_vm4, %v13525_v15, 0.0 }
0x1a18   : > { %7106 = vadd.xlane.f32.xlu1 %v7105_v11 }
0x1a1a   : > { %v13527_v14 = vpop.eup %13526 }
0x1a1b   : > { %v13529_v22 = vpop.eup %13528  ;;  %v7111_v48 = vsel %vm2122_vm4, %v13527_v14, 0.0 }
0x1a1c   : > { %7112 = vadd.xlane.f32.xlu1 %v7111_v48  ;;  %v7108_v61 = vsel %vm2122_vm4, %v13529_v22, 0.0 }
0x1a1d   : > { %7109 = vadd.xlane.f32.xlu0 %v7108_v61 }
0x1aa1   : > { %v7104_v60 = vpop.xlane.xlu0 %7103 }
0x1aa2   : > { %13530 = vrcp.f32 %v7104_v60 }
0x1aa5   : > { %v7107_v16 = vpop.xlane.xlu1 %7106 }
0x1aa6   : > { %13532 = vrcp.f32 %v7107_v16 }
0x1aa9   : > { %v7113_v21 = vpop.xlane.xlu1 %7112 }
0x1aaa   : > { %13534 = vrcp.f32 %v7113_v21  ;;  %v7110_v23 = vpop.xlane.xlu0 %7109 }
0x1aab   : > { %13536 = vrcp.f32 %v7110_v23 }
0x1aac   : > { %v13531_v24 = vpop.eup %13530 }
0x1aad   : > { %v7118_v27 = vmul.f32 %v13531_v24, %v13523_v13 }
0x1aaf   : > { %v7122_v28 = vpack.c.bf16 %v7118_v27, %v7118_v27 }
0x1ab0   : > { %v13533_v29 = vpop.eup %13532 }
0x1ab1   : > { %v7119_v32 = vmul.f32 %v13533_v29, %v13525_v15  ;;  %12774 = vmatmul.mubr.msk.bf16.vlgmr.msra.gmra.mrb[188].mxu0 %vm2122_vm4, %v7122_v28  ;;  %v11373_v28 = vld [vmem:[%s15499_s20] ss:$0 sm:$0xff] }
0x1ab2   : > { %12784 = vmatpush3.bf16.msra.mxu0 %v7226_v30  ;;  %12785 = vmatprep.mubr.msk.bf16.mxu0 %vm13687_vm0, %v13686_v3 }
0x1ab3   : > { %v7123_v17 = vpack.c.bf16 %v7119_v32, %v7119_v32  ;;  %12795 = vmatprep.subr.bf16.mxu0 %v13686_v3 }
0x1ab4   : > { %v13535_v36 = vpop.eup %13534 }
0x1ab5   : > { %v13537_v37 = vpop.eup %13536  ;;  %12780 = vmatmul.mubr.msk.bf16.vlgmr.msra.gmra.mrb[188].mxu1 %vm2122_vm4, %v7123_v17  ;;  %v7121_v35 = vmul.f32 %v13535_v36, %v13527_v14 }
0x1ab6   : > { %v7120_v34 = vmul.f32 %v13537_v37, %v13529_v22  ;;  %12790 = vmatpush3.bf16.msra.mxu1 %v7272_v19  ;;  %12791 = vmatprep.mubr.msk.bf16.mxu1 %vm13687_vm0, %v13686_v3 }
0x1ab7   : > { %12801 = vmatprep.subr.bf16.mxu1 %v13686_v3  ;;  %v7125_v42 = vpack.c.bf16 %v7121_v35, %v7121_v35 }
0x1ab8   : > { %v7124_v40 = vpack.c.bf16 %v7120_v34, %v7120_v34 }
0x1aba   : > { %12786 = vmatmul.mubr.msk.bf16.vlgmr.msra.gmra.mrb[192].mxu0 %vm2122_vm4, %v7124_v40 }
0x1abb   : > { %12796 = vmatpush3.bf16.msra.mxu0 %v7327_v41  ;;  %12797 = vmatprep.mubr.msk.bf16.mxu0 %vm13687_vm0, %v13686_v3 }
0x1abc   : > { %12807 = vmatprep.subr.bf16.mxu0 %v13686_v3 }
0x1abd   : > { %12792 = vmatmul.mubr.msk.bf16.vlgmr.msra.gmra.mrb[192].mxu1 %vm2122_vm4, %v7125_v42  ;;  %v13402_v42 = vld [vmem:[%s15500_s22] sm:$0xff]  }
0x1abe   : > { %12803 = vmatprep.mubr.msk.bf16.mxu1 %vm13687_vm0, %v13686_v3  ;;  %12802 = vmatpush3.bf16.msra.mxu1 %v7373_v44  ;;  %v13405_v44 = vld [vmem:[%s15501_s23 + $0x8] sm:$0xff]  }
0x1abf   : > { %12813 = vmatprep.subr.bf16.mxu1 %v13686_v3 }
0x1b84   : > { %v7170_v49 = vpop.f32.mrb[188].mxu0 }
0x1b85   : > { %v7319_v50 = vpack.c.bf16 %v7170_v49, %v7170_v49  ;;  %v12775_v51 = vpop.f32.mrb[189].mxu0 }
0x1b86   : > { %v7173_v53 = vpop.f32.mrb[190].mxu0 }
0x1b87   : > { %v12776_v57 = vpop.f32.mrb[191].mxu0  ;;  %12798 = vmatmul.mubr.msk.bf16.vlgmr.msra.gmra.mrb[196].mxu0 %vm2122_vm4, %v7319_v50 }
0x1b88   : > { %v7216_v58 = vpop.f32.mrb[188].mxu1  ;;  %12808 = vmatpush3.bf16.msra.mxu0 %v7419_v52  ;;  %12809 = vmatprep.mubr.msk.bf16.mxu0 %vm13687_vm0, %v13686_v3  ;;  %v11374_v52 = vld [vmem:[%s15502_s24] ss:$0 sm:$0xff] }
0x1b89   : > { %v7320_v59 = vpack.c.bf16 %v7216_v58, %v7216_v58  ;;  %v12781_v62 = vpop.f32.mrb[189].mxu1  ;;  %12819 = vmatprep.subr.bf16.mxu0 %v13686_v3 }
0x1b8a   : > { %v7219_v0 = vpop.f32.mrb[190].mxu1  ;;  %v13406_v62 = vld [vmem:[%s15501_s23 + $0x10] sm:$0xff]  }
0x1b8b   : > { %v12782_v1 = vpop.f32.mrb[191].mxu1  ;;  %12804 = vmatmul.mubr.msk.bf16.vlgmr.msra.gmra.mrb[196].mxu1 %vm2122_vm4, %v7320_v59  ;;  %v11376_v0 = vld [vmem:[%s15504_s27] ss:$0 sm:$0xff] }
0x1b8c   : > { %12814 = vmatpush3.bf16.msra.mxu1 %v7465_v63  ;;  %12815 = vmatprep.mubr.msk.bf16.mxu1 %vm13687_vm0, %v13686_v3  ;;  %v13407_v63 = vld [vmem:[%s15501_s23 + $0x18] sm:$0xff]  }
0x1b8d   : > { %v7262_v38 = vpop.f32.mrb[192].mxu0  ;;  %12827 = vmatprep.subr.bf16.mxu1 %v13686_v3 }
0x1b8e   : > { %v7321_v46 = vpack.c.bf16 %v7262_v38, %v7262_v38  ;;  %v12787_v2 = vpop.f32.mrb[193].mxu0 }
0x1b8f   : > { %v7265_v47 = vpop.f32.mrb[194].mxu0 }
0x1b90   : > { %v12788_v4 = vpop.f32.mrb[195].mxu0  ;;  %12810 = vmatmul.mubr.msk.bf16.vlgmr.msra.gmra.mrb[200].mxu0 %vm2122_vm4, %v7321_v46  ;;  %v7308_v6 = vpop.f32.mrb[192].mxu1 }
0x1b91   : > { %v7322_v7 = vpack.c.bf16 %v7308_v6, %v7308_v6  ;;  %v12793_v9 = vpop.f32.mrb[193].mxu1  ;;  %12823 = vmatprep.mubr.msk.bf16.mxu0 %vm13687_vm0, %v13686_v3  ;;  %12820 = vmatpush3.bf16.msra.mxu0 %v13402_v42  ;;  %v13421_v42 = vld [vmem:[%s15487_s3 + $0x140] sm:$0xff]  }
0x1b92   : > { %v7311_v5 = vpop.f32.mrb[194].mxu1  ;;  %12821 = vmatprep.subr.bf16.mxu0 %v13686_v3 }
0x1b93   : > { %v12794_v13 = vpop.f32.mrb[195].mxu1  ;;  %12816 = vmatmul.mubr.msk.bf16.vlgmr.msra.gmra.mrb[200].mxu1 %vm2122_vm4, %v7322_v7  ;;  %v11380_v7 = vld [vmem:[%s15505_s30] ss:$0 sm:$0xff] }
0x1b94   : > { %12835 = vmatprep.mubr.msk.bf16.mxu1 %vm13687_vm0, %v13686_v3 }
0x1b95   : > { %12822 = vmatpush3.bf16.msra.mxu0 %v13403_v43  ;;  %v13422_v43 = vld [vmem:[%s15487_s3 + $0x118] sm:$0xff]  }
0x1b96   : > { %12839 = vmatprep.subr.bf16.mxu0 %v13686_v3 }
0x1c5a   : > { %v7363_v10 = vpop.f32.mrb[196].mxu0 }
0x1c5b   : > { %v12799_v15 = vpop.f32.mrb[197].mxu0  ;;  %v7507_v48 = vsel %vm1498_vm3, %v7363_v10, 0.0 }
0x1c5c   : > { %v7366_v11 = vpop.f32.mrb[198].mxu0 }
0x1c5d   : > { %v12800_v14 = vpop.f32.mrb[199].mxu0 }
0x1c5e   : > { %v7409_v22 = vpop.f32.mrb[196].mxu1 }
0x1c5f   : > { %v7508_v61 = vsel %vm1498_vm3, %v7409_v22, 0.0  ;;  %v12805_v60 = vpop.f32.mrb[197].mxu1 }
0x1c60   : > { %v7509_v16 = vadd.f32 %v7508_v61, %v7507_v48  ;;  %v7412_v31 = vpop.f32.mrb[198].mxu1 }
0x1c61   : > { %v12806_v20 = vpop.f32.mrb[199].mxu1  ;;  %v13408_v31 = vld [vmem:[%s15487_s3 + $0xc0] sm:$0xff]  }
0x1c62   : > { %v13409_v20 = vld [vmem:[%s15487_s3 + $0xe0] sm:$0xff]  }
0x1c63   : > { %v7455_v21 = vpop.f32.mrb[200].mxu0 }
0x1c64   : > { %v7510_v18 = vsel %vm1498_vm3, %v7455_v21, 0.0  ;;  %v12811_v23 = vpop.f32.mrb[201].mxu0  ;;  %v13410_v21 = vld [vmem:[%s15487_s3 + $0xc8] sm:$0xff]  }
0x1c65   : > { %v7511_v24 = vadd.f32 %v7510_v18, %v7509_v16  ;;  %v7458_v8 = vpop.f32.mrb[202].mxu0  ;;  %v13411_v18 = vld [vmem:[%s15487_s3 + $0xe8] sm:$0xff]  }
0x1c66   : > { %v12812_v25 = vpop.f32.mrb[203].mxu0  ;;  %v7501_v27 = vpop.f32.mrb[200].mxu1 }
0x1c67   : > { %v7512_v29 = vsel %vm1498_vm3, %v7501_v27, 0.0  ;;  %v12817_v30 = vpop.f32.mrb[201].mxu1  ;;  %v11386_v27 = vld [vmem:[%s15506_s26] ss:$0 sm:$0xff] }
0x1c68   : > { %v7513_v26 = vadd.f32 %v7512_v29, %v7511_v24  ;;  %v7504_v32 = vpop.f32.mrb[202].mxu1  ;;  %v11387_v29 = vld [vmem:[%s13888_s29] ss:$0 sm:$0xff] }
0x1c69   : > { %v12818_v17 = vpop.f32.mrb[203].mxu1  ;;  %v13412_v32 = vld [vmem:[%s15487_s3 + $0xd0] sm:$0xff]  }
0x1c6a   : > { %v7520_v36 = vadd.f32 %v11373_v28, %v7513_v26  ;;  %v13413_v17 = vld [vmem:[%s15487_s3 + $0x100] sm:$0xff]  }
0x1c6c   : > { %v7521_v37 = vadd.f32 %v7520_v36, %v14687_v33  ;;  %v13404_v33 = vld [vmem:[%s15501_s23] sm:$0xff]  }
0x1c6d   : > { %12828 = vmatpush3.bf16.msra.mxu1 %v13404_v33  ;;  %v13423_v33 = vld [vmem:[%s15487_s3 + $0x148] sm:$0xff]  }
0x1c6e   : > { %v7524_v19 = vsel %vm1498_vm3, %v7521_v37, 0.0  ;;  %12829 = vmatprep.subr.bf16.mxu1 %v13686_v3 }
0x1c6f   : > { %7525 = vadd.xlane.f32.xlu0 %v7524_v19  ;;  %v13415_v19 = vld [vmem:[%s15487_s3 + $0x108] sm:$0xff]  }
0x1c71   : > { %12830 = vmatpush3.bf16.msra.mxu1 %v13405_v44  ;;  %v13424_v44 = vld [vmem:[%s15487_s3 + $0x130] sm:$0xff]  }
0x1c72   : > { %12831 = vmatprep.subr.bf16.mxu1 %v13686_v3 }
0x1c75   : > { %12832 = vmatpush3.bf16.msra.mxu1 %v13406_v62 }
0x1c76   : > { %12833 = vmatprep.subr.bf16.mxu1 %v13686_v3 }
0x1c79   : > { %12834 = vmatpush3.bf16.msra.mxu1 %v13407_v63 }
0x1c7a   : > { %12855 = vmatprep.subr.bf16.mxu1 %v13686_v3 }
0x1cfc   : > { %v7526_v39 = vpop.xlane.xlu0 %7525 }
0x1cfd   : > { %v7527_v34 = vmul.f32 0.03125, %v7526_v39  ;;  %v13416_v39 = vld [vmem:[%s15487_s3 + $0xf0] sm:$0xff]  }
0x1cff   : > { %v7528_v35 = vsub.f32 %v7521_v37, %v7527_v34  ;;  %v13414_v37 = vld [vmem:[%s15487_s3 + $0xd8] sm:$0xff]   ;;  %v13417_v34 = vld [vmem:[%s15487_s3 + $0x120] sm:$0xff]  }
0x1d01   : > { %v7529_v40 = vmul.f32 %v7528_v35, %v7528_v35 }
0x1d03   : > { %v7530_v41 = vsel %vm1498_vm3, %v7529_v40, 0.0  ;;  %v13419_v40 = vld [vmem:[%s15487_s3 + $0x128] sm:$0xff]  }
0x1d04   : > { %7531 = vadd.xlane.f32.xlu1 %v7530_v41  ;;  %v13420_v41 = vld [vmem:[%s15487_s3 + $0x110] sm:$0xff]  }
0x1d91   : > { %v7532_v45 = vpop.xlane.xlu1 %7531 }
0x1d92   : > { %v7533_v49 = vmul.f32 0.03125, %v7532_v45  ;;  %v13425_v45 = vld [vmem:[%s15487_s3 + $0x160] sm:$0xff]  }
0x1d94   : > { %v7534_v50 = vadd.f32 1e-05, %v7533_v49  ;;  %v13426_v49 = vld [vmem:[%s15487_s3 + $0x138] sm:$0xff]  }
0x1d96   : > { %13538 = vrsqrt.f32 %v7534_v50  ;;  %v13427_v50 = vld [vmem:[%s15487_s3 + $0x168] sm:$0xff]  }
0x1da0   : > { %v13539_v51 = vpop.eup %13538 }
0x1da1   : > { %v7536_v53 = vmul.f32 %v13539_v51, %v7528_v35  ;;  %v13418_v35 = vld [vmem:[%s15487_s3 + $0xf8] sm:$0xff]   ;;  %v13428_v51 = vld [vmem:[%s15487_s3 + $0x150] sm:$0xff]  }
0x1da3   : > { %v7543_v57 = vmul.f32 %v11374_v52, %v7536_v53  ;;  %v13429_v52 = vld [vmem:[%s15487_s3 + $0x158] sm:$0xff]   ;;  %v13430_v53 = vld [vmem:[%s15487_s3 + $0x170] sm:$0xff]  }
0x1da5   : > { %v7550_v58 = vadd.f32 %v11375_v54, %v7543_v57  ;;  %v13431_v54 = vld [vmem:[%s15487_s3 + $0x178] sm:$0xff]  }
0x1da7   : > { %v7565_v59 = vpack.c.bf16 %v7550_v58, %v7550_v58 }
0x1da9   : > { %12824 = vmatmul.mubr.msk.bf16.vlgmr.msra.gmra.mrb[204].mxu0 %vm1498_vm3, %v7565_v59 }
0x1daa   : > { %12843 = vmatprep.mubr.msk.bf16.mxu0 %vm13687_vm0, %v13686_v3  ;;  %12840 = vmatpush3.bf16.msra.mxu0 %v13408_v31 }
0x1dab   : > { %12841 = vmatprep.subr.bf16.mxu0 %v13686_v3 }
0x1dae   : > { %12842 = vmatpush3.bf16.msra.mxu0 %v13410_v21 }
0x1daf   : > { %12847 = vmatprep.subr.bf16.mxu0 %v13686_v3 }
0x1e7c   : > { %v7621_v1 = vpop.f32.mrb[204].mxu0 }
0x1e7d   : > { %v7622_v38 = vadd.f32 %v11376_v0, %v7621_v1  ;;  %v12825_v46 = vpop.f32.mrb[205].mxu0 }
0x1e7e   : > { %v7624_v2 = vpop.f32.mrb[206].mxu0  ;;  %v11452_v46 = vld [vmem:[%s15489_s16 + $0x10] ss:$0 sm:$0xff] }
0x1e7f   : > { %v7627_v47 = vmax.f32 %v7622_v38, 0.0  ;;  %v12826_v4 = vpop.f32.mrb[207].mxu0 }
0x1e81   : > { %v7628_v6 = vpack.c.bf16 %v7627_v47, %v7627_v47 }
0x1e83   : > { %12836 = vmatmul.mubr.msk.bf16.vlgmr.msra.gmra.mrb[204].mxu1 %vm2904_vm6, %v7628_v6 }
0x1e84   : > { %12859 = vmatprep.mubr.msk.bf16.mxu1 %vm13687_vm0, %v13686_v3  ;;  %12856 = vmatpush3.bf16.msra.mxu1 %v13409_v20 }
0x1e85   : > { %12857 = vmatprep.subr.bf16.mxu1 %v13686_v3 }
0x1e88   : > { %12858 = vmatpush3.bf16.msra.mxu1 %v13411_v18 }
0x1e89   : > { %12871 = vmatprep.subr.bf16.mxu1 %v13686_v3 }
0x1f56   : > { %v7696_v9 = vpop.f32.mrb[204].mxu1 }
0x1f57   : > { %v7697_v5 = vadd.f32 %v11380_v7, %v7696_v9  ;;  %v12837_v13 = vpop.f32.mrb[205].mxu1 }
0x1f58   : > { %v7699_v10 = vpop.f32.mrb[206].mxu1 }
0x1f59   : > { %v12838_v15 = vpop.f32.mrb[207].mxu1  ;;  %v7702_v11 = vadd.f32 %v7697_v5, %v7550_v58 }
0x1f5b   : > { %v7705_v14 = vsel %vm1498_vm3, %v7702_v11, 0.0 }
0x1f5c   : > { %7706 = vadd.xlane.f32.xlu0 %v7705_v14 }
0x1fe9   : > { %v7707_v22 = vpop.xlane.xlu0 %7706 }
0x1fea   : > { %v7708_v48 = vmul.f32 0.03125, %v7707_v22  ;;  %v11454_v22 = vld [vmem:[%s15489_s16 + $0x12] ss:$0 sm:$0xff] }
0x1fec   : > { %v7709_v61 = vsub.f32 %v7702_v11, %v7708_v48  ;;  %v11448_v11 = vld [vmem:[%s15489_s16 + $0xc] ss:$0 sm:$0xff] }
0x1fee   : > { %v7710_v60 = vmul.f32 %v7709_v61, %v7709_v61 }
0x1ff0   : > { %v7711_v16 = vsel %vm1498_vm3, %v7710_v60, 0.0 }
0x1ff1   : > { %7712 = vadd.xlane.f32.xlu1 %v7711_v16 }
0x207e   : > { %v7713_v23 = vpop.xlane.xlu1 %7712 }
0x207f   : > { %v7714_v24 = vmul.f32 0.03125, %v7713_v23 }
0x2081   : > { %v7715_v8 = vadd.f32 1e-05, %v7714_v24 }
0x2083   : > { %13540 = vrsqrt.f32 %v7715_v8 }
0x208d   : > { %v13541_v25 = vpop.eup %13540 }
0x208e   : > { %v7717_v28 = vmul.f32 %v13541_v25, %v7709_v61 }
0x2090   : > { %v7724_v30 = vmul.f32 %v11386_v27, %v7717_v28  ;;  %v11450_v27 = vld [vmem:[%s15489_s16 + $0xe] ss:$0 sm:$0xff] }
0x2092   : > { %v14915_v26 = vadd.f32 %v11387_v29, %v7724_v30  ;;  %v11453_v29 = vld [vmem:[%s15489_s16 + $0x11] ss:$0 sm:$0xff]  ;;  %v11456_v30 = vld [vmem:[%s15489_s16 + $0x14] ss:$0 sm:$0xff] }
0x2094   : > { %v14921_v36 = vpack.c.bf16 %v14915_v26, %v14915_v26 }
0x2096   : > { %12844 = vmatmul.mubr.msk.bf16.vlgmr.msra.gmra.mrb[208].mxu0 %vm1498_vm3, %v14921_v36  ;;  %12860 = vmatmul.mubr.msk.bf16.vlgmr.msra.gmra.mrb[208].mxu1 %vm1498_vm3, %v14921_v36 }
0x2097   : > { %12848 = vmatpush3.bf16.msra.mxu0 %v13412_v32  ;;  %12872 = vmatpush3.bf16.msra.mxu1 %v13413_v17 }
0x2098   : > { %12849 = vmatprep.subr.bf16.mxu0 %v13686_v3  ;;  %12873 = vmatprep.subr.bf16.mxu1 %v13686_v3 }
0x2099   : > { %12851 = vmatprep.mubr.msk.bf16.mxu0 %vm13687_vm0, %v13686_v3  ;;  %12875 = vmatprep.mubr.msk.bf16.mxu1 %vm13687_vm0, %v13686_v3 }
0x209b   : > { %12850 = vmatpush3.bf16.msra.mxu0 %v13414_v37  ;;  %12874 = vmatpush3.bf16.msra.mxu1 %v13415_v19 }
0x209c   : > { %12863 = vmatprep.subr.bf16.mxu0 %v13686_v3  ;;  %12887 = vmatprep.subr.bf16.mxu1 %v13686_v3 }
0x209e   : > { %12852 = vmatmul.mubr.msk.bf16.vlgmr.msra.gmra.mrb[212].mxu0 %vm1498_vm3, %v14921_v36  ;;  %12876 = vmatmul.mubr.msk.bf16.vlgmr.msra.gmra.mrb[212].mxu1 %vm1498_vm3, %v14921_v36 }
0x209f   : > { %12864 = vmatpush3.bf16.msra.mxu0 %v13416_v39  ;;  %12888 = vmatpush3.bf16.msra.mxu1 %v13417_v34 }
0x20a0   : > { %12865 = vmatprep.subr.bf16.mxu0 %v13686_v3  ;;  %12889 = vmatprep.subr.bf16.mxu1 %v13686_v3 }
0x20a1   : > { %12867 = vmatprep.mubr.msk.bf16.mxu0 %vm13687_vm0, %v13686_v3  ;;  %12891 = vmatprep.mubr.msk.bf16.mxu1 %vm13687_vm0, %v13686_v3 }
0x20a3   : > { %12866 = vmatpush3.bf16.msra.mxu0 %v13418_v35  ;;  %12890 = vmatpush3.bf16.msra.mxu1 %v13419_v40 }
0x20a4   : > { %12879 = vmatprep.subr.bf16.mxu0 %v13686_v3  ;;  %12903 = vmatprep.subr.bf16.mxu1 %v13686_v3 }
0x20a6   : > { %12868 = vmatmul.mubr.msk.bf16.vlgmr.msra.gmra.mrb[216].mxu0 %vm1498_vm3, %v14921_v36  ;;  %12892 = vmatmul.mubr.msk.bf16.vlgmr.msra.gmra.mrb[216].mxu1 %vm1498_vm3, %v14921_v36 }
0x20a7   : > { %12880 = vmatpush3.bf16.msra.mxu0 %v13420_v41  ;;  %12904 = vmatpush3.bf16.msra.mxu1 %v13421_v42 }
0x20a8   : > { %12881 = vmatprep.subr.bf16.mxu0 %v13686_v3  ;;  %12905 = vmatprep.subr.bf16.mxu1 %v13686_v3 }
0x20a9   : > { %12883 = vmatprep.mubr.msk.bf16.mxu0 %vm13687_vm0, %v13686_v3  ;;  %12907 = vmatprep.mubr.msk.bf16.mxu1 %vm13687_vm0, %v13686_v3 }
0x20ab   : > { %12882 = vmatpush3.bf16.msra.mxu0 %v13422_v43  ;;  %12906 = vmatpush3.bf16.msra.mxu1 %v13423_v33 }
0x20ac   : > { %12895 = vmatprep.subr.bf16.mxu0 %v13686_v3  ;;  %12919 = vmatprep.subr.bf16.mxu1 %v13686_v3 }
0x20ae   : > { %12884 = vmatmul.mubr.msk.bf16.vlgmr.msra.gmra.mrb[220].mxu0 %vm1498_vm3, %v14921_v36  ;;  %12908 = vmatmul.mubr.msk.bf16.vlgmr.msra.gmra.mrb[220].mxu1 %vm1498_vm3, %v14921_v36 }
0x20af   : > { %12896 = vmatpush3.bf16.msra.mxu0 %v13424_v44  ;;  %12920 = vmatpush3.bf16.msra.mxu1 %v13425_v45  ;;  %v11449_v45 = vld [vmem:[%s15489_s16 + $0xd] ss:$0 sm:$0xff] }
0x20b0   : > { %12897 = vmatprep.subr.bf16.mxu0 %v13686_v3  ;;  %12921 = vmatprep.subr.bf16.mxu1 %v13686_v3 }
0x20b1   : > { %12899 = vmatprep.mubr.msk.bf16.mxu0 %vm13687_vm0, %v13686_v3  ;;  %12923 = vmatprep.mubr.msk.bf16.mxu1 %vm13687_vm0, %v13686_v3 }
0x20b3   : > { %12898 = vmatpush3.bf16.msra.mxu0 %v13426_v49  ;;  %12922 = vmatpush3.bf16.msra.mxu1 %v13427_v50 }
0x20b4   : > { %12911 = vmatprep.subr.bf16.mxu0 %v13686_v3  ;;  %12935 = vmatprep.subr.bf16.mxu1 %v13686_v3 }
0x20b6   : > { %12900 = vmatmul.mubr.msk.bf16.vlgmr.msra.gmra.mrb[224].mxu0 %vm1498_vm3, %v14921_v36  ;;  %12924 = vmatmul.mubr.msk.bf16.vlgmr.msra.gmra.mrb[224].mxu1 %vm1498_vm3, %v14921_v36 }
0x20b7   : > { %12912 = vmatpush3.bf16.msra.mxu0 %v13428_v51  ;;  %12915 = vmatprep.mubr.msk.bf16.mxu0 %vm13687_vm0, %v13686_v3  ;;  %v11455_v51 = vld [vmem:[%s15489_s16 + $0x13] ss:$0 sm:$0xff] }
0x20b8   : > { %12913 = vmatprep.subr.bf16.mxu0 %v13686_v3  ;;  %12937 = vmatprep.mubr.msk.bf16.mxu1 %vm13687_vm0, %v13686_v3 }
0x20bb   : > { %12914 = vmatpush3.bf16.msra.mxu0 %v13429_v52 }
0x20bc   : > { %12927 = vmatprep.subr.bf16.mxu0 %v13686_v3 }
0x20be   : > { %12916 = vmatmul.mubr.msk.bf16.vlgmr.msra.gmra.mrb[228].mxu0 %vm1498_vm3, %v14921_v36 }
0x20bf   : > { %12928 = vmatpush3.bf16.msra.mxu0 %v13430_v53  ;;  %12931 = vmatprep.mubr.msk.bf16.mxu0 %vm13687_vm0, %v13686_v3 }
0x20c0   : > { %12929 = vmatprep.subr.bf16.mxu0 %v13686_v3 }
0x20c3   : > { %12930 = vmatpush3.bf16.msra.mxu0 %v13431_v54 }
0x20c4   : > { %12941 = vmatprep.subr.bf16.mxu0 %v13686_v3 }
0x20c6   : > { %12932 = vmatmul.mubr.msk.bf16.vlgmr.msra.gmra.mrb[232].mxu0 %vm1498_vm3, %v14921_v36 }
0x20c7   : > { %12943 = vmatprep.mubr.msk.bf16.mxu0 %vm13687_vm0, %v13686_v3 }
0x2169   : > { %v7916_v57 = vpop.f32.mrb[208].mxu0  ;;  %v8020_v58 = vpop.f32.mrb[208].mxu1 }
0x216a   : > { %v12845_v59 = vpop.f32.mrb[209].mxu0  ;;  %v12861_v62 = vpop.f32.mrb[209].mxu1  ;;  %v7917_v48 = vadd.f32 %v11448_v11, %v7916_v57  ;;  %v8021_v32 = vadd.f32 %v11450_v27, %v8020_v58 }
0x216b   : > { %v7919_v63 = vpop.f32.mrb[210].mxu0  ;;  %v8023_v0 = vpop.f32.mrb[210].mxu1 }
0x216c   : > { %v12846_v1 = vpop.f32.mrb[211].mxu0  ;;  %v12862_v38 = vpop.f32.mrb[211].mxu1  ;;  %v8494_v23 = vpack.c.bf16 %v7917_v48, %v7917_v48  ;;  %v8496_v41 = vpack.c.bf16 %v8021_v32, %v8021_v32 }
0x2171   : > { %v7968_v2 = vpop.f32.mrb[212].mxu0  ;;  %v8124_v47 = vpop.f32.mrb[212].mxu1 }
0x2172   : > { %v8125_v4 = vadd.f32 %v11452_v46, %v8124_v47  ;;  %v12853_v6 = vpop.f32.mrb[213].mxu0  ;;  %v12877_v7 = vpop.f32.mrb[213].mxu1  ;;  %v7969_v52 = vadd.f32 %v11449_v45, %v7968_v2  ;;  %v11451_v2 = vld [vmem:[%s15489_s16 + $0xf] ss:$0 sm:$0xff] }
0x2173   : > { %v7971_v9 = vpop.f32.mrb[214].mxu0  ;;  %v8127_v5 = vpop.f32.mrb[214].mxu1 }
0x2174   : > { %v8498_v13 = vpack.c.bf16 %v8125_v4, %v8125_v4  ;;  %v12854_v10 = vpop.f32.mrb[215].mxu0  ;;  %v12878_v15 = vpop.f32.mrb[215].mxu1  ;;  %v8495_v0 = vpack.c.bf16 %v7969_v52, %v7969_v52  ;;  %v11457_v4 = vld [vmem:[%s15489_s16 + $0x15] ss:$0 sm:$0xff] }
0x2176   : > { %v8506_v14 = vsel %vm2122_vm4, %v8498_v13, 0 }
0x2177   : > { %12936 = vmatpush3.bf16.xpose.msra.mxu1 %v8506_v14 }
0x2178   : > { %12947 = vmatprep.subr.bf16.mxu1 %v13686_v3 }
0x2179   : > { %v8072_v61 = vpop.f32.mrb[216].mxu0  ;;  %v8228_v60 = vpop.f32.mrb[216].mxu1 }
0x217a   : > { %v8229_v16 = vadd.f32 %v11454_v22, %v8228_v60  ;;  %v12869_v31 = vpop.f32.mrb[217].mxu0  ;;  %v12893_v20 = vpop.f32.mrb[217].mxu1  ;;  %v8073_v6 = vadd.f32 %v11451_v2, %v8072_v61 }
0x217b   : > { %v8075_v21 = vpop.f32.mrb[218].mxu0  ;;  %v8231_v18 = vpop.f32.mrb[218].mxu1 }
0x217c   : > { %v8500_v24 = vpack.c.bf16 %v8229_v16, %v8229_v16  ;;  %v12870_v8 = vpop.f32.mrb[219].mxu0  ;;  %v12894_v25 = vpop.f32.mrb[219].mxu1  ;;  %v8497_v10 = vpack.c.bf16 %v8073_v6, %v8073_v6 }
0x217e   : > { %v8598_v28 = vsel %vm2122_vm4, %v8500_v24, 0  ;;  %12938 = vmatmul.mubr.msk.bf16.vlgmr.msra.gmra.mrb[228].mxu1 %vm2122_vm4, %v8494_v23 }
0x217f   : > { %12948 = vmatpush3.bf16.xpose.msra.mxu1 %v8598_v28  ;;  %12949 = vmatprep.mubr.msk.bf16.mxu1 %vm13687_vm0, %v13686_v3 }
0x2180   : > { %12959 = vmatprep.subr.bf16.mxu1 %v13686_v3 }
0x2181   : > { %v8176_v17 = vpop.f32.mrb[220].mxu0  ;;  %v8332_v36 = vpop.f32.mrb[220].mxu1 }
0x2182   : > { %v8177_v37 = vadd.f32 %v11453_v29, %v8176_v17  ;;  %v8333_v19 = vadd.f32 %v11456_v30, %v8332_v36  ;;  %v12885_v39 = vpop.f32.mrb[221].mxu0  ;;  %v12909_v34 = vpop.f32.mrb[221].mxu1 }
0x2183   : > { %v8179_v35 = vpop.f32.mrb[222].mxu0  ;;  %v8335_v40 = vpop.f32.mrb[222].mxu1 }
0x2184   : > { %v8499_v42 = vpack.c.bf16 %v8177_v37, %v8177_v37  ;;  %v8742_v43 = vpack.c.bf16 %v8333_v19, %v8333_v19  ;;  %v12886_v33 = vpop.f32.mrb[223].mxu0  ;;  %v12910_v44 = vpop.f32.mrb[223].mxu1 }
0x2186   : > { %v8552_v49 = vsel %vm2122_vm4, %v8499_v42, 0  ;;  %v8750_v50 = vsel %vm2376_vm5, %v8742_v43, 0  ;;  %12950 = vmatmul.mubr.msk.bf16.vlgmr.msra.gmra.mrb[232].mxu1 %vm2122_vm4, %v8496_v41 }
0x2187   : > { %12942 = vmatpush3.bf16.xpose.msra.mxu0 %v8552_v49  ;;  %12960 = vmatpush3.bf16.msra.mxu1 %v8750_v50 }
0x2188   : > { %12953 = vmatprep.subr.bf16.mxu0 %v13686_v3  ;;  %12961 = vmatprep.mubr.msk.bf16.mxu1 %vm13687_vm0, %v13686_v3 }
0x2189   : > { %v8280_v53 = vpop.f32.mrb[224].mxu0  ;;  %v15030_v54 = vpop.f32.mrb[224].mxu1  ;;  %12971 = vmatprep.subr.bf16.mxu1 %v13686_v3 }
0x218a   : > { %v8281_v57 = vadd.f32 %v11455_v51, %v8280_v53  ;;  %v12901_v58 = vpop.f32.mrb[225].mxu0  ;;  %v12925_v59 = vpop.f32.mrb[225].mxu1 }
0x218b   : > { %v8283_v62 = vpop.f32.mrb[226].mxu0  ;;  %v8439_v63 = vpop.f32.mrb[226].mxu1 }
0x218c   : > { %v8501_v1 = vpack.c.bf16 %v8281_v57, %v8281_v57  ;;  %v12902_v38 = vpop.f32.mrb[227].mxu0  ;;  %v12926_v46 = vpop.f32.mrb[227].mxu1 }
0x218e   : > { %v8644_v47 = vsel %vm2122_vm4, %v8501_v1, 0  ;;  %12944 = vmatmul.mubr.msk.bf16.vlgmr.msra.gmra.mrb[236].mxu0 %vm2122_vm4, %v8495_v0 }
0x218f   : > { %12954 = vmatpush3.bf16.xpose.msra.mxu0 %v8644_v47  ;;  %12955 = vmatprep.mubr.msk.bf16.mxu0 %vm13687_vm0, %v13686_v3 }
0x2190   : > { %12965 = vmatprep.subr.bf16.mxu0 %v13686_v3 }
0x2191   : > { %v8384_v7 = vpop.f32.mrb[228].mxu0 }
0x2192   : > { %v8385_v9 = vadd.f32 %v11457_v4, %v8384_v7  ;;  %v12917_v5 = vpop.f32.mrb[229].mxu0 }
0x2193   : > { %v8387_v13 = vpop.f32.mrb[230].mxu0  ;;  %v11458_v5 = vld [vmem:[%s15489_s16 + $0x16] ss:$0 sm:$0xff] }
0x2194   : > { %v8743_v15 = vpack.c.bf16 %v8385_v9, %v8385_v9  ;;  %v12918_v11 = vpop.f32.mrb[231].mxu0  ;;  %v8437_v13 = vadd.f32 %v11458_v5, %v15030_v54 }
0x2196   : > { %v8796_v14 = vsel %vm2376_vm5, %v8743_v15, 0  ;;  %12956 = vmatmul.mubr.msk.bf16.vlgmr.msra.gmra.mrb[240].mxu0 %vm2122_vm4, %v8497_v10  ;;  %v8744_v11 = vpack.c.bf16 %v8437_v13, %v8437_v13 }
0x2197   : > { %12966 = vmatpush3.bf16.msra.mxu0 %v8796_v14  ;;  %12967 = vmatprep.mubr.msk.bf16.mxu0 %vm13687_vm0, %v13686_v3 }
0x2198   : > { %12977 = vmatprep.subr.bf16.mxu0 %v13686_v3 }
0x2199   : > { %v15045_v22 = vpop.f32.mrb[232].mxu0 }
0x219a   : > { %v12933_v48 = vpop.f32.mrb[233].mxu0 }
0x219b   : > { %v8491_v61 = vpop.f32.mrb[234].mxu0 }
0x219c   : > { %v12934_v60 = vpop.f32.mrb[235].mxu0  ;;  %v8842_v61 = vsel %vm2376_vm5, %v8744_v11, 0 }
0x2251   : > { %v8542_v16 = vpop.f32.mrb[228].mxu1 }
0x2252   : > { %v8686_v31 = vmul.f32 0.35355338, %v8542_v16  ;;  %v12939_v20 = vpop.f32.mrb[229].mxu1 }
0x2253   : > { %v8545_v21 = vpop.f32.mrb[230].mxu1 }
0x2254   : > { %v12940_v18 = vpop.f32.mrb[231].mxu1  ;;  %v8690_v23 = vadd.f32 %v8686_v31, %v14606_v56  ;;  %v11459_v31 = vld [vmem:[%s15489_s16 + $0x17] ss:$0 sm:$0xff] }
0x2255   : > { %v8489_v21 = vadd.f32 %v11459_v31, %v15045_v22 }
0x2256   : > { %v8694_v24 = vsel %vm2122_vm4, %v8690_v23, -inf }
0x2257   : > { %8695 = vmax.xlane.f32.xlu0 %v8694_v24  ;;  %v8745_v24 = vpack.c.bf16 %v8489_v21, %v8489_v21 }
0x2259   : > { %v8634_v8 = vpop.f32.mrb[232].mxu1 }
0x225a   : > { %v8688_v25 = vmul.f32 0.35355338, %v8634_v8  ;;  %v12951_v27 = vpop.f32.mrb[233].mxu1 }
0x225b   : > { %v8637_v28 = vpop.f32.mrb[234].mxu1  ;;  %v8888_v27 = vsel %vm2376_vm5, %v8745_v24, 0 }
0x225c   : > { %v12952_v29 = vpop.f32.mrb[235].mxu1  ;;  %v8692_v30 = vadd.f32 %v8688_v25, %v14606_v56 }
0x225e   : > { %v8700_v32 = vsel %vm2122_vm4, %v8692_v30, -inf }
0x225f   : > { %8701 = vmax.xlane.f32.xlu0 %v8700_v32 }
0x2261   : > { %v8588_v17 = vpop.f32.mrb[236].mxu0 }
0x2262   : > { %v8687_v36 = vmul.f32 0.35355338, %v8588_v17  ;;  %v12945_v37 = vpop.f32.mrb[237].mxu0  ;;  %v11505_v17 = vld [vmem:[%s15490_s2 + $0x14] sm:$0xf] }
0x2263   : > { %v8591_v19 = vpop.f32.mrb[238].mxu0  ;;  %v11506_v37 = vld [vmem:[%s15490_s2 + $0x18] sm:$0xf] }
0x2264   : > { %v12946_v39 = vpop.f32.mrb[239].mxu0  ;;  %v8691_v34 = vadd.f32 %v8687_v36, %v14606_v56  ;;  %v8991_v36 = vsel %vm2376_vm5, %v11505_v17, 0  ;;  %v13434_v17 = vld [vmem:[%s15492_s6 + $0x48] sm:$0xff]  }
0x2266   : > { %v8697_v35 = vsel %vm2122_vm4, %v8691_v34, -inf }
0x2267   : > { %8698 = vmax.xlane.f32.xlu1 %v8697_v35  ;;  %v9037_v35 = vsel %vm2376_vm5, %v11506_v37, 0 }
0x2269   : > { %v8680_v40 = vpop.f32.mrb[240].mxu0 }
0x226a   : > { %v8689_v41 = vmul.f32 0.35355338, %v8680_v40  ;;  %v12957_v42 = vpop.f32.mrb[241].mxu0 }
0x226b   : > { %v8683_v43 = vpop.f32.mrb[242].mxu0 }
0x226c   : > { %v12958_v33 = vpop.f32.mrb[243].mxu0  ;;  %v8693_v44 = vadd.f32 %v8689_v41, %v14606_v56 }
0x226e   : > { %v8703_v45 = vsel %vm2122_vm4, %v8693_v44, -inf }
0x226f   : > { %8704 = vmax.xlane.f32.xlu1 %v8703_v45 }
0x22e4   : > { %v8696_v49 = vpop.xlane.xlu0 %8695 }
0x22e5   : > { %v8706_v50 = vsub.f32 %v8690_v23, %v8696_v49  ;;  %v11507_v49 = vld [vmem:[%s15490_s2 + $0x1c] sm:$0xf] }
0x22e7   : > { %v8710_v51 = vmul.f32 1.442695, %v8706_v50 }
0x22e9   : > { %13542 = vpow2.f32 %v8710_v51 }
0x22ec   : > { %v8702_v52 = vpop.xlane.xlu0 %8701 }
0x22ed   : > { %v8708_v53 = vsub.f32 %v8692_v30, %v8702_v52  ;;  %v11504_v30 = vld [vmem:[%s15490_s2 + $0x10] sm:$0xf]  ;;  %s1251_s2 = sand.u32 1, %s13634_s10  }
0x22ee   : > { %v8945_v32 = vsel %vm2376_vm5, %v11504_v30, 0  ;;  %v13432_v30 = vld [vmem:[%s15492_s6 + $0x40] sm:$0xff]   ;;  %s11006_s3 = sshll.u32 %s1251_s2, 3 }
0x22ef   : > { %v8714_v57 = vmul.f32 1.442695, %v8708_v53  ;;  %v9083_v53 = vsel %vm2376_vm5, %v11507_v49, 0  ;;  %v13439_v49 = vld [vmem:[%s15492_s6 + $0x78] sm:$0xff]  }
0x22f1   : > { %13544 = vpow2.f32 %v8714_v57 }
0x22f3   : > { %v13543_v58 = vpop.eup %13542 }
0x22f4   : > { %v8699_v59 = vpop.xlane.xlu1 %8698  ;;  %v8718_v62 = vsel %vm2122_vm4, %v13543_v58, 0.0 }
0x22f5   : > { %v8707_v63 = vsub.f32 %v8691_v34, %v8699_v59  ;;  %8719 = vadd.xlane.f32.xlu0 %v8718_v62 }
0x22f7   : > { %v8712_v0 = vmul.f32 1.442695, %v8707_v63 }
0x22f9   : > { %13546 = vpow2.f32 %v8712_v0 }
0x22fb   : > { %v13545_v56 = vpop.eup %13544 }
0x22fc   : > { %v8705_v1 = vpop.xlane.xlu1 %8704  ;;  %v8724_v38 = vsel %vm2122_vm4, %v13545_v56, 0.0 }
0x22fd   : > { %v8709_v46 = vsub.f32 %v8693_v44, %v8705_v1  ;;  %8725 = vadd.xlane.f32.xlu0 %v8724_v38 }
0x22ff   : > { %v8716_v2 = vmul.f32 1.442695, %v8709_v46 }
0x2301   : > { %13548 = vpow2.f32 %v8716_v2 }
0x2303   : > { %v13547_v47 = vpop.eup %13546 }
0x2304   : > { %v8721_v4 = vsel %vm2122_vm4, %v13547_v47, 0.0 }
0x2305   : > { %8722 = vadd.xlane.f32.xlu1 %v8721_v4 }
0x230b   : > { %v13549_v6 = vpop.eup %13548 }
0x230c   : > { %v8727_v7 = vsel %vm2122_vm4, %v13549_v6, 0.0 }
0x230d   : > { %8728 = vadd.xlane.f32.xlu1 %v8727_v7 }
0x2382   : > { %v8720_v9 = vpop.xlane.xlu0 %8719 }
0x2383   : > { %13550 = vrcp.f32 %v8720_v9 }
0x238a   : > { %v8726_v10 = vpop.xlane.xlu0 %8725 }
0x238b   : > { %13552 = vrcp.f32 %v8726_v10 }
0x238d   : > { %v13551_v15 = vpop.eup %13550 }
0x238e   : > { %v8734_v14 = vmul.f32 %v13551_v15, %v13543_v58 }
0x2390   : > { %v8738_v48 = vpack.c.bf16 %v8734_v14, %v8734_v14 }
0x2392   : > { %12962 = vmatmul.mubr.msk.bf16.vlgmr.msra.gmra.mrb[236].mxu1 %vm2122_vm4, %v8738_v48  ;;  %v8723_v60 = vpop.xlane.xlu1 %8722 }
0x2393   : > { %12972 = vmatpush3.bf16.msra.mxu1 %v8842_v61  ;;  %13554 = vrcp.f32 %v8723_v60  ;;  %12973 = vmatprep.mubr.msk.bf16.mxu1 %vm13687_vm0, %v13686_v3 }
0x2394   : > { %12983 = vmatprep.subr.bf16.mxu1 %v13686_v3 }
0x2395   : > { %v13553_v54 = vpop.eup %13552 }
0x2396   : > { %v8736_v16 = vmul.f32 %v13553_v54, %v13545_v56  ;;  %v11513_v54 = vld [vmem:[%s15491_s5 + $0x1] ss:$0 sm:$0xff]  ;;  %s11681_s5 = sshll.u32 %s13926_s0, 7  ;;  %s13689_s0 = smov [#allocation2]  }
0x2398   : > { %v8740_v20 = vpack.c.bf16 %v8736_v16, %v8736_v16 }
0x239a   : > { %12974 = vmatmul.mubr.msk.bf16.vlgmr.msra.gmra.mrb[240].mxu1 %vm2122_vm4, %v8740_v20  ;;  %v8729_v18 = vpop.xlane.xlu1 %8728 }
0x239b   : > { %13556 = vrcp.f32 %v8729_v18  ;;  %12985 = vmatprep.mubr.msk.bf16.mxu1 %vm13687_vm0, %v13686_v3  ;;  %12984 = vmatpush3.bf16.msra.mxu1 %v8945_v32  ;;  %v13433_v32 = vld [vmem:[%s15492_s6 + $0x50] sm:$0xff]  }
0x239c   : > { %12995 = vmatprep.subr.bf16.mxu1 %v13686_v3 }
0x239d   : > { %v13555_v23 = vpop.eup %13554 }
0x239e   : > { %v8735_v8 = vmul.f32 %v13555_v23, %v13547_v47 }
0x23a0   : > { %v8739_v25 = vpack.c.bf16 %v8735_v8, %v8735_v8 }
0x23a2   : > { %12968 = vmatmul.mubr.msk.bf16.vlgmr.msra.gmra.mrb[244].mxu0 %vm2122_vm4, %v8739_v25 }
0x23a3   : > { %12978 = vmatpush3.bf16.msra.mxu0 %v8888_v27  ;;  %12979 = vmatprep.mubr.msk.bf16.mxu0 %vm13687_vm0, %v13686_v3 }
0x23a4   : > { %12989 = vmatprep.subr.bf16.mxu0 %v13686_v3 }
0x23a5   : > { %v13557_v22 = vpop.eup %13556 }
0x23a6   : > { %v8737_v28 = vmul.f32 %v13557_v22, %v13549_v6 }
0x23a8   : > { %v8741_v29 = vpack.c.bf16 %v8737_v28, %v8737_v28 }
0x23aa   : > { %12980 = vmatmul.mubr.msk.bf16.vlgmr.msra.gmra.mrb[248].mxu0 %vm2122_vm4, %v8741_v29 }
0x23ab   : > { %12991 = vmatprep.mubr.msk.bf16.mxu0 %vm13687_vm0, %v13686_v3  ;;  %12990 = vmatpush3.bf16.msra.mxu0 %v8991_v36  ;;  %v13435_v36 = vld [vmem:[%s15492_s6 + $0x58] sm:$0xff]  }
0x23ac   : > { %13001 = vmatprep.subr.bf16.mxu0 %v13686_v3 }
0x2465   : > { %v8786_v19 = vpop.f32.mrb[236].mxu1 }
0x2466   : > { %v8937_v39 = vpack.c.bf16 %v8786_v19, %v8786_v19  ;;  %v12963_v34 = vpop.f32.mrb[237].mxu1 }
0x2467   : > { %v8789_v40 = vpop.f32.mrb[238].mxu1  ;;  %v11516_v34 = vld [vmem:[%s15493_s8 + $0x1] ss:$0 sm:$0xff] }
0x2468   : > { %v12964_v41 = vpop.f32.mrb[239].mxu1  ;;  %12986 = vmatmul.mubr.msk.bf16.vlgmr.msra.gmra.mrb[244].mxu1 %vm2122_vm4, %v8937_v39  ;;  %v11517_v40 = vld [vmem:[%s15494_s12 + $0x1] ss:$0 sm:$0xff]  ;;  %s15342_s12 = scalar_lea.hbm %s13903_s4, %s11681_s5 }
0x2469   : > { %12996 = vmatpush3.bf16.msra.mxu1 %v9037_v35  ;;  %12997 = vmatprep.mubr.msk.bf16.mxu1 %vm13687_vm0, %v13686_v3 }
0x246a   : > { %13007 = vmatprep.subr.bf16.mxu1 %v13686_v3 }
0x246d   : > { %v8878_v42 = vpop.f32.mrb[240].mxu1 }
0x246e   : > { %v8939_v43 = vpack.c.bf16 %v8878_v42, %v8878_v42  ;;  %v12975_v33 = vpop.f32.mrb[241].mxu1 }
0x246f   : > { %v8881_v44 = vpop.f32.mrb[242].mxu1  ;;  %v13437_v33 = vld [vmem:[%s15492_s6 + $0x70] sm:$0xff]  }
0x2470   : > { %v12976_v45 = vpop.f32.mrb[243].mxu1  ;;  %12998 = vmatmul.mubr.msk.bf16.vlgmr.msra.gmra.mrb[248].mxu1 %vm2122_vm4, %v8939_v43  ;;  %v13436_v43 = vld [vmem:[%s15492_s6 + $0x60] sm:$0xff]  }
0x2471   : > { %13011 = vmatprep.mubr.msk.bf16.mxu1 %vm13687_vm0, %v13686_v3  ;;  %13008 = vmatpush3.bf16.msra.mxu1 %v13432_v30  ;;  %v13438_v45 = vld [vmem:[%s15492_s6 + $0x68] sm:$0xff]   ;;  %s1253_s6 = scalar_lea.vmem [#allocation2], %s11006_s3  ;;  %s13584_s3 = sshll.u32 %s13689_s0, 4  ;;  %s13585_s3 = int_to_ptr.vmem [resolvable:$false] %s13584_s3 }
0x2472   : > { %13009 = vmatprep.subr.bf16.mxu1 %v13686_v3  ;;  %s10881_s8 = sshll.u32 %s1253_s6, 4  ;;  %s15344_s8 = int_to_ptr.vmem [resolvable:$true] %s10881_s8 }
0x2473   : > { %p13587_p0 = scmp.lt.s32.totalorder %s15344_s8, %s13585_s3 }
0x2475   : > { %v8832_v50 = vpop.f32.mrb[244].mxu0  ;;  %13010 = vmatpush3.bf16.msra.mxu1 %v13434_v17  ;;  %v11538_v17 = vld [vmem:[%s15497_s17 + $0x4] ss:$0 sm:$0xff] }
0x2476   : > { %v8938_v51 = vpack.c.bf16 %v8832_v50, %v8832_v50  ;;  %v12969_v52 = vpop.f32.mrb[245].mxu0  ;;  %13023 = vmatprep.subr.bf16.mxu1 %v13686_v3  ;;  %v13440_v50 = vld [vmem:[%s15495_s13 + $0x80] sm:$0xff]  }
0x2477   : > { %v8835_v57 = vpop.f32.mrb[246].mxu0  ;;  %v13442_v52 = vld [vmem:[%s15495_s13 + $0x88] sm:$0xff]  }
0x2478   : > { %v12970_v58 = vpop.f32.mrb[247].mxu0  ;;  %12992 = vmatmul.mubr.msk.bf16.vlgmr.msra.gmra.mrb[252].mxu0 %vm2122_vm4, %v8938_v51  ;;  %v13441_v51 = vld [vmem:[%s15495_s13 + $0x90] sm:$0xff]   ;;  %v13444_v57 = vld [vmem:[%s15495_s13 + $0xa0] sm:$0xff]  }
0x2479   : > { %13002 = vmatpush3.bf16.msra.mxu0 %v9083_v53  ;;  %13003 = vmatprep.mubr.msk.bf16.mxu0 %vm13687_vm0, %v13686_v3  ;;  %v13443_v53 = vld [vmem:[%s15495_s13 + $0x98] sm:$0xff]   ;;  %v13445_v58 = vld [vmem:[%s15495_s13 + $0xb0] sm:$0xff]  }
0x247a   : > { %13015 = vmatprep.subr.bf16.mxu0 %v13686_v3 }
0x247d   : > { %v8924_v59 = vpop.f32.mrb[248].mxu0 }
0x247e   : > { %v8940_v62 = vpack.c.bf16 %v8924_v59, %v8924_v59  ;;  %v12981_v63 = vpop.f32.mrb[249].mxu0  ;;  %v13446_v59 = vld [vmem:[%s15495_s13 + $0xa8] sm:$0xff]  }
0x247f   : > { %v8927_v0 = vpop.f32.mrb[250].mxu0  ;;  %v13448_v63 = vld [vmem:[%s15495_s13 + $0xc0] sm:$0xff]  }
0x2480   : > { %v12982_v56 = vpop.f32.mrb[251].mxu0  ;;  %13004 = vmatmul.mubr.msk.bf16.vlgmr.msra.gmra.mrb[0].mxu0 %vm2122_vm4, %v8940_v62  ;;  %v13447_v62 = vld [vmem:[%s15495_s13 + $0xb8] sm:$0xff]   ;;  %v13449_v0 = vld [vmem:[%s15495_s13 + $0xd0] sm:$0xff]  }
0x2481   : > { %13019 = vmatprep.mubr.msk.bf16.mxu0 %vm13687_vm0, %v13686_v3  ;;  %13016 = vmatpush3.bf16.msra.mxu0 %v13433_v32  ;;  %v13450_v56 = vld [vmem:[%s15495_s13 + $0xc8] sm:$0xff]  }
0x2482   : > { %13017 = vmatprep.subr.bf16.mxu0 %v13686_v3 }
0x2485   : > { %13018 = vmatpush3.bf16.msra.mxu0 %v13435_v36  ;;  %v11539_v36 = vld [vmem:[%s15497_s17 + $0x5] ss:$0 sm:$0xff] }
0x2486   : > { %13031 = vmatprep.subr.bf16.mxu0 %v13686_v3 }
0x253b   : > { %v8981_v1 = vpop.f32.mrb[244].mxu1 }
0x253c   : > { %v12987_v38 = vpop.f32.mrb[245].mxu1  ;;  %v9125_v5 = vsel %vm1498_vm3, %v8981_v1, 0.0  ;;  %v13451_v1 = vld [vmem:[%s15495_s13 + $0xd8] sm:$0xff]  }
0x253d   : > { %v8984_v46 = vpop.f32.mrb[246].mxu1  ;;  %v13452_v38 = vld [vmem:[%s15495_s13 + $0xe0] sm:$0xff]  }
0x253e   : > { %v12988_v2 = vpop.f32.mrb[247].mxu1  ;;  %v13453_v46 = vld [vmem:[%s15495_s13 + $0xf0] sm:$0xff]  }
0x253f   : > { %v13454_v2 = vld [vmem:[%s15495_s13 + $0xe8] sm:$0xff]  }
0x2543   : > { %v9073_v47 = vpop.f32.mrb[248].mxu1 }
0x2544   : > { %v12999_v4 = vpop.f32.mrb[249].mxu1  ;;  %v9128_v14 = vsel %vm1498_vm3, %v9073_v47, 0.0  ;;  %v13455_v47 = vld [vmem:[%s15495_s13 + $0xf8] sm:$0xff]   ;;  %s10868_s13 = scalar_lea.sflag [#allocation3], %s1251_s2 }
0x2545   : > { %v9076_v6 = vpop.f32.mrb[250].mxu1 }
0x2546   : > { %v13000_v7 = vpop.f32.mrb[251].mxu1 }
0x254b   : > { %v9027_v9 = vpop.f32.mrb[252].mxu0 }
0x254c   : > { %v9126_v13 = vsel %vm1498_vm3, %v9027_v9, 0.0  ;;  %v12993_v10 = vpop.f32.mrb[253].mxu0 }
0x254d   : > { %v9127_v15 = vadd.f32 %v9126_v13, %v9125_v5  ;;  %v9030_v11 = vpop.f32.mrb[254].mxu0 }
0x254e   : > { %v12994_v48 = vpop.f32.mrb[255].mxu0 }
0x254f   : > { %v9129_v61 = vadd.f32 %v9128_v14, %v9127_v15 }
0x2553   : > { %v9119_v60 = vpop.f32.mrb[0].mxu0 }
0x2554   : > { %v9130_v16 = vsel %vm1498_vm3, %v9119_v60, 0.0  ;;  %v13005_v31 = vpop.f32.mrb[1].mxu0 }
0x2555   : > { %v9131_v20 = vadd.f32 %v9130_v16, %v9129_v61  ;;  %v9122_v21 = vpop.f32.mrb[2].mxu0  ;;  %v11594_v31 = vld [vmem:[%s15496_s14 + $0x8] ss:$0 sm:$0xff] }
0x2556   : > { %v13006_v18 = vpop.f32.mrb[3].mxu0 }
0x2557   : > { %v9138_v23 = vadd.f32 %v11513_v54, %v9131_v20  ;;  %v11595_v20 = vld [vmem:[%s15496_s14 + $0x9] ss:$0 sm:$0xff] }
0x2559   : > { %v9139_v24 = vadd.f32 %v9138_v23, %v14915_v26 }
0x255b   : > { %v9144_v8 = vsel %vm1498_vm3, %v9139_v24, 0.0 }
0x255c   : > { %9145 = vadd.xlane.f32.xlu0 %v9144_v8 }
0x25e9   : > { %v9146_v25 = vpop.xlane.xlu0 %9145 }
0x25ea   : > { %v9147_v27 = vmul.f32 0.03125, %v9146_v25 }
0x25ec   : > { %v9148_v22 = vsub.f32 %v9139_v24, %v9147_v27 }
0x25ee   : > { %v9149_v28 = vmul.f32 %v9148_v22, %v9148_v22 }
0x25f0   : > { %v9150_v29 = vsel %vm1498_vm3, %v9149_v28, 0.0 }
0x25f1   : > { %9151 = vadd.xlane.f32.xlu1 %v9150_v29 }
0x267e   : > { %v9152_v26 = vpop.xlane.xlu1 %9151 }
0x267f   : > { %v9153_v37 = vmul.f32 0.03125, %v9152_v26 }
0x2681   : > { %v9154_v19 = vadd.f32 1e-05, %v9153_v37 }
0x2683   : > { %13558 = vrsqrt.f32 %v9154_v19  ;;  %v11596_v19 = vld [vmem:[%s15496_s14 + $0xa] ss:$0 sm:$0xff] }
0x268d   : > { %v13559_v39 = vpop.eup %13558 }
0x268e   : > { %v9156_v35 = vmul.f32 %v13559_v39, %v9148_v22  ;;  %v11597_v39 = vld [vmem:[%s15496_s14 + $0xb] ss:$0 sm:$0xff] }
0x2690   : > { %v9163_v41 = vmul.f32 %v11516_v34, %v9156_v35 }
0x2692   : > { %v15121_v42 = vadd.f32 %v11517_v40, %v9163_v41 }
0x2694   : > { %v9193_v44 = vpack.c.bf16 %v15121_v42, %v15121_v42 }
0x2696   : > { %13012 = vmatmul.mubr.msk.bf16.vlgmr.msra.gmra.mrb[252].mxu1 %vm1498_vm3, %v9193_v44  ;;  %13020 = vmatmul.mubr.msk.bf16.vlgmr.msra.gmra.mrb[4].mxu0 %vm1498_vm3, %v9193_v44 }
0x2697   : > { %13024 = vmatpush3.bf16.msra.mxu1 %v13436_v43  ;;  %13032 = vmatpush3.bf16.msra.mxu0 %v13437_v33 }
0x2698   : > { %13025 = vmatprep.subr.bf16.mxu1 %v13686_v3  ;;  %13033 = vmatprep.subr.bf16.mxu0 %v13686_v3 }
0x2699   : > { %13027 = vmatprep.mubr.msk.bf16.mxu1 %vm13687_vm0, %v13686_v3  ;;  %13035 = vmatprep.mubr.msk.bf16.mxu0 %vm13687_vm0, %v13686_v3 }
0x269b   : > { %13026 = vmatpush3.bf16.msra.mxu1 %v13438_v45  ;;  %13034 = vmatpush3.bf16.msra.mxu0 %v13439_v49 }
0x269c   : > { %13039 = vmatprep.subr.bf16.mxu1 %v13686_v3  ;;  %13047 = vmatprep.subr.bf16.mxu0 %v13686_v3 }
0x269e   : > { %13028 = vmatmul.mubr.msk.bf16.vlgmr.msra.gmra.mrb[0].mxu1 %vm1498_vm3, %v9193_v44  ;;  %13036 = vmatmul.mubr.msk.bf16.vlgmr.msra.gmra.mrb[8].mxu0 %vm1498_vm3, %v9193_v44 }
0x269f   : > { %13040 = vmatpush3.bf16.msra.mxu1 %v13440_v50  ;;  %13048 = vmatpush3.bf16.msra.mxu0 %v13441_v51 }
0x26a0   : > { %13041 = vmatprep.subr.bf16.mxu1 %v13686_v3  ;;  %13049 = vmatprep.subr.bf16.mxu0 %v13686_v3 }
0x26a1   : > { %13043 = vmatprep.mubr.msk.bf16.mxu1 %vm13687_vm0, %v13686_v3  ;;  %13051 = vmatprep.mubr.msk.bf16.mxu0 %vm13687_vm0, %v13686_v3 }
0x26a3   : > { %13042 = vmatpush3.bf16.msra.mxu1 %v13442_v52  ;;  %13050 = vmatpush3.bf16.msra.mxu0 %v13443_v53 }
0x26a4   : > { %13055 = vmatprep.subr.bf16.mxu1 %v13686_v3  ;;  %13063 = vmatprep.subr.bf16.mxu0 %v13686_v3 }
0x26a6   : > { %13044 = vmatmul.mubr.msk.bf16.vlgmr.msra.gmra.mrb[4].mxu1 %vm1498_vm3, %v14721_v55  ;;  %13052 = vmatmul.mubr.msk.bf16.vlgmr.msra.gmra.mrb[12].mxu0 %vm1498_vm3, %v14721_v55 }
0x26a7   : > { %13056 = vmatpush3.bf16.msra.mxu1 %v13444_v57  ;;  %13064 = vmatpush3.bf16.msra.mxu0 %v13445_v58 }
0x26a8   : > { %13057 = vmatprep.subr.bf16.mxu1 %v13686_v3  ;;  %13065 = vmatprep.subr.bf16.mxu0 %v13686_v3 }
0x26a9   : > { %13059 = vmatprep.mubr.msk.bf16.mxu1 %vm13687_vm0, %v13686_v3  ;;  %13067 = vmatprep.mubr.msk.bf16.mxu0 %vm13687_vm0, %v13686_v3 }
0x26ab   : > { %13058 = vmatpush3.bf16.msra.mxu1 %v13446_v59  ;;  %13066 = vmatpush3.bf16.msra.mxu0 %v13447_v62  ;;  %v11540_v62 = vld [vmem:[%s15497_s17 + $0x6] ss:$0 sm:$0xff] }
0x26ac   : > { %13071 = vmatprep.subr.bf16.mxu1 %v13686_v3  ;;  %13079 = vmatprep.subr.bf16.mxu0 %v13686_v3 }
0x26ae   : > { %13060 = vmatmul.mubr.msk.bf16.vlgmr.msra.gmra.mrb[8].mxu1 %vm1498_vm3, %v14721_v55  ;;  %13068 = vmatmul.mubr.msk.bf16.vlgmr.msra.gmra.mrb[16].mxu0 %vm1498_vm3, %v14721_v55 }
0x26af   : > { %13072 = vmatpush3.bf16.msra.mxu1 %v13448_v63  ;;  %13080 = vmatpush3.bf16.msra.mxu0 %v13449_v0  ;;  %v11541_v63 = vld [vmem:[%s15497_s17 + $0x7] ss:$0 sm:$0xff] }
0x26b0   : > { %13073 = vmatprep.subr.bf16.mxu1 %v13686_v3  ;;  %13081 = vmatprep.subr.bf16.mxu0 %v13686_v3 }
0x26b1   : > { %13075 = vmatprep.mubr.msk.bf16.mxu1 %vm13687_vm0, %v13686_v3  ;;  %13083 = vmatprep.mubr.msk.bf16.mxu0 %vm13687_vm0, %v13686_v3 }
0x26b3   : > { %13074 = vmatpush3.bf16.msra.mxu1 %v13450_v56  ;;  %13082 = vmatpush3.bf16.msra.mxu0 %v13451_v1  ;;  %v11598_v1 = vld [vmem:[%s15496_s14 + $0xc] ss:$0 sm:$0xff] }
0x26b4   : > { %13087 = vmatprep.subr.bf16.mxu1 %v13686_v3  ;;  %13095 = vmatprep.subr.bf16.mxu0 %v13686_v3 }
0x26b6   : > { %13076 = vmatmul.mubr.msk.bf16.vlgmr.msra.gmra.mrb[12].mxu1 %vm1498_vm3, %v14721_v55  ;;  %13084 = vmatmul.mubr.msk.bf16.vlgmr.msra.gmra.mrb[20].mxu0 %vm1498_vm3, %v14721_v55 }
0x26b7   : > { %13088 = vmatpush3.bf16.msra.mxu1 %v13452_v38  ;;  %13096 = vmatpush3.bf16.msra.mxu0 %v13453_v46  ;;  %v11599_v38 = vld [vmem:[%s15496_s14 + $0xd] ss:$0 sm:$0xff] }
0x26b8   : > { %13089 = vmatprep.subr.bf16.mxu1 %v13686_v3  ;;  %13097 = vmatprep.subr.bf16.mxu0 %v13686_v3 }
0x26b9   : > { %13091 = vmatprep.mubr.msk.bf16.mxu1 %vm13687_vm0, %v13686_v3  ;;  %13099 = vmatprep.mubr.msk.bf16.mxu0 %vm13687_vm0, %v13686_v3 }
0x26bb   : > { %13090 = vmatpush3.bf16.msra.mxu1 %v13454_v2  ;;  %13098 = vmatpush3.bf16.msra.mxu0 %v13455_v47 }
0x26bc   : > { %13103 = vmatprep.subr.bf16.mxu1 %v13686_v3  ;;  %13109 = vmatprep.subr.bf16.mxu0 %v13686_v3 }
0x26be   : > { %13092 = vmatmul.mubr.msk.bf16.vlgmr.msra.gmra.mrb[16].mxu1 %vm1498_vm3, %v14721_v55  ;;  %13100 = vmatmul.mubr.msk.bf16.vlgmr.msra.gmra.mrb[24].mxu0 %vm1498_vm3, %v14721_v55 }
0x26bf   : > { %13105 = vmatprep.mubr.msk.bf16.mxu1 %vm13687_vm0, %v13686_v3  ;;  %13111 = vmatprep.mubr.msk.bf16.mxu0 %vm13687_vm0, %v13686_v3 }
0x2769   : > { %v9267_v4 = vpop.f32.mrb[252].mxu1  ;;  %v9319_v6 = vpop.f32.mrb[4].mxu0 }
0x276a   : > { %v13013_v7 = vpop.f32.mrb[253].mxu1  ;;  %v13021_v9 = vpop.f32.mrb[5].mxu0  ;;  %v9268_v34 = vadd.f32 %v11538_v17, %v9267_v4  ;;  %v9320_v35 = vadd.f32 %v11539_v36, %v9319_v6 }
0x276b   : > { %v9270_v5 = vpop.f32.mrb[254].mxu1  ;;  %v9322_v13 = vpop.f32.mrb[6].mxu0 }
0x276c   : > { %v13014_v10 = vpop.f32.mrb[255].mxu1  ;;  %v13022_v15 = vpop.f32.mrb[7].mxu0  ;;  %v9935_v51 = vpack.c.bf16 %v9268_v34, %v9268_v34  ;;  %v9936_v52 = vpack.c.bf16 %v9320_v35, %v9320_v35 }
0x2771   : > { %v9371_v11 = vpop.f32.mrb[0].mxu1  ;;  %v9423_v14 = vpop.f32.mrb[8].mxu0 }
0x2772   : > { %v13029_v48 = vpop.f32.mrb[1].mxu1  ;;  %v13037_v55 = vpop.f32.mrb[9].mxu0  ;;  %v9372_v46 = vadd.f32 %v11540_v62, %v9371_v11  ;;  %v9424_v2 = vadd.f32 %v11541_v63, %v9423_v14 }
0x2773   : > { %v9374_v61 = vpop.f32.mrb[2].mxu1  ;;  %v9426_v60 = vpop.f32.mrb[10].mxu0 }
0x2774   : > { %v13030_v54 = vpop.f32.mrb[3].mxu1  ;;  %v13038_v16 = vpop.f32.mrb[11].mxu0  ;;  %v9937_v15 = vpack.c.bf16 %v9372_v46, %v9372_v46  ;;  %v9938_v11 = vpack.c.bf16 %v9424_v2, %v9424_v2 }
0x2779   : > { %v9565_v21 = vpop.f32.mrb[4].mxu1  ;;  %v9617_v18 = vpop.f32.mrb[12].mxu0 }
0x277a   : > { %v9566_v23 = vadd.f32 %v11594_v31, %v9565_v21  ;;  %v9618_v24 = vadd.f32 %v11595_v20, %v9617_v18  ;;  %v13045_v8 = vpop.f32.mrb[5].mxu1  ;;  %v13053_v25 = vpop.f32.mrb[13].mxu0 }
0x277b   : > { %v9568_v27 = vpop.f32.mrb[6].mxu1  ;;  %v9620_v22 = vpop.f32.mrb[14].mxu0 }
0x277c   : > { %v9939_v28 = vpack.c.bf16 %v9566_v23, %v9566_v23  ;;  %v9940_v29 = vpack.c.bf16 %v9618_v24, %v9618_v24  ;;  %v13046_v30 = vpop.f32.mrb[7].mxu1  ;;  %v13054_v32 = vpop.f32.mrb[15].mxu0 }
0x277e   : > { %v9947_v26 = vsel %vm2122_vm4, %v9939_v28, 0  ;;  %v9993_v37 = vsel %vm2122_vm4, %v9940_v29, 0 }
0x277f   : > { %13104 = vmatpush3.bf16.xpose.msra.mxu1 %v9947_v26  ;;  %13110 = vmatpush3.bf16.xpose.msra.mxu0 %v9993_v37 }
0x2780   : > { %13115 = vmatprep.subr.bf16.mxu1 %v13686_v3  ;;  %13121 = vmatprep.subr.bf16.mxu0 %v13686_v3 }
0x2781   : > { %v9669_v40 = vpop.f32.mrb[8].mxu1  ;;  %v9721_v41 = vpop.f32.mrb[16].mxu0 }
0x2782   : > { %v9670_v43 = vadd.f32 %v11596_v19, %v9669_v40  ;;  %v9722_v33 = vadd.f32 %v11597_v39, %v9721_v41  ;;  %v13061_v44 = vpop.f32.mrb[9].mxu1  ;;  %v13069_v45 = vpop.f32.mrb[17].mxu0 }
0x2783   : > { %v9672_v49 = vpop.f32.mrb[10].mxu1  ;;  %v9724_v50 = vpop.f32.mrb[18].mxu0 }
0x2784   : > { %v9941_v53 = vpack.c.bf16 %v9670_v43, %v9670_v43  ;;  %v9942_v57 = vpack.c.bf16 %v9722_v33, %v9722_v33  ;;  %v13062_v58 = vpop.f32.mrb[11].mxu1  ;;  %v13070_v59 = vpop.f32.mrb[19].mxu0 }
0x2786   : > { %v10039_v0 = vsel %vm2122_vm4, %v9941_v53, 0  ;;  %v10085_v56 = vsel %vm2122_vm4, %v9942_v57, 0  ;;  %13106 = vmatmul.mubr.msk.bf16.vlgmr.msra.gmra.mrb[20].mxu1 %vm2122_vm4, %v9935_v51  ;;  %13112 = vmatmul.mubr.msk.bf16.vlgmr.msra.gmra.mrb[28].mxu0 %vm2122_vm4, %v9936_v52 }
0x2787   : > { %13116 = vmatpush3.bf16.xpose.msra.mxu1 %v10039_v0  ;;  %13122 = vmatpush3.bf16.xpose.msra.mxu0 %v10085_v56 }
0x2788   : > { %13117 = vmatprep.mubr.msk.bf16.mxu1 %vm13687_vm0, %v13686_v3  ;;  %13123 = vmatprep.mubr.msk.bf16.mxu0 %vm13687_vm0, %v13686_v3 }
0x2789   : > { %v9773_v47 = vpop.f32.mrb[12].mxu1  ;;  %v9825_v4 = vpop.f32.mrb[20].mxu0  ;;  %13127 = vmatprep.subr.bf16.mxu1 %v13686_v3  ;;  %13133 = vmatprep.subr.bf16.mxu0 %v13686_v3 }
0x278a   : > { %v9774_v6 = vadd.f32 %v11598_v1, %v9773_v47  ;;  %v9826_v7 = vadd.f32 %v11599_v38, %v9825_v4  ;;  %v13077_v9 = vpop.f32.mrb[13].mxu1  ;;  %v13085_v5 = vpop.f32.mrb[21].mxu0 }
0x278b   : > { %v9776_v13 = vpop.f32.mrb[14].mxu1  ;;  %v9828_v10 = vpop.f32.mrb[22].mxu0 }
0x278c   : > { %v10183_v14 = vpack.c.bf16 %v9774_v6, %v9774_v6  ;;  %v10184_v48 = vpack.c.bf16 %v9826_v7, %v9826_v7  ;;  %v13078_v55 = vpop.f32.mrb[15].mxu1  ;;  %v13086_v61 = vpop.f32.mrb[23].mxu0 }
0x278d   : > { %v11600_v55 = vld [vmem:[%s15496_s14 + $0xe] ss:$0 sm:$0xff]  ;;  %v11601_v61 = vld [vmem:[%s15496_s14 + $0xf] ss:$0 sm:$0xff]  ;;  %s13580_s14 = scalar_lea.vmem %s15344_s8, 128 }
0x278e   : > { %v10191_v60 = vsel %vm2376_vm5, %v10183_v14, 0  ;;  %v10237_v54 = vsel %vm2376_vm5, %v10184_v48, 0  ;;  %13118 = vmatmul.mubr.msk.bf16.vlgmr.msra.gmra.mrb[24].mxu1 %vm2122_vm4, %v9937_v15  ;;  %13124 = vmatmul.mubr.msk.bf16.vlgmr.msra.gmra.mrb[32].mxu0 %vm2122_vm4, %v9938_v11  ;;  %p13581_p11 = scmp.ne.s32.totalorder %s15344_s8, %s13580_s14 }
0x278f   : > { %13128 = vmatpush3.bf16.msra.mxu1 %v10191_v60  ;;  %13134 = vmatpush3.bf16.msra.mxu0 %v10237_v54 }
0x2790   : > { %13129 = vmatprep.mubr.msk.bf16.mxu1 %vm13687_vm0, %v13686_v3  ;;  %13135 = vmatprep.mubr.msk.bf16.mxu0 %vm13687_vm0, %v13686_v3  ;;  %p13582_p12 = pnand %p13581_p11, %p13943_p5 }
0x2791   : > { %v15241_v16 = vpop.f32.mrb[16].mxu1  ;;  %v15243_v31 = vpop.f32.mrb[24].mxu0  ;;  %13139 = vmatprep.subr.bf16.mxu1 %v13686_v3  ;;  %13145 = vmatprep.subr.bf16.mxu0 %v13686_v3 }
0x2792   : > { %v13093_v20 = vpop.f32.mrb[17].mxu1  ;;  %v13101_v21 = vpop.f32.mrb[25].mxu0  ;;  %v9878_v60 = vadd.f32 %v11600_v55, %v15241_v16  ;;  %p13583_p13 = pneg %p13582_p12 }
0x2793   : > { %v9880_v18 = vpop.f32.mrb[18].mxu1  ;;  %v9932_v23 = vpop.f32.mrb[26].mxu0  ;;  %v9930_v20 = vadd.f32 %v11601_v61, %v15243_v31 }
0x2794   : > { %v13094_v24 = vpop.f32.mrb[19].mxu1  ;;  %v13102_v8 = vpop.f32.mrb[27].mxu0 }
0x2795   : > { %v10185_v24 = vpack.c.bf16 %v9878_v60, %v9878_v60 }
0x2859   : > { %v9983_v25 = vpop.f32.mrb[20].mxu1  ;;  %v10029_v27 = vpop.f32.mrb[28].mxu0 }
0x285a   : > { %v10127_v22 = vmul.f32 0.35355338, %v9983_v25  ;;  %v10128_v28 = vmul.f32 0.35355338, %v10029_v27  ;;  %v13107_v29 = vpop.f32.mrb[21].mxu1  ;;  %v13113_v30 = vpop.f32.mrb[29].mxu0  ;;  %v10186_v25 = vpack.c.bf16 %v9930_v20, %v9930_v20 }
0x285b   : > { %v9986_v32 = vpop.f32.mrb[22].mxu1  ;;  %v10032_v17 = vpop.f32.mrb[30].mxu0  ;;  %v10283_v29 = vsel %vm2376_vm5, %v10185_v24, 0  ;;  %v11634_v30 = vld [vmem:[%s15498_s19 + $0x10] sm:$0xf] }
0x285c   : > { %v13108_v36 = vpop.f32.mrb[23].mxu1  ;;  %v13114_v26 = vpop.f32.mrb[31].mxu0  ;;  %v10131_v37 = vadd.f32 %v10127_v22, %v13973_v12  ;;  %v10132_v19 = vadd.f32 %v10128_v28, %v13973_v12  ;;  %v10329_v16 = vsel %vm2376_vm5, %v10186_v25, 0 }
0x285d   : > { %v11635_v36 = vld [vmem:[%s15498_s19 + $0x14] sm:$0xf] }
0x285e   : > { %v10135_v39 = vsel %vm2122_vm4, %v10131_v37, -inf  ;;  %v10138_v34 = vsel %vm2122_vm4, %v10132_v19, -inf }
0x285f   : > { %10136 = vmax.xlane.f32.xlu0 %v10135_v39  ;;  %10139 = vmax.xlane.f32.xlu1 %v10138_v34  ;;  %v10432_v34 = vsel %vm2376_vm5, %v11635_v36, 0  ;;  %v13456_v36 = vld [vmem:[%s15500_s22 + $0x10] sm:$0xff]  }
0x2861   : > { %v10075_v35 = vpop.f32.mrb[24].mxu1  ;;  %v10121_v40 = vpop.f32.mrb[32].mxu0 }
0x2862   : > { %v10129_v41 = vmul.f32 0.35355338, %v10075_v35  ;;  %v10130_v43 = vmul.f32 0.35355338, %v10121_v40  ;;  %v13119_v33 = vpop.f32.mrb[25].mxu1  ;;  %v13125_v44 = vpop.f32.mrb[33].mxu0 }
0x2863   : > { %v10078_v45 = vpop.f32.mrb[26].mxu1  ;;  %v10124_v49 = vpop.f32.mrb[34].mxu0  ;;  %v11636_v35 = vld [vmem:[%s15498_s19 + $0x18] sm:$0xf]  ;;  %v11637_v40 = vld [vmem:[%s15498_s19 + $0x1c] sm:$0xf] }
0x2864   : > { %v13120_v50 = vpop.f32.mrb[27].mxu1  ;;  %v13126_v51 = vpop.f32.mrb[35].mxu0  ;;  %v10133_v52 = vadd.f32 %v10129_v41, %v13973_v12  ;;  %v10134_v53 = vadd.f32 %v10130_v43, %v13973_v12  ;;  %v10478_v45 = vsel %vm2376_vm5, %v11636_v35, 0 }
0x2866   : > { %v10141_v57 = vsel %vm2122_vm4, %v10133_v52, -inf  ;;  %v10144_v58 = vsel %vm2122_vm4, %v10134_v53, -inf }
0x2867   : > { %10142 = vmax.xlane.f32.xlu0 %v10141_v57  ;;  %10145 = vmax.xlane.f32.xlu1 %v10144_v58 }
0x28ec   : > { %v10137_v59 = vpop.xlane.xlu0 %10136  ;;  %v10140_v62 = vpop.xlane.xlu1 %10139 }
0x28ed   : > { %v10147_v63 = vsub.f32 %v10131_v37, %v10137_v59  ;;  %v10148_v0 = vsub.f32 %v10132_v19, %v10140_v62  ;;  %v10386_v19 = vsel %vm2376_vm5, %v11634_v30, 0 }
0x28ef   : > { %v10151_v56 = vmul.f32 1.442695, %v10147_v63  ;;  %v10153_v1 = vmul.f32 1.442695, %v10148_v0 }
0x28f1   : > { %13560 = vpow2.f32 %v10151_v56 }
0x28f2   : > { %13562 = vpow2.f32 %v10153_v1 }
0x28f4   : > { %v10143_v38 = vpop.xlane.xlu0 %10142  ;;  %v10146_v46 = vpop.xlane.xlu1 %10145 }
0x28f5   : > { %v10149_v2 = vsub.f32 %v10133_v52, %v10143_v38  ;;  %v10150_v47 = vsub.f32 %v10134_v53, %v10146_v46  ;;  %v10524_v52 = vsel %vm2376_vm5, %v11637_v40, 0  ;;  %v11646_v40 = vld [vmem:[%s15502_s24 + $0x1] ss:$0 sm:$0xff] }
0x28f7   : > { %v10155_v4 = vmul.f32 1.442695, %v10149_v2  ;;  %v10157_v12 = vmul.f32 1.442695, %v10150_v47 }
0x28f9   : > { %13564 = vpow2.f32 %v10155_v4 }
0x28fa   : > { %13566 = vpow2.f32 %v10157_v12 }
0x28fb   : > { %v13561_v6 = vpop.eup %13560 }
0x28fc   : > { %v13563_v7 = vpop.eup %13562  ;;  %v10159_v9 = vsel %vm2122_vm4, %v13561_v6, 0.0 }
0x28fd   : > { %10160 = vadd.xlane.f32.xlu0 %v10159_v9  ;;  %v10162_v5 = vsel %vm2122_vm4, %v13563_v7, 0.0 }
0x28fe   : > { %10163 = vadd.xlane.f32.xlu1 %v10162_v5 }
0x2903   : > { %v13565_v13 = vpop.eup %13564 }
0x2904   : > { %v13567_v10 = vpop.eup %13566  ;;  %v10165_v15 = vsel %vm2122_vm4, %v13565_v13, 0.0 }
0x2905   : > { %10166 = vadd.xlane.f32.xlu0 %v10165_v15  ;;  %v10168_v11 = vsel %vm2122_vm4, %v13567_v10, 0.0 }
0x2906   : > { %10169 = vadd.xlane.f32.xlu1 %v10168_v11 }
0x298a   : > { %v10161_v14 = vpop.xlane.xlu0 %10160 }
0x298b   : > { %13568 = vrcp.f32 %v10161_v14  ;;  %v10164_v48 = vpop.xlane.xlu1 %10163 }
0x298c   : > { %13570 = vrcp.f32 %v10164_v48 }
0x2992   : > { %v10167_v54 = vpop.xlane.xlu0 %10166 }
0x2993   : > { %13572 = vrcp.f32 %v10167_v54  ;;  %v10170_v21 = vpop.xlane.xlu1 %10169 }
0x2994   : > { %13574 = vrcp.f32 %v10170_v21 }
0x2995   : > { %v13569_v18 = vpop.eup %13568 }
0x2996   : > { %v13571_v23 = vpop.eup %13570  ;;  %v10175_v8 = vmul.f32 %v13569_v18, %v13561_v6  ;;  %v11643_v18 = vld [vmem:[%s15499_s20 + $0x1] ss:$0 sm:$0xff] }
0x2997   : > { %v10176_v27 = vmul.f32 %v13571_v23, %v13563_v7 }
0x2998   : > { %v10179_v22 = vpack.c.bf16 %v10175_v8, %v10175_v8 }
0x2999   : > { %v10180_v28 = vpack.c.bf16 %v10176_v27, %v10176_v27 }
0x299a   : > { %13130 = vmatmul.mubr.msk.bf16.vlgmr.msra.gmra.mrb[28].mxu1 %vm2122_vm4, %v10179_v22 }
0x299b   : > { %13136 = vmatmul.mubr.msk.bf16.vlgmr.msra.gmra.mrb[36].mxu0 %vm2122_vm4, %v10180_v28  ;;  %13140 = vmatpush3.bf16.msra.mxu1 %v10283_v29 }
0x299c   : > { %13146 = vmatpush3.bf16.msra.mxu0 %v10329_v16  ;;  %13141 = vmatprep.mubr.msk.bf16.mxu1 %vm13687_vm0, %v13686_v3 }
0x299d   : > { %v13573_v31 = vpop.eup %13572  ;;  %13147 = vmatprep.mubr.msk.bf16.mxu0 %vm13687_vm0, %v13686_v3  ;;  %13151 = vmatprep.subr.bf16.mxu1 %v13686_v3 }
0x299e   : > { %v13575_v32 = vpop.eup %13574  ;;  %v10177_v17 = vmul.f32 %v13573_v31, %v13565_v13  ;;  %13157 = vmatprep.subr.bf16.mxu0 %v13686_v3 }
0x299f   : > { %v10178_v26 = vmul.f32 %v13575_v32, %v13567_v10 }
0x29a0   : > { %v10181_v37 = vpack.c.bf16 %v10177_v17, %v10177_v17 }
0x29a1   : > { %v10182_v39 = vpack.c.bf16 %v10178_v26, %v10178_v26  ;;  %v13457_v26 = vld [vmem:[%s15500_s22 + $0x18] sm:$0xff]  }
0x29a2   : > { %13142 = vmatmul.mubr.msk.bf16.vlgmr.msra.gmra.mrb[32].mxu1 %vm2122_vm4, %v10181_v37  ;;  %v13459_v37 = vld [vmem:[%s15501_s23 + $0x28] sm:$0xff]  }
0x29a3   : > { %13148 = vmatmul.mubr.msk.bf16.vlgmr.msra.gmra.mrb[40].mxu0 %vm2122_vm4, %v10182_v39  ;;  %13152 = vmatpush3.bf16.msra.mxu1 %v10386_v19 }
0x29a4   : > { %13158 = vmatpush3.bf16.msra.mxu0 %v10432_v34  ;;  %13153 = vmatprep.mubr.msk.bf16.mxu1 %vm13687_vm0, %v13686_v3 }
0x29a5   : > { %13159 = vmatprep.mubr.msk.bf16.mxu0 %vm13687_vm0, %v13686_v3  ;;  %13163 = vmatprep.subr.bf16.mxu1 %v13686_v3 }
0x29a6   : > { %13169 = vmatprep.subr.bf16.mxu0 %v13686_v3 }
0x2a6d   : > { %v10227_v41 = vpop.f32.mrb[28].mxu1 }
0x2a6e   : > { %v10378_v43 = vpack.c.bf16 %v10227_v41, %v10227_v41  ;;  %v10273_v33 = vpop.f32.mrb[36].mxu0  ;;  %v13131_v44 = vpop.f32.mrb[29].mxu1 }
0x2a6f   : > { %v10379_v49 = vpack.c.bf16 %v10273_v33, %v10273_v33  ;;  %v13137_v50 = vpop.f32.mrb[37].mxu0  ;;  %v10230_v51 = vpop.f32.mrb[30].mxu1 }
0x2a70   : > { %v10276_v53 = vpop.f32.mrb[38].mxu0  ;;  %v13132_v57 = vpop.f32.mrb[31].mxu1  ;;  %13154 = vmatmul.mubr.msk.bf16.vlgmr.msra.gmra.mrb[36].mxu1 %vm2122_vm4, %v10378_v43  ;;  %v11647_v43 = vld [vmem:[%s15503_s25 + $0x1] ss:$0 sm:$0xff]  ;;  %v13461_v50 = vld [vmem:[%s15501_s23 + $0x38] sm:$0xff]  }
0x2a71   : > { %v13138_v58 = vpop.f32.mrb[39].mxu0  ;;  %13160 = vmatmul.mubr.msk.bf16.vlgmr.msra.gmra.mrb[44].mxu0 %vm2122_vm4, %v10379_v49  ;;  %13164 = vmatpush3.bf16.msra.mxu1 %v10478_v45  ;;  %v13460_v49 = vld [vmem:[%s15501_s23 + $0x30] sm:$0xff]   ;;  %v11662_v51 = vld [vmem:[%s15504_s27 + $0x1] ss:$0 sm:$0xff] }
0x2a72   : > { %13170 = vmatpush3.bf16.msra.mxu0 %v10524_v52  ;;  %13165 = vmatprep.mubr.msk.bf16.mxu1 %vm13687_vm0, %v13686_v3 }
0x2a73   : > { %13171 = vmatprep.mubr.msk.bf16.mxu0 %vm13687_vm0, %v13686_v3  ;;  %13175 = vmatprep.subr.bf16.mxu1 %v13686_v3 }
0x2a74   : > { %13183 = vmatprep.subr.bf16.mxu0 %v13686_v3 }
0x2a75   : > { %v10319_v59 = vpop.f32.mrb[32].mxu1 }
0x2a76   : > { %v10380_v62 = vpack.c.bf16 %v10319_v59, %v10319_v59  ;;  %v10365_v63 = vpop.f32.mrb[40].mxu0  ;;  %v13143_v0 = vpop.f32.mrb[33].mxu1 }
0x2a77   : > { %v10381_v56 = vpack.c.bf16 %v10365_v63, %v10365_v63  ;;  %v13149_v1 = vpop.f32.mrb[41].mxu0  ;;  %v10322_v38 = vpop.f32.mrb[34].mxu1  ;;  %v11666_v0 = vld [vmem:[%s15505_s30 + $0x1] ss:$0 sm:$0xff] }
0x2a78   : > { %v10368_v46 = vpop.f32.mrb[42].mxu0  ;;  %v13144_v2 = vpop.f32.mrb[35].mxu1  ;;  %13166 = vmatmul.mubr.msk.bf16.vlgmr.msra.gmra.mrb[40].mxu1 %vm2122_vm4, %v10380_v62 }
0x2a79   : > { %v13150_v47 = vpop.f32.mrb[43].mxu0  ;;  %13172 = vmatmul.mubr.msk.bf16.vlgmr.msra.gmra.mrb[48].mxu0 %vm2122_vm4, %v10381_v56  ;;  %13179 = vmatprep.mubr.msk.bf16.mxu1 %vm13687_vm0, %v13686_v3 }
0x2a7a   : > { %13191 = vmatprep.mubr.msk.bf16.mxu0 %vm13687_vm0, %v13686_v3  ;;  %13176 = vmatpush3.bf16.msra.mxu1 %v13456_v36 }
0x2a7b   : > { %13177 = vmatprep.subr.bf16.mxu1 %v13686_v3 }
0x2a7e   : > { %13178 = vmatpush3.bf16.msra.mxu1 %v13457_v26 }
0x2a7f   : > { %13195 = vmatprep.subr.bf16.mxu1 %v13686_v3 }
0x2b43   : > { %v10422_v4 = vpop.f32.mrb[36].mxu1 }
0x2b44   : > { %v10566_v12 = vsel %vm1498_vm3, %v10422_v4, 0.0  ;;  %v10468_v6 = vpop.f32.mrb[44].mxu0  ;;  %v13155_v7 = vpop.f32.mrb[37].mxu1 }
0x2b45   : > { %v10567_v9 = vsel %vm1498_vm3, %v10468_v6, 0.0  ;;  %v13161_v5 = vpop.f32.mrb[45].mxu0  ;;  %v10425_v13 = vpop.f32.mrb[38].mxu1 }
0x2b46   : > { %v10568_v10 = vadd.f32 %v10567_v9, %v10566_v12  ;;  %v10471_v15 = vpop.f32.mrb[46].mxu0  ;;  %v13156_v11 = vpop.f32.mrb[39].mxu1  ;;  %v13462_v13 = vld [vmem:[%s13893_s21] sm:$0xff]  }
0x2b47   : > { %v13162_v14 = vpop.f32.mrb[47].mxu0 }
0x2b4b   : > { %v10514_v48 = vpop.f32.mrb[40].mxu1 }
0x2b4c   : > { %v10569_v55 = vsel %vm1498_vm3, %v10514_v48, 0.0  ;;  %v10560_v61 = vpop.f32.mrb[48].mxu0  ;;  %v13167_v60 = vpop.f32.mrb[41].mxu1 }
0x2b4d   : > { %v10570_v54 = vadd.f32 %v10569_v55, %v10568_v10  ;;  %v13173_v20 = vpop.f32.mrb[49].mxu0  ;;  %v10517_v21 = vpop.f32.mrb[42].mxu1  ;;  %v10571_v23 = vsel %vm1498_vm3, %v10560_v61, 0.0  ;;  %v13463_v10 = vld [vmem:[%s13893_s21 + $0x8] sm:$0xff]   ;;  %v11674_v55 = vld [vmem:[%s15506_s26 + $0x1] ss:$0 sm:$0xff] }
0x2b4e   : > { %v10563_v24 = vpop.f32.mrb[50].mxu0  ;;  %v13168_v8 = vpop.f32.mrb[43].mxu1  ;;  %v11675_v60 = vld [vmem:[%s13888_s29 + $0x1] ss:$0 sm:$0xff] }
0x2b4f   : > { %v10572_v25 = vadd.f32 %v10571_v23, %v10570_v54  ;;  %v13174_v27 = vpop.f32.mrb[51].mxu0 }
0x2b51   : > { %v10579_v22 = vadd.f32 %v11643_v18, %v10572_v25 }
0x2b53   : > { %v10580_v28 = vadd.f32 %v10579_v22, %v15121_v42  ;;  %v13458_v42 = vld [vmem:[%s15501_s23 + $0x20] sm:$0xff]  }
0x2b54   : > { %13184 = vmatpush3.bf16.msra.mxu0 %v13458_v42 }
0x2b55   : > { %v10585_v29 = vsel %vm1498_vm3, %v10580_v28, 0.0  ;;  %13185 = vmatprep.subr.bf16.mxu0 %v13686_v3 }
0x2b56   : > { %10586 = vadd.xlane.f32.xlu0 %v10585_v29 }
0x2b58   : > { %13186 = vmatpush3.bf16.msra.mxu0 %v13459_v37 }
0x2b59   : > { %13187 = vmatprep.subr.bf16.mxu0 %v13686_v3 }
0x2b5c   : > { %13188 = vmatpush3.bf16.msra.mxu0 %v13460_v49 }
0x2b5d   : > { %13189 = vmatprep.subr.bf16.mxu0 %v13686_v3 }
0x2b60   : > { %13190 = vmatpush3.bf16.msra.mxu0 %v13461_v50 }
0x2be3   : > { %v10587_v16 = vpop.xlane.xlu0 %10586 }
0x2be4   : > { %v10588_v31 = vmul.f32 0.03125, %v10587_v16 }
0x2be6   : > { %v10589_v30 = vsub.f32 %v10580_v28, %v10588_v31 }
0x2be8   : > { %v10590_v32 = vmul.f32 %v10589_v30, %v10589_v30 }
0x2bea   : > { %v10591_v17 = vsel %vm1498_vm3, %v10590_v32, 0.0 }
0x2beb   : > { %10592 = vadd.xlane.f32.xlu1 %v10591_v17 }
0x2c78   : > { %v10593_v19 = vpop.xlane.xlu1 %10592 }
0x2c79   : > { %v10594_v39 = vmul.f32 0.03125, %v10593_v19 }
0x2c7b   : > { %v10595_v34 = vadd.f32 1e-05, %v10594_v39 }
0x2c7d   : > { %13576 = vrsqrt.f32 %v10595_v34 }
0x2c87   : > { %v13577_v35 = vpop.eup %13576 }
0x2c88   : > { %v10597_v41 = vmul.f32 %v13577_v35, %v10589_v30 }
0x2c8a   : > { %v10604_v33 = vmul.f32 %v11646_v40, %v10597_v41 }
0x2c8c   : > { %v10611_v44 = vadd.f32 %v11647_v43, %v10604_v33 }
0x2c8e   : > { %v10630_v45 = vpack.c.bf16 %v10611_v44, %v10611_v44 }
0x2c90   : > { %13180 = vmatmul.mubr.msk.bf16.vlgmr.msra.gmra.mrb[44].mxu1 %vm1498_vm3, %v10630_v45 }
0x2c91   : > { %13199 = vmatprep.mubr.msk.bf16.mxu1 %vm13687_vm0, %v13686_v3  ;;  %13196 = vmatpush3.bf16.msra.mxu1 %v13462_v13 }
0x2c92   : > { %13197 = vmatprep.subr.bf16.mxu1 %v13686_v3  ;;  %v11676_v3 = vld [vmem:[%s15507_s9] ss:$0 sm:$0xff]  ;;  %s13586_s9 = scalar_lea.vmem %s13585_s3, 256 }
0x2c93   : > { %p13588_p1 = scmp.lt.s32.totalorder %s13586_s9, %s13580_s14 }
0x2c95   : > { %13198 = vmatpush3.bf16.msra.mxu1 %v13463_v10  ;;  %p13589_p2 = por %p13588_p1, %p13587_p0 }
0x2c97   : > { %p13590_p3 = pnand %p13589_p2, %p13583_p13 }
0x2d63   : > { %v10686_v52 = vpop.f32.mrb[44].mxu1 }
0x2d64   : > { %v10687_v53 = vadd.f32 %v11662_v51, %v10686_v52  ;;  %v13181_v57 = vpop.f32.mrb[45].mxu1 }
0x2d65   : > { %v10689_v58 = vpop.f32.mrb[46].mxu1 }
0x2d66   : > { %v10692_v59 = vmax.f32 %v10687_v53, 0.0  ;;  %v13182_v62 = vpop.f32.mrb[47].mxu1 }
0x2d68   : > { %v10693_v63 = vpack.c.bf16 %v10692_v59, %v10692_v59 }
0x2d6a   : > { %13192 = vmatmul.mubr.msk.bf16.vlgmr.msra.gmra.mrb[52].mxu0 %vm2904_vm6, %v10693_v63 }
0x2e3d   : > { %v10761_v56 = vpop.f32.mrb[52].mxu0 }
0x2e3e   : > { %v10762_v1 = vadd.f32 %v11666_v0, %v10761_v56  ;;  %v13193_v38 = vpop.f32.mrb[53].mxu0 }
0x2e3f   : > { %v10764_v46 = vpop.f32.mrb[54].mxu0 }
0x2e40   : > { %v13194_v2 = vpop.f32.mrb[55].mxu0  ;;  %v10767_v47 = vadd.f32 %v10762_v1, %v10611_v44 }
0x2e42   : > { %v10772_v4 = vsel %vm1498_vm3, %v10767_v47, 0.0 }
0x2e43   : > { %10773 = vadd.xlane.f32.xlu0 %v10772_v4 }
0x2ed0   : > { %v10774_v12 = vpop.xlane.xlu0 %10773 }
0x2ed1   : > { %v10775_v6 = vmul.f32 0.03125, %v10774_v12 }
0x2ed3   : > { %v10776_v7 = vsub.f32 %v10767_v47, %v10775_v6 }
0x2ed5   : > { %v10777_v9 = vmul.f32 %v10776_v7, %v10776_v7 }
0x2ed7   : > { %v10778_v5 = vsel %vm1498_vm3, %v10777_v9, 0.0 }
0x2ed8   : > { %10779 = vadd.xlane.f32.xlu1 %v10778_v5 }
0x2f65   : > { %v10780_v15 = vpop.xlane.xlu1 %10779 }
0x2f66   : > { %v10781_v11 = vmul.f32 0.03125, %v10780_v15 }
0x2f68   : > { %v10782_v14 = vadd.f32 1e-05, %v10781_v11 }
0x2f6a   : > { %13578 = vrsqrt.f32 %v10782_v14 }
0x2f74   : > { %v13579_v48 = vpop.eup %13578 }
0x2f75   : > { %v10784_v61 = vmul.f32 %v13579_v48, %v10776_v7 }
0x2f77   : > { %v10791_v54 = vmul.f32 %v11674_v55, %v10784_v61 }
0x2f79   : > { %v10798_v20 = vadd.f32 %v11675_v60, %v10791_v54 }
0x2f7b   : > { %v10799_v21 = vpack.c.bf16 %v10798_v20, %v10798_v20 }
0x2f7d   : > { %13200 = vmatmul.mubr.msk.bf16.vlgmr.msra.gmra.mrb[48].mxu1 %vm1498_vm3, %v10799_v21 }
0x3050   : > { %v10860_v18 = vpop.f32.mrb[48].mxu1 }
0x3051   : > { %v10861_v23 = vadd.f32 %v11676_v3, %v10860_v18  ;;  %v13201_v24 = vpop.f32.mrb[49].mxu1 }
0x3052   : > { %v10863_v8 = vpop.f32.mrb[50].mxu1 }
0x3053   : > { %10866 = vst [vmem:[%s1253_s6] sm:$0xff] %v10861_v23  ;;  %v13202_v25 = vpop.f32.mrb[51].mxu1 }
0x3054   : > { %13593 = shalt.err (!%p13590_p3)
}
0x3055   : > { %s13594_s6 = scalar_lea.hbm %s15342_s12, 128  ;;  %s13598_s5 = scalar_lea.hbm %s13903_s4, 256 }
0x3056   : > { %p13595_p4 = scmp.ne.s32.totalorder %s15342_s12, %s13594_s6  ;;  %p13599_p9 = scmp.lt.u32.totalorder %s15342_s12, %s13903_s4 }
0x3057   : > { %p13600_p10 = scmp.lt.u32.totalorder %s13598_s5, %s13594_s6  ;;  %p13602_p12 = scmp.lt.u32.totalorder %s13594_s6, %s15342_s12 }
0x3058   : > { %p13596_p7 = pnand %p13595_p4, %p13943_p5 }
0x3059   : > { %p13601_p11 = por %p13600_p10, %p13599_p9 }
0x305a   : > { %p13597_p8 = pneg %p13596_p7 }
0x305b   : > { %p13603_p0 = por %p13602_p12, %p13601_p11 }
0x305d   : > { %p13604_p13 = pnand %p13603_p0, %p13597_p8 }
0x305f   : > { %13607 = shalt.err (!%p13604_p13)
}
0x3060   : > { %13203 = dma.vmem_to_hbm [thread:$0]  (%p13943_p5), %s15344_s8, 128, %s15342_s12, %s10868_s13  }
0x3061 PF: > { %p13209_p1 = scmp.ge.s32.totalorder %s13642_s15, 2  ;;  %s10893_s9 = sand.u32 1, %s13630_s7  }
0x3062   : > { %s10894_s14 = scalar_lea.sflag [#allocation3], %s10893_s9 }
0x3063   : > { %p13206_p2 = pnand %p13209_p1, %p13947_p6 }
0x3065   : > { %13625 = dma.done.wait (!%p13206_p2), %s10894_s14, 128  }
0x3066   : > { %13627 = vsyncadd (!%p13206_p2), %s10894_s14, 4294967168  ;;  %s15508_s2 = sld [smem:[#allocation44_spill]]  ;;  %p93_p3 = scmp.ge.s32.totalorder %s13930_s18, 4  }
0x3067   : > { %s15509_s7 = smov %s13634_s10  ;;  %s15510_s10 = smov %s13638_s11 }
0x3068   : > { %s15512_s15 = smov %s13930_s18  ;;  %95 = sbr.rel (!%p93_p3) target bundleno = 99 (0x63), region = 298 }
0x306c   : > { %s15511_s11 = smov %s15508_s2 }
0x306f   :  { %10899 = vsyncpa [#allocation3], 1 }
0x3070   :  { %10901 = vsyncpa [#allocation3 + $0x1], 1 }

</bundles_post_ra>
